<compile_context>
chip_gen: v6e
topology: v6e:2x2x1
jax: 0.10.0
libtpu: 0.0.40
codegen_flags: <defaults>
</compile_context>

<pallas_src>
import functools

import jax
import jax.numpy as jnp
from jax import lax
from jax.experimental import pallas as pl
from jax.experimental.pallas import tpu as pltpu


_UNROLL_MAX_S = 32   # full Python unroll up to this seq len, fori_loop beyond


def _round_up(v, m):
    return ((v + m - 1) // m) * m


def _rnn_decoder_kernel(x2d_ref, hcat0_ref, c0_ref, wih_ref, whh_ref, b_ref,
                        hseq_f_ref, hseq_b_ref, h_out_ref, c_out_ref,
                        xg_sc,
                        *, seq_len, batch_pad, hidden_pad, precision):
    S, Bp, Hp = seq_len, batch_pad, hidden_pad
    Gp = 4 * Hp                      # per-direction (gate-padded) width

    # ---- hoisted input projection: all timesteps, both directions, one GEMM.
    # Off the serial chain; bias folded in here (padded gate lanes stay 0).
    # TODO(synk): cast x2d/wih to bf16 for this GEMM on v6e/v7x (halves DMA,
    #             bf16 MXU rate); keep the recurrence / gate math in f32.
    xg_sc[...] = (jnp.dot(x2d_ref[...], wih_ref[...],
                          preferred_element_type=jnp.float32)
                  + b_ref[...])                                   # (S*Bp, 8Hp)

    def lstm_gates(pre, c_prev):
        # Gate slices start at multiples of Hp (>=128): pure vreg selection,
        # no lane rotates; tanh touches only the g gate (no wasted EUP work).
        i = jax.nn.sigmoid(pre[:, 0 * Hp:1 * Hp])
        f = jax.nn.sigmoid(pre[:, 1 * Hp:2 * Hp])
        g = jnp.tanh(pre[:, 2 * Hp:3 * Hp])
        o = jax.nn.sigmoid(pre[:, 3 * Hp:4 * Hp])
        c_new = f * c_prev + i * g
        h_new = o * jnp.tanh(c_new)
        return h_new, c_new

    def step(t, tb, h_cat, c_f, c_b):
        row_f, row_b = t * Bp, tb * Bp
        if not isinstance(t, int):               # dynamic (fori_loop) indices
            row_f = pl.multiple_of(row_f, Bp)
            row_b = pl.multiple_of(row_b, Bp)
        # One block-diagonal dot gives both directions' recurrent term.
        # TODO(synk): on v5e/v6e pin whh in the MXU staging registers across
        #             the recurrence via pltpu.matmul_push_rhs/acc_lhs/pop.
        hh = jnp.dot(h_cat, whh_ref[...],
                     preferred_element_type=jnp.float32,
                     precision=precision)                          # (Bp, 8Hp)
        pre_f = xg_sc[pl.ds(row_f, Bp), 0:Gp] + hh[:, 0:Gp]
        pre_b = xg_sc[pl.ds(row_b, Bp), Gp:2 * Gp] + hh[:, Gp:2 * Gp]
        h_f, c_f = lstm_gates(pre_f, c_f)
        h_b, c_b = lstm_gates(pre_b, c_b)
        hseq_f_ref[t] = h_f                      # lane-dense, tile-aligned
        hseq_b_ref[tb] = h_b                     # separate slab -> no hazard
        return jnp.concatenate([h_f, h_b], axis=1), c_f, c_b

    # state lives in vregs, not VMEM
    h_cat = hcat0_ref[...]                       # (Bp, 2Hp): [fwd | bwd]
    c_f, c_b = c0_ref[0], c0_ref[1]

    if S <= _UNROLL_MAX_S:
        # Small static S: full unroll -> static slices, full LLO visibility.
        for t in range(S):
            h_cat, c_f, c_b = step(t, S - 1 - t, h_cat, c_f, c_b)
    else:
        # Large S: modestly-unrolled fori_loop bounds code size / vreg spill.
        def body(t, carry):
            return step(t, S - 1 - t, *carry)
        h_cat, c_f, c_b = lax.fori_loop(0, S, body, (h_cat, c_f, c_b),
                                        unroll=4)

    h_out_ref[0] = h_cat[:, 0:Hp]
    h_out_ref[1] = h_cat[:, Hp:2 * Hp]
    c_out_ref[0] = c_f
    c_out_ref[1] = c_b


def rnn_decoder_forward(x, h, c, params, *, recurrent_precision=None):
    """Mirrors RnnDecoder.forward.  x: (B, S, I) batch-first; h, c: (B, 2, H).

    recurrent_precision: pass lax.Precision.HIGHEST at long sequence lengths
    if the default bf16-pass MXU precision compounds too much error per step
    (review correctness note); default keeps the fast single-pass MXU path.
    """
    B, S, I = x.shape
    H = params["whh"].shape[1]
    f32 = jnp.float32
    Bp = _round_up(B, 8)             # sublane-pad the batch
    Hp = _round_up(H, 128)           # lane-pad every gate to a 128 boundary
    Gp = 4 * Hp

    def pad_gates(w):                # (rows, 4H) -> (rows, 4Hp), zero-padded
        r = w.shape[0]
        return jnp.pad(w.reshape(r, 4, H).astype(f32),
                       ((0, 0), (0, 0), (0, Hp - H))).reshape(r, 4 * Hp)

    # ---- layout prep in XLA (free plumbing): time-major, padded, block-diag.
    x_t = jnp.transpose(x, (1, 0, 2)).astype(f32)                # (S, B, I)
    x2d = jnp.pad(x_t, ((0, 0), (0, Bp - B), (0, 0))).reshape(S * Bp, I)

    h_t = jnp.transpose(h, (1, 0, 2)).astype(f32)                # (2, B, H)
    c_t = jnp.transpose(c, (1, 0, 2)).astype(f32)
    hcat0 = jnp.zeros((Bp, 2 * Hp), f32)
    hcat0 = hcat0.at[:B, 0:H].set(h_t[0]).at[:B, Hp:Hp + H].set(h_t[1])
    c0 = jnp.zeros((2, Bp, Hp), f32)
    c0 = c0.at[0, :B, :H].set(c_t[0]).at[1, :B, :H].set(c_t[1])

    wih_p = jnp.concatenate([pad_gates(params["wih"][0]),
                             pad_gates(params["wih"][1])], axis=1)   # (I, 8Hp)
    b_p = jnp.concatenate([pad_gates(params["b"][0]),
                           pad_gates(params["b"][1])], axis=1)       # (1, 8Hp)
    whh_bd = jnp.zeros((2 * Hp, 2 * Gp), f32)                        # block-diag
    whh_bd = whh_bd.at[0:H, 0:Gp].set(pad_gates(params["whh"][0]))
    whh_bd = whh_bd.at[Hp:Hp + H, Gp:2 * Gp].set(pad_gates(params["whh"][1]))

    # VMEM budget of the all-resident design (inputs + scratch + outputs);
    # v5e's default scoped limit is only 16 MiB, so request what we need.
    elems = (S * Bp * I + Bp * 2 * Hp + 2 * Bp * Hp + I * 8 * Hp
             + 2 * Hp * 8 * Hp + 8 * Hp                 # inputs
             + S * Bp * 8 * Hp                          # xg scratch
             + 2 * S * Bp * Hp + 2 * 2 * Bp * Hp)       # outputs
    vmem_limit = int(min(64 * 2 ** 20, max(32 * 2 ** 20, 2 * 4 * elems)))

    kernel = functools.partial(_rnn_decoder_kernel, seq_len=S, batch_pad=Bp,
                               hidden_pad=Hp, precision=recurrent_precision)
    vmem = pl.BlockSpec(memory_space=pltpu.MemorySpace.VMEM)

    hseq_f, hseq_b, h_out, c_out = pl.pallas_call(
        kernel,
        out_shape=(
            jax.ShapeDtypeStruct((S, Bp, Hp), f32),    # fwd hidden sequence
            jax.ShapeDtypeStruct((S, Bp, Hp), f32),    # bwd hidden sequence
            jax.ShapeDtypeStruct((2, Bp, Hp), f32),    # final h [fwd, bwd]
            jax.ShapeDtypeStruct((2, Bp, Hp), f32),    # final c [fwd, bwd]
        ),
        in_specs=[vmem] * 6,
        out_specs=(vmem, vmem, vmem, vmem),
        scratch_shapes=[
            pltpu.VMEM((S * Bp, 8 * Hp), f32),         # hoisted x @ W_ih (+b)
        ],
        compiler_params=pltpu.CompilerParams(vmem_limit_bytes=vmem_limit),
    )(x2d, hcat0, c0, wih_p, whh_bd, b_p)

    # ---- epilogue in XLA: tiny position-wise Linear (O is small -> keeping it
    # out of the kernel keeps every kernel store lane-dense) + layout restore.
    hs = jnp.concatenate([hseq_f[:, :B, :H], hseq_b[:, :B, :H]], axis=-1)
    out = (jnp.dot(hs, params["wmlp"], precision=lax.Precision.HIGHEST)
           + params["bmlp"][0])                                  # (S, B, O)
    output = jnp.transpose(out, (1, 0, 2))                       # (B, S, O)
    if S == 1:                                                   # torch .squeeze(1)
        output = output[:, 0, :]
    h_new = jnp.transpose(h_out[:, :B, :H], (1, 0, 2))           # (B, 2, H)
    c_new = jnp.transpose(c_out[:, :B, :H], (1, 0, 2))           # (B, 2, H)
    return output, (h_new, c_new)


def rnn_decoder_ref(x, h, c, params):
    """Pure-JAX reference with identical semantics (HIGHEST precision dots)."""
    P = lax.Precision.HIGHEST
    x_t = jnp.transpose(x, (1, 0, 2))
    h_t = jnp.transpose(h, (1, 0, 2))
    c_t = jnp.transpose(c, (1, 0, 2))

    def cell(carry, xt, d):
        hp, cp = carry
        gates = (jnp.dot(xt, params["wih"][d], precision=P)
                 + jnp.dot(hp, params["whh"][d], precision=P)
                 + params["b"][d, 0])
        i, f, g, o = jnp.split(gates, 4, axis=-1)
        i, f, o = jax.nn.sigmoid(i), jax.nn.sigmoid(f), jax.nn.sigmoid(o)
        g = jnp.tanh(g)
        cn = f * cp + i * g
        hn = o * jnp.tanh(cn)
        return (hn, cn), hn

    (hf, cf), out_f = lax.scan(lambda cr, xt: cell(cr, xt, 0), (h_t[0], c_t[0]), x_t)
    (hb, cb), out_b = lax.scan(lambda cr, xt: cell(cr, xt, 1), (h_t[1], c_t[1]), x_t[::-1])
    out_b = out_b[::-1]
    out = jnp.concatenate([out_f, out_b], axis=-1)               # (S, B, 2H)
    out = jnp.dot(out, params["wmlp"], precision=P) + params["bmlp"][0]
    output = jnp.transpose(out, (1, 0, 2))
    if x.shape[1] == 1:
        output = output[:, 0, :]
    h_new = jnp.transpose(jnp.stack([hf, hb]), (1, 0, 2))
    c_new = jnp.transpose(jnp.stack([cf, cb]), (1, 0, 2))
    return output, (h_new, c_new)


def init_params(key, input_dim, hidden_dim, output_dim):
    ks = jax.random.split(key, 7)
    kb = 1.0 / jnp.sqrt(hidden_dim)
    wih = jax.random.uniform(ks[0], (2, input_dim, 4 * hidden_dim),
                             minval=-kb, maxval=kb, dtype=jnp.float32)
    whh = jax.random.uniform(ks[1], (2, hidden_dim, 4 * hidden_dim),
                             minval=-kb, maxval=kb, dtype=jnp.float32)
    b_ih = jax.random.uniform(ks[2], (2, 1, 4 * hidden_dim),
                              minval=-kb, maxval=kb, dtype=jnp.float32)
    b_hh = jax.random.uniform(ks[3], (2, 1, 4 * hidden_dim),
                              minval=-kb, maxval=kb, dtype=jnp.float32)
    km = 1.0 / jnp.sqrt(2 * hidden_dim)
    wmlp = jax.random.uniform(ks[4], (2 * hidden_dim, output_dim),
                              minval=-km, maxval=km, dtype=jnp.float32)
    bmlp = jax.random.uniform(ks[5], (1, output_dim),
                              minval=-km, maxval=km, dtype=jnp.float32)
    return {"wih": wih, "whh": whh, "b": b_ih + b_hh, "wmlp": wmlp, "bmlp": bmlp}


if __name__ == "__main__":
    B, S, I, H, O = 2, 8, 16, 32, 8
    key = jax.random.PRNGKey(0)
    kx, kh, kc, kp = jax.random.split(key, 4)
    x = jax.random.normal(kx, (B, S, I), dtype=jnp.float32)
    h0 = jax.random.normal(kh, (B, 2, H), dtype=jnp.float32)
    c0 = jax.random.normal(kc, (B, 2, H), dtype=jnp.float32)
    params = init_params(kp, I, H, O)

    out, (h_new, c_new) = rnn_decoder_forward(x, h0, c0, params)
    jax.block_until_ready((out, h_new, c_new))

    # sanity check against the pure-JAX reference
    out_r, (h_r, c_r) = rnn_decoder_ref(x, h0, c0, params)
    assert out.shape == (B, S, O) and h_new.shape == (B, 2, H) and c_new.shape == (B, 2, H)
    assert float(jnp.max(jnp.abs(out - out_r))) < 5e-3
    assert float(jnp.max(jnp.abs(h_new - h_r))) < 5e-3
    assert float(jnp.max(jnp.abs(c_new - c_r))) < 5e-3

    print("KERNEL_OK")
</pallas_src>

<mosaic_0001>
module attributes {stable_mosaic.version = 11 : i64} {
  func.func @_rnn_decoder_kernel(%arg0: memref<64x16xf32, #tpu.memory_space<vmem>>, %arg1: memref<8x256xf32, #tpu.memory_space<vmem>>, %arg2: memref<2x8x128xf32, #tpu.memory_space<vmem>>, %arg3: memref<16x1024xf32, #tpu.memory_space<vmem>>, %arg4: memref<256x1024xf32, #tpu.memory_space<vmem>>, %arg5: memref<1x1024xf32, #tpu.memory_space<vmem>>, %arg6: memref<8x8x128xf32, #tpu.memory_space<vmem>>, %arg7: memref<8x8x128xf32, #tpu.memory_space<vmem>>, %arg8: memref<2x8x128xf32, #tpu.memory_space<vmem>>, %arg9: memref<2x8x128xf32, #tpu.memory_space<vmem>>, %arg10: memref<64x1024xf32, #tpu.memory_space<vmem>>) attributes {dimension_semantics = [], scalar_prefetch = 0 : i64, scratch_operands = 1 : i64, tpu.core_type = #tpu.core_type<tc>} {
    %c0 = arith.constant 0 : index
    %c0_0 = arith.constant 0 : index
    %0 = vector.load %arg0[%c0, %c0_0] : memref<64x16xf32, #tpu.memory_space<vmem>>, vector<64x16xf32>
    %c0_1 = arith.constant 0 : index
    %c0_2 = arith.constant 0 : index
    %1 = vector.load %arg3[%c0_1, %c0_2] : memref<16x1024xf32, #tpu.memory_space<vmem>>, vector<16x1024xf32>
    %cst = arith.constant dense<0.000000e+00> : vector<64x1024xf32>
    %2 = tpu.matmul %0, %1, %cst {dimension_numbers = #tpu.dot_dimension_numbers<[1], [0], [0], [1], [0, 0, 1, 1], [], []>} : vector<64x16xf32>, vector<16x1024xf32>, vector<64x1024xf32> -> vector<64x1024xf32>
    %c0_3 = arith.constant 0 : index
    %c0_4 = arith.constant 0 : index
    %3 = vector.load %arg5[%c0_3, %c0_4] : memref<1x1024xf32, #tpu.memory_space<vmem>>, vector<1x1024xf32>
    %4 = vector.broadcast %3 : vector<1x1024xf32> to vector<64x1024xf32>
    %5 = arith.addf %2, %4 : vector<64x1024xf32>
    %c0_5 = arith.constant 0 : index
    %c0_6 = arith.constant 0 : index
    %6 = vector.load %arg10[%c0_5, %c0_6] : memref<64x1024xf32, #tpu.memory_space<vmem>>, vector<64x1024xf32>
    tpu.vector_store %arg10[%c0_5, %c0_6], %5 {strides = array<i32>} : memref<64x1024xf32, #tpu.memory_space<vmem>>, vector<64x1024xf32>,
    %c0_7 = arith.constant 0 : index
    %c0_8 = arith.constant 0 : index
    %7 = vector.load %arg1[%c0_7, %c0_8] : memref<8x256xf32, #tpu.memory_space<vmem>>, vector<8x256xf32>
    %c0_9 = arith.constant 0 : index
    %c0_10 = arith.constant 0 : index
    %c0_11 = arith.constant 0 : index
    %8 = vector.load %arg2[%c0_9, %c0_10, %c0_11] : memref<2x8x128xf32, #tpu.memory_space<vmem>>, vector<1x8x128xf32>
    %9 = vector.shape_cast %8 : vector<1x8x128xf32> to vector<8x128xf32>
    %c1 = arith.constant 1 : index
    %c0_12 = arith.constant 0 : index
    %c0_13 = arith.constant 0 : index
    %10 = vector.load %arg2[%c1, %c0_12, %c0_13] : memref<2x8x128xf32, #tpu.memory_space<vmem>>, vector<1x8x128xf32>
    %11 = vector.shape_cast %10 : vector<1x8x128xf32> to vector<8x128xf32>
    %c0_14 = arith.constant 0 : index
    %c0_15 = arith.constant 0 : index
    %12 = vector.load %arg4[%c0_14, %c0_15] : memref<256x1024xf32, #tpu.memory_space<vmem>>, vector<256x1024xf32>
    %cst_16 = arith.constant dense<0.000000e+00> : vector<8x1024xf32>
    %13 = tpu.matmul %7, %12, %cst_16 {dimension_numbers = #tpu.dot_dimension_numbers<[1], [0], [0], [1], [0, 0, 1, 1], [], []>} : vector<8x256xf32>, vector<256x1024xf32>, vector<8x1024xf32> -> vector<8x1024xf32>
    %c0_17 = arith.constant 0 : index
    %c0_18 = arith.constant 0 : index
    %14 = vector.load %arg10[%c0_17, %c0_18] : memref<64x1024xf32, #tpu.memory_space<vmem>>, vector<8x512xf32>
    %15 = vector.extract_strided_slice %13 {offsets = [0, 0], sizes = [8, 512], strides = [1, 1]} : vector<8x1024xf32> to vector<8x512xf32>
    %16 = arith.addf %14, %15 : vector<8x512xf32>
    %c56 = arith.constant 56 : index
    %c512 = arith.constant 512 : index
    %17 = vector.load %arg10[%c56, %c512] : memref<64x1024xf32, #tpu.memory_space<vmem>>, vector<8x512xf32>
    %18 = vector.extract_strided_slice %13 {offsets = [0, 512], sizes = [8, 512], strides = [1, 1]} : vector<8x1024xf32> to vector<8x512xf32>
    %19 = arith.addf %17, %18 : vector<8x512xf32>
    %20 = vector.extract_strided_slice %16 {offsets = [0, 0], sizes = [8, 128], strides = [1, 1]} : vector<8x512xf32> to vector<8x128xf32>
    %21 = arith.negf %20 : vector<8x128xf32>
    %22 = math.exp %21 : vector<8x128xf32>
    %cst_19 = arith.constant 1.000000e+00 : f32
    %23 = vector.broadcast %cst_19 : f32 to vector<8x128xf32>
    %24 = arith.addf %23, %22 : vector<8x128xf32>
    %25 = arith.divf %23, %24 : vector<8x128xf32>
    %26 = vector.extract_strided_slice %16 {offsets = [0, 128], sizes = [8, 128], strides = [1, 1]} : vector<8x512xf32> to vector<8x128xf32>
    %27 = arith.negf %26 : vector<8x128xf32>
    %28 = math.exp %27 : vector<8x128xf32>
    %cst_20 = arith.constant 1.000000e+00 : f32
    %29 = vector.broadcast %cst_20 : f32 to vector<8x128xf32>
    %30 = arith.addf %29, %28 : vector<8x128xf32>
    %31 = arith.divf %29, %30 : vector<8x128xf32>
    %32 = vector.extract_strided_slice %16 {offsets = [0, 256], sizes = [8, 128], strides = [1, 1]} : vector<8x512xf32> to vector<8x128xf32>
    %33 = math.tanh %32 : vector<8x128xf32>
    %34 = vector.extract_strided_slice %16 {offsets = [0, 384], sizes = [8, 128], strides = [1, 1]} : vector<8x512xf32> to vector<8x128xf32>
    %35 = arith.negf %34 : vector<8x128xf32>
    %36 = math.exp %35 : vector<8x128xf32>
    %cst_21 = arith.constant 1.000000e+00 : f32
    %37 = vector.broadcast %cst_21 : f32 to vector<8x128xf32>
    %38 = arith.addf %37, %36 : vector<8x128xf32>
    %39 = arith.divf %37, %38 : vector<8x128xf32>
    %40 = arith.mulf %31, %9 : vector<8x128xf32>
    %41 = arith.mulf %25, %33 : vector<8x128xf32>
    %42 = arith.addf %40, %41 : vector<8x128xf32>
    %43 = math.tanh %42 : vector<8x128xf32>
    %44 = arith.mulf %39, %43 : vector<8x128xf32>
    %45 = vector.extract_strided_slice %19 {offsets = [0, 0], sizes = [8, 128], strides = [1, 1]} : vector<8x512xf32> to vector<8x128xf32>
    %46 = arith.negf %45 : vector<8x128xf32>
    %47 = math.exp %46 : vector<8x128xf32>
    %cst_22 = arith.constant 1.000000e+00 : f32
    %48 = vector.broadcast %cst_22 : f32 to vector<8x128xf32>
    %49 = arith.addf %48, %47 : vector<8x128xf32>
    %50 = arith.divf %48, %49 : vector<8x128xf32>
    %51 = vector.extract_strided_slice %19 {offsets = [0, 128], sizes = [8, 128], strides = [1, 1]} : vector<8x512xf32> to vector<8x128xf32>
    %52 = arith.negf %51 : vector<8x128xf32>
    %53 = math.exp %52 : vector<8x128xf32>
    %cst_23 = arith.constant 1.000000e+00 : f32
    %54 = vector.broadcast %cst_23 : f32 to vector<8x128xf32>
    %55 = arith.addf %54, %53 : vector<8x128xf32>
    %56 = arith.divf %54, %55 : vector<8x128xf32>
    %57 = vector.extract_strided_slice %19 {offsets = [0, 256], sizes = [8, 128], strides = [1, 1]} : vector<8x512xf32> to vector<8x128xf32>
    %58 = math.tanh %57 : vector<8x128xf32>
    %59 = vector.extract_strided_slice %19 {offsets = [0, 384], sizes = [8, 128], strides = [1, 1]} : vector<8x512xf32> to vector<8x128xf32>
    %60 = arith.negf %59 : vector<8x128xf32>
    %61 = math.exp %60 : vector<8x128xf32>
    %cst_24 = arith.constant 1.000000e+00 : f32
    %62 = vector.broadcast %cst_24 : f32 to vector<8x128xf32>
    %63 = arith.addf %62, %61 : vector<8x128xf32>
    %64 = arith.divf %62, %63 : vector<8x128xf32>
    %65 = arith.mulf %56, %11 : vector<8x128xf32>
    %66 = arith.mulf %50, %58 : vector<8x128xf32>
    %67 = arith.addf %65, %66 : vector<8x128xf32>
    %68 = math.tanh %67 : vector<8x128xf32>
    %69 = arith.mulf %64, %68 : vector<8x128xf32>
    %c0_25 = arith.constant 0 : index
    %c0_26 = arith.constant 0 : index
    %c0_27 = arith.constant 0 : index
    %70 = vector.load %arg6[%c0_25, %c0_26, %c0_27] : memref<8x8x128xf32, #tpu.memory_space<vmem>>, vector<1x8x128xf32>
    %71 = vector.shape_cast %70 : vector<1x8x128xf32> to vector<8x128xf32>
    %72 = vector.shape_cast %44 : vector<8x128xf32> to vector<1x8x128xf32>
    tpu.vector_store %arg6[%c0_25, %c0_26, %c0_27], %72 {strides = array<i32>} : memref<8x8x128xf32, #tpu.memory_space<vmem>>, vector<1x8x128xf32>,
    %c7 = arith.constant 7 : index
    %c0_28 = arith.constant 0 : index
    %c0_29 = arith.constant 0 : index
    %73 = vector.load %arg7[%c7, %c0_28, %c0_29] : memref<8x8x128xf32, #tpu.memory_space<vmem>>, vector<1x8x128xf32>
    %74 = vector.shape_cast %73 : vector<1x8x128xf32> to vector<8x128xf32>
    %75 = vector.shape_cast %69 : vector<8x128xf32> to vector<1x8x128xf32>
    tpu.vector_store %arg7[%c7, %c0_28, %c0_29], %75 {strides = array<i32>} : memref<8x8x128xf32, #tpu.memory_space<vmem>>, vector<1x8x128xf32>,
    %76 = tpu.concatenate %44, %69 in 1 : vector<8x128xf32>, vector<8x128xf32> -> vector<8x256xf32>
    %c0_30 = arith.constant 0 : index
    %c0_31 = arith.constant 0 : index
    %77 = vector.load %arg4[%c0_30, %c0_31] : memref<256x1024xf32, #tpu.memory_space<vmem>>, vector<256x1024xf32>
    %cst_32 = arith.constant dense<0.000000e+00> : vector<8x1024xf32>
    %78 = tpu.matmul %76, %77, %cst_32 {dimension_numbers = #tpu.dot_dimension_numbers<[1], [0], [0], [1], [0, 0, 1, 1], [], []>} : vector<8x256xf32>, vector<256x1024xf32>, vector<8x1024xf32> -> vector<8x1024xf32>
    %c8 = arith.constant 8 : index
    %c0_33 = arith.constant 0 : index
    %79 = vector.load %arg10[%c8, %c0_33] : memref<64x1024xf32, #tpu.memory_space<vmem>>, vector<8x512xf32>
    %80 = vector.extract_strided_slice %78 {offsets = [0, 0], sizes = [8, 512], strides = [1, 1]} : vector<8x1024xf32> to vector<8x512xf32>
    %81 = arith.addf %79, %80 : vector<8x512xf32>
    %c48 = arith.constant 48 : index
    %c512_34 = arith.constant 512 : index
    %82 = vector.load %arg10[%c48, %c512_34] : memref<64x1024xf32, #tpu.memory_space<vmem>>, vector<8x512xf32>
    %83 = vector.extract_strided_slice %78 {offsets = [0, 512], sizes = [8, 512], strides = [1, 1]} : vector<8x1024xf32> to vector<8x512xf32>
    %84 = arith.addf %82, %83 : vector<8x512xf32>
    %85 = vector.extract_strided_slice %81 {offsets = [0, 0], sizes = [8, 128], strides = [1, 1]} : vector<8x512xf32> to vector<8x128xf32>
    %86 = arith.negf %85 : vector<8x128xf32>
    %87 = math.exp %86 : vector<8x128xf32>
    %cst_35 = arith.constant 1.000000e+00 : f32
    %88 = vector.broadcast %cst_35 : f32 to vector<8x128xf32>
    %89 = arith.addf %88, %87 : vector<8x128xf32>
    %90 = arith.divf %88, %89 : vector<8x128xf32>
    %91 = vector.extract_strided_slice %81 {offsets = [0, 128], sizes = [8, 128], strides = [1, 1]} : vector<8x512xf32> to vector<8x128xf32>
    %92 = arith.negf %91 : vector<8x128xf32>
    %93 = math.exp %92 : vector<8x128xf32>
    %cst_36 = arith.constant 1.000000e+00 : f32
    %94 = vector.broadcast %cst_36 : f32 to vector<8x128xf32>
    %95 = arith.addf %94, %93 : vector<8x128xf32>
    %96 = arith.divf %94, %95 : vector<8x128xf32>
    %97 = vector.extract_strided_slice %81 {offsets = [0, 256], sizes = [8, 128], strides = [1, 1]} : vector<8x512xf32> to vector<8x128xf32>
    %98 = math.tanh %97 : vector<8x128xf32>
    %99 = vector.extract_strided_slice %81 {offsets = [0, 384], sizes = [8, 128], strides = [1, 1]} : vector<8x512xf32> to vector<8x128xf32>
    %100 = arith.negf %99 : vector<8x128xf32>
    %101 = math.exp %100 : vector<8x128xf32>
    %cst_37 = arith.constant 1.000000e+00 : f32
    %102 = vector.broadcast %cst_37 : f32 to vector<8x128xf32>
    %103 = arith.addf %102, %101 : vector<8x128xf32>
    %104 = arith.divf %102, %103 : vector<8x128xf32>
    %105 = arith.mulf %96, %42 : vector<8x128xf32>
    %106 = arith.mulf %90, %98 : vector<8x128xf32>
    %107 = arith.addf %105, %106 : vector<8x128xf32>
    %108 = math.tanh %107 : vector<8x128xf32>
    %109 = arith.mulf %104, %108 : vector<8x128xf32>
    %110 = vector.extract_strided_slice %84 {offsets = [0, 0], sizes = [8, 128], strides = [1, 1]} : vector<8x512xf32> to vector<8x128xf32>
    %111 = arith.negf %110 : vector<8x128xf32>
    %112 = math.exp %111 : vector<8x128xf32>
    %cst_38 = arith.constant 1.000000e+00 : f32
    %113 = vector.broadcast %cst_38 : f32 to vector<8x128xf32>
    %114 = arith.addf %113, %112 : vector<8x128xf32>
    %115 = arith.divf %113, %114 : vector<8x128xf32>
    %116 = vector.extract_strided_slice %84 {offsets = [0, 128], sizes = [8, 128], strides = [1, 1]} : vector<8x512xf32> to vector<8x128xf32>
    %117 = arith.negf %116 : vector<8x128xf32>
    %118 = math.exp %117 : vector<8x128xf32>
    %cst_39 = arith.constant 1.000000e+00 : f32
    %119 = vector.broadcast %cst_39 : f32 to vector<8x128xf32>
    %120 = arith.addf %119, %118 : vector<8x128xf32>
    %121 = arith.divf %119, %120 : vector<8x128xf32>
    %122 = vector.extract_strided_slice %84 {offsets = [0, 256], sizes = [8, 128], strides = [1, 1]} : vector<8x512xf32> to vector<8x128xf32>
    %123 = math.tanh %122 : vector<8x128xf32>
    %124 = vector.extract_strided_slice %84 {offsets = [0, 384], sizes = [8, 128], strides = [1, 1]} : vector<8x512xf32> to vector<8x128xf32>
    %125 = arith.negf %124 : vector<8x128xf32>
    %126 = math.exp %125 : vector<8x128xf32>
    %cst_40 = arith.constant 1.000000e+00 : f32
    %127 = vector.broadcast %cst_40 : f32 to vector<8x128xf32>
    %128 = arith.addf %127, %126 : vector<8x128xf32>
    %129 = arith.divf %127, %128 : vector<8x128xf32>
    %130 = arith.mulf %121, %67 : vector<8x128xf32>
    %131 = arith.mulf %115, %123 : vector<8x128xf32>
    %132 = arith.addf %130, %131 : vector<8x128xf32>
    %133 = math.tanh %132 : vector<8x128xf32>
    %134 = arith.mulf %129, %133 : vector<8x128xf32>
    %c1_41 = arith.constant 1 : index
    %c0_42 = arith.constant 0 : index
    %c0_43 = arith.constant 0 : index
    %135 = vector.load %arg6[%c1_41, %c0_42, %c0_43] : memref<8x8x128xf32, #tpu.memory_space<vmem>>, vector<1x8x128xf32>
    %136 = vector.shape_cast %135 : vector<1x8x128xf32> to vector<8x128xf32>
    %137 = vector.shape_cast %109 : vector<8x128xf32> to vector<1x8x128xf32>
    tpu.vector_store %arg6[%c1_41, %c0_42, %c0_43], %137 {strides = array<i32>} : memref<8x8x128xf32, #tpu.memory_space<vmem>>, vector<1x8x128xf32>,
    %c6 = arith.constant 6 : index
    %c0_44 = arith.constant 0 : index
    %c0_45 = arith.constant 0 : index
    %138 = vector.load %arg7[%c6, %c0_44, %c0_45] : memref<8x8x128xf32, #tpu.memory_space<vmem>>, vector<1x8x128xf32>
    %139 = vector.shape_cast %138 : vector<1x8x128xf32> to vector<8x128xf32>
    %140 = vector.shape_cast %134 : vector<8x128xf32> to vector<1x8x128xf32>
    tpu.vector_store %arg7[%c6, %c0_44, %c0_45], %140 {strides = array<i32>} : memref<8x8x128xf32, #tpu.memory_space<vmem>>, vector<1x8x128xf32>,
    %141 = tpu.concatenate %109, %134 in 1 : vector<8x128xf32>, vector<8x128xf32> -> vector<8x256xf32>
    %c0_46 = arith.constant 0 : index
    %c0_47 = arith.constant 0 : index
    %142 = vector.load %arg4[%c0_46, %c0_47] : memref<256x1024xf32, #tpu.memory_space<vmem>>, vector<256x1024xf32>
    %cst_48 = arith.constant dense<0.000000e+00> : vector<8x1024xf32>
    %143 = tpu.matmul %141, %142, %cst_48 {dimension_numbers = #tpu.dot_dimension_numbers<[1], [0], [0], [1], [0, 0, 1, 1], [], []>} : vector<8x256xf32>, vector<256x1024xf32>, vector<8x1024xf32> -> vector<8x1024xf32>
    %c16 = arith.constant 16 : index
    %c0_49 = arith.constant 0 : index
    %144 = vector.load %arg10[%c16, %c0_49] : memref<64x1024xf32, #tpu.memory_space<vmem>>, vector<8x512xf32>
    %145 = vector.extract_strided_slice %143 {offsets = [0, 0], sizes = [8, 512], strides = [1, 1]} : vector<8x1024xf32> to vector<8x512xf32>
    %146 = arith.addf %144, %145 : vector<8x512xf32>
    %c40 = arith.constant 40 : index
    %c512_50 = arith.constant 512 : index
    %147 = vector.load %arg10[%c40, %c512_50] : memref<64x1024xf32, #tpu.memory_space<vmem>>, vector<8x512xf32>
    %148 = vector.extract_strided_slice %143 {offsets = [0, 512], sizes = [8, 512], strides = [1, 1]} : vector<8x1024xf32> to vector<8x512xf32>
    %149 = arith.addf %147, %148 : vector<8x512xf32>
    %150 = vector.extract_strided_slice %146 {offsets = [0, 0], sizes = [8, 128], strides = [1, 1]} : vector<8x512xf32> to vector<8x128xf32>
    %151 = arith.negf %150 : vector<8x128xf32>
    %152 = math.exp %151 : vector<8x128xf32>
    %cst_51 = arith.constant 1.000000e+00 : f32
    %153 = vector.broadcast %cst_51 : f32 to vector<8x128xf32>
    %154 = arith.addf %153, %152 : vector<8x128xf32>
    %155 = arith.divf %153, %154 : vector<8x128xf32>
    %156 = vector.extract_strided_slice %146 {offsets = [0, 128], sizes = [8, 128], strides = [1, 1]} : vector<8x512xf32> to vector<8x128xf32>
    %157 = arith.negf %156 : vector<8x128xf32>
    %158 = math.exp %157 : vector<8x128xf32>
    %cst_52 = arith.constant 1.000000e+00 : f32
    %159 = vector.broadcast %cst_52 : f32 to vector<8x128xf32>
    %160 = arith.addf %159, %158 : vector<8x128xf32>
    %161 = arith.divf %159, %160 : vector<8x128xf32>
    %162 = vector.extract_strided_slice %146 {offsets = [0, 256], sizes = [8, 128], strides = [1, 1]} : vector<8x512xf32> to vector<8x128xf32>
    %163 = math.tanh %162 : vector<8x128xf32>
    %164 = vector.extract_strided_slice %146 {offsets = [0, 384], sizes = [8, 128], strides = [1, 1]} : vector<8x512xf32> to vector<8x128xf32>
    %165 = arith.negf %164 : vector<8x128xf32>
    %166 = math.exp %165 : vector<8x128xf32>
    %cst_53 = arith.constant 1.000000e+00 : f32
    %167 = vector.broadcast %cst_53 : f32 to vector<8x128xf32>
    %168 = arith.addf %167, %166 : vector<8x128xf32>
    %169 = arith.divf %167, %168 : vector<8x128xf32>
    %170 = arith.mulf %161, %107 : vector<8x128xf32>
    %171 = arith.mulf %155, %163 : vector<8x128xf32>
    %172 = arith.addf %170, %171 : vector<8x128xf32>
    %173 = math.tanh %172 : vector<8x128xf32>
    %174 = arith.mulf %169, %173 : vector<8x128xf32>
    %175 = vector.extract_strided_slice %149 {offsets = [0, 0], sizes = [8, 128], strides = [1, 1]} : vector<8x512xf32> to vector<8x128xf32>
    %176 = arith.negf %175 : vector<8x128xf32>
    %177 = math.exp %176 : vector<8x128xf32>
    %cst_54 = arith.constant 1.000000e+00 : f32
    %178 = vector.broadcast %cst_54 : f32 to vector<8x128xf32>
    %179 = arith.addf %178, %177 : vector<8x128xf32>
    %180 = arith.divf %178, %179 : vector<8x128xf32>
    %181 = vector.extract_strided_slice %149 {offsets = [0, 128], sizes = [8, 128], strides = [1, 1]} : vector<8x512xf32> to vector<8x128xf32>
    %182 = arith.negf %181 : vector<8x128xf32>
    %183 = math.exp %182 : vector<8x128xf32>
    %cst_55 = arith.constant 1.000000e+00 : f32
    %184 = vector.broadcast %cst_55 : f32 to vector<8x128xf32>
    %185 = arith.addf %184, %183 : vector<8x128xf32>
    %186 = arith.divf %184, %185 : vector<8x128xf32>
    %187 = vector.extract_strided_slice %149 {offsets = [0, 256], sizes = [8, 128], strides = [1, 1]} : vector<8x512xf32> to vector<8x128xf32>
    %188 = math.tanh %187 : vector<8x128xf32>
    %189 = vector.extract_strided_slice %149 {offsets = [0, 384], sizes = [8, 128], strides = [1, 1]} : vector<8x512xf32> to vector<8x128xf32>
    %190 = arith.negf %189 : vector<8x128xf32>
    %191 = math.exp %190 : vector<8x128xf32>
    %cst_56 = arith.constant 1.000000e+00 : f32
    %192 = vector.broadcast %cst_56 : f32 to vector<8x128xf32>
    %193 = arith.addf %192, %191 : vector<8x128xf32>
    %194 = arith.divf %192, %193 : vector<8x128xf32>
    %195 = arith.mulf %186, %132 : vector<8x128xf32>
    %196 = arith.mulf %180, %188 : vector<8x128xf32>
    %197 = arith.addf %195, %196 : vector<8x128xf32>
    %198 = math.tanh %197 : vector<8x128xf32>
    %199 = arith.mulf %194, %198 : vector<8x128xf32>
    %c2 = arith.constant 2 : index
    %c0_57 = arith.constant 0 : index
    %c0_58 = arith.constant 0 : index
    %200 = vector.load %arg6[%c2, %c0_57, %c0_58] : memref<8x8x128xf32, #tpu.memory_space<vmem>>, vector<1x8x128xf32>
    %201 = vector.shape_cast %200 : vector<1x8x128xf32> to vector<8x128xf32>
    %202 = vector.shape_cast %174 : vector<8x128xf32> to vector<1x8x128xf32>
    tpu.vector_store %arg6[%c2, %c0_57, %c0_58], %202 {strides = array<i32>} : memref<8x8x128xf32, #tpu.memory_space<vmem>>, vector<1x8x128xf32>,
    %c5 = arith.constant 5 : index
    %c0_59 = arith.constant 0 : index
    %c0_60 = arith.constant 0 : index
    %203 = vector.load %arg7[%c5, %c0_59, %c0_60] : memref<8x8x128xf32, #tpu.memory_space<vmem>>, vector<1x8x128xf32>
    %204 = vector.shape_cast %203 : vector<1x8x128xf32> to vector<8x128xf32>
    %205 = vector.shape_cast %199 : vector<8x128xf32> to vector<1x8x128xf32>
    tpu.vector_store %arg7[%c5, %c0_59, %c0_60], %205 {strides = array<i32>} : memref<8x8x128xf32, #tpu.memory_space<vmem>>, vector<1x8x128xf32>,
    %206 = tpu.concatenate %174, %199 in 1 : vector<8x128xf32>, vector<8x128xf32> -> vector<8x256xf32>
    %c0_61 = arith.constant 0 : index
    %c0_62 = arith.constant 0 : index
    %207 = vector.load %arg4[%c0_61, %c0_62] : memref<256x1024xf32, #tpu.memory_space<vmem>>, vector<256x1024xf32>
    %cst_63 = arith.constant dense<0.000000e+00> : vector<8x1024xf32>
    %208 = tpu.matmul %206, %207, %cst_63 {dimension_numbers = #tpu.dot_dimension_numbers<[1], [0], [0], [1], [0, 0, 1, 1], [], []>} : vector<8x256xf32>, vector<256x1024xf32>, vector<8x1024xf32> -> vector<8x1024xf32>
    %c24 = arith.constant 24 : index
    %c0_64 = arith.constant 0 : index
    %209 = vector.load %arg10[%c24, %c0_64] : memref<64x1024xf32, #tpu.memory_space<vmem>>, vector<8x512xf32>
    %210 = vector.extract_strided_slice %208 {offsets = [0, 0], sizes = [8, 512], strides = [1, 1]} : vector<8x1024xf32> to vector<8x512xf32>
    %211 = arith.addf %209, %210 : vector<8x512xf32>
    %c32 = arith.constant 32 : index
    %c512_65 = arith.constant 512 : index
    %212 = vector.load %arg10[%c32, %c512_65] : memref<64x1024xf32, #tpu.memory_space<vmem>>, vector<8x512xf32>
    %213 = vector.extract_strided_slice %208 {offsets = [0, 512], sizes = [8, 512], strides = [1, 1]} : vector<8x1024xf32> to vector<8x512xf32>
    %214 = arith.addf %212, %213 : vector<8x512xf32>
    %215 = vector.extract_strided_slice %211 {offsets = [0, 0], sizes = [8, 128], strides = [1, 1]} : vector<8x512xf32> to vector<8x128xf32>
    %216 = arith.negf %215 : vector<8x128xf32>
    %217 = math.exp %216 : vector<8x128xf32>
    %cst_66 = arith.constant 1.000000e+00 : f32
    %218 = vector.broadcast %cst_66 : f32 to vector<8x128xf32>
    %219 = arith.addf %218, %217 : vector<8x128xf32>
    %220 = arith.divf %218, %219 : vector<8x128xf32>
    %221 = vector.extract_strided_slice %211 {offsets = [0, 128], sizes = [8, 128], strides = [1, 1]} : vector<8x512xf32> to vector<8x128xf32>
    %222 = arith.negf %221 : vector<8x128xf32>
    %223 = math.exp %222 : vector<8x128xf32>
    %cst_67 = arith.constant 1.000000e+00 : f32
    %224 = vector.broadcast %cst_67 : f32 to vector<8x128xf32>
    %225 = arith.addf %224, %223 : vector<8x128xf32>
    %226 = arith.divf %224, %225 : vector<8x128xf32>
    %227 = vector.extract_strided_slice %211 {offsets = [0, 256], sizes = [8, 128], strides = [1, 1]} : vector<8x512xf32> to vector<8x128xf32>
    %228 = math.tanh %227 : vector<8x128xf32>
    %229 = vector.extract_strided_slice %211 {offsets = [0, 384], sizes = [8, 128], strides = [1, 1]} : vector<8x512xf32> to vector<8x128xf32>
    %230 = arith.negf %229 : vector<8x128xf32>
    %231 = math.exp %230 : vector<8x128xf32>
    %cst_68 = arith.constant 1.000000e+00 : f32
    %232 = vector.broadcast %cst_68 : f32 to vector<8x128xf32>
    %233 = arith.addf %232, %231 : vector<8x128xf32>
    %234 = arith.divf %232, %233 : vector<8x128xf32>
    %235 = arith.mulf %226, %172 : vector<8x128xf32>
    %236 = arith.mulf %220, %228 : vector<8x128xf32>
    %237 = arith.addf %235, %236 : vector<8x128xf32>
    %238 = math.tanh %237 : vector<8x128xf32>
    %239 = arith.mulf %234, %238 : vector<8x128xf32>
    %240 = vector.extract_strided_slice %214 {offsets = [0, 0], sizes = [8, 128], strides = [1, 1]} : vector<8x512xf32> to vector<8x128xf32>
    %241 = arith.negf %240 : vector<8x128xf32>
    %242 = math.exp %241 : vector<8x128xf32>
    %cst_69 = arith.constant 1.000000e+00 : f32
    %243 = vector.broadcast %cst_69 : f32 to vector<8x128xf32>
    %244 = arith.addf %243, %242 : vector<8x128xf32>
    %245 = arith.divf %243, %244 : vector<8x128xf32>
    %246 = vector.extract_strided_slice %214 {offsets = [0, 128], sizes = [8, 128], strides = [1, 1]} : vector<8x512xf32> to vector<8x128xf32>
    %247 = arith.negf %246 : vector<8x128xf32>
    %248 = math.exp %247 : vector<8x128xf32>
    %cst_70 = arith.constant 1.000000e+00 : f32
    %249 = vector.broadcast %cst_70 : f32 to vector<8x128xf32>
    %250 = arith.addf %249, %248 : vector<8x128xf32>
    %251 = arith.divf %249, %250 : vector<8x128xf32>
    %252 = vector.extract_strided_slice %214 {offsets = [0, 256], sizes = [8, 128], strides = [1, 1]} : vector<8x512xf32> to vector<8x128xf32>
    %253 = math.tanh %252 : vector<8x128xf32>
    %254 = vector.extract_strided_slice %214 {offsets = [0, 384], sizes = [8, 128], strides = [1, 1]} : vector<8x512xf32> to vector<8x128xf32>
    %255 = arith.negf %254 : vector<8x128xf32>
    %256 = math.exp %255 : vector<8x128xf32>
    %cst_71 = arith.constant 1.000000e+00 : f32
    %257 = vector.broadcast %cst_71 : f32 to vector<8x128xf32>
    %258 = arith.addf %257, %256 : vector<8x128xf32>
    %259 = arith.divf %257, %258 : vector<8x128xf32>
    %260 = arith.mulf %251, %197 : vector<8x128xf32>
    %261 = arith.mulf %245, %253 : vector<8x128xf32>
    %262 = arith.addf %260, %261 : vector<8x128xf32>
    %263 = math.tanh %262 : vector<8x128xf32>
    %264 = arith.mulf %259, %263 : vector<8x128xf32>
    %c3 = arith.constant 3 : index
    %c0_72 = arith.constant 0 : index
    %c0_73 = arith.constant 0 : index
    %265 = vector.load %arg6[%c3, %c0_72, %c0_73] : memref<8x8x128xf32, #tpu.memory_space<vmem>>, vector<1x8x128xf32>
    %266 = vector.shape_cast %265 : vector<1x8x128xf32> to vector<8x128xf32>
    %267 = vector.shape_cast %239 : vector<8x128xf32> to vector<1x8x128xf32>
    tpu.vector_store %arg6[%c3, %c0_72, %c0_73], %267 {strides = array<i32>} : memref<8x8x128xf32, #tpu.memory_space<vmem>>, vector<1x8x128xf32>,
    %c4 = arith.constant 4 : index
    %c0_74 = arith.constant 0 : index
    %c0_75 = arith.constant 0 : index
    %268 = vector.load %arg7[%c4, %c0_74, %c0_75] : memref<8x8x128xf32, #tpu.memory_space<vmem>>, vector<1x8x128xf32>
    %269 = vector.shape_cast %268 : vector<1x8x128xf32> to vector<8x128xf32>
    %270 = vector.shape_cast %264 : vector<8x128xf32> to vector<1x8x128xf32>
    tpu.vector_store %arg7[%c4, %c0_74, %c0_75], %270 {strides = array<i32>} : memref<8x8x128xf32, #tpu.memory_space<vmem>>, vector<1x8x128xf32>,
    %271 = tpu.concatenate %239, %264 in 1 : vector<8x128xf32>, vector<8x128xf32> -> vector<8x256xf32>
    %c0_76 = arith.constant 0 : index
    %c0_77 = arith.constant 0 : index
    %272 = vector.load %arg4[%c0_76, %c0_77] : memref<256x1024xf32, #tpu.memory_space<vmem>>, vector<256x1024xf32>
    %cst_78 = arith.constant dense<0.000000e+00> : vector<8x1024xf32>
    %273 = tpu.matmul %271, %272, %cst_78 {dimension_numbers = #tpu.dot_dimension_numbers<[1], [0], [0], [1], [0, 0, 1, 1], [], []>} : vector<8x256xf32>, vector<256x1024xf32>, vector<8x1024xf32> -> vector<8x1024xf32>
    %c32_79 = arith.constant 32 : index
    %c0_80 = arith.constant 0 : index
    %274 = vector.load %arg10[%c32_79, %c0_80] : memref<64x1024xf32, #tpu.memory_space<vmem>>, vector<8x512xf32>
    %275 = vector.extract_strided_slice %273 {offsets = [0, 0], sizes = [8, 512], strides = [1, 1]} : vector<8x1024xf32> to vector<8x512xf32>
    %276 = arith.addf %274, %275 : vector<8x512xf32>
    %c24_81 = arith.constant 24 : index
    %c512_82 = arith.constant 512 : index
    %277 = vector.load %arg10[%c24_81, %c512_82] : memref<64x1024xf32, #tpu.memory_space<vmem>>, vector<8x512xf32>
    %278 = vector.extract_strided_slice %273 {offsets = [0, 512], sizes = [8, 512], strides = [1, 1]} : vector<8x1024xf32> to vector<8x512xf32>
    %279 = arith.addf %277, %278 : vector<8x512xf32>
    %280 = vector.extract_strided_slice %276 {offsets = [0, 0], sizes = [8, 128], strides = [1, 1]} : vector<8x512xf32> to vector<8x128xf32>
    %281 = arith.negf %280 : vector<8x128xf32>
    %282 = math.exp %281 : vector<8x128xf32>
    %cst_83 = arith.constant 1.000000e+00 : f32
    %283 = vector.broadcast %cst_83 : f32 to vector<8x128xf32>
    %284 = arith.addf %283, %282 : vector<8x128xf32>
    %285 = arith.divf %283, %284 : vector<8x128xf32>
    %286 = vector.extract_strided_slice %276 {offsets = [0, 128], sizes = [8, 128], strides = [1, 1]} : vector<8x512xf32> to vector<8x128xf32>
    %287 = arith.negf %286 : vector<8x128xf32>
    %288 = math.exp %287 : vector<8x128xf32>
    %cst_84 = arith.constant 1.000000e+00 : f32
    %289 = vector.broadcast %cst_84 : f32 to vector<8x128xf32>
    %290 = arith.addf %289, %288 : vector<8x128xf32>
    %291 = arith.divf %289, %290 : vector<8x128xf32>
    %292 = vector.extract_strided_slice %276 {offsets = [0, 256], sizes = [8, 128], strides = [1, 1]} : vector<8x512xf32> to vector<8x128xf32>
    %293 = math.tanh %292 : vector<8x128xf32>
    %294 = vector.extract_strided_slice %276 {offsets = [0, 384], sizes = [8, 128], strides = [1, 1]} : vector<8x512xf32> to vector<8x128xf32>
    %295 = arith.negf %294 : vector<8x128xf32>
    %296 = math.exp %295 : vector<8x128xf32>
    %cst_85 = arith.constant 1.000000e+00 : f32
    %297 = vector.broadcast %cst_85 : f32 to vector<8x128xf32>
    %298 = arith.addf %297, %296 : vector<8x128xf32>
    %299 = arith.divf %297, %298 : vector<8x128xf32>
    %300 = arith.mulf %291, %237 : vector<8x128xf32>
    %301 = arith.mulf %285, %293 : vector<8x128xf32>
    %302 = arith.addf %300, %301 : vector<8x128xf32>
    %303 = math.tanh %302 : vector<8x128xf32>
    %304 = arith.mulf %299, %303 : vector<8x128xf32>
    %305 = vector.extract_strided_slice %279 {offsets = [0, 0], sizes = [8, 128], strides = [1, 1]} : vector<8x512xf32> to vector<8x128xf32>
    %306 = arith.negf %305 : vector<8x128xf32>
    %307 = math.exp %306 : vector<8x128xf32>
    %cst_86 = arith.constant 1.000000e+00 : f32
    %308 = vector.broadcast %cst_86 : f32 to vector<8x128xf32>
    %309 = arith.addf %308, %307 : vector<8x128xf32>
    %310 = arith.divf %308, %309 : vector<8x128xf32>
    %311 = vector.extract_strided_slice %279 {offsets = [0, 128], sizes = [8, 128], strides = [1, 1]} : vector<8x512xf32> to vector<8x128xf32>
    %312 = arith.negf %311 : vector<8x128xf32>
    %313 = math.exp %312 : vector<8x128xf32>
    %cst_87 = arith.constant 1.000000e+00 : f32
    %314 = vector.broadcast %cst_87 : f32 to vector<8x128xf32>
    %315 = arith.addf %314, %313 : vector<8x128xf32>
    %316 = arith.divf %314, %315 : vector<8x128xf32>
    %317 = vector.extract_strided_slice %279 {offsets = [0, 256], sizes = [8, 128], strides = [1, 1]} : vector<8x512xf32> to vector<8x128xf32>
    %318 = math.tanh %317 : vector<8x128xf32>
    %319 = vector.extract_strided_slice %279 {offsets = [0, 384], sizes = [8, 128], strides = [1, 1]} : vector<8x512xf32> to vector<8x128xf32>
    %320 = arith.negf %319 : vector<8x128xf32>
    %321 = math.exp %320 : vector<8x128xf32>
    %cst_88 = arith.constant 1.000000e+00 : f32
    %322 = vector.broadcast %cst_88 : f32 to vector<8x128xf32>
    %323 = arith.addf %322, %321 : vector<8x128xf32>
    %324 = arith.divf %322, %323 : vector<8x128xf32>
    %325 = arith.mulf %316, %262 : vector<8x128xf32>
    %326 = arith.mulf %310, %318 : vector<8x128xf32>
    %327 = arith.addf %325, %326 : vector<8x128xf32>
    %328 = math.tanh %327 : vector<8x128xf32>
    %329 = arith.mulf %324, %328 : vector<8x128xf32>
    %c4_89 = arith.constant 4 : index
    %c0_90 = arith.constant 0 : index
    %c0_91 = arith.constant 0 : index
    %330 = vector.load %arg6[%c4_89, %c0_90, %c0_91] : memref<8x8x128xf32, #tpu.memory_space<vmem>>, vector<1x8x128xf32>
    %331 = vector.shape_cast %330 : vector<1x8x128xf32> to vector<8x128xf32>
    %332 = vector.shape_cast %304 : vector<8x128xf32> to vector<1x8x128xf32>
    tpu.vector_store %arg6[%c4_89, %c0_90, %c0_91], %332 {strides = array<i32>} : memref<8x8x128xf32, #tpu.memory_space<vmem>>, vector<1x8x128xf32>,
    %c3_92 = arith.constant 3 : index
    %c0_93 = arith.constant 0 : index
    %c0_94 = arith.constant 0 : index
    %333 = vector.load %arg7[%c3_92, %c0_93, %c0_94] : memref<8x8x128xf32, #tpu.memory_space<vmem>>, vector<1x8x128xf32>
    %334 = vector.shape_cast %333 : vector<1x8x128xf32> to vector<8x128xf32>
    %335 = vector.shape_cast %329 : vector<8x128xf32> to vector<1x8x128xf32>
    tpu.vector_store %arg7[%c3_92, %c0_93, %c0_94], %335 {strides = array<i32>} : memref<8x8x128xf32, #tpu.memory_space<vmem>>, vector<1x8x128xf32>,
    %336 = tpu.concatenate %304, %329 in 1 : vector<8x128xf32>, vector<8x128xf32> -> vector<8x256xf32>
    %c0_95 = arith.constant 0 : index
    %c0_96 = arith.constant 0 : index
    %337 = vector.load %arg4[%c0_95, %c0_96] : memref<256x1024xf32, #tpu.memory_space<vmem>>, vector<256x1024xf32>
    %cst_97 = arith.constant dense<0.000000e+00> : vector<8x1024xf32>
    %338 = tpu.matmul %336, %337, %cst_97 {dimension_numbers = #tpu.dot_dimension_numbers<[1], [0], [0], [1], [0, 0, 1, 1], [], []>} : vector<8x256xf32>, vector<256x1024xf32>, vector<8x1024xf32> -> vector<8x1024xf32>
    %c40_98 = arith.constant 40 : index
    %c0_99 = arith.constant 0 : index
    %339 = vector.load %arg10[%c40_98, %c0_99] : memref<64x1024xf32, #tpu.memory_space<vmem>>, vector<8x512xf32>
    %340 = vector.extract_strided_slice %338 {offsets = [0, 0], sizes = [8, 512], strides = [1, 1]} : vector<8x1024xf32> to vector<8x512xf32>
    %341 = arith.addf %339, %340 : vector<8x512xf32>
    %c16_100 = arith.constant 16 : index
    %c512_101 = arith.constant 512 : index
    %342 = vector.load %arg10[%c16_100, %c512_101] : memref<64x1024xf32, #tpu.memory_space<vmem>>, vector<8x512xf32>
    %343 = vector.extract_strided_slice %338 {offsets = [0, 512], sizes = [8, 512], strides = [1, 1]} : vector<8x1024xf32> to vector<8x512xf32>
    %344 = arith.addf %342, %343 : vector<8x512xf32>
    %345 = vector.extract_strided_slice %341 {offsets = [0, 0], sizes = [8, 128], strides = [1, 1]} : vector<8x512xf32> to vector<8x128xf32>
    %346 = arith.negf %345 : vector<8x128xf32>
    %347 = math.exp %346 : vector<8x128xf32>
    %cst_102 = arith.constant 1.000000e+00 : f32
    %348 = vector.broadcast %cst_102 : f32 to vector<8x128xf32>
    %349 = arith.addf %348, %347 : vector<8x128xf32>
    %350 = arith.divf %348, %349 : vector<8x128xf32>
    %351 = vector.extract_strided_slice %341 {offsets = [0, 128], sizes = [8, 128], strides = [1, 1]} : vector<8x512xf32> to vector<8x128xf32>
    %352 = arith.negf %351 : vector<8x128xf32>
    %353 = math.exp %352 : vector<8x128xf32>
    %cst_103 = arith.constant 1.000000e+00 : f32
    %354 = vector.broadcast %cst_103 : f32 to vector<8x128xf32>
    %355 = arith.addf %354, %353 : vector<8x128xf32>
    %356 = arith.divf %354, %355 : vector<8x128xf32>
    %357 = vector.extract_strided_slice %341 {offsets = [0, 256], sizes = [8, 128], strides = [1, 1]} : vector<8x512xf32> to vector<8x128xf32>
    %358 = math.tanh %357 : vector<8x128xf32>
    %359 = vector.extract_strided_slice %341 {offsets = [0, 384], sizes = [8, 128], strides = [1, 1]} : vector<8x512xf32> to vector<8x128xf32>
    %360 = arith.negf %359 : vector<8x128xf32>
    %361 = math.exp %360 : vector<8x128xf32>
    %cst_104 = arith.constant 1.000000e+00 : f32
    %362 = vector.broadcast %cst_104 : f32 to vector<8x128xf32>
    %363 = arith.addf %362, %361 : vector<8x128xf32>
    %364 = arith.divf %362, %363 : vector<8x128xf32>
    %365 = arith.mulf %356, %302 : vector<8x128xf32>
    %366 = arith.mulf %350, %358 : vector<8x128xf32>
    %367 = arith.addf %365, %366 : vector<8x128xf32>
    %368 = math.tanh %367 : vector<8x128xf32>
    %369 = arith.mulf %364, %368 : vector<8x128xf32>
    %370 = vector.extract_strided_slice %344 {offsets = [0, 0], sizes = [8, 128], strides = [1, 1]} : vector<8x512xf32> to vector<8x128xf32>
    %371 = arith.negf %370 : vector<8x128xf32>
    %372 = math.exp %371 : vector<8x128xf32>
    %cst_105 = arith.constant 1.000000e+00 : f32
    %373 = vector.broadcast %cst_105 : f32 to vector<8x128xf32>
    %374 = arith.addf %373, %372 : vector<8x128xf32>
    %375 = arith.divf %373, %374 : vector<8x128xf32>
    %376 = vector.extract_strided_slice %344 {offsets = [0, 128], sizes = [8, 128], strides = [1, 1]} : vector<8x512xf32> to vector<8x128xf32>
    %377 = arith.negf %376 : vector<8x128xf32>
    %378 = math.exp %377 : vector<8x128xf32>
    %cst_106 = arith.constant 1.000000e+00 : f32
    %379 = vector.broadcast %cst_106 : f32 to vector<8x128xf32>
    %380 = arith.addf %379, %378 : vector<8x128xf32>
    %381 = arith.divf %379, %380 : vector<8x128xf32>
    %382 = vector.extract_strided_slice %344 {offsets = [0, 256], sizes = [8, 128], strides = [1, 1]} : vector<8x512xf32> to vector<8x128xf32>
    %383 = math.tanh %382 : vector<8x128xf32>
    %384 = vector.extract_strided_slice %344 {offsets = [0, 384], sizes = [8, 128], strides = [1, 1]} : vector<8x512xf32> to vector<8x128xf32>
    %385 = arith.negf %384 : vector<8x128xf32>
    %386 = math.exp %385 : vector<8x128xf32>
    %cst_107 = arith.constant 1.000000e+00 : f32
    %387 = vector.broadcast %cst_107 : f32 to vector<8x128xf32>
    %388 = arith.addf %387, %386 : vector<8x128xf32>
    %389 = arith.divf %387, %388 : vector<8x128xf32>
    %390 = arith.mulf %381, %327 : vector<8x128xf32>
    %391 = arith.mulf %375, %383 : vector<8x128xf32>
    %392 = arith.addf %390, %391 : vector<8x128xf32>
    %393 = math.tanh %392 : vector<8x128xf32>
    %394 = arith.mulf %389, %393 : vector<8x128xf32>
    %c5_108 = arith.constant 5 : index
    %c0_109 = arith.constant 0 : index
    %c0_110 = arith.constant 0 : index
    %395 = vector.load %arg6[%c5_108, %c0_109, %c0_110] : memref<8x8x128xf32, #tpu.memory_space<vmem>>, vector<1x8x128xf32>
    %396 = vector.shape_cast %395 : vector<1x8x128xf32> to vector<8x128xf32>
    %397 = vector.shape_cast %369 : vector<8x128xf32> to vector<1x8x128xf32>
    tpu.vector_store %arg6[%c5_108, %c0_109, %c0_110], %397 {strides = array<i32>} : memref<8x8x128xf32, #tpu.memory_space<vmem>>, vector<1x8x128xf32>,
    %c2_111 = arith.constant 2 : index
    %c0_112 = arith.constant 0 : index
    %c0_113 = arith.constant 0 : index
    %398 = vector.load %arg7[%c2_111, %c0_112, %c0_113] : memref<8x8x128xf32, #tpu.memory_space<vmem>>, vector<1x8x128xf32>
    %399 = vector.shape_cast %398 : vector<1x8x128xf32> to vector<8x128xf32>
    %400 = vector.shape_cast %394 : vector<8x128xf32> to vector<1x8x128xf32>
    tpu.vector_store %arg7[%c2_111, %c0_112, %c0_113], %400 {strides = array<i32>} : memref<8x8x128xf32, #tpu.memory_space<vmem>>, vector<1x8x128xf32>,
    %401 = tpu.concatenate %369, %394 in 1 : vector<8x128xf32>, vector<8x128xf32> -> vector<8x256xf32>
    %c0_114 = arith.constant 0 : index
    %c0_115 = arith.constant 0 : index
    %402 = vector.load %arg4[%c0_114, %c0_115] : memref<256x1024xf32, #tpu.memory_space<vmem>>, vector<256x1024xf32>
    %cst_116 = arith.constant dense<0.000000e+00> : vector<8x1024xf32>
    %403 = tpu.matmul %401, %402, %cst_116 {dimension_numbers = #tpu.dot_dimension_numbers<[1], [0], [0], [1], [0, 0, 1, 1], [], []>} : vector<8x256xf32>, vector<256x1024xf32>, vector<8x1024xf32> -> vector<8x1024xf32>
    %c48_117 = arith.constant 48 : index
    %c0_118 = arith.constant 0 : index
    %404 = vector.load %arg10[%c48_117, %c0_118] : memref<64x1024xf32, #tpu.memory_space<vmem>>, vector<8x512xf32>
    %405 = vector.extract_strided_slice %403 {offsets = [0, 0], sizes = [8, 512], strides = [1, 1]} : vector<8x1024xf32> to vector<8x512xf32>
    %406 = arith.addf %404, %405 : vector<8x512xf32>
    %c8_119 = arith.constant 8 : index
    %c512_120 = arith.constant 512 : index
    %407 = vector.load %arg10[%c8_119, %c512_120] : memref<64x1024xf32, #tpu.memory_space<vmem>>, vector<8x512xf32>
    %408 = vector.extract_strided_slice %403 {offsets = [0, 512], sizes = [8, 512], strides = [1, 1]} : vector<8x1024xf32> to vector<8x512xf32>
    %409 = arith.addf %407, %408 : vector<8x512xf32>
    %410 = vector.extract_strided_slice %406 {offsets = [0, 0], sizes = [8, 128], strides = [1, 1]} : vector<8x512xf32> to vector<8x128xf32>
    %411 = arith.negf %410 : vector<8x128xf32>
    %412 = math.exp %411 : vector<8x128xf32>
    %cst_121 = arith.constant 1.000000e+00 : f32
    %413 = vector.broadcast %cst_121 : f32 to vector<8x128xf32>
    %414 = arith.addf %413, %412 : vector<8x128xf32>
    %415 = arith.divf %413, %414 : vector<8x128xf32>
    %416 = vector.extract_strided_slice %406 {offsets = [0, 128], sizes = [8, 128], strides = [1, 1]} : vector<8x512xf32> to vector<8x128xf32>
    %417 = arith.negf %416 : vector<8x128xf32>
    %418 = math.exp %417 : vector<8x128xf32>
    %cst_122 = arith.constant 1.000000e+00 : f32
    %419 = vector.broadcast %cst_122 : f32 to vector<8x128xf32>
    %420 = arith.addf %419, %418 : vector<8x128xf32>
    %421 = arith.divf %419, %420 : vector<8x128xf32>
    %422 = vector.extract_strided_slice %406 {offsets = [0, 256], sizes = [8, 128], strides = [1, 1]} : vector<8x512xf32> to vector<8x128xf32>
    %423 = math.tanh %422 : vector<8x128xf32>
    %424 = vector.extract_strided_slice %406 {offsets = [0, 384], sizes = [8, 128], strides = [1, 1]} : vector<8x512xf32> to vector<8x128xf32>
    %425 = arith.negf %424 : vector<8x128xf32>
    %426 = math.exp %425 : vector<8x128xf32>
    %cst_123 = arith.constant 1.000000e+00 : f32
    %427 = vector.broadcast %cst_123 : f32 to vector<8x128xf32>
    %428 = arith.addf %427, %426 : vector<8x128xf32>
    %429 = arith.divf %427, %428 : vector<8x128xf32>
    %430 = arith.mulf %421, %367 : vector<8x128xf32>
    %431 = arith.mulf %415, %423 : vector<8x128xf32>
    %432 = arith.addf %430, %431 : vector<8x128xf32>
    %433 = math.tanh %432 : vector<8x128xf32>
    %434 = arith.mulf %429, %433 : vector<8x128xf32>
    %435 = vector.extract_strided_slice %409 {offsets = [0, 0], sizes = [8, 128], strides = [1, 1]} : vector<8x512xf32> to vector<8x128xf32>
    %436 = arith.negf %435 : vector<8x128xf32>
    %437 = math.exp %436 : vector<8x128xf32>
    %cst_124 = arith.constant 1.000000e+00 : f32
    %438 = vector.broadcast %cst_124 : f32 to vector<8x128xf32>
    %439 = arith.addf %438, %437 : vector<8x128xf32>
    %440 = arith.divf %438, %439 : vector<8x128xf32>
    %441 = vector.extract_strided_slice %409 {offsets = [0, 128], sizes = [8, 128], strides = [1, 1]} : vector<8x512xf32> to vector<8x128xf32>
    %442 = arith.negf %441 : vector<8x128xf32>
    %443 = math.exp %442 : vector<8x128xf32>
    %cst_125 = arith.constant 1.000000e+00 : f32
    %444 = vector.broadcast %cst_125 : f32 to vector<8x128xf32>
    %445 = arith.addf %444, %443 : vector<8x128xf32>
    %446 = arith.divf %444, %445 : vector<8x128xf32>
    %447 = vector.extract_strided_slice %409 {offsets = [0, 256], sizes = [8, 128], strides = [1, 1]} : vector<8x512xf32> to vector<8x128xf32>
    %448 = math.tanh %447 : vector<8x128xf32>
    %449 = vector.extract_strided_slice %409 {offsets = [0, 384], sizes = [8, 128], strides = [1, 1]} : vector<8x512xf32> to vector<8x128xf32>
    %450 = arith.negf %449 : vector<8x128xf32>
    %451 = math.exp %450 : vector<8x128xf32>
    %cst_126 = arith.constant 1.000000e+00 : f32
    %452 = vector.broadcast %cst_126 : f32 to vector<8x128xf32>
    %453 = arith.addf %452, %451 : vector<8x128xf32>
    %454 = arith.divf %452, %453 : vector<8x128xf32>
    %455 = arith.mulf %446, %392 : vector<8x128xf32>
    %456 = arith.mulf %440, %448 : vector<8x128xf32>
    %457 = arith.addf %455, %456 : vector<8x128xf32>
    %458 = math.tanh %457 : vector<8x128xf32>
    %459 = arith.mulf %454, %458 : vector<8x128xf32>
    %c6_127 = arith.constant 6 : index
    %c0_128 = arith.constant 0 : index
    %c0_129 = arith.constant 0 : index
    %460 = vector.load %arg6[%c6_127, %c0_128, %c0_129] : memref<8x8x128xf32, #tpu.memory_space<vmem>>, vector<1x8x128xf32>
    %461 = vector.shape_cast %460 : vector<1x8x128xf32> to vector<8x128xf32>
    %462 = vector.shape_cast %434 : vector<8x128xf32> to vector<1x8x128xf32>
    tpu.vector_store %arg6[%c6_127, %c0_128, %c0_129], %462 {strides = array<i32>} : memref<8x8x128xf32, #tpu.memory_space<vmem>>, vector<1x8x128xf32>,
    %c1_130 = arith.constant 1 : index
    %c0_131 = arith.constant 0 : index
    %c0_132 = arith.constant 0 : index
    %463 = vector.load %arg7[%c1_130, %c0_131, %c0_132] : memref<8x8x128xf32, #tpu.memory_space<vmem>>, vector<1x8x128xf32>
    %464 = vector.shape_cast %463 : vector<1x8x128xf32> to vector<8x128xf32>
    %465 = vector.shape_cast %459 : vector<8x128xf32> to vector<1x8x128xf32>
    tpu.vector_store %arg7[%c1_130, %c0_131, %c0_132], %465 {strides = array<i32>} : memref<8x8x128xf32, #tpu.memory_space<vmem>>, vector<1x8x128xf32>,
    %466 = tpu.concatenate %434, %459 in 1 : vector<8x128xf32>, vector<8x128xf32> -> vector<8x256xf32>
    %c0_133 = arith.constant 0 : index
    %c0_134 = arith.constant 0 : index
    %467 = vector.load %arg4[%c0_133, %c0_134] : memref<256x1024xf32, #tpu.memory_space<vmem>>, vector<256x1024xf32>
    %cst_135 = arith.constant dense<0.000000e+00> : vector<8x1024xf32>
    %468 = tpu.matmul %466, %467, %cst_135 {dimension_numbers = #tpu.dot_dimension_numbers<[1], [0], [0], [1], [0, 0, 1, 1], [], []>} : vector<8x256xf32>, vector<256x1024xf32>, vector<8x1024xf32> -> vector<8x1024xf32>
    %c56_136 = arith.constant 56 : index
    %c0_137 = arith.constant 0 : index
    %469 = vector.load %arg10[%c56_136, %c0_137] : memref<64x1024xf32, #tpu.memory_space<vmem>>, vector<8x512xf32>
    %470 = vector.extract_strided_slice %468 {offsets = [0, 0], sizes = [8, 512], strides = [1, 1]} : vector<8x1024xf32> to vector<8x512xf32>
    %471 = arith.addf %469, %470 : vector<8x512xf32>
    %c0_138 = arith.constant 0 : index
    %c512_139 = arith.constant 512 : index
    %472 = vector.load %arg10[%c0_138, %c512_139] : memref<64x1024xf32, #tpu.memory_space<vmem>>, vector<8x512xf32>
    %473 = vector.extract_strided_slice %468 {offsets = [0, 512], sizes = [8, 512], strides = [1, 1]} : vector<8x1024xf32> to vector<8x512xf32>
    %474 = arith.addf %472, %473 : vector<8x512xf32>
    %475 = vector.extract_strided_slice %471 {offsets = [0, 0], sizes = [8, 128], strides = [1, 1]} : vector<8x512xf32> to vector<8x128xf32>
    %476 = arith.negf %475 : vector<8x128xf32>
    %477 = math.exp %476 : vector<8x128xf32>
    %cst_140 = arith.constant 1.000000e+00 : f32
    %478 = vector.broadcast %cst_140 : f32 to vector<8x128xf32>
    %479 = arith.addf %478, %477 : vector<8x128xf32>
    %480 = arith.divf %478, %479 : vector<8x128xf32>
    %481 = vector.extract_strided_slice %471 {offsets = [0, 128], sizes = [8, 128], strides = [1, 1]} : vector<8x512xf32> to vector<8x128xf32>
    %482 = arith.negf %481 : vector<8x128xf32>
    %483 = math.exp %482 : vector<8x128xf32>
    %cst_141 = arith.constant 1.000000e+00 : f32
    %484 = vector.broadcast %cst_141 : f32 to vector<8x128xf32>
    %485 = arith.addf %484, %483 : vector<8x128xf32>
    %486 = arith.divf %484, %485 : vector<8x128xf32>
    %487 = vector.extract_strided_slice %471 {offsets = [0, 256], sizes = [8, 128], strides = [1, 1]} : vector<8x512xf32> to vector<8x128xf32>
    %488 = math.tanh %487 : vector<8x128xf32>
    %489 = vector.extract_strided_slice %471 {offsets = [0, 384], sizes = [8, 128], strides = [1, 1]} : vector<8x512xf32> to vector<8x128xf32>
    %490 = arith.negf %489 : vector<8x128xf32>
    %491 = math.exp %490 : vector<8x128xf32>
    %cst_142 = arith.constant 1.000000e+00 : f32
    %492 = vector.broadcast %cst_142 : f32 to vector<8x128xf32>
    %493 = arith.addf %492, %491 : vector<8x128xf32>
    %494 = arith.divf %492, %493 : vector<8x128xf32>
    %495 = arith.mulf %486, %432 : vector<8x128xf32>
    %496 = arith.mulf %480, %488 : vector<8x128xf32>
    %497 = arith.addf %495, %496 : vector<8x128xf32>
    %498 = math.tanh %497 : vector<8x128xf32>
    %499 = arith.mulf %494, %498 : vector<8x128xf32>
    %500 = vector.extract_strided_slice %474 {offsets = [0, 0], sizes = [8, 128], strides = [1, 1]} : vector<8x512xf32> to vector<8x128xf32>
    %501 = arith.negf %500 : vector<8x128xf32>
    %502 = math.exp %501 : vector<8x128xf32>
    %cst_143 = arith.constant 1.000000e+00 : f32
    %503 = vector.broadcast %cst_143 : f32 to vector<8x128xf32>
    %504 = arith.addf %503, %502 : vector<8x128xf32>
    %505 = arith.divf %503, %504 : vector<8x128xf32>
    %506 = vector.extract_strided_slice %474 {offsets = [0, 128], sizes = [8, 128], strides = [1, 1]} : vector<8x512xf32> to vector<8x128xf32>
    %507 = arith.negf %506 : vector<8x128xf32>
    %508 = math.exp %507 : vector<8x128xf32>
    %cst_144 = arith.constant 1.000000e+00 : f32
    %509 = vector.broadcast %cst_144 : f32 to vector<8x128xf32>
    %510 = arith.addf %509, %508 : vector<8x128xf32>
    %511 = arith.divf %509, %510 : vector<8x128xf32>
    %512 = vector.extract_strided_slice %474 {offsets = [0, 256], sizes = [8, 128], strides = [1, 1]} : vector<8x512xf32> to vector<8x128xf32>
    %513 = math.tanh %512 : vector<8x128xf32>
    %514 = vector.extract_strided_slice %474 {offsets = [0, 384], sizes = [8, 128], strides = [1, 1]} : vector<8x512xf32> to vector<8x128xf32>
    %515 = arith.negf %514 : vector<8x128xf32>
    %516 = math.exp %515 : vector<8x128xf32>
    %cst_145 = arith.constant 1.000000e+00 : f32
    %517 = vector.broadcast %cst_145 : f32 to vector<8x128xf32>
    %518 = arith.addf %517, %516 : vector<8x128xf32>
    %519 = arith.divf %517, %518 : vector<8x128xf32>
    %520 = arith.mulf %511, %457 : vector<8x128xf32>
    %521 = arith.mulf %505, %513 : vector<8x128xf32>
    %522 = arith.addf %520, %521 : vector<8x128xf32>
    %523 = math.tanh %522 : vector<8x128xf32>
    %524 = arith.mulf %519, %523 : vector<8x128xf32>
    %c7_146 = arith.constant 7 : index
    %c0_147 = arith.constant 0 : index
    %c0_148 = arith.constant 0 : index
    %525 = vector.load %arg6[%c7_146, %c0_147, %c0_148] : memref<8x8x128xf32, #tpu.memory_space<vmem>>, vector<1x8x128xf32>
    %526 = vector.shape_cast %525 : vector<1x8x128xf32> to vector<8x128xf32>
    %527 = vector.shape_cast %499 : vector<8x128xf32> to vector<1x8x128xf32>
    tpu.vector_store %arg6[%c7_146, %c0_147, %c0_148], %527 {strides = array<i32>} : memref<8x8x128xf32, #tpu.memory_space<vmem>>, vector<1x8x128xf32>,
    %c0_149 = arith.constant 0 : index
    %c0_150 = arith.constant 0 : index
    %c0_151 = arith.constant 0 : index
    %528 = vector.load %arg7[%c0_149, %c0_150, %c0_151] : memref<8x8x128xf32, #tpu.memory_space<vmem>>, vector<1x8x128xf32>
    %529 = vector.shape_cast %528 : vector<1x8x128xf32> to vector<8x128xf32>
    %530 = vector.shape_cast %524 : vector<8x128xf32> to vector<1x8x128xf32>
    tpu.vector_store %arg7[%c0_149, %c0_150, %c0_151], %530 {strides = array<i32>} : memref<8x8x128xf32, #tpu.memory_space<vmem>>, vector<1x8x128xf32>,
    %531 = tpu.concatenate %499, %524 in 1 : vector<8x128xf32>, vector<8x128xf32> -> vector<8x256xf32>
    %532 = vector.extract_strided_slice %531 {offsets = [0, 0], sizes = [8, 128], strides = [1, 1]} : vector<8x256xf32> to vector<8x128xf32>
    %c0_152 = arith.constant 0 : index
    %c0_153 = arith.constant 0 : index
    %c0_154 = arith.constant 0 : index
    %533 = vector.load %arg8[%c0_152, %c0_153, %c0_154] : memref<2x8x128xf32, #tpu.memory_space<vmem>>, vector<1x8x128xf32>
    %534 = vector.shape_cast %533 : vector<1x8x128xf32> to vector<8x128xf32>
    %535 = vector.shape_cast %532 : vector<8x128xf32> to vector<1x8x128xf32>
    tpu.vector_store %arg8[%c0_152, %c0_153, %c0_154], %535 {strides = array<i32>} : memref<2x8x128xf32, #tpu.memory_space<vmem>>, vector<1x8x128xf32>,
    %536 = vector.extract_strided_slice %531 {offsets = [0, 128], sizes = [8, 128], strides = [1, 1]} : vector<8x256xf32> to vector<8x128xf32>
    %c1_155 = arith.constant 1 : index
    %c0_156 = arith.constant 0 : index
    %c0_157 = arith.constant 0 : index
    %537 = vector.load %arg8[%c1_155, %c0_156, %c0_157] : memref<2x8x128xf32, #tpu.memory_space<vmem>>, vector<1x8x128xf32>
    %538 = vector.shape_cast %537 : vector<1x8x128xf32> to vector<8x128xf32>
    %539 = vector.shape_cast %536 : vector<8x128xf32> to vector<1x8x128xf32>
    tpu.vector_store %arg8[%c1_155, %c0_156, %c0_157], %539 {strides = array<i32>} : memref<2x8x128xf32, #tpu.memory_space<vmem>>, vector<1x8x128xf32>,
    %c0_158 = arith.constant 0 : index
    %c0_159 = arith.constant 0 : index
    %c0_160 = arith.constant 0 : index
    %540 = vector.load %arg9[%c0_158, %c0_159, %c0_160] : memref<2x8x128xf32, #tpu.memory_space<vmem>>, vector<1x8x128xf32>
    %541 = vector.shape_cast %540 : vector<1x8x128xf32> to vector<8x128xf32>
    %542 = vector.shape_cast %497 : vector<8x128xf32> to vector<1x8x128xf32>
    tpu.vector_store %arg9[%c0_158, %c0_159, %c0_160], %542 {strides = array<i32>} : memref<2x8x128xf32, #tpu.memory_space<vmem>>, vector<1x8x128xf32>,
    %c1_161 = arith.constant 1 : index
    %c0_162 = arith.constant 0 : index
    %c0_163 = arith.constant 0 : index
    %543 = vector.load %arg9[%c1_161, %c0_162, %c0_163] : memref<2x8x128xf32, #tpu.memory_space<vmem>>, vector<1x8x128xf32>
    %544 = vector.shape_cast %543 : vector<1x8x128xf32> to vector<8x128xf32>
    %545 = vector.shape_cast %522 : vector<8x128xf32> to vector<1x8x128xf32>
    tpu.vector_store %arg9[%c1_161, %c0_162, %c0_163], %545 {strides = array<i32>} : memref<2x8x128xf32, #tpu.memory_space<vmem>>, vector<1x8x128xf32>,
    return
  }
}

</mosaic_0001>

<bundles_post_ra>
// kernel: tpu_custom_call.1
= control target key start
LH: loop header
LB: loop body
LE: loop exit
PB: predicated region body
PF: predicated region fallthrough
CT: control target
= control target key end

     0   :  { %15 = vsyncpa [#allocation4], 0  ;;  %s6720_s0 = inlined_call_operand.vmem [shape: f32[64,16], index: 0, kind: input, shape index: {}]   ;;  %s6721_s1 = inlined_call_operand.vmem [shape: f32[8,256], index: 1, kind: input, shape index: {}]   ;;  %s6722_s2 = inlined_call_operand.vmem [shape: f32[2,8,128], index: 2, kind: input, shape index: {}]   ;;  %s6723_s3 = inlined_call_operand.hbm [shape: f32[16,1024], index: 3, kind: input, shape index: {}]   ;;  %s6724_s4 = inlined_call_operand.hbm [shape: f32[256,1024], index: 4, kind: input, shape index: {}]   ;;  %s6725_s5 = inlined_call_operand.vmem [shape: f32[1,1024], index: 5, kind: input, shape index: {}]   ;;  %s6726_s6 = inlined_call_operand.hbm [shape: f32[8,8,128], index: 6, kind: output, shape index: {0}]   ;;  %s6727_s7 = inlined_call_operand.hbm [shape: f32[8,8,128], index: 7, kind: output, shape index: {1}]   ;;  %s6728_s8 = inlined_call_operand.hbm [shape: f32[2,8,128], index: 8, kind: output, shape index: {2}]   ;;  %s6729_s9 = inlined_call_operand.hbm [shape: f32[2,8,128], index: 9, kind: output, shape index: {3}]  }
   0x1   :  { %16 = vsyncpa [#allocation7], 0 }
   0x2   :  { %17 = vsyncpa [#allocation5], 0 }
   0x3   :  { %18 = vsyncpa [#allocation10], 0 }
   0x4   :  { %19 = vsyncpa [#allocation13], 0  ;;  %s6081_s30 = smov [#allocation3]  }
   0x5   :  { %s31_s10 = sshll.u32 %s6081_s30, 4  ;;  %s32_s10 = int_to_ptr.vmem [resolvable:$true] %s31_s10 }
   0x6   :  { %s5959_s11 = scalar_lea.vmem %s32_s10, 2048  ;;  %p5964_p1 = scmp.lt.s32.totalorder %s32_s10, %s32_s10 }
   0x7   :  { %p5960_p0 = scmp.ne.s32.totalorder %s32_s10, %s5959_s11  ;;  %p5965_p2 = scmp.lt.s32.totalorder %s5959_s11, %s5959_s11 }
   0x9   :  { %p5966_p3 = por %p5965_p2, %p5964_p1 }
   0xb   :  { %p5967_p4 = pnand %p5966_p3, %p5960_p0 }
   0xd   :  { %5970 = shalt.err (!%p5967_p4)
}
   0xe   :  { %s6082_s12 = smov 1024   ;;  %s6083_s13 = smov 64  }
   0xf   :  { %37 = dma.hbm_to_vmem [thread:$0]  %s6723_s3, 2048, %s32_s10, [#allocation4], %s6082_s12, %s6082_s12, %s6083_s13  }
  0x10   :  { %s6084_s16 = smov [#allocation6]  }
  0x11   :  { %s43_s17 = sshll.u32 %s6084_s16, 4  ;;  %s44_s17 = int_to_ptr.vmem [resolvable:$true] %s43_s17 }
  0x12   :  { %s5979_s18 = scalar_lea.vmem %s44_s17, 32768  ;;  %p5984_p6 = scmp.lt.s32.totalorder %s44_s17, %s44_s17 }
  0x13   :  { %p5980_p5 = scmp.ne.s32.totalorder %s44_s17, %s5979_s18  ;;  %p5985_p7 = scmp.lt.s32.totalorder %s5979_s18, %s5979_s18 }
  0x15   :  { %p5986_p8 = por %p5985_p7, %p5984_p6 }
  0x17   :  { %p5987_p9 = pnand %p5986_p8, %p5980_p5 }
  0x19   :  { %5990 = shalt.err (!%p5987_p9)
}
  0x1a   :  { %49 = dma.hbm_to_vmem [thread:$0]  %s6724_s4, 32768, %s44_s17, [#allocation7], %s6082_s12, %s6082_s12, %s6083_s13  }
  0x1b   :  { %6071 = dma.done.wait [#allocation4], 2048  }
  0x1c   :  { %6072 = vsyncadd [#allocation4], 4294965248 }
  0x1d   :  { %6073 = dma.done.wait [#allocation7], 32768  }
  0x1e   :  { %6074 = vsyncadd [#allocation7], 4294934528  ;;  %v6085_v0 = vmov 0.0   ;;  %v75_v1 = vld [vmem:[#allocation3 + $0x48] sm:$0xff]  ;;  %v77_v2 = vld [vmem:[#allocation3 + $0x58] sm:$0xff]  ;;  %vm124_vm0 = vcmask 130048  }
  0x1f   :  { %213 = vmatprep.mubr.f32.mxu0 %v6085_v0  ;;  %326 = vmatprep.mubr.f32.mxu1 %v6085_v0  ;;  %v74_v3 = vld [vmem:[#allocation3 + $0x40] sm:$0xff]  ;;  %v76_v4 = vld [vmem:[#allocation3 + $0x50] sm:$0xff]  ;;  %v67_v5 = vld [vmem:[#allocation3 + $0x8] sm:$0xff] }
  0x20   :  { %177 = vmatprep.subr.mxu0 %v75_v1  ;;  %290 = vmatprep.subr.mxu1 %v77_v2  ;;  %v69_v6 = vld [vmem:[#allocation3 + $0x18] sm:$0xff]  ;;  %v66_v7 = vld [vmem:[#allocation3] sm:$0xff]  ;;  %v68_v8 = vld [vmem:[#allocation3 + $0x10] sm:$0xff] }
  0x21   :  { %178 = vmatpush1.msra.mxu0 %v74_v3  ;;  %291 = vmatpush1.msra.mxu1 %v76_v4  ;;  %v6153_v9 = vld [vmem:[%s6720_s0] sm:$0xff]  ;;  %v79_v10 = vld [vmem:[#allocation3 + $0x68] sm:$0xff]  ;;  %v81_v13 = vld [vmem:[#allocation3 + $0x78] sm:$0xff] }
  0x22   :  { %179 = vmatprep.subr.mxu0 %v67_v5  ;;  %292 = vmatprep.subr.mxu1 %v69_v6  ;;  %v78_v11 = vld [vmem:[#allocation3 + $0x60] sm:$0xff]  ;;  %v71_v12 = vld [vmem:[#allocation3 + $0x28] sm:$0xff]  ;;  %v80_v16 = vld [vmem:[#allocation3 + $0x70] sm:$0xff] }
  0x23   :  { %180 = vmatpush1.msra.mxu0 %v66_v7  ;;  %293 = vmatpush1.msra.mxu1 %v68_v8  ;;  %v6163_v14 = vld [vmem:[%s6720_s0 + $0x8] sm:$0xff]  ;;  %v70_v15 = vld [vmem:[#allocation3 + $0x20] sm:$0xff]  ;;  %v73_v17 = vld [vmem:[#allocation3 + $0x38] sm:$0xff] }
  0x24   :  { %5603 = vmatmul.mubr.msk.f32.vlgmr.msra.gmra.mxu0 %vm124_vm0, %v6153_v9  ;;  %5611 = vmatmul.mubr.msk.f32.vlgmr.msra.gmra.mxu1 %vm124_vm0, %v6153_v9  ;;  %v791_v18 = vld [vmem:[#allocation6 + $0x3c8] sm:$0xff]  ;;  %v6175_v19 = vld [vmem:[%s6720_s0 + $0x10] sm:$0xff]  ;;  %v793_v21 = vld [vmem:[#allocation6 + $0x3d8] sm:$0xff] }
  0x25   :  { %403 = vmatprep.subr.mxu0 %v79_v10  ;;  %219 = vmatprep.mubr.f32.mxu0 %v6085_v0  ;;  %v72_v20 = vld [vmem:[#allocation3 + $0x30] sm:$0xff]  ;;  %v6186_v22 = vld [vmem:[%s6720_s0 + $0x18] sm:$0xff]  ;;  %v6197_v23 = vld [vmem:[%s6720_s0 + $0x20] sm:$0xff] }
  0x26   :  { %404 = vmatpush1.msra.mxu0 %v78_v11  ;;  %332 = vmatprep.mubr.f32.mxu1 %v6085_v0  ;;  %v6208_v24 = vld [vmem:[%s6720_s0 + $0x28] sm:$0xff]  ;;  %v6219_v25 = vld [vmem:[%s6720_s0 + $0x30] sm:$0xff]  ;;  %v6230_v26 = vld [vmem:[%s6720_s0 + $0x38] sm:$0xff] }
  0x27   :  { %405 = vmatprep.subr.mxu0 %v71_v12  ;;  %516 = vmatprep.subr.mxu1 %v81_v13  ;;  %v790_v27 = vld [vmem:[#allocation6 + $0x3c0] sm:$0xff]  ;;  %v792_v28 = vld [vmem:[#allocation6 + $0x3d0] sm:$0xff]  ;;  %v783_v29 = vld [vmem:[#allocation6 + $0x388] sm:$0xff] }
  0x28   :  { %5604 = vmatmul.mubr.msk.f32.gmra.mxu0 %vm124_vm0, %v6163_v14  ;;  %5612 = vmatmul.mubr.msk.f32.gmra.mxu1 %vm124_vm0, %v6163_v14  ;;  %v785_v30 = vld [vmem:[#allocation6 + $0x398] sm:$0xff]  ;;  %v782_v31 = vld [vmem:[#allocation6 + $0x380] sm:$0xff]  ;;  %v784_v32 = vld [vmem:[#allocation6 + $0x390] sm:$0xff] }
  0x29   :  { %225 = vmatprep.mubr.f32.mxu0 %v6085_v0  ;;  %338 = vmatprep.mubr.f32.mxu1 %v6085_v0  ;;  %v775_v33 = vld [vmem:[#allocation6 + $0x348] sm:$0xff]  ;;  %v777_v34 = vld [vmem:[#allocation6 + $0x358] sm:$0xff]  ;;  %v774_v35 = vld [vmem:[#allocation6 + $0x340] sm:$0xff] }
  0x2a   :  { %406 = vmatpush1.msra.mxu0 %v70_v15  ;;  %517 = vmatpush1.msra.mxu1 %v80_v16  ;;  %v776_v36 = vld [vmem:[#allocation6 + $0x350] sm:$0xff]  ;;  %v767_v37 = vld [vmem:[#allocation6 + $0x308] sm:$0xff]  ;;  %v769_v38 = vld [vmem:[#allocation6 + $0x318] sm:$0xff] }
  0x2b   :  { %518 = vmatprep.subr.mxu1 %v73_v17  ;;  %926 = vmatprep.subr.mxu0 %v791_v18  ;;  %v766_v39 = vld [vmem:[#allocation6 + $0x300] sm:$0xff]  ;;  %v768_v40 = vld [vmem:[#allocation6 + $0x310] sm:$0xff]  ;;  %v759_v41 = vld [vmem:[#allocation6 + $0x2c8] sm:$0xff] }
  0x2c   :  { %5605 = vmatmul.mubr.msk.f32.gmra.mxu0 %vm124_vm0, %v6175_v19  ;;  %5613 = vmatmul.mubr.msk.f32.gmra.mxu1 %vm124_vm0, %v6175_v19  ;;  %v761_v42 = vld [vmem:[#allocation6 + $0x2d8] sm:$0xff]  ;;  %v758_v43 = vld [vmem:[#allocation6 + $0x2c0] sm:$0xff]  ;;  %v760_v44 = vld [vmem:[#allocation6 + $0x2d0] sm:$0xff] }
  0x2d   :  { %231 = vmatprep.mubr.f32.mxu0 %v6085_v0  ;;  %344 = vmatprep.mubr.f32.mxu1 %v6085_v0  ;;  %v751_v45 = vld [vmem:[#allocation6 + $0x288] sm:$0xff]  ;;  %v753_v46 = vld [vmem:[#allocation6 + $0x298] sm:$0xff]  ;;  %v750_v47 = vld [vmem:[#allocation6 + $0x280] sm:$0xff] }
  0x2e   :  { %519 = vmatpush1.msra.mxu1 %v72_v20  ;;  %v752_v48 = vld [vmem:[#allocation6 + $0x290] sm:$0xff]  ;;  %v743_v49 = vld [vmem:[#allocation6 + $0x248] sm:$0xff]  ;;  %v745_v50 = vld [vmem:[#allocation6 + $0x258] sm:$0xff] }
  0x2f   :  { %997 = vmatprep.subr.mxu1 %v793_v21  ;;  %v742_v51 = vld [vmem:[#allocation6 + $0x240] sm:$0xff]  ;;  %v744_v52 = vld [vmem:[#allocation6 + $0x250] sm:$0xff]  ;;  %v735_v53 = vld [vmem:[#allocation6 + $0x208] sm:$0xff] }
  0x30   :  { %5606 = vmatmul.mubr.msk.f32.gmra.mxu0 %vm124_vm0, %v6186_v22  ;;  %5614 = vmatmul.mubr.msk.f32.gmra.mxu1 %vm124_vm0, %v6186_v22  ;;  %v737_v54 = vld [vmem:[#allocation6 + $0x218] sm:$0xff]  ;;  %v734_v55 = vld [vmem:[#allocation6 + $0x200] sm:$0xff]  ;;  %v736_v56 = vld [vmem:[#allocation6 + $0x210] sm:$0xff] }
  0x31   :  { %237 = vmatprep.mubr.f32.mxu0 %v6085_v0  ;;  %350 = vmatprep.mubr.f32.mxu1 %v6085_v0  ;;  %v727_v57 = vld [vmem:[#allocation6 + $0x1c8] sm:$0xff]  ;;  %v729_v58 = vld [vmem:[#allocation6 + $0x1d8] sm:$0xff]  ;;  %v726_v59 = vld [vmem:[#allocation6 + $0x1c0] sm:$0xff] }
  0x32   :  { %v728_v60 = vld [vmem:[#allocation6 + $0x1d0] sm:$0xff]  ;;  %v719_v61 = vld [vmem:[#allocation6 + $0x188] sm:$0xff]  ;;  %v721_v62 = vld [vmem:[#allocation6 + $0x198] sm:$0xff] }
  0x33   :  { %v718_v63 = vld [vmem:[#allocation6 + $0x180] sm:$0xff]  ;;  %v720_v1 = vld [vmem:[#allocation6 + $0x190] sm:$0xff]  ;;  %v711_v2 = vld [vmem:[#allocation6 + $0x148] sm:$0xff] }
  0x34   :  { %5607 = vmatmul.mubr.msk.f32.gmra.mxu0 %vm124_vm0, %v6197_v23  ;;  %5615 = vmatmul.mubr.msk.f32.gmra.mxu1 %vm124_vm0, %v6197_v23  ;;  %v713_v3 = vld [vmem:[#allocation6 + $0x158] sm:$0xff]  ;;  %v710_v4 = vld [vmem:[#allocation6 + $0x140] sm:$0xff]  ;;  %v712_v5 = vld [vmem:[#allocation6 + $0x150] sm:$0xff] }
  0x35   :  { %243 = vmatprep.mubr.f32.mxu0 %v6085_v0  ;;  %356 = vmatprep.mubr.f32.mxu1 %v6085_v0  ;;  %v703_v6 = vld [vmem:[#allocation6 + $0x108] sm:$0xff]  ;;  %v705_v7 = vld [vmem:[#allocation6 + $0x118] sm:$0xff]  ;;  %v702_v8 = vld [vmem:[#allocation6 + $0x100] sm:$0xff] }
  0x36   :  { %v695_v10 = vld [vmem:[#allocation6 + $0xc8] sm:$0xff]  ;;  %v697_v11 = vld [vmem:[#allocation6 + $0xd8] sm:$0xff]  ;;  %v694_v12 = vld [vmem:[#allocation6 + $0xc0] sm:$0xff] }
  0x37   :  { %v696_v13 = vld [vmem:[#allocation6 + $0xd0] sm:$0xff]  ;;  %v687_v15 = vld [vmem:[#allocation6 + $0x88] sm:$0xff]  ;;  %v689_v16 = vld [vmem:[#allocation6 + $0x98] sm:$0xff] }
  0x38   :  { %5608 = vmatmul.mubr.msk.f32.gmra.mxu0 %vm124_vm0, %v6208_v24  ;;  %5616 = vmatmul.mubr.msk.f32.gmra.mxu1 %vm124_vm0, %v6208_v24  ;;  %v686_v17 = vld [vmem:[#allocation6 + $0x80] sm:$0xff]  ;;  %v688_v18 = vld [vmem:[#allocation6 + $0x90] sm:$0xff]  ;;  %v679_v20 = vld [vmem:[#allocation6 + $0x48] sm:$0xff] }
  0x39   :  { %249 = vmatprep.mubr.f32.mxu0 %v6085_v0  ;;  %362 = vmatprep.mubr.f32.mxu1 %v6085_v0  ;;  %v681_v21 = vld [vmem:[#allocation6 + $0x58] sm:$0xff] }
  0x3c   :  { %5609 = vmatmul.mubr.msk.f32.gmra.mxu0 %vm124_vm0, %v6219_v25  ;;  %5617 = vmatmul.mubr.msk.f32.gmra.mxu1 %vm124_vm0, %v6219_v25 }
  0x3d   :  { %255 = vmatprep.mubr.f32.mxu0 %v6085_v0  ;;  %368 = vmatprep.mubr.f32.mxu1 %v6085_v0 }
  0x40   :  { %5610 = vmatmul.mubr.msk.f32.gmra.mxu0 %vm124_vm0, %v6230_v26  ;;  %5618 = vmatmul.mubr.msk.f32.gmra.mxu1 %vm124_vm0, %v6230_v26 }
  0x41   :  { %439 = vmatprep.mubr.f32.mxu0 %v6085_v0  ;;  %552 = vmatprep.mubr.f32.mxu1 %v6085_v0 }
  0x44   :  { %5619 = vmatmul.mubr.msk.f32.vlgmr.msra.gmra.mxu0 %vm124_vm0, %v6153_v9  ;;  %5627 = vmatmul.mubr.msk.f32.vlgmr.msra.gmra.mxu1 %vm124_vm0, %v6153_v9  ;;  %v704_v9 = vld [vmem:[#allocation6 + $0x110] sm:$0xff] }
  0x45   :  { %927 = vmatpush1.msra.mxu0 %v790_v27  ;;  %998 = vmatpush1.msra.mxu1 %v792_v28  ;;  %v678_v27 = vld [vmem:[#allocation6 + $0x40] sm:$0xff]  ;;  %v680_v28 = vld [vmem:[#allocation6 + $0x50] sm:$0xff] }
  0x46   :  { %928 = vmatprep.subr.mxu0 %v783_v29  ;;  %999 = vmatprep.subr.mxu1 %v785_v30  ;;  %v671_v29 = vld [vmem:[#allocation6 + $0x8] sm:$0xff]  ;;  %v673_v30 = vld [vmem:[#allocation6 + $0x18] sm:$0xff] }
  0x47   :  { %929 = vmatpush1.msra.mxu0 %v782_v31  ;;  %1000 = vmatpush1.msra.mxu1 %v784_v32  ;;  %v670_v31 = vld [vmem:[#allocation6] sm:$0xff]  ;;  %v672_v32 = vld [vmem:[#allocation6 + $0x10] sm:$0xff] }
  0x48   :  { %930 = vmatprep.subr.mxu0 %v775_v33  ;;  %1001 = vmatprep.subr.mxu1 %v777_v34  ;;  %v919_v33 = vld [vmem:[#allocation6 + $0x7c8] sm:$0xff]  ;;  %v921_v34 = vld [vmem:[#allocation6 + $0x7d8] sm:$0xff] }
  0x49   :  { %931 = vmatpush1.msra.mxu0 %v774_v35  ;;  %1002 = vmatpush1.msra.mxu1 %v776_v36  ;;  %v918_v35 = vld [vmem:[#allocation6 + $0x7c0] sm:$0xff]  ;;  %v920_v36 = vld [vmem:[#allocation6 + $0x7d0] sm:$0xff] }
  0x4a   :  { %932 = vmatprep.subr.mxu0 %v767_v37  ;;  %1003 = vmatprep.subr.mxu1 %v769_v38  ;;  %v911_v37 = vld [vmem:[#allocation6 + $0x788] sm:$0xff]  ;;  %v913_v38 = vld [vmem:[#allocation6 + $0x798] sm:$0xff] }
  0x4b   :  { %933 = vmatpush1.msra.mxu0 %v766_v39  ;;  %1004 = vmatpush1.msra.mxu1 %v768_v40  ;;  %v910_v39 = vld [vmem:[#allocation6 + $0x780] sm:$0xff]  ;;  %v912_v40 = vld [vmem:[#allocation6 + $0x790] sm:$0xff] }
  0x4c   :  { %934 = vmatprep.subr.mxu0 %v759_v41  ;;  %1005 = vmatprep.subr.mxu1 %v761_v42  ;;  %v903_v41 = vld [vmem:[#allocation6 + $0x748] sm:$0xff]  ;;  %v905_v42 = vld [vmem:[#allocation6 + $0x758] sm:$0xff] }
  0x4d   :  { %935 = vmatpush1.msra.mxu0 %v758_v43  ;;  %1006 = vmatpush1.msra.mxu1 %v760_v44  ;;  %v902_v43 = vld [vmem:[#allocation6 + $0x740] sm:$0xff]  ;;  %v904_v44 = vld [vmem:[#allocation6 + $0x750] sm:$0xff] }
  0x4e   :  { %936 = vmatprep.subr.mxu0 %v751_v45  ;;  %1007 = vmatprep.subr.mxu1 %v753_v46  ;;  %v895_v45 = vld [vmem:[#allocation6 + $0x708] sm:$0xff]  ;;  %v897_v46 = vld [vmem:[#allocation6 + $0x718] sm:$0xff] }
  0x4f   :  { %937 = vmatpush1.msra.mxu0 %v750_v47  ;;  %1008 = vmatpush1.msra.mxu1 %v752_v48  ;;  %v894_v47 = vld [vmem:[#allocation6 + $0x700] sm:$0xff]  ;;  %v896_v48 = vld [vmem:[#allocation6 + $0x710] sm:$0xff] }
  0x50   :  { %938 = vmatprep.subr.mxu0 %v743_v49  ;;  %1009 = vmatprep.subr.mxu1 %v745_v50  ;;  %v887_v49 = vld [vmem:[#allocation6 + $0x6c8] sm:$0xff]  ;;  %v889_v50 = vld [vmem:[#allocation6 + $0x6d8] sm:$0xff] }
  0x51   :  { %939 = vmatpush1.msra.mxu0 %v742_v51  ;;  %1010 = vmatpush1.msra.mxu1 %v744_v52  ;;  %v886_v51 = vld [vmem:[#allocation6 + $0x6c0] sm:$0xff]  ;;  %v879_v52 = vld [vmem:[#allocation6 + $0x688] sm:$0xff] }
  0x52   :  { %940 = vmatprep.subr.mxu0 %v735_v53  ;;  %1011 = vmatprep.subr.mxu1 %v737_v54  ;;  %v881_v53 = vld [vmem:[#allocation6 + $0x698] sm:$0xff]  ;;  %v878_v54 = vld [vmem:[#allocation6 + $0x680] sm:$0xff] }
  0x53   :  { %941 = vmatpush1.msra.mxu0 %v734_v55  ;;  %1012 = vmatpush1.msra.mxu1 %v736_v56  ;;  %v880_v55 = vld [vmem:[#allocation6 + $0x690] sm:$0xff]  ;;  %v871_v56 = vld [vmem:[#allocation6 + $0x648] sm:$0xff] }
  0x54   :  { %942 = vmatprep.subr.mxu0 %v727_v57  ;;  %1013 = vmatprep.subr.mxu1 %v729_v58  ;;  %v873_v57 = vld [vmem:[#allocation6 + $0x658] sm:$0xff]  ;;  %v870_v58 = vld [vmem:[#allocation6 + $0x640] sm:$0xff] }
  0x55   :  { %943 = vmatpush1.msra.mxu0 %v726_v59  ;;  %1014 = vmatpush1.msra.mxu1 %v728_v60  ;;  %v863_v59 = vld [vmem:[#allocation6 + $0x608] sm:$0xff]  ;;  %v865_v60 = vld [vmem:[#allocation6 + $0x618] sm:$0xff] }
  0x56   :  { %944 = vmatprep.subr.mxu0 %v719_v61  ;;  %1015 = vmatprep.subr.mxu1 %v721_v62  ;;  %v862_v61 = vld [vmem:[#allocation6 + $0x600] sm:$0xff]  ;;  %v864_v62 = vld [vmem:[#allocation6 + $0x610] sm:$0xff] }
  0x57   :  { %945 = vmatpush1.msra.mxu0 %v718_v63  ;;  %1016 = vmatpush1.msra.mxu1 %v720_v1  ;;  %v855_v63 = vld [vmem:[#allocation6 + $0x5c8] sm:$0xff]  ;;  %v857_v1 = vld [vmem:[#allocation6 + $0x5d8] sm:$0xff] }
  0x58   :  { %946 = vmatprep.subr.mxu0 %v711_v2  ;;  %1017 = vmatprep.subr.mxu1 %v713_v3  ;;  %v854_v2 = vld [vmem:[#allocation6 + $0x5c0] sm:$0xff]  ;;  %v847_v3 = vld [vmem:[#allocation6 + $0x588] sm:$0xff] }
  0x59   :  { %947 = vmatpush1.msra.mxu0 %v710_v4  ;;  %1018 = vmatpush1.msra.mxu1 %v712_v5  ;;  %v849_v4 = vld [vmem:[#allocation6 + $0x598] sm:$0xff]  ;;  %v846_v5 = vld [vmem:[#allocation6 + $0x580] sm:$0xff] }
  0x5a   :  { %948 = vmatprep.subr.mxu0 %v703_v6  ;;  %1019 = vmatprep.subr.mxu1 %v705_v7  ;;  %v848_v6 = vld [vmem:[#allocation6 + $0x590] sm:$0xff]  ;;  %v84_v7 = vlaneseq }
  0x5b   :  { %949 = vmatpush1.msra.mxu0 %v702_v8  ;;  %1020 = vmatpush1.msra.mxu1 %v704_v9  ;;  %v839_v8 = vld [vmem:[#allocation6 + $0x548] sm:$0xff]  ;;  %v841_v9 = vld [vmem:[#allocation6 + $0x558] sm:$0xff] }
  0x5c   :  { %950 = vmatprep.subr.mxu0 %v695_v10  ;;  %1021 = vmatprep.subr.mxu1 %v697_v11  ;;  %v840_v10 = vld [vmem:[#allocation6 + $0x550] sm:$0xff]  ;;  %v831_v11 = vld [vmem:[#allocation6 + $0x508] sm:$0xff] }
  0x5d   :  { %951 = vmatpush1.msra.mxu0 %v694_v12  ;;  %1022 = vmatpush1.msra.mxu1 %v696_v13  ;;  %v833_v12 = vld [vmem:[#allocation6 + $0x518] sm:$0xff]  ;;  %v6272_v13 = vshrl.u32 %v84_v7, 7  ;;  %v748_v7 = vld [vmem:[#allocation6 + $0x270] sm:$0xff] }
  0x5e   :  { %952 = vmatprep.subr.mxu0 %v687_v15  ;;  %1023 = vmatprep.subr.mxu1 %v689_v16  ;;  %v830_v15 = vld [vmem:[#allocation6 + $0x500] sm:$0xff]  ;;  %v832_v16 = vld [vmem:[#allocation6 + $0x510] sm:$0xff] }
  0x5f   :  { %953 = vmatpush1.msra.mxu0 %v686_v17  ;;  %1024 = vmatpush1.msra.mxu1 %v688_v18  ;;  %v102_v17 = vsub.s32 4, %v6272_v13  ;;  %v6278_v18 = vld [vmem:[%s6725_s5] sm:$0xff] }
  0x60   :  { %954 = vmatprep.subr.mxu0 %v679_v20  ;;  %1025 = vmatprep.subr.mxu1 %v681_v21  ;;  %v825_v20 = vld [vmem:[#allocation6 + $0x4d8] sm:$0xff] }
  0x61   :  { %955 = vmatpush1.msra.mxu0 %v678_v27  ;;  %1026 = vmatpush1.msra.mxu1 %v680_v28  ;;  %v6283_v21 = vrot.slane %v6278_v18, %v102_v17  ;;  %v106_v27 = vsub.s32 5, %v6272_v13  ;;  %v822_v28 = vld [vmem:[#allocation6 + $0x4c0] sm:$0xff]  ;;  %v723_v17 = vld [vmem:[#allocation6 + $0x1a8] sm:$0xff] }
  0x62   :  { %956 = vmatprep.subr.mxu0 %v671_v29  ;;  %1027 = vmatprep.subr.mxu1 %v673_v30  ;;  %v824_v29 = vld [vmem:[#allocation6 + $0x4d0] sm:$0xff]  ;;  %v815_v30 = vld [vmem:[#allocation6 + $0x488] sm:$0xff] }
  0x63   :  { %957 = vmatpush1.msra.mxu0 %v670_v31  ;;  %1028 = vmatpush1.msra.mxu1 %v672_v32  ;;  %v817_v31 = vld [vmem:[#allocation6 + $0x498] sm:$0xff]  ;;  %v6291_v32 = vrot.slane %v6278_v18, %v106_v27  ;;  %v724_v27 = vld [vmem:[#allocation6 + $0x1b0] sm:$0xff] }
  0x64   :  { %958 = vmatprep.subr.mxu0 %v919_v33  ;;  %1029 = vmatprep.subr.mxu1 %v921_v34  ;;  %v110_v33 = vsub.s32 6, %v6272_v13  ;;  %v114_v34 = vsub.s32 7, %v6272_v13 }
  0x65   :  { %959 = vmatpush2.msra.mxu0 %v918_v35  ;;  %1030 = vmatpush2.msra.mxu1 %v920_v36  ;;  %v814_v35 = vld [vmem:[#allocation6 + $0x480] sm:$0xff]  ;;  %v816_v36 = vld [vmem:[#allocation6 + $0x490] sm:$0xff] }
  0x66   :  { %960 = vmatprep.subr.mxu0 %v911_v37  ;;  %1031 = vmatprep.subr.mxu1 %v913_v38  ;;  %v6296_v37 = vrot.slane %v6278_v18, %v110_v33  ;;  %v807_v38 = vld [vmem:[#allocation6 + $0x448] sm:$0xff] }
  0x67   :  { %445 = vmatprep.mubr.f32.mxu0 %v6085_v0  ;;  %558 = vmatprep.mubr.f32.mxu1 %v6085_v0  ;;  %v707_v33 = vld [vmem:[#allocation6 + $0x128] sm:$0xff] }
  0x68   :  { %961 = vmatpush2.msra.mxu0 %v910_v39  ;;  %1032 = vmatpush2.msra.mxu1 %v912_v40  ;;  %v809_v39 = vld [vmem:[#allocation6 + $0x458] sm:$0xff]  ;;  %v806_v40 = vld [vmem:[#allocation6 + $0x440] sm:$0xff] }
  0x69   :  { %5620 = vmatmul.mubr.msk.f32.gmra.mxu0 %vm124_vm0, %v6163_v14  ;;  %5628 = vmatmul.mubr.msk.f32.gmra.mxu1 %vm124_vm0, %v6163_v14  ;;  %v888_v14 = vld [vmem:[#allocation6 + $0x6d0] sm:$0xff] }
  0x6a   :  { %962 = vmatprep.subr.mxu0 %v903_v41  ;;  %1033 = vmatprep.subr.mxu1 %v905_v42  ;;  %v808_v41 = vld [vmem:[#allocation6 + $0x450] sm:$0xff]  ;;  %v799_v42 = vld [vmem:[#allocation6 + $0x408] sm:$0xff] }
  0x6b   :  { %963 = vmatpush2.msra.mxu0 %v902_v43  ;;  %1034 = vmatpush2.msra.mxu1 %v904_v44  ;;  %v801_v43 = vld [vmem:[#allocation6 + $0x418] sm:$0xff]  ;;  %v798_v44 = vld [vmem:[#allocation6 + $0x400] sm:$0xff] }
  0x6c   :  { %964 = vmatprep.subr.mxu0 %v895_v45  ;;  %1035 = vmatprep.subr.mxu1 %v897_v46  ;;  %v800_v45 = vld [vmem:[#allocation6 + $0x410] sm:$0xff]  ;;  %v6315_v46 = vld [vmem:[%s6721_s1] sm:$0xff] }
  0x6d   :  { %451 = vmatprep.mubr.f32.mxu0 %v6085_v0  ;;  %564 = vmatprep.mubr.f32.mxu1 %v6085_v0 }
  0x6e   :  { %965 = vmatpush2.msra.mxu0 %v894_v47  ;;  %1036 = vmatpush2.msra.mxu1 %v896_v48  ;;  %v797_v47 = vld [vmem:[#allocation6 + $0x3f8] sm:$0xff]  ;;  %v794_v48 = vld [vmem:[#allocation6 + $0x3e0] sm:$0xff] }
  0x6f   :  { %5621 = vmatmul.mubr.msk.f32.gmra.mxu0 %vm124_vm0, %v6175_v19  ;;  %5629 = vmatmul.mubr.msk.f32.gmra.mxu1 %vm124_vm0, %v6175_v19  ;;  %v872_v19 = vld [vmem:[#allocation6 + $0x650] sm:$0xff] }
  0x70   :  { %966 = vmatprep.subr.mxu0 %v887_v49  ;;  %1037 = vmatprep.subr.mxu1 %v889_v50  ;;  %v796_v49 = vld [vmem:[#allocation6 + $0x3f0] sm:$0xff]  ;;  %v787_v50 = vld [vmem:[#allocation6 + $0x3a8] sm:$0xff] }
  0x71   :  { %967 = vmatpush2.msra.mxu0 %v886_v51  ;;  %1038 = vmatpush2.msra.mxu1 %v888_v14  ;;  %v789_v51 = vld [vmem:[#allocation6 + $0x3b8] sm:$0xff]  ;;  %v786_v14 = vld [vmem:[#allocation6 + $0x3a0] sm:$0xff] }
  0x72   :  { %968 = vmatprep.subr.mxu0 %v879_v52  ;;  %1039 = vmatprep.subr.mxu1 %v881_v53  ;;  %v788_v52 = vld [vmem:[#allocation6 + $0x3b0] sm:$0xff]  ;;  %v779_v53 = vld [vmem:[#allocation6 + $0x368] sm:$0xff] }
  0x73   :  { %457 = vmatprep.mubr.f32.mxu0 %v6085_v0  ;;  %570 = vmatprep.mubr.f32.mxu1 %v6085_v0 }
  0x74   :  { %969 = vmatpush2.msra.mxu0 %v878_v54  ;;  %1040 = vmatpush2.msra.mxu1 %v880_v55  ;;  %v781_v54 = vld [vmem:[#allocation6 + $0x378] sm:$0xff]  ;;  %v778_v55 = vld [vmem:[#allocation6 + $0x360] sm:$0xff] }
  0x75   :  { %5622 = vmatmul.mubr.msk.f32.gmra.mxu0 %vm124_vm0, %v6186_v22  ;;  %5630 = vmatmul.mubr.msk.f32.gmra.mxu1 %vm124_vm0, %v6186_v22  ;;  %v856_v22 = vld [vmem:[#allocation6 + $0x5d0] sm:$0xff] }
  0x76   :  { %970 = vmatprep.subr.mxu0 %v871_v56  ;;  %1041 = vmatprep.subr.mxu1 %v873_v57  ;;  %v780_v56 = vld [vmem:[#allocation6 + $0x370] sm:$0xff]  ;;  %v771_v57 = vld [vmem:[#allocation6 + $0x328] sm:$0xff] }
  0x77   :  { %971 = vmatpush2.msra.mxu0 %v870_v58  ;;  %1042 = vmatpush2.msra.mxu1 %v872_v19  ;;  %v773_v58 = vld [vmem:[#allocation6 + $0x338] sm:$0xff]  ;;  %v770_v19 = vld [vmem:[#allocation6 + $0x320] sm:$0xff] }
  0x78   :  { %972 = vmatprep.subr.mxu0 %v863_v59  ;;  %1043 = vmatprep.subr.mxu1 %v865_v60  ;;  %v772_v59 = vld [vmem:[#allocation6 + $0x330] sm:$0xff]  ;;  %v763_v60 = vld [vmem:[#allocation6 + $0x2e8] sm:$0xff] }
  0x79   :  { %463 = vmatprep.mubr.f32.mxu0 %v6085_v0  ;;  %576 = vmatprep.mubr.f32.mxu1 %v6085_v0 }
  0x7a   :  { %973 = vmatpush2.msra.mxu0 %v862_v61  ;;  %1044 = vmatpush2.msra.mxu1 %v864_v62  ;;  %v765_v61 = vld [vmem:[#allocation6 + $0x2f8] sm:$0xff]  ;;  %v762_v62 = vld [vmem:[#allocation6 + $0x2e0] sm:$0xff] }
  0x7b   :  { %5623 = vmatmul.mubr.msk.f32.gmra.mxu0 %vm124_vm0, %v6197_v23  ;;  %5631 = vmatmul.mubr.msk.f32.gmra.mxu1 %vm124_vm0, %v6197_v23  ;;  %v838_v23 = vld [vmem:[#allocation6 + $0x540] sm:$0xff] }
  0x7c   :  { %974 = vmatprep.subr.mxu0 %v855_v63  ;;  %1045 = vmatprep.subr.mxu1 %v857_v1  ;;  %v764_v63 = vld [vmem:[#allocation6 + $0x2f0] sm:$0xff]  ;;  %v755_v1 = vld [vmem:[#allocation6 + $0x2a8] sm:$0xff] }
  0x7d   :  { %975 = vmatpush2.msra.mxu0 %v854_v2  ;;  %1046 = vmatpush2.msra.mxu1 %v856_v22  ;;  %v757_v2 = vld [vmem:[#allocation6 + $0x2b8] sm:$0xff]  ;;  %v754_v22 = vld [vmem:[#allocation6 + $0x2a0] sm:$0xff] }
  0x7e   :  { %976 = vmatprep.subr.mxu0 %v847_v3  ;;  %1047 = vmatprep.subr.mxu1 %v849_v4  ;;  %v756_v3 = vld [vmem:[#allocation6 + $0x2b0] sm:$0xff]  ;;  %v747_v4 = vld [vmem:[#allocation6 + $0x268] sm:$0xff] }
  0x7f   :  { %469 = vmatprep.mubr.f32.mxu0 %v6085_v0  ;;  %582 = vmatprep.mubr.f32.mxu1 %v6085_v0 }
  0x80   :  { %977 = vmatpush2.msra.mxu0 %v846_v5  ;;  %1048 = vmatpush2.msra.mxu1 %v848_v6  ;;  %v749_v5 = vld [vmem:[#allocation6 + $0x278] sm:$0xff]  ;;  %v746_v6 = vld [vmem:[#allocation6 + $0x260] sm:$0xff] }
  0x81   :  { %5624 = vmatmul.mubr.msk.f32.gmra.mxu0 %vm124_vm0, %v6208_v24  ;;  %5632 = vmatmul.mubr.msk.f32.gmra.mxu1 %vm124_vm0, %v6208_v24  ;;  %v823_v24 = vld [vmem:[#allocation6 + $0x4c8] sm:$0xff] }
  0x82   :  { %978 = vmatprep.subr.mxu0 %v839_v8  ;;  %1049 = vmatprep.subr.mxu1 %v841_v9  ;;  %v739_v8 = vld [vmem:[#allocation6 + $0x228] sm:$0xff]  ;;  %v741_v9 = vld [vmem:[#allocation6 + $0x238] sm:$0xff] }
  0x83   :  { %979 = vmatpush2.msra.mxu0 %v838_v23  ;;  %1050 = vmatpush2.msra.mxu1 %v840_v10  ;;  %v738_v23 = vld [vmem:[#allocation6 + $0x220] sm:$0xff]  ;;  %v740_v10 = vld [vmem:[#allocation6 + $0x230] sm:$0xff] }
  0x84   :  { %980 = vmatprep.subr.mxu0 %v831_v11  ;;  %1051 = vmatprep.subr.mxu1 %v833_v12  ;;  %v731_v11 = vld [vmem:[#allocation6 + $0x1e8] sm:$0xff]  ;;  %v733_v12 = vld [vmem:[#allocation6 + $0x1f8] sm:$0xff] }
  0x85   :  { %475 = vmatprep.mubr.f32.mxu0 %v6085_v0  ;;  %588 = vmatprep.mubr.f32.mxu1 %v6085_v0 }
  0x86   :  { %981 = vmatpush2.msra.mxu0 %v830_v15  ;;  %1052 = vmatpush2.msra.mxu1 %v832_v16  ;;  %v730_v15 = vld [vmem:[#allocation6 + $0x1e0] sm:$0xff]  ;;  %v732_v16 = vld [vmem:[#allocation6 + $0x1f0] sm:$0xff] }
  0x87   :  { %5625 = vmatmul.mubr.msk.f32.gmra.mxu0 %vm124_vm0, %v6219_v25  ;;  %5633 = vmatmul.mubr.msk.f32.gmra.mxu1 %vm124_vm0, %v6219_v25  ;;  %v6299_v25 = vrot.slane %v6278_v18, %v114_v34  ;;  %v709_v34 = vld [vmem:[#allocation6 + $0x138] sm:$0xff] }
  0x88   :  { %982 = vmatprep.subr.mxu0 %v823_v24  ;;  %1053 = vmatprep.subr.mxu1 %v825_v20  ;;  %v725_v24 = vld [vmem:[#allocation6 + $0x1b8] sm:$0xff]  ;;  %v722_v20 = vld [vmem:[#allocation6 + $0x1a0] sm:$0xff] }
  0x89   :  { %983 = vmatpush2.msra.mxu0 %v822_v28  ;;  %1054 = vmatpush2.msra.mxu1 %v824_v29  ;;  %v715_v28 = vld [vmem:[#allocation6 + $0x168] sm:$0xff]  ;;  %v717_v29 = vld [vmem:[#allocation6 + $0x178] sm:$0xff] }
  0x8a   :  { %984 = vmatprep.subr.mxu0 %v815_v30  ;;  %1055 = vmatprep.subr.mxu1 %v817_v31  ;;  %v714_v30 = vld [vmem:[#allocation6 + $0x160] sm:$0xff]  ;;  %v716_v31 = vld [vmem:[#allocation6 + $0x170] sm:$0xff] }
  0x8b   :  { %481 = vmatprep.mubr.f32.mxu0 %v6085_v0  ;;  %594 = vmatprep.mubr.f32.mxu1 %v6085_v0  ;;  %v6310_v0 = vld [vmem:[%s6721_s1 + $0x8] sm:$0xff] }
  0x8c   :  { %985 = vmatpush2.msra.mxu0 %v814_v35  ;;  %1056 = vmatpush2.msra.mxu1 %v816_v36  ;;  %v706_v35 = vld [vmem:[#allocation6 + $0x120] sm:$0xff]  ;;  %v708_v36 = vld [vmem:[#allocation6 + $0x130] sm:$0xff] }
  0x8d   :  { %5626 = vmatmul.mubr.msk.f32.gmra.mxu0 %vm124_vm0, %v6230_v26  ;;  %5634 = vmatmul.mubr.msk.f32.gmra.mxu1 %vm124_vm0, %v6230_v26  ;;  %v795_v26 = vld [vmem:[#allocation6 + $0x3e8] sm:$0xff] }
  0x8e   :  { %986 = vmatprep.subr.mxu0 %v807_v38  ;;  %1057 = vmatprep.subr.mxu1 %v809_v39  ;;  %v699_v38 = vld [vmem:[#allocation6 + $0xe8] sm:$0xff]  ;;  %v701_v39 = vld [vmem:[#allocation6 + $0xf8] sm:$0xff] }
  0x8f   :  { %987 = vmatpush2.msra.mxu0 %v806_v40  ;;  %1058 = vmatpush2.msra.mxu1 %v808_v41  ;;  %v698_v40 = vld [vmem:[#allocation6 + $0xe0] sm:$0xff]  ;;  %v700_v41 = vld [vmem:[#allocation6 + $0xf0] sm:$0xff] }
  0x90   :  { %988 = vmatprep.subr.mxu0 %v799_v42  ;;  %1059 = vmatprep.subr.mxu1 %v801_v43  ;;  %v691_v42 = vld [vmem:[#allocation6 + $0xa8] sm:$0xff]  ;;  %v693_v43 = vld [vmem:[#allocation6 + $0xb8] sm:$0xff] }
  0x91   :  { %989 = vmatpush2.msra.mxu0 %v798_v44  ;;  %990 = vmatprep.mubr.f32.mxu0 %v6310_v0  ;;  %v690_v44 = vld [vmem:[#allocation6 + $0xa0] sm:$0xff] }
  0x92   :  { %1060 = vmatpush2.msra.mxu1 %v800_v45  ;;  %1061 = vmatprep.mubr.f32.mxu1 %v6310_v0  ;;  %v692_v45 = vld [vmem:[#allocation6 + $0xb0] sm:$0xff] }
  0x93   :  { %991 = vmatmul.mubr.f32.vlgmr.msra.gmra.mxu0 %v6315_v46  ;;  %1062 = vmatmul.mubr.f32.vlgmr.msra.gmra.mxu1 %v6315_v46 }
  0x94   :  { %1068 = vmatprep.subr.mxu0 %v795_v26  ;;  %1139 = vmatprep.subr.mxu1 %v797_v47  ;;  %v683_v26 = vld [vmem:[#allocation6 + $0x68] sm:$0xff]  ;;  %v685_v47 = vld [vmem:[#allocation6 + $0x78] sm:$0xff] }
  0x95   :  { %1069 = vmatpush1.msra.mxu0 %v794_v48  ;;  %1140 = vmatpush1.msra.mxu1 %v796_v49  ;;  %v682_v48 = vld [vmem:[#allocation6 + $0x60] sm:$0xff]  ;;  %v684_v49 = vld [vmem:[#allocation6 + $0x70] sm:$0xff] }
  0x96   :  { %1070 = vmatprep.subr.mxu0 %v787_v50  ;;  %1141 = vmatprep.subr.mxu1 %v789_v51  ;;  %v675_v50 = vld [vmem:[#allocation6 + $0x28] sm:$0xff]  ;;  %v677_v51 = vld [vmem:[#allocation6 + $0x38] sm:$0xff] }
  0x97   :  { %1071 = vmatpush1.msra.mxu0 %v786_v14  ;;  %1142 = vmatpush1.msra.mxu1 %v788_v52  ;;  %v674_v14 = vld [vmem:[#allocation6 + $0x20] sm:$0xff]  ;;  %v676_v52 = vld [vmem:[#allocation6 + $0x30] sm:$0xff] }
  0x98   :  { %1072 = vmatprep.subr.mxu0 %v779_v53  ;;  %1143 = vmatprep.subr.mxu1 %v781_v54  ;;  %v923_v53 = vld [vmem:[#allocation6 + $0x7e8] sm:$0xff]  ;;  %v925_v54 = vld [vmem:[#allocation6 + $0x7f8] sm:$0xff] }
  0x99   :  { %1073 = vmatpush1.msra.mxu0 %v778_v55  ;;  %1144 = vmatpush1.msra.mxu1 %v780_v56  ;;  %v922_v55 = vld [vmem:[#allocation6 + $0x7e0] sm:$0xff]  ;;  %v924_v56 = vld [vmem:[#allocation6 + $0x7f0] sm:$0xff] }
  0x9a   :  { %1074 = vmatprep.subr.mxu0 %v771_v57  ;;  %1145 = vmatprep.subr.mxu1 %v773_v58  ;;  %v915_v57 = vld [vmem:[#allocation6 + $0x7a8] sm:$0xff]  ;;  %v917_v58 = vld [vmem:[#allocation6 + $0x7b8] sm:$0xff] }
  0x9b   :  { %1075 = vmatpush1.msra.mxu0 %v770_v19  ;;  %1146 = vmatpush1.msra.mxu1 %v772_v59  ;;  %v914_v19 = vld [vmem:[#allocation6 + $0x7a0] sm:$0xff]  ;;  %v916_v59 = vld [vmem:[#allocation6 + $0x7b0] sm:$0xff] }
  0x9c   :  { %1076 = vmatprep.subr.mxu0 %v763_v60  ;;  %1147 = vmatprep.subr.mxu1 %v765_v61  ;;  %v907_v60 = vld [vmem:[#allocation6 + $0x768] sm:$0xff]  ;;  %v909_v61 = vld [vmem:[#allocation6 + $0x778] sm:$0xff] }
  0x9d   :  { %1077 = vmatpush1.msra.mxu0 %v762_v62  ;;  %1148 = vmatpush1.msra.mxu1 %v764_v63  ;;  %v906_v62 = vld [vmem:[#allocation6 + $0x760] sm:$0xff]  ;;  %v908_v63 = vld [vmem:[#allocation6 + $0x770] sm:$0xff] }
  0x9e   :  { %1078 = vmatprep.subr.mxu0 %v755_v1  ;;  %1149 = vmatprep.subr.mxu1 %v757_v2  ;;  %v899_v1 = vld [vmem:[#allocation6 + $0x728] sm:$0xff]  ;;  %v901_v2 = vld [vmem:[#allocation6 + $0x738] sm:$0xff] }
  0x9f   :  { %1079 = vmatpush1.msra.mxu0 %v754_v22  ;;  %1150 = vmatpush1.msra.mxu1 %v756_v3  ;;  %v898_v22 = vld [vmem:[#allocation6 + $0x720] sm:$0xff]  ;;  %v900_v3 = vld [vmem:[#allocation6 + $0x730] sm:$0xff] }
  0xa0   :  { %1080 = vmatprep.subr.mxu0 %v747_v4  ;;  %1151 = vmatprep.subr.mxu1 %v749_v5  ;;  %v891_v4 = vld [vmem:[#allocation6 + $0x6e8] sm:$0xff]  ;;  %v893_v5 = vld [vmem:[#allocation6 + $0x6f8] sm:$0xff] }
  0xa1   :  { %1081 = vmatpush1.msra.mxu0 %v746_v6  ;;  %1152 = vmatpush1.msra.mxu1 %v748_v7  ;;  %v890_v6 = vld [vmem:[#allocation6 + $0x6e0] sm:$0xff]  ;;  %v892_v7 = vld [vmem:[#allocation6 + $0x6f0] sm:$0xff] }
  0xa2   :  { %1082 = vmatprep.subr.mxu0 %v739_v8  ;;  %1153 = vmatprep.subr.mxu1 %v741_v9  ;;  %v883_v8 = vld [vmem:[#allocation6 + $0x6a8] sm:$0xff]  ;;  %v885_v9 = vld [vmem:[#allocation6 + $0x6b8] sm:$0xff] }
  0xa3   :  { %1083 = vmatpush1.msra.mxu0 %v738_v23  ;;  %1154 = vmatpush1.msra.mxu1 %v740_v10  ;;  %v882_v23 = vld [vmem:[#allocation6 + $0x6a0] sm:$0xff]  ;;  %v884_v10 = vld [vmem:[#allocation6 + $0x6b0] sm:$0xff] }
  0xa4   :  { %1084 = vmatprep.subr.mxu0 %v731_v11  ;;  %1155 = vmatprep.subr.mxu1 %v733_v12  ;;  %v875_v11 = vld [vmem:[#allocation6 + $0x668] sm:$0xff]  ;;  %v877_v12 = vld [vmem:[#allocation6 + $0x678] sm:$0xff] }
  0xa5   :  { %1085 = vmatpush1.msra.mxu0 %v730_v15  ;;  %1156 = vmatpush1.msra.mxu1 %v732_v16  ;;  %v874_v15 = vld [vmem:[#allocation6 + $0x660] sm:$0xff]  ;;  %v876_v16 = vld [vmem:[#allocation6 + $0x670] sm:$0xff] }
  0xa6   :  { %1086 = vmatprep.subr.mxu0 %v723_v17  ;;  %1157 = vmatprep.subr.mxu1 %v725_v24  ;;  %v867_v17 = vld [vmem:[#allocation6 + $0x628] sm:$0xff]  ;;  %v869_v24 = vld [vmem:[#allocation6 + $0x638] sm:$0xff] }
  0xa7   :  { %1087 = vmatpush1.msra.mxu0 %v722_v20  ;;  %1158 = vmatpush1.msra.mxu1 %v724_v27  ;;  %v866_v20 = vld [vmem:[#allocation6 + $0x620] sm:$0xff]  ;;  %v868_v27 = vld [vmem:[#allocation6 + $0x630] sm:$0xff] }
  0xa8   :  { %1088 = vmatprep.subr.mxu0 %v715_v28  ;;  %1159 = vmatprep.subr.mxu1 %v717_v29  ;;  %v859_v28 = vld [vmem:[#allocation6 + $0x5e8] sm:$0xff]  ;;  %v861_v29 = vld [vmem:[#allocation6 + $0x5f8] sm:$0xff] }
  0xa9   :  { %1089 = vmatpush1.msra.mxu0 %v714_v30  ;;  %1160 = vmatpush1.msra.mxu1 %v716_v31  ;;  %v858_v30 = vld [vmem:[#allocation6 + $0x5e0] sm:$0xff]  ;;  %v860_v31 = vld [vmem:[#allocation6 + $0x5f0] sm:$0xff] }
  0xaa   :  { %1090 = vmatprep.subr.mxu0 %v707_v33  ;;  %1161 = vmatprep.subr.mxu1 %v709_v34  ;;  %v851_v33 = vld [vmem:[#allocation6 + $0x5a8] sm:$0xff]  ;;  %v853_v34 = vld [vmem:[#allocation6 + $0x5b8] sm:$0xff] }
  0xab   :  { %1091 = vmatpush1.msra.mxu0 %v706_v35  ;;  %1162 = vmatpush1.msra.mxu1 %v708_v36  ;;  %v850_v35 = vld [vmem:[#allocation6 + $0x5a0] sm:$0xff]  ;;  %v852_v36 = vld [vmem:[#allocation6 + $0x5b0] sm:$0xff] }
  0xac   :  { %1092 = vmatprep.subr.mxu0 %v699_v38  ;;  %1163 = vmatprep.subr.mxu1 %v701_v39  ;;  %v843_v38 = vld [vmem:[#allocation6 + $0x568] sm:$0xff]  ;;  %v845_v39 = vld [vmem:[#allocation6 + $0x578] sm:$0xff] }
  0xad   :  { %1093 = vmatpush1.msra.mxu0 %v698_v40  ;;  %1164 = vmatpush1.msra.mxu1 %v700_v41  ;;  %v842_v40 = vld [vmem:[#allocation6 + $0x560] sm:$0xff]  ;;  %v844_v41 = vld [vmem:[#allocation6 + $0x570] sm:$0xff] }
  0xae   :  { %1094 = vmatprep.subr.mxu0 %v691_v42  ;;  %1165 = vmatprep.subr.mxu1 %v693_v43  ;;  %v835_v42 = vld [vmem:[#allocation6 + $0x528] sm:$0xff]  ;;  %v837_v43 = vld [vmem:[#allocation6 + $0x538] sm:$0xff] }
  0xaf   :  { %1095 = vmatpush1.msra.mxu0 %v690_v44  ;;  %1166 = vmatpush1.msra.mxu1 %v692_v45  ;;  %v834_v44 = vld [vmem:[#allocation6 + $0x520] sm:$0xff]  ;;  %v836_v45 = vld [vmem:[#allocation6 + $0x530] sm:$0xff] }
  0xb0   :  { %1096 = vmatprep.subr.mxu0 %v683_v26  ;;  %1167 = vmatprep.subr.mxu1 %v685_v47  ;;  %v827_v26 = vld [vmem:[#allocation6 + $0x4e8] sm:$0xff]  ;;  %v829_v47 = vld [vmem:[#allocation6 + $0x4f8] sm:$0xff] }
  0xb1   :  { %1097 = vmatpush1.msra.mxu0 %v682_v48  ;;  %1168 = vmatpush1.msra.mxu1 %v684_v49  ;;  %v826_v48 = vld [vmem:[#allocation6 + $0x4e0] sm:$0xff]  ;;  %v828_v49 = vld [vmem:[#allocation6 + $0x4f0] sm:$0xff] }
  0xb2   :  { %1098 = vmatprep.subr.mxu0 %v675_v50  ;;  %1169 = vmatprep.subr.mxu1 %v677_v51  ;;  %v819_v50 = vld [vmem:[#allocation6 + $0x4a8] sm:$0xff]  ;;  %v821_v51 = vld [vmem:[#allocation6 + $0x4b8] sm:$0xff] }
  0xb3   :  { %1099 = vmatpush1.msra.mxu0 %v674_v14  ;;  %1170 = vmatpush1.msra.mxu1 %v676_v52  ;;  %v818_v14 = vld [vmem:[#allocation6 + $0x4a0] sm:$0xff]  ;;  %v820_v52 = vld [vmem:[#allocation6 + $0x4b0] sm:$0xff] }
  0xb4   :  { %1100 = vmatprep.subr.mxu0 %v923_v53  ;;  %1171 = vmatprep.subr.mxu1 %v925_v54  ;;  %v811_v53 = vld [vmem:[#allocation6 + $0x468] sm:$0xff]  ;;  %v813_v54 = vld [vmem:[#allocation6 + $0x478] sm:$0xff] }
  0xb5   :  { %1101 = vmatpush2.msra.mxu0 %v922_v55  ;;  %1172 = vmatpush2.msra.mxu1 %v924_v56  ;;  %v810_v55 = vld [vmem:[#allocation6 + $0x460] sm:$0xff]  ;;  %v812_v56 = vld [vmem:[#allocation6 + $0x470] sm:$0xff] }
  0xb6   :  { %1102 = vmatprep.subr.mxu0 %v915_v57  ;;  %1173 = vmatprep.subr.mxu1 %v917_v58  ;;  %v803_v57 = vld [vmem:[#allocation6 + $0x428] sm:$0xff]  ;;  %v805_v58 = vld [vmem:[#allocation6 + $0x438] sm:$0xff] }
  0xb7   :  { %1103 = vmatpush2.msra.mxu0 %v914_v19  ;;  %1174 = vmatpush2.msra.mxu1 %v916_v59  ;;  %v802_v19 = vld [vmem:[#allocation6 + $0x420] sm:$0xff]  ;;  %v804_v59 = vld [vmem:[#allocation6 + $0x430] sm:$0xff] }
  0xb8   :  { %1104 = vmatprep.subr.mxu0 %v907_v60  ;;  %1175 = vmatprep.subr.mxu1 %v909_v61  ;;  %v86_v60 = vsub.s32 0, %v6272_v13  ;;  %v94_v61 = vsub.s32 2, %v6272_v13 }
  0xb9   :  { %1105 = vmatpush2.msra.mxu0 %v906_v62  ;;  %1176 = vmatpush2.msra.mxu1 %v908_v63 }
  0xba   :  { %1106 = vmatprep.subr.mxu0 %v899_v1  ;;  %1177 = vmatprep.subr.mxu1 %v901_v2  ;;  %v90_v1 = vsub.s32 1, %v6272_v13  ;;  %v98_v2 = vsub.s32 3, %v6272_v13 }
  0xbb   :  { %1107 = vmatpush2.msra.mxu0 %v898_v22  ;;  %1178 = vmatpush2.msra.mxu1 %v900_v3 }
  0xbc   :  { %1108 = vmatprep.subr.mxu0 %v891_v4  ;;  %1179 = vmatprep.subr.mxu1 %v893_v5  ;;  %v6350_v13 = vrot.slane %v6278_v18, %v98_v2 }
  0xbd   :  { %1109 = vmatpush2.msra.mxu0 %v890_v6  ;;  %1180 = vmatpush2.msra.mxu1 %v892_v7  ;;  %v6344_v6 = vrot.slane %v6278_v18, %v90_v1 }
  0xbe   :  { %1110 = vmatprep.subr.mxu0 %v883_v8  ;;  %1181 = vmatprep.subr.mxu1 %v885_v9 }
  0xbf   :  { %1111 = vmatpush2.msra.mxu0 %v882_v23  ;;  %1182 = vmatpush2.msra.mxu1 %v884_v10 }
  0xc0   :  { %1112 = vmatprep.subr.mxu0 %v875_v11  ;;  %1183 = vmatprep.subr.mxu1 %v877_v12 }
  0xc1   :  { %1113 = vmatpush2.msra.mxu0 %v874_v15  ;;  %1184 = vmatpush2.msra.mxu1 %v876_v16 }
  0xc2   :  { %1114 = vmatprep.subr.mxu0 %v867_v17  ;;  %1185 = vmatprep.subr.mxu1 %v869_v24 }
  0xc3   :  { %1115 = vmatpush2.msra.mxu0 %v866_v20  ;;  %1186 = vmatpush2.msra.mxu1 %v868_v27 }
  0xc4   :  { %1116 = vmatprep.subr.mxu0 %v859_v28  ;;  %1187 = vmatprep.subr.mxu1 %v861_v29 }
  0xc5   :  { %1117 = vmatpush2.msra.mxu0 %v858_v30  ;;  %1188 = vmatpush2.msra.mxu1 %v860_v31 }
  0xc6   :  { %1118 = vmatprep.subr.mxu0 %v851_v33  ;;  %1189 = vmatprep.subr.mxu1 %v853_v34 }
  0xc7   :  { %1119 = vmatpush2.msra.mxu0 %v850_v35  ;;  %1190 = vmatpush2.msra.mxu1 %v852_v36 }
  0xc8   :  { %1120 = vmatprep.subr.mxu0 %v843_v38  ;;  %1191 = vmatprep.subr.mxu1 %v845_v39 }
  0xc9   :  { %1121 = vmatpush2.msra.mxu0 %v842_v40  ;;  %1192 = vmatpush2.msra.mxu1 %v844_v41 }
  0xca   :  { %1122 = vmatprep.subr.mxu0 %v835_v42  ;;  %1193 = vmatprep.subr.mxu1 %v837_v43 }
  0xcb   :  { %1123 = vmatpush2.msra.mxu0 %v834_v44  ;;  %1194 = vmatpush2.msra.mxu1 %v836_v45 }
  0xcc   :  { %1124 = vmatprep.subr.mxu0 %v827_v26  ;;  %1195 = vmatprep.subr.mxu1 %v829_v47 }
  0xcd   :  { %1125 = vmatpush2.msra.mxu0 %v826_v48  ;;  %1196 = vmatpush2.msra.mxu1 %v828_v49 }
  0xce   :  { %1126 = vmatprep.subr.mxu0 %v819_v50  ;;  %1197 = vmatprep.subr.mxu1 %v821_v51 }
  0xcf   :  { %1127 = vmatpush2.msra.mxu0 %v818_v14  ;;  %1198 = vmatpush2.msra.mxu1 %v820_v52 }
  0xd0   :  { %1128 = vmatprep.subr.mxu0 %v811_v53  ;;  %1199 = vmatprep.subr.mxu1 %v813_v54 }
  0xd1   :  { %1129 = vmatpush2.msra.mxu0 %v810_v55  ;;  %1200 = vmatpush2.msra.mxu1 %v812_v56  ;;  %v1398_v55 = vld [vmem:[#allocation6 + $0x3c8] sm:$0xff]  ;;  %v1400_v56 = vld [vmem:[#allocation6 + $0x3d8] sm:$0xff] }
  0xd2   :  { %1130 = vmatprep.subr.mxu0 %v803_v57  ;;  %1201 = vmatprep.subr.mxu1 %v805_v58  ;;  %v1397_v57 = vld [vmem:[#allocation6 + $0x3c0] sm:$0xff] }
  0xd3   :  { %1131 = vmatpush2.msra.mxu0 %v802_v19  ;;  %1132 = vmatprep.mubr.f32.mxu0 %v6310_v0 }
  0xd4   :  { %1202 = vmatpush2.msra.mxu1 %v804_v59  ;;  %1203 = vmatprep.mubr.f32.mxu1 %v6310_v0  ;;  %v6338_v0 = vrot.slane %v6278_v18, %v86_v60  ;;  %v1399_v59 = vld [vmem:[#allocation6 + $0x3d0] sm:$0xff]  ;;  %v1390_v60 = vld [vmem:[#allocation6 + $0x388] sm:$0xff] }
  0xd5   :  { %1133 = vmatmul.mubr.f32.vlgmr.msra.gmra.mxu0 %v6315_v46  ;;  %1204 = vmatmul.mubr.f32.vlgmr.msra.gmra.mxu1 %v6315_v46  ;;  %v6341_v46 = vrot.slane %v6278_v18, %v94_v61  ;;  %v1392_v61 = vld [vmem:[#allocation6 + $0x398] sm:$0xff] }
  0xd6   :  { %1533 = vmatprep.subr.mxu0 %v1398_v55  ;;  %1604 = vmatprep.subr.mxu1 %v1400_v56  ;;  %v1365_v55 = vld [vmem:[#allocation6 + $0x2c0] sm:$0xff]  ;;  %v1367_v56 = vld [vmem:[#allocation6 + $0x2d0] sm:$0xff] }
  0xd7   :  { %1534 = vmatpush1.msra.mxu0 %v1397_v57  ;;  %1605 = vmatpush1.msra.mxu1 %v1399_v59  ;;  %v1358_v57 = vld [vmem:[#allocation6 + $0x288] sm:$0xff]  ;;  %v1360_v59 = vld [vmem:[#allocation6 + $0x298] sm:$0xff] }
  0xd8   :  { %1535 = vmatprep.subr.mxu0 %v1390_v60  ;;  %1606 = vmatprep.subr.mxu1 %v1392_v61  ;;  %v1357_v60 = vld [vmem:[#allocation6 + $0x280] sm:$0xff]  ;;  %v1359_v61 = vld [vmem:[#allocation6 + $0x290] sm:$0xff] }
  0xe4   :  { %v6327_v62 = vpop.f32.mrf.mxu0  ;;  %v6329_v63 = vpop.f32.mrf.mxu1 }
  0xe6   :  { %v6333_v22 = vpop.f32.mrf.mxu0  ;;  %v6335_v3 = vpop.f32.mrf.mxu1 }
  0xe8   :  { %v221_v4 = vpop.f32.mrf.mxu0  ;;  %v334_v5 = vpop.f32.mrf.mxu1 }
  0xe9   :  { %v6347_v7 = vadd.f32 %v221_v4, %v6338_v0  ;;  %v6353_v8 = vadd.f32 %v334_v5, %v6341_v46  ;;  %v1389_v4 = vld [vmem:[#allocation6 + $0x380] sm:$0xff]  ;;  %v1391_v5 = vld [vmem:[#allocation6 + $0x390] sm:$0xff] }
  0xea   :  { %v223_v9 = vpop.f32.mrf.mxu0  ;;  %v336_v23 = vpop.f32.mrf.mxu1  ;;  %1536 = vmatpush1.msra.mxu0 %v1389_v4  ;;  %1607 = vmatpush1.msra.mxu1 %v1391_v5  ;;  %v1349_v4 = vld [vmem:[#allocation6 + $0x240] sm:$0xff]  ;;  %v1351_v5 = vld [vmem:[#allocation6 + $0x250] sm:$0xff] }
  0xeb   :  { %v6356_v10 = vadd.f32 %v223_v9, %v6344_v6  ;;  %v6359_v11 = vadd.f32 %v336_v23, %v6350_v13  ;;  %v1382_v9 = vld [vmem:[#allocation6 + $0x348] sm:$0xff] }
  0xec   :  { %v227_v12 = vpop.f32.mrf.mxu0  ;;  %v340_v15 = vpop.f32.mrf.mxu1  ;;  %1537 = vmatprep.subr.mxu0 %v1382_v9  ;;  %v1342_v9 = vld [vmem:[#allocation6 + $0x208] sm:$0xff] }
  0xed   :  { %v6362_v16 = vadd.f32 %v227_v12, %v6338_v0  ;;  %v6365_v17 = vadd.f32 %v340_v15, %v6341_v46  ;;  %v1384_v15 = vld [vmem:[#allocation6 + $0x358] sm:$0xff] }
  0xee   :  { %v229_v18 = vpop.f32.mrf.mxu0  ;;  %v342_v24 = vpop.f32.mrf.mxu1  ;;  %1608 = vmatprep.subr.mxu1 %v1384_v15  ;;  %v1344_v15 = vld [vmem:[#allocation6 + $0x218] sm:$0xff] }
  0xef   :  { %v6368_v20 = vadd.f32 %v229_v18, %v6344_v6  ;;  %v6371_v27 = vadd.f32 %v342_v24, %v6350_v13  ;;  %v1381_v18 = vld [vmem:[#allocation6 + $0x340] sm:$0xff]  ;;  %v1383_v24 = vld [vmem:[#allocation6 + $0x350] sm:$0xff] }
  0xf0   :  { %v233_v28 = vpop.f32.mrf.mxu0  ;;  %v346_v29 = vpop.f32.mrf.mxu1  ;;  %1538 = vmatpush1.msra.mxu0 %v1381_v18  ;;  %1609 = vmatpush1.msra.mxu1 %v1383_v24  ;;  %v1341_v18 = vld [vmem:[#allocation6 + $0x200] sm:$0xff]  ;;  %v1343_v24 = vld [vmem:[#allocation6 + $0x210] sm:$0xff] }
  0xf1   :  { %v6374_v30 = vadd.f32 %v233_v28, %v6338_v0  ;;  %v6377_v31 = vadd.f32 %v346_v29, %v6341_v46 }
  0xf2   :  { %v235_v33 = vpop.f32.mrf.mxu0  ;;  %v348_v34 = vpop.f32.mrf.mxu1 }
  0xf3   :  { %v6380_v35 = vadd.f32 %v235_v33, %v6344_v6  ;;  %v6383_v36 = vadd.f32 %v348_v34, %v6350_v13  ;;  %v1374_v33 = vld [vmem:[#allocation6 + $0x308] sm:$0xff]  ;;  %v1376_v34 = vld [vmem:[#allocation6 + $0x318] sm:$0xff] }
  0xf4   :  { %v239_v38 = vpop.f32.mrf.mxu0  ;;  %v352_v39 = vpop.f32.mrf.mxu1  ;;  %1539 = vmatprep.subr.mxu0 %v1374_v33  ;;  %1610 = vmatprep.subr.mxu1 %v1376_v34  ;;  %v1333_v33 = vld [vmem:[#allocation6 + $0x1c0] sm:$0xff]  ;;  %v1335_v34 = vld [vmem:[#allocation6 + $0x1d0] sm:$0xff] }
  0xf5   :  { %v6386_v40 = vadd.f32 %v239_v38, %v6338_v0  ;;  %v6389_v41 = vadd.f32 %v352_v39, %v6341_v46 }
  0xf6   :  { %v241_v42 = vpop.f32.mrf.mxu0  ;;  %v354_v43 = vpop.f32.mrf.mxu1 }
  0xf7   :  { %v6392_v44 = vadd.f32 %v241_v42, %v6344_v6  ;;  %v6395_v45 = vadd.f32 %v354_v43, %v6350_v13 }
  0xf8   :  { %v245_v26 = vpop.f32.mrf.mxu0  ;;  %v358_v47 = vpop.f32.mrf.mxu1 }
  0xf9   :  { %v6398_v48 = vadd.f32 %v245_v26, %v6338_v0  ;;  %v6401_v49 = vadd.f32 %v358_v47, %v6341_v46 }
  0xfa   :  { %v247_v50 = vpop.f32.mrf.mxu0  ;;  %v360_v51 = vpop.f32.mrf.mxu1 }
  0xfb   :  { %6730 = vst [vmem:[#allocation19_spill] sm:$0xff] %v6401_v49  ;;  %v6404_v14 = vadd.f32 %v247_v50, %v6344_v6  ;;  %v6407_v52 = vadd.f32 %v360_v51, %v6350_v13  ;;  %v1373_v50 = vld [vmem:[#allocation6 + $0x300] sm:$0xff]  ;;  %v1375_v51 = vld [vmem:[#allocation6 + $0x310] sm:$0xff] }
  0xfc   :  { %v251_v53 = vpop.f32.mrf.mxu0  ;;  %v364_v54 = vpop.f32.mrf.mxu1  ;;  %1540 = vmatpush1.msra.mxu0 %v1373_v50  ;;  %1611 = vmatpush1.msra.mxu1 %v1375_v51  ;;  %v1325_v50 = vld [vmem:[#allocation6 + $0x180] sm:$0xff]  ;;  %v1327_v51 = vld [vmem:[#allocation6 + $0x190] sm:$0xff] }
  0xfd   :  { %v6410_v58 = vadd.f32 %v251_v53, %v6338_v0  ;;  %v6413_v19 = vadd.f32 %v364_v54, %v6341_v46  ;;  %v1366_v53 = vld [vmem:[#allocation6 + $0x2c8] sm:$0xff]  ;;  %v1368_v54 = vld [vmem:[#allocation6 + $0x2d8] sm:$0xff] }
  0xfe   :  { %v253_v1 = vpop.f32.mrf.mxu0  ;;  %v366_v2 = vpop.f32.mrf.mxu1  ;;  %1541 = vmatprep.subr.mxu0 %v1366_v53  ;;  %1612 = vmatprep.subr.mxu1 %v1368_v54  ;;  %v1318_v53 = vld [vmem:[#allocation6 + $0x148] sm:$0xff]  ;;  %v1320_v54 = vld [vmem:[#allocation6 + $0x158] sm:$0xff] }
  0xff   :  { %6731 = vst [vmem:[#allocation20_spill] sm:$0xff] %v6410_v58  ;;  %6732 = vst [vmem:[#allocation21_spill] sm:$0xff] %v6413_v19  ;;  %v6416_v23 = vadd.f32 %v253_v1, %v6344_v6  ;;  %v6419_v12 = vadd.f32 %v366_v2, %v6350_v13  ;;  %1542 = vmatpush1.msra.mxu0 %v1365_v55  ;;  %1613 = vmatpush1.msra.mxu1 %v1367_v56  ;;  %v1350_v1 = vld [vmem:[#allocation6 + $0x248] sm:$0xff]  ;;  %v1352_v2 = vld [vmem:[#allocation6 + $0x258] sm:$0xff] }
 0x100   :  { %v257_v28 = vpop.f32.mrf.mxu0  ;;  %v370_v29 = vpop.f32.mrf.mxu1  ;;  %1543 = vmatprep.subr.mxu0 %v1358_v57  ;;  %1614 = vmatprep.subr.mxu1 %v1360_v59  ;;  %v1317_v57 = vld [vmem:[#allocation6 + $0x140] sm:$0xff]  ;;  %v1319_v59 = vld [vmem:[#allocation6 + $0x150] sm:$0xff]  ;;  %v1430_v19 = vld [vmem:[#allocation6 + $0x4c8] sm:$0xff] }
 0x101   :  { %6733 = vst [vmem:[#allocation22_spill] sm:$0xff] %v6416_v23  ;;  %6734 = vst [vmem:[#allocation23_spill] sm:$0xff] %v6419_v12  ;;  %v6422_v38 = vadd.f32 %v257_v28, %v6338_v0  ;;  %v6425_v39 = vadd.f32 %v370_v29, %v6341_v46  ;;  %1544 = vmatpush1.msra.mxu0 %v1357_v60  ;;  %1615 = vmatpush1.msra.mxu1 %v1359_v61  ;;  %v1334_v28 = vld [vmem:[#allocation6 + $0x1c8] sm:$0xff]  ;;  %v1336_v29 = vld [vmem:[#allocation6 + $0x1d8] sm:$0xff] }
 0x102   :  { %v259_v42 = vpop.f32.mrf.mxu0  ;;  %v372_v43 = vpop.f32.mrf.mxu1  ;;  %1545 = vmatprep.subr.mxu0 %v1350_v1  ;;  %1616 = vmatprep.subr.mxu1 %v1352_v2  ;;  %v1310_v60 = vld [vmem:[#allocation6 + $0x108] sm:$0xff]  ;;  %v1312_v61 = vld [vmem:[#allocation6 + $0x118] sm:$0xff]  ;;  %v1309_v1 = vld [vmem:[#allocation6 + $0x100] sm:$0xff] }
 0x103   :  { %6735 = vst [vmem:[#allocation24_spill] sm:$0xff] %v6422_v38  ;;  %6736 = vst [vmem:[#allocation25_spill] sm:$0xff] %v6425_v39  ;;  %v6428_v26 = vadd.f32 %v259_v42, %v6344_v6  ;;  %v6431_v47 = vadd.f32 %v372_v43, %v6350_v13  ;;  %1546 = vmatpush1.msra.mxu0 %v1349_v4  ;;  %1617 = vmatpush1.msra.mxu1 %v1351_v5  ;;  %v1326_v42 = vld [vmem:[#allocation6 + $0x188] sm:$0xff]  ;;  %v1328_v43 = vld [vmem:[#allocation6 + $0x198] sm:$0xff] }
 0x104   :  { %1547 = vmatprep.subr.mxu0 %v1342_v9  ;;  %1618 = vmatprep.subr.mxu1 %v1344_v15  ;;  %v6433_v55 = vpop.f32.mrf.mxu0  ;;  %v6435_v56 = vpop.f32.mrf.mxu1  ;;  %v1311_v2 = vld [vmem:[#allocation6 + $0x110] sm:$0xff]  ;;  %v1302_v4 = vld [vmem:[#allocation6 + $0xc8] sm:$0xff]  ;;  %v1304_v5 = vld [vmem:[#allocation6 + $0xd8] sm:$0xff] }
 0x105   :  { %6737 = vst [vmem:[#allocation26_spill] sm:$0xff] %v6428_v26  ;;  %6738 = vst [vmem:[#allocation27_spill] sm:$0xff] %v6431_v47  ;;  %1548 = vmatpush1.msra.mxu0 %v1341_v18  ;;  %1619 = vmatpush1.msra.mxu1 %v1343_v24  ;;  %v1301_v18 = vld [vmem:[#allocation6 + $0xc0] sm:$0xff]  ;;  %v1303_v24 = vld [vmem:[#allocation6 + $0xd0] sm:$0xff] }
 0x106   :  { %1549 = vmatprep.subr.mxu0 %v1334_v28  ;;  %1620 = vmatprep.subr.mxu1 %v1336_v29  ;;  %6739 = vst [vmem:[#allocation28_spill] sm:$0xff] %v6433_v55  ;;  %6740 = vst [vmem:[#allocation29_spill] sm:$0xff] %v6435_v56  ;;  %v6437_v9 = vpop.f32.mrf.mxu0  ;;  %v6439_v15 = vpop.f32.mrf.mxu1  ;;  %v1294_v28 = vld [vmem:[#allocation6 + $0x88] sm:$0xff]  ;;  %v1296_v29 = vld [vmem:[#allocation6 + $0x98] sm:$0xff] }
 0x107   :  { %1550 = vmatpush1.msra.mxu0 %v1333_v33  ;;  %1621 = vmatpush1.msra.mxu1 %v1335_v34  ;;  %6741 = vst [vmem:[#allocation30_spill] sm:$0xff] %v6437_v9  ;;  %6742 = vst [vmem:[#allocation31_spill] sm:$0xff] %v6439_v15  ;;  %v1486_v56 = vld [vmem:[#allocation6 + $0x688] sm:$0xff]  ;;  %v1488_v15 = vld [vmem:[#allocation6 + $0x698] sm:$0xff] }
 0x108   :  { %1551 = vmatprep.subr.mxu0 %v1326_v42  ;;  %1622 = vmatprep.subr.mxu1 %v1328_v43  ;;  %v1293_v42 = vld [vmem:[#allocation6 + $0x80] sm:$0xff]  ;;  %v1295_v43 = vld [vmem:[#allocation6 + $0x90] sm:$0xff]  ;;  %v1462_v39 = vld [vmem:[#allocation6 + $0x5c8] sm:$0xff] }
 0x109   :  { %1552 = vmatpush1.msra.mxu0 %v1325_v50  ;;  %1623 = vmatpush1.msra.mxu1 %v1327_v51  ;;  %v1286_v50 = vld [vmem:[#allocation6 + $0x48] sm:$0xff]  ;;  %v1288_v51 = vld [vmem:[#allocation6 + $0x58] sm:$0xff]  ;;  %v1453_v26 = vld [vmem:[#allocation6 + $0x580] sm:$0xff] }
 0x10a   :  { %1553 = vmatprep.subr.mxu0 %v1318_v53  ;;  %1624 = vmatprep.subr.mxu1 %v1320_v54  ;;  %v1464_v47 = vld [vmem:[#allocation6 + $0x5d8] sm:$0xff]  ;;  %v1455_v38 = vld [vmem:[#allocation6 + $0x590] sm:$0xff] }
 0x10b   :  { %1554 = vmatpush1.msra.mxu0 %v1317_v57  ;;  %1625 = vmatpush1.msra.mxu1 %v1319_v59  ;;  %v1285_v57 = vld [vmem:[#allocation6 + $0x40] sm:$0xff]  ;;  %v1287_v59 = vld [vmem:[#allocation6 + $0x50] sm:$0xff] }
 0x10c   :  { %1555 = vmatprep.subr.mxu0 %v1310_v60  ;;  %1626 = vmatprep.subr.mxu1 %v1312_v61  ;;  %v1278_v60 = vld [vmem:[#allocation6 + $0x8] sm:$0xff]  ;;  %v1280_v61 = vld [vmem:[#allocation6 + $0x18] sm:$0xff]  ;;  %v1431_v12 = vld [vmem:[#allocation6 + $0x4d0] sm:$0xff] }
 0x10d   :  { %1556 = vmatpush1.msra.mxu0 %v1309_v1  ;;  %1627 = vmatpush1.msra.mxu1 %v1311_v2  ;;  %v1277_v1 = vld [vmem:[#allocation6] sm:$0xff]  ;;  %v1279_v2 = vld [vmem:[#allocation6 + $0x10] sm:$0xff] }
 0x10e   :  { %1557 = vmatprep.subr.mxu0 %v1302_v4  ;;  %1628 = vmatprep.subr.mxu1 %v1304_v5  ;;  %v1526_v4 = vld [vmem:[#allocation6 + $0x7c8] sm:$0xff]  ;;  %v1528_v5 = vld [vmem:[#allocation6 + $0x7d8] sm:$0xff] }
 0x10f   :  { %1558 = vmatpush1.msra.mxu0 %v1301_v18  ;;  %1629 = vmatpush1.msra.mxu1 %v1303_v24 }
 0x110   :  { %1559 = vmatprep.subr.mxu0 %v1294_v28  ;;  %1630 = vmatprep.subr.mxu1 %v1296_v29  ;;  %v1525_v28 = vld [vmem:[#allocation6 + $0x7c0] sm:$0xff]  ;;  %v1527_v29 = vld [vmem:[#allocation6 + $0x7d0] sm:$0xff] }
 0x111   :  { %1560 = vmatpush1.msra.mxu0 %v1293_v42  ;;  %1631 = vmatpush1.msra.mxu1 %v1295_v43  ;;  %v1518_v42 = vld [vmem:[#allocation6 + $0x788] sm:$0xff]  ;;  %v1520_v43 = vld [vmem:[#allocation6 + $0x798] sm:$0xff] }
 0x112   :  { %1561 = vmatprep.subr.mxu0 %v1286_v50  ;;  %1632 = vmatprep.subr.mxu1 %v1288_v51 }
 0x113   :  { %1562 = vmatpush1.msra.mxu0 %v1285_v57  ;;  %1633 = vmatpush1.msra.mxu1 %v1287_v59  ;;  %v1517_v57 = vld [vmem:[#allocation6 + $0x780] sm:$0xff]  ;;  %v1519_v59 = vld [vmem:[#allocation6 + $0x790] sm:$0xff] }
 0x114   :  { %1563 = vmatprep.subr.mxu0 %v1278_v60  ;;  %1634 = vmatprep.subr.mxu1 %v1280_v61  ;;  %v1510_v60 = vld [vmem:[#allocation6 + $0x748] sm:$0xff]  ;;  %v1512_v61 = vld [vmem:[#allocation6 + $0x758] sm:$0xff] }
 0x115   :  { %1564 = vmatpush1.msra.mxu0 %v1277_v1  ;;  %1635 = vmatpush1.msra.mxu1 %v1279_v2  ;;  %v1509_v1 = vld [vmem:[#allocation6 + $0x740] sm:$0xff]  ;;  %v1511_v2 = vld [vmem:[#allocation6 + $0x750] sm:$0xff] }
 0x116   :  { %1565 = vmatprep.subr.mxu0 %v1526_v4  ;;  %1636 = vmatprep.subr.mxu1 %v1528_v5  ;;  %v1502_v4 = vld [vmem:[#allocation6 + $0x708] sm:$0xff]  ;;  %v1504_v5 = vld [vmem:[#allocation6 + $0x718] sm:$0xff] }
 0x117   :  { %1566 = vmatpush2.msra.mxu0 %v1525_v28  ;;  %1637 = vmatpush2.msra.mxu1 %v1527_v29 }
 0x118   :  { %1567 = vmatprep.subr.mxu0 %v1518_v42  ;;  %1638 = vmatprep.subr.mxu1 %v1520_v43  ;;  %v1501_v42 = vld [vmem:[#allocation6 + $0x700] sm:$0xff]  ;;  %v1503_v43 = vld [vmem:[#allocation6 + $0x710] sm:$0xff] }
 0x119   :  { %1568 = vmatpush2.msra.mxu0 %v1517_v57  ;;  %1639 = vmatpush2.msra.mxu1 %v1519_v59  ;;  %v1494_v57 = vld [vmem:[#allocation6 + $0x6c8] sm:$0xff]  ;;  %v1496_v59 = vld [vmem:[#allocation6 + $0x6d8] sm:$0xff] }
 0x11a   :  { %1569 = vmatprep.subr.mxu0 %v1510_v60  ;;  %1640 = vmatprep.subr.mxu1 %v1512_v61 }
 0x11b   :  { %1570 = vmatpush2.msra.mxu0 %v1509_v1  ;;  %1641 = vmatpush2.msra.mxu1 %v1511_v2  ;;  %v1493_v1 = vld [vmem:[#allocation6 + $0x6c0] sm:$0xff]  ;;  %v1495_v2 = vld [vmem:[#allocation6 + $0x6d0] sm:$0xff] }
 0x11c   :  { %1571 = vmatprep.subr.mxu0 %v1502_v4  ;;  %1642 = vmatprep.subr.mxu1 %v1504_v5  ;;  %v1485_v4 = vld [vmem:[#allocation6 + $0x680] sm:$0xff]  ;;  %v1487_v5 = vld [vmem:[#allocation6 + $0x690] sm:$0xff] }
 0x11d   :  { %1572 = vmatpush2.msra.mxu0 %v1501_v42  ;;  %1643 = vmatpush2.msra.mxu1 %v1503_v43  ;;  %v1478_v42 = vld [vmem:[#allocation6 + $0x648] sm:$0xff]  ;;  %v1480_v43 = vld [vmem:[#allocation6 + $0x658] sm:$0xff] }
 0x11e   :  { %1573 = vmatprep.subr.mxu0 %v1494_v57  ;;  %1644 = vmatprep.subr.mxu1 %v1496_v59  ;;  %v1477_v57 = vld [vmem:[#allocation6 + $0x640] sm:$0xff]  ;;  %v1479_v59 = vld [vmem:[#allocation6 + $0x650] sm:$0xff] }
 0x11f   :  { %1574 = vmatpush2.msra.mxu0 %v1493_v1  ;;  %1645 = vmatpush2.msra.mxu1 %v1495_v2  ;;  %v1470_v1 = vld [vmem:[#allocation6 + $0x608] sm:$0xff]  ;;  %v1472_v2 = vld [vmem:[#allocation6 + $0x618] sm:$0xff] }
 0x120   :  { %1575 = vmatprep.subr.mxu0 %v1486_v56  ;;  %1646 = vmatprep.subr.mxu1 %v1488_v15 }
 0x121   :  { %1576 = vmatpush2.msra.mxu0 %v1485_v4  ;;  %1647 = vmatpush2.msra.mxu1 %v1487_v5  ;;  %v1469_v4 = vld [vmem:[#allocation6 + $0x600] sm:$0xff]  ;;  %v1471_v5 = vld [vmem:[#allocation6 + $0x610] sm:$0xff] }
 0x122   :  { %1577 = vmatprep.subr.mxu0 %v1478_v42  ;;  %1648 = vmatprep.subr.mxu1 %v1480_v43  ;;  %v1461_v42 = vld [vmem:[#allocation6 + $0x5c0] sm:$0xff]  ;;  %v1463_v43 = vld [vmem:[#allocation6 + $0x5d0] sm:$0xff] }
 0x123   :  { %1578 = vmatpush2.msra.mxu0 %v1477_v57  ;;  %1649 = vmatpush2.msra.mxu1 %v1479_v59  ;;  %v1454_v57 = vld [vmem:[#allocation6 + $0x588] sm:$0xff]  ;;  %v1456_v59 = vld [vmem:[#allocation6 + $0x598] sm:$0xff] }
 0x124   :  { %1579 = vmatprep.subr.mxu0 %v1470_v1  ;;  %1650 = vmatprep.subr.mxu1 %v1472_v2  ;;  %v1448_v2 = vld [vmem:[#allocation6 + $0x558] sm:$0xff] }
 0x125   :  { %1580 = vmatpush2.msra.mxu0 %v1469_v4  ;;  %1651 = vmatpush2.msra.mxu1 %v1471_v5  ;;  %v1445_v4 = vld [vmem:[#allocation6 + $0x540] sm:$0xff]  ;;  %v1447_v5 = vld [vmem:[#allocation6 + $0x550] sm:$0xff] }
 0x126   :  { %1581 = vmatprep.subr.mxu0 %v1462_v39  ;;  %1652 = vmatprep.subr.mxu1 %v1464_v47  ;;  %v1438_v39 = vld [vmem:[#allocation6 + $0x508] sm:$0xff]  ;;  %v1440_v47 = vld [vmem:[#allocation6 + $0x518] sm:$0xff] }
 0x127   :  { %1582 = vmatpush2.msra.mxu0 %v1461_v42  ;;  %1653 = vmatpush2.msra.mxu1 %v1463_v43  ;;  %v1437_v42 = vld [vmem:[#allocation6 + $0x500] sm:$0xff]  ;;  %v1439_v43 = vld [vmem:[#allocation6 + $0x510] sm:$0xff] }
 0x128   :  { %1583 = vmatprep.subr.mxu0 %v1454_v57  ;;  %1654 = vmatprep.subr.mxu1 %v1456_v59  ;;  %v1432_v57 = vld [vmem:[#allocation6 + $0x4d8] sm:$0xff]  ;;  %v1429_v59 = vld [vmem:[#allocation6 + $0x4c0] sm:$0xff] }
 0x129   :  { %v6441_v33 = vpop.f32.mrf.mxu0  ;;  %v6443_v34 = vpop.f32.mrf.mxu1  ;;  %1584 = vmatpush2.msra.mxu0 %v1453_v26  ;;  %1655 = vmatpush2.msra.mxu1 %v1455_v38  ;;  %v1422_v38 = vld [vmem:[#allocation6 + $0x488] sm:$0xff]  ;;  %v1424_v26 = vld [vmem:[#allocation6 + $0x498] sm:$0xff] }
 0x12a   :  { %6743 = vst [vmem:[#allocation32_spill] sm:$0xff] %v6441_v33  ;;  %6744 = vst [vmem:[#allocation33_spill] sm:$0xff] %v6443_v34  ;;  %v1446_v34 = vld [vmem:[#allocation6 + $0x548] sm:$0xff]  ;;  %1656 = vmatprep.subr.mxu1 %v1448_v2  ;;  %v1423_v2 = vld [vmem:[#allocation6 + $0x490] sm:$0xff] }
 0x12b   :  { %v6445_v53 = vpop.f32.mrf.mxu0  ;;  %v6447_v54 = vpop.f32.mrf.mxu1  ;;  %1585 = vmatprep.subr.mxu0 %v1446_v34  ;;  %1657 = vmatpush2.msra.mxu1 %v1447_v5  ;;  %v1421_v34 = vld [vmem:[#allocation6 + $0x480] sm:$0xff]  ;;  %v1416_v5 = vld [vmem:[#allocation6 + $0x458] sm:$0xff] }
 0x12c   :  { %6745 = vst [vmem:[#allocation34_spill] sm:$0xff] %v6445_v53  ;;  %6746 = vst [vmem:[#allocation35_spill] sm:$0xff] %v6447_v54  ;;  %1586 = vmatpush2.msra.mxu0 %v1445_v4  ;;  %1658 = vmatprep.subr.mxu1 %v1440_v47  ;;  %v1414_v4 = vld [vmem:[#allocation6 + $0x448] sm:$0xff]  ;;  %v1413_v47 = vld [vmem:[#allocation6 + $0x440] sm:$0xff] }
 0x12d   :  { %1587 = vmatprep.subr.mxu0 %v1438_v39  ;;  %1659 = vmatpush2.msra.mxu1 %v1439_v43  ;;  %v1406_v43 = vld [vmem:[#allocation6 + $0x408] sm:$0xff] }
 0x12e   :  { %1588 = vmatpush2.msra.mxu0 %v1437_v42  ;;  %1660 = vmatprep.subr.mxu1 %v1432_v57  ;;  %v1415_v42 = vld [vmem:[#allocation6 + $0x450] sm:$0xff] }
 0x12f   :  { %v6449_v18 = vpop.f32.mrf.mxu0  ;;  %v6451_v24 = vpop.f32.mrf.mxu1  ;;  %1589 = vmatprep.subr.mxu0 %v1430_v19  ;;  %1661 = vmatpush2.msra.mxu1 %v1431_v12  ;;  %v1405_v19 = vld [vmem:[#allocation6 + $0x400] sm:$0xff]  ;;  %v1407_v57 = vld [vmem:[#allocation6 + $0x410] sm:$0xff] }
 0x130   :  { %6747 = vst [vmem:[#allocation36_spill] sm:$0xff] %v6449_v18  ;;  %6748 = vst [vmem:[#allocation37_spill] sm:$0xff] %v6451_v24  ;;  %1590 = vmatpush2.msra.mxu0 %v1429_v59  ;;  %1662 = vmatprep.subr.mxu1 %v1424_v26  ;;  %v1408_v24 = vld [vmem:[#allocation6 + $0x418] sm:$0xff]  ;;  %v1402_v59 = vld [vmem:[#allocation6 + $0x3e8] sm:$0xff] }
 0x131   :  { %v6453_v50 = vpop.f32.mrf.mxu0  ;;  %v6455_v51 = vpop.f32.mrf.mxu1  ;;  %1591 = vmatprep.subr.mxu0 %v1422_v38  ;;  %1663 = vmatpush2.msra.mxu1 %v1423_v2  ;;  %v1404_v38 = vld [vmem:[#allocation6 + $0x3f8] sm:$0xff]  ;;  %v216_v2 = vadd.f32 %v6327_v62, %v6338_v0  ;;  %v329_v62 = vadd.f32 %v6329_v63, %v6341_v46 }
 0x132   :  { %6749 = vst [vmem:[#allocation38_spill] sm:$0xff] %v6453_v50  ;;  %6750 = vst [vmem:[#allocation39_spill] sm:$0xff] %v6455_v51  ;;  %1592 = vmatpush2.msra.mxu0 %v1421_v34  ;;  %1664 = vmatprep.subr.mxu1 %v1416_v5  ;;  %v218_v5 = vadd.f32 %v6333_v22, %v6344_v6 }
 0x133   :  { %1593 = vmatprep.subr.mxu0 %v1414_v4  ;;  %1665 = vmatpush2.msra.mxu1 %v1415_v42 }
 0x134   :  { %1594 = vmatpush2.msra.mxu0 %v1413_v47  ;;  %1666 = vmatprep.subr.mxu1 %v1408_v24 }
 0x135   :  { %v6457_v28 = vpop.f32.mrf.mxu0  ;;  %v6459_v29 = vpop.f32.mrf.mxu1  ;;  %1595 = vmatprep.subr.mxu0 %v1406_v43  ;;  %1667 = vmatpush2.msra.mxu1 %v1407_v57 }
 0x136   :  { %1596 = vmatpush2.msra.mxu0 %v1405_v19  ;;  %1746 = vmatprep.subr.mxu1 %v1404_v38 }
 0x137   :  { %v6461_v60 = vpop.f32.mrf.mxu0  ;;  %v6463_v61 = vpop.f32.mrf.mxu1  ;;  %1675 = vmatprep.subr.mxu0 %v1402_v59  ;;  %v331_v59 = vadd.f32 %v6335_v3, %v6350_v13  ;;  %v667_v3 = vld [vmem:[%s6722_s2] sm:$0xff] }
 0x13b   :  { %v6465_v9 = vpop.f32.mrf.mxu0  ;;  %v6467_v55 = vpop.f32.mrf.mxu1 }
 0x13d   :  { %v6469_v56 = vpop.f32.mrf.mxu0  ;;  %v6471_v15 = vpop.f32.mrf.mxu1 }
 0x141   :  { %v6473_v54 = vpop.f32.mrf.mxu0  ;;  %v6475_v1 = vpop.f32.mrf.mxu1 }
 0x143   :  { %v6477_v53 = vpop.f32.mrf.mxu0  ;;  %v6479_v33 = vpop.f32.mrf.mxu1 }
 0x147   :  { %v6481_v23 = vpop.f32.mrf.mxu0  ;;  %v6483_v58 = vpop.f32.mrf.mxu1 }
 0x149   :  { %v6485_v39 = vpop.f32.mrf.mxu0  ;;  %v6487_v51 = vpop.f32.mrf.mxu1 }
 0x14d   :  { %v483_v12 = vpop.f32.mrf.mxu0  ;;  %v596_v34 = vpop.f32.mrf.mxu1 }
 0x14f   :  { %v485_v26 = vpop.f32.mrf.mxu0  ;;  %v598_v47 = vpop.f32.mrf.mxu1 }
 0x153   :  { %v992_v4 = vpop.f32.mrf.mxu0  ;;  %v1063_v19 = vpop.f32.mrf.mxu1 }
 0x154   :  { %v1214_v42 = vadd.f32 %v992_v4, %v216_v2  ;;  %v1216_v0 = vadd.f32 %v1063_v19, %v329_v62 }
 0x155   :  { %v994_v50 = vpop.f32.mrf.mxu0  ;;  %v1065_v18 = vpop.f32.mrf.mxu1 }
 0x156   :  { %v5636_v43 = vmul.f32 -1.442695, %v1214_v42  ;;  %v1215_v24 = vadd.f32 %v994_v50, %v218_v5  ;;  %v1217_v38 = vadd.f32 %v1065_v18, %v331_v59 }
 0x158   :  { %5695 = vpow2.f32 %v5636_v43  ;;  %v5637_v57 = vmul.f32 -1.442695, %v1215_v24  ;;  %v5638_v49 = vmul.f32 -1.442695, %v1217_v38  ;;  %v486_v38 = vadd.f32 %v485_v26, %v6291_v32 }
 0x15a   :  { %5697 = vpow2.f32 %v5637_v57  ;;  %v484_v57 = vadd.f32 %v483_v12, %v6283_v21 }
 0x15b   :  { %5699 = vtanh.f32 %v1216_v0 }
 0x15c   :  { %5701 = vpow2.f32 %v5638_v49 }
 0x165   :  { %v5696_v22 = vpop.eup %5695 }
 0x166   :  { %v1229_v6 = vadd.f32 1.0, %v5696_v22 }
 0x167   :  { %v5698_v2 = vpop.eup %5697 }
 0x168   :  { %5703 = vrcp.f32 %v1229_v6  ;;  %v1235_v50 = vadd.f32 1.0, %v5698_v2  ;;  %v5700_v4 = vpop.eup %5699 }
 0x169   :  { %v5702_v5 = vpop.eup %5701 }
 0x16a   :  { %5705 = vrcp.f32 %v1235_v50  ;;  %v1242_v63 = vadd.f32 1.0, %v5702_v5  ;;  %v599_v5 = vadd.f32 %v598_v47, %v6299_v25  ;;  %v5635_v47 = vld [vmem:[%s6722_s2 + $0x8] sm:$0xff]  ;;  %s6086_s2 = smov [#allocation8]  }
 0x16b   :  { %s5543_s3 = sshll.u32 %s6086_s2, 4  ;;  %s5544_s3 = int_to_ptr.vmem [resolvable:$true] %s5543_s3 }
 0x16c   :  { %5707 = vrcp.f32 %v1242_v63  ;;  %s5991_s4 = scalar_lea.vmem %s5544_s3, 1024  ;;  %p5996_p11 = scmp.lt.s32.totalorder %s5544_s3, %s5544_s3 }
 0x16d   :  { %p5992_p10 = scmp.ne.s32.totalorder %s5544_s3, %s5991_s4  ;;  %p5997_p12 = scmp.lt.s32.totalorder %s5991_s4, %s5991_s4 }
 0x16f   :  { %p5998_p13 = por %p5997_p12, %p5996_p11 }
 0x171   :  { %p5999_p0 = pnand %p5998_p13, %p5992_p10 }
 0x175   :  { %v5704_v42 = vpop.eup %5703 }
 0x176   :  { %v1246_v13 = vmul.f32 %v5704_v42, %v5700_v4 }
 0x177   :  { %v5706_v18 = vpop.eup %5705 }
 0x178   :  { %v1245_v46 = vmul.f32 %v5706_v18, %v667_v3  ;;  %v597_v3 = vadd.f32 %v596_v34, %v6296_v37 }
 0x179   :  { %v5708_v49 = vpop.eup %5707 }
 0x17a   :  { %v6500_v43 = vadd.f32 %v1246_v13, %v1245_v46 }
 0x17c   :  { %5709 = vtanh.f32 %v6500_v43 }
 0x189   :  { %v5710_v24 = vpop.eup %5709 }
 0x18a   :  { %v6503_v19 = vmul.f32 %v5710_v24, %v5708_v49 }
 0x18c   :  { %1274 = vst [vmem:[#allocation8] sm:$0xff] %v6503_v19 }
 0x195   :  { %v1134_v59 = vpop.f32.mrf.mxu0  ;;  %v1205_v2 = vpop.f32.mrf.mxu1 }
 0x196   :  { %v1222_v62 = vadd.f32 %v1134_v59, %v484_v57  ;;  %v1224_v13 = vadd.f32 %v1205_v2, %v597_v3  ;;  %v1393_v3 = vld [vmem:[#allocation6 + $0x3a0] sm:$0xff] }
 0x197   :  { %v1136_v0 = vpop.f32.mrf.mxu0  ;;  %v1207_v4 = vpop.f32.mrf.mxu1 }
 0x198   :  { %v5639_v22 = vmul.f32 -1.442695, %v1222_v62  ;;  %v1223_v6 = vadd.f32 %v1136_v0, %v486_v38  ;;  %v1225_v42 = vadd.f32 %v1207_v4, %v599_v5  ;;  %v1403_v4 = vld [vmem:[#allocation6 + $0x3f0] sm:$0xff]  ;;  %v1394_v5 = vld [vmem:[#allocation6 + $0x3a8] sm:$0xff] }
 0x19a   :  { %5711 = vpow2.f32 %v5639_v22  ;;  %v5640_v50 = vmul.f32 -1.442695, %v1223_v6  ;;  %v5641_v18 = vmul.f32 -1.442695, %v1225_v42  ;;  %v1396_v42 = vld [vmem:[#allocation6 + $0x3b8] sm:$0xff] }
 0x19c   :  { %5713 = vpow2.f32 %v5640_v50  ;;  %v1401_v50 = vld [vmem:[#allocation6 + $0x3e0] sm:$0xff] }
 0x19d   :  { %5715 = vtanh.f32 %v1224_v13  ;;  %v1395_v13 = vld [vmem:[#allocation6 + $0x3b0] sm:$0xff] }
 0x19e   :  { %5717 = vpow2.f32 %v5641_v18  ;;  %v1386_v18 = vld [vmem:[#allocation6 + $0x368] sm:$0xff] }
 0x1a7   :  { %v5712_v12 = vpop.eup %5711 }
 0x1a8   :  { %v1253_v63 = vadd.f32 1.0, %v5712_v12  ;;  %v1388_v12 = vld [vmem:[#allocation6 + $0x378] sm:$0xff] }
 0x1a9   :  { %v5714_v26 = vpop.eup %5713 }
 0x1aa   :  { %5719 = vrcp.f32 %v1253_v63  ;;  %v1259_v46 = vadd.f32 1.0, %v5714_v26  ;;  %v5716_v49 = vpop.eup %5715  ;;  %v1385_v63 = vld [vmem:[#allocation6 + $0x360] sm:$0xff]  ;;  %v1387_v26 = vld [vmem:[#allocation6 + $0x370] sm:$0xff] }
 0x1ab   :  { %v5718_v24 = vpop.eup %5717 }
 0x1ac   :  { %5721 = vrcp.f32 %v1259_v46  ;;  %v1266_v34 = vadd.f32 1.0, %v5718_v24  ;;  %v1378_v46 = vld [vmem:[#allocation6 + $0x328] sm:$0xff]  ;;  %v1377_v24 = vld [vmem:[#allocation6 + $0x320] sm:$0xff] }
 0x1ae   :  { %5723 = vrcp.f32 %v1266_v34  ;;  %v1371_v34 = vld [vmem:[#allocation6 + $0x2f0] sm:$0xff] }
 0x1b7   :  { %v5720_v57 = vpop.eup %5719 }
 0x1b8   :  { %v1270_v59 = vmul.f32 %v5720_v57, %v5716_v49  ;;  %v1380_v49 = vld [vmem:[#allocation6 + $0x338] sm:$0xff]  ;;  %v1379_v57 = vld [vmem:[#allocation6 + $0x330] sm:$0xff] }
 0x1b9   :  { %v5722_v38 = vpop.eup %5721 }
 0x1ba   :  { %v1269_v62 = vmul.f32 %v5722_v38, %v5635_v47  ;;  %v1370_v47 = vld [vmem:[#allocation6 + $0x2e8] sm:$0xff]  ;;  %v1369_v38 = vld [vmem:[#allocation6 + $0x2e0] sm:$0xff] }
 0x1bb   :  { %v5724_v22 = vpop.eup %5723 }
 0x1bc   :  { %v6513_v0 = vadd.f32 %v1270_v59, %v1269_v62  ;;  %v1372_v59 = vld [vmem:[#allocation6 + $0x2f8] sm:$0xff]  ;;  %v1362_v62 = vld [vmem:[#allocation6 + $0x2a8] sm:$0xff] }
 0x1be   :  { %5725 = vtanh.f32 %v6513_v0 }
 0x1cb   :  { %v5726_v6 = vpop.eup %5725 }
 0x1cc   :  { %v1273_v2 = vmul.f32 %v5726_v6, %v5724_v22  ;;  %v1364_v22 = vld [vmem:[#allocation6 + $0x2b8] sm:$0xff]  ;;  %v1361_v6 = vld [vmem:[#allocation6 + $0x2a0] sm:$0xff] }
 0x1ce   :  { %1276 = vst [vmem:[#allocation9 + $0x38] sm:$0xff] %v1273_v2  ;;  %1597 = vmatprep.mubr.f32.mxu0 %v1273_v2  ;;  %1668 = vmatprep.mubr.f32.mxu1 %v1273_v2 }
 0x1cf   :  { %1598 = vmatmul.mubr.f32.vlgmr.msra.gmra.mxu0 %v6503_v19  ;;  %1669 = vmatmul.mubr.f32.vlgmr.msra.gmra.mxu1 %v6503_v19 }
 0x1d0   :  { %1676 = vmatpush1.msra.mxu0 %v1401_v50  ;;  %1747 = vmatpush1.msra.mxu1 %v1403_v4  ;;  %v1354_v50 = vld [vmem:[#allocation6 + $0x268] sm:$0xff]  ;;  %v1356_v4 = vld [vmem:[#allocation6 + $0x278] sm:$0xff] }
 0x1d1   :  { %1677 = vmatprep.subr.mxu0 %v1394_v5  ;;  %1739 = vmatprep.mubr.f32.mxu0 %v1273_v2  ;;  %v1353_v5 = vld [vmem:[#allocation6 + $0x260] sm:$0xff] }
 0x1d2   :  { %1748 = vmatprep.subr.mxu1 %v1396_v42  ;;  %1810 = vmatprep.mubr.f32.mxu1 %v1273_v2  ;;  %v1363_v2 = vld [vmem:[#allocation6 + $0x2b0] sm:$0xff] }
 0x1d3   :  { %1678 = vmatpush1.msra.mxu0 %v1393_v3  ;;  %1749 = vmatpush1.msra.mxu1 %v1395_v13  ;;  %v1355_v42 = vld [vmem:[#allocation6 + $0x270] sm:$0xff]  ;;  %v1346_v3 = vld [vmem:[#allocation6 + $0x228] sm:$0xff]  ;;  %v1348_v13 = vld [vmem:[#allocation6 + $0x238] sm:$0xff] }
 0x1d4   :  { %1679 = vmatprep.subr.mxu0 %v1386_v18  ;;  %1750 = vmatprep.subr.mxu1 %v1388_v12  ;;  %v1345_v18 = vld [vmem:[#allocation6 + $0x220] sm:$0xff]  ;;  %v1347_v12 = vld [vmem:[#allocation6 + $0x230] sm:$0xff] }
 0x1d5   :  { %1680 = vmatpush1.msra.mxu0 %v1385_v63  ;;  %1751 = vmatpush1.msra.mxu1 %v1387_v26  ;;  %v1338_v63 = vld [vmem:[#allocation6 + $0x1e8] sm:$0xff]  ;;  %v1340_v26 = vld [vmem:[#allocation6 + $0x1f8] sm:$0xff] }
 0x1d6   :  { %1681 = vmatprep.subr.mxu0 %v1378_v46  ;;  %1752 = vmatprep.subr.mxu1 %v1380_v49  ;;  %v1337_v46 = vld [vmem:[#allocation6 + $0x1e0] sm:$0xff]  ;;  %v1339_v49 = vld [vmem:[#allocation6 + $0x1f0] sm:$0xff] }
 0x1d7   :  { %1682 = vmatpush1.msra.mxu0 %v1377_v24  ;;  %1753 = vmatpush1.msra.mxu1 %v1379_v57  ;;  %v1330_v24 = vld [vmem:[#allocation6 + $0x1a8] sm:$0xff]  ;;  %v1332_v57 = vld [vmem:[#allocation6 + $0x1b8] sm:$0xff] }
 0x1d8   :  { %1683 = vmatprep.subr.mxu0 %v1370_v47  ;;  %1754 = vmatprep.subr.mxu1 %v1372_v59  ;;  %v1329_v47 = vld [vmem:[#allocation6 + $0x1a0] sm:$0xff]  ;;  %v1331_v59 = vld [vmem:[#allocation6 + $0x1b0] sm:$0xff] }
 0x1d9   :  { %1684 = vmatpush1.msra.mxu0 %v1369_v38  ;;  %1755 = vmatpush1.msra.mxu1 %v1371_v34  ;;  %v1322_v38 = vld [vmem:[#allocation6 + $0x168] sm:$0xff]  ;;  %v1324_v34 = vld [vmem:[#allocation6 + $0x178] sm:$0xff] }
 0x1da   :  { %1685 = vmatprep.subr.mxu0 %v1362_v62  ;;  %1756 = vmatprep.subr.mxu1 %v1364_v22  ;;  %v1321_v62 = vld [vmem:[#allocation6 + $0x160] sm:$0xff]  ;;  %v1323_v22 = vld [vmem:[#allocation6 + $0x170] sm:$0xff] }
 0x1db   :  { %1686 = vmatpush1.msra.mxu0 %v1361_v6  ;;  %1757 = vmatpush1.msra.mxu1 %v1363_v2  ;;  %v1314_v6 = vld [vmem:[#allocation6 + $0x128] sm:$0xff]  ;;  %v1316_v2 = vld [vmem:[#allocation6 + $0x138] sm:$0xff] }
 0x1dc   :  { %1687 = vmatprep.subr.mxu0 %v1354_v50  ;;  %1758 = vmatprep.subr.mxu1 %v1356_v4  ;;  %v1313_v50 = vld [vmem:[#allocation6 + $0x120] sm:$0xff]  ;;  %v1315_v4 = vld [vmem:[#allocation6 + $0x130] sm:$0xff] }
 0x1dd   :  { %1688 = vmatpush1.msra.mxu0 %v1353_v5  ;;  %1759 = vmatpush1.msra.mxu1 %v1355_v42  ;;  %v1306_v5 = vld [vmem:[#allocation6 + $0xe8] sm:$0xff]  ;;  %v1308_v42 = vld [vmem:[#allocation6 + $0xf8] sm:$0xff] }
 0x1de   :  { %1689 = vmatprep.subr.mxu0 %v1346_v3  ;;  %1760 = vmatprep.subr.mxu1 %v1348_v13  ;;  %v1305_v3 = vld [vmem:[#allocation6 + $0xe0] sm:$0xff]  ;;  %v1307_v13 = vld [vmem:[#allocation6 + $0xf0] sm:$0xff] }
 0x1df   :  { %1690 = vmatpush1.msra.mxu0 %v1345_v18  ;;  %1761 = vmatpush1.msra.mxu1 %v1347_v12  ;;  %v1298_v18 = vld [vmem:[#allocation6 + $0xa8] sm:$0xff]  ;;  %v1300_v12 = vld [vmem:[#allocation6 + $0xb8] sm:$0xff] }
 0x1e0   :  { %1691 = vmatprep.subr.mxu0 %v1338_v63  ;;  %1762 = vmatprep.subr.mxu1 %v1340_v26  ;;  %v1297_v63 = vld [vmem:[#allocation6 + $0xa0] sm:$0xff]  ;;  %v1299_v26 = vld [vmem:[#allocation6 + $0xb0] sm:$0xff] }
 0x1e1   :  { %1692 = vmatpush1.msra.mxu0 %v1337_v46  ;;  %1763 = vmatpush1.msra.mxu1 %v1339_v49  ;;  %v1290_v46 = vld [vmem:[#allocation6 + $0x68] sm:$0xff]  ;;  %v1292_v49 = vld [vmem:[#allocation6 + $0x78] sm:$0xff] }
 0x1e2   :  { %1693 = vmatprep.subr.mxu0 %v1330_v24  ;;  %1764 = vmatprep.subr.mxu1 %v1332_v57  ;;  %v1289_v24 = vld [vmem:[#allocation6 + $0x60] sm:$0xff]  ;;  %v1291_v57 = vld [vmem:[#allocation6 + $0x70] sm:$0xff] }
 0x1e3   :  { %1694 = vmatpush1.msra.mxu0 %v1329_v47  ;;  %1765 = vmatpush1.msra.mxu1 %v1331_v59  ;;  %v1282_v47 = vld [vmem:[#allocation6 + $0x28] sm:$0xff]  ;;  %v1284_v59 = vld [vmem:[#allocation6 + $0x38] sm:$0xff] }
 0x1e4   :  { %1695 = vmatprep.subr.mxu0 %v1322_v38  ;;  %1766 = vmatprep.subr.mxu1 %v1324_v34  ;;  %v1281_v38 = vld [vmem:[#allocation6 + $0x20] sm:$0xff]  ;;  %v1283_v34 = vld [vmem:[#allocation6 + $0x30] sm:$0xff] }
 0x1e5   :  { %1696 = vmatpush1.msra.mxu0 %v1321_v62  ;;  %1767 = vmatpush1.msra.mxu1 %v1323_v22  ;;  %v1530_v62 = vld [vmem:[#allocation6 + $0x7e8] sm:$0xff]  ;;  %v1532_v22 = vld [vmem:[#allocation6 + $0x7f8] sm:$0xff] }
 0x1e6   :  { %1697 = vmatprep.subr.mxu0 %v1314_v6  ;;  %1768 = vmatprep.subr.mxu1 %v1316_v2  ;;  %v1529_v6 = vld [vmem:[#allocation6 + $0x7e0] sm:$0xff]  ;;  %v1531_v2 = vld [vmem:[#allocation6 + $0x7f0] sm:$0xff] }
 0x1e7   :  { %1698 = vmatpush1.msra.mxu0 %v1313_v50  ;;  %1769 = vmatpush1.msra.mxu1 %v1315_v4  ;;  %v1522_v50 = vld [vmem:[#allocation6 + $0x7a8] sm:$0xff]  ;;  %v1524_v4 = vld [vmem:[#allocation6 + $0x7b8] sm:$0xff] }
 0x1e8   :  { %1699 = vmatprep.subr.mxu0 %v1306_v5  ;;  %1770 = vmatprep.subr.mxu1 %v1308_v42  ;;  %v1521_v5 = vld [vmem:[#allocation6 + $0x7a0] sm:$0xff]  ;;  %v1523_v42 = vld [vmem:[#allocation6 + $0x7b0] sm:$0xff] }
 0x1e9   :  { %1700 = vmatpush1.msra.mxu0 %v1305_v3  ;;  %1771 = vmatpush1.msra.mxu1 %v1307_v13  ;;  %v1514_v3 = vld [vmem:[#allocation6 + $0x768] sm:$0xff]  ;;  %v1516_v13 = vld [vmem:[#allocation6 + $0x778] sm:$0xff] }
 0x1ea   :  { %1701 = vmatprep.subr.mxu0 %v1298_v18  ;;  %1772 = vmatprep.subr.mxu1 %v1300_v12  ;;  %v1513_v18 = vld [vmem:[#allocation6 + $0x760] sm:$0xff]  ;;  %v1515_v12 = vld [vmem:[#allocation6 + $0x770] sm:$0xff] }
 0x1eb   :  { %1702 = vmatpush1.msra.mxu0 %v1297_v63  ;;  %1773 = vmatpush1.msra.mxu1 %v1299_v26  ;;  %v1506_v63 = vld [vmem:[#allocation6 + $0x728] sm:$0xff]  ;;  %v1508_v26 = vld [vmem:[#allocation6 + $0x738] sm:$0xff] }
 0x1ec   :  { %1703 = vmatprep.subr.mxu0 %v1290_v46  ;;  %1774 = vmatprep.subr.mxu1 %v1292_v49  ;;  %v1505_v46 = vld [vmem:[#allocation6 + $0x720] sm:$0xff]  ;;  %v1507_v49 = vld [vmem:[#allocation6 + $0x730] sm:$0xff] }
 0x1ed   :  { %1704 = vmatpush1.msra.mxu0 %v1289_v24  ;;  %1775 = vmatpush1.msra.mxu1 %v1291_v57  ;;  %v1498_v24 = vld [vmem:[#allocation6 + $0x6e8] sm:$0xff]  ;;  %v1500_v57 = vld [vmem:[#allocation6 + $0x6f8] sm:$0xff] }
 0x1ee   :  { %1705 = vmatprep.subr.mxu0 %v1282_v47  ;;  %1776 = vmatprep.subr.mxu1 %v1284_v59  ;;  %v1497_v47 = vld [vmem:[#allocation6 + $0x6e0] sm:$0xff]  ;;  %v1499_v59 = vld [vmem:[#allocation6 + $0x6f0] sm:$0xff] }
 0x1ef   :  { %1706 = vmatpush1.msra.mxu0 %v1281_v38  ;;  %1777 = vmatpush1.msra.mxu1 %v1283_v34  ;;  %v1490_v38 = vld [vmem:[#allocation6 + $0x6a8] sm:$0xff]  ;;  %v1492_v34 = vld [vmem:[#allocation6 + $0x6b8] sm:$0xff] }
 0x1f0   :  { %1707 = vmatprep.subr.mxu0 %v1530_v62  ;;  %1778 = vmatprep.subr.mxu1 %v1532_v22  ;;  %v1489_v62 = vld [vmem:[#allocation6 + $0x6a0] sm:$0xff]  ;;  %v1491_v22 = vld [vmem:[#allocation6 + $0x6b0] sm:$0xff] }
 0x1f1   :  { %1708 = vmatpush2.msra.mxu0 %v1529_v6  ;;  %1779 = vmatpush2.msra.mxu1 %v1531_v2  ;;  %v1482_v6 = vld [vmem:[#allocation6 + $0x668] sm:$0xff]  ;;  %v1484_v2 = vld [vmem:[#allocation6 + $0x678] sm:$0xff] }
 0x1f2   :  { %1709 = vmatprep.subr.mxu0 %v1522_v50  ;;  %1780 = vmatprep.subr.mxu1 %v1524_v4  ;;  %v1481_v50 = vld [vmem:[#allocation6 + $0x660] sm:$0xff]  ;;  %v1483_v4 = vld [vmem:[#allocation6 + $0x670] sm:$0xff] }
 0x1f3   :  { %1710 = vmatpush2.msra.mxu0 %v1521_v5  ;;  %1781 = vmatpush2.msra.mxu1 %v1523_v42  ;;  %v1474_v5 = vld [vmem:[#allocation6 + $0x628] sm:$0xff]  ;;  %v1476_v42 = vld [vmem:[#allocation6 + $0x638] sm:$0xff] }
 0x1f4   :  { %1711 = vmatprep.subr.mxu0 %v1514_v3  ;;  %1782 = vmatprep.subr.mxu1 %v1516_v13  ;;  %v1473_v3 = vld [vmem:[#allocation6 + $0x620] sm:$0xff]  ;;  %v1475_v13 = vld [vmem:[#allocation6 + $0x630] sm:$0xff] }
 0x1f5   :  { %1712 = vmatpush2.msra.mxu0 %v1513_v18  ;;  %1783 = vmatpush2.msra.mxu1 %v1515_v12  ;;  %v1466_v18 = vld [vmem:[#allocation6 + $0x5e8] sm:$0xff]  ;;  %v1468_v12 = vld [vmem:[#allocation6 + $0x5f8] sm:$0xff] }
 0x1f6   :  { %1713 = vmatprep.subr.mxu0 %v1506_v63  ;;  %1784 = vmatprep.subr.mxu1 %v1508_v26  ;;  %v1465_v63 = vld [vmem:[#allocation6 + $0x5e0] sm:$0xff]  ;;  %v1467_v26 = vld [vmem:[#allocation6 + $0x5f0] sm:$0xff] }
 0x1f7   :  { %1714 = vmatpush2.msra.mxu0 %v1505_v46  ;;  %1785 = vmatpush2.msra.mxu1 %v1507_v49  ;;  %v1458_v46 = vld [vmem:[#allocation6 + $0x5a8] sm:$0xff]  ;;  %v1460_v49 = vld [vmem:[#allocation6 + $0x5b8] sm:$0xff] }
 0x1f8   :  { %1715 = vmatprep.subr.mxu0 %v1498_v24  ;;  %1786 = vmatprep.subr.mxu1 %v1500_v57  ;;  %v1457_v24 = vld [vmem:[#allocation6 + $0x5a0] sm:$0xff]  ;;  %v1459_v57 = vld [vmem:[#allocation6 + $0x5b0] sm:$0xff] }
 0x1f9   :  { %1716 = vmatpush2.msra.mxu0 %v1497_v47  ;;  %1787 = vmatpush2.msra.mxu1 %v1499_v59  ;;  %v1450_v47 = vld [vmem:[#allocation6 + $0x568] sm:$0xff]  ;;  %v1452_v59 = vld [vmem:[#allocation6 + $0x578] sm:$0xff] }
 0x1fa   :  { %1717 = vmatprep.subr.mxu0 %v1490_v38  ;;  %1788 = vmatprep.subr.mxu1 %v1492_v34  ;;  %v1449_v38 = vld [vmem:[#allocation6 + $0x560] sm:$0xff]  ;;  %v1451_v34 = vld [vmem:[#allocation6 + $0x570] sm:$0xff] }
 0x1fb   :  { %1718 = vmatpush2.msra.mxu0 %v1489_v62  ;;  %1789 = vmatpush2.msra.mxu1 %v1491_v22  ;;  %v1442_v62 = vld [vmem:[#allocation6 + $0x528] sm:$0xff]  ;;  %v1444_v22 = vld [vmem:[#allocation6 + $0x538] sm:$0xff] }
 0x1fc   :  { %1719 = vmatprep.subr.mxu0 %v1482_v6  ;;  %1790 = vmatprep.subr.mxu1 %v1484_v2  ;;  %v1441_v6 = vld [vmem:[#allocation6 + $0x520] sm:$0xff]  ;;  %v1443_v2 = vld [vmem:[#allocation6 + $0x530] sm:$0xff] }
 0x1fd   :  { %1720 = vmatpush2.msra.mxu0 %v1481_v50  ;;  %1791 = vmatpush2.msra.mxu1 %v1483_v4  ;;  %v1434_v50 = vld [vmem:[#allocation6 + $0x4e8] sm:$0xff]  ;;  %v1436_v4 = vld [vmem:[#allocation6 + $0x4f8] sm:$0xff] }
 0x1fe   :  { %1721 = vmatprep.subr.mxu0 %v1474_v5  ;;  %1792 = vmatprep.subr.mxu1 %v1476_v42  ;;  %v1433_v5 = vld [vmem:[#allocation6 + $0x4e0] sm:$0xff]  ;;  %v1435_v42 = vld [vmem:[#allocation6 + $0x4f0] sm:$0xff] }
 0x1ff   :  { %1722 = vmatpush2.msra.mxu0 %v1473_v3  ;;  %1793 = vmatpush2.msra.mxu1 %v1475_v13  ;;  %v1426_v3 = vld [vmem:[#allocation6 + $0x4a8] sm:$0xff]  ;;  %v1428_v13 = vld [vmem:[#allocation6 + $0x4b8] sm:$0xff] }
 0x200   :  { %1723 = vmatprep.subr.mxu0 %v1466_v18  ;;  %1794 = vmatprep.subr.mxu1 %v1468_v12  ;;  %v1425_v18 = vld [vmem:[#allocation6 + $0x4a0] sm:$0xff]  ;;  %v1427_v12 = vld [vmem:[#allocation6 + $0x4b0] sm:$0xff] }
 0x201   :  { %1724 = vmatpush2.msra.mxu0 %v1465_v63  ;;  %1795 = vmatpush2.msra.mxu1 %v1467_v26  ;;  %v1418_v63 = vld [vmem:[#allocation6 + $0x468] sm:$0xff]  ;;  %v1420_v26 = vld [vmem:[#allocation6 + $0x478] sm:$0xff] }
 0x202   :  { %1725 = vmatprep.subr.mxu0 %v1458_v46  ;;  %1796 = vmatprep.subr.mxu1 %v1460_v49  ;;  %v1417_v46 = vld [vmem:[#allocation6 + $0x460] sm:$0xff]  ;;  %v1419_v49 = vld [vmem:[#allocation6 + $0x470] sm:$0xff] }
 0x203   :  { %1726 = vmatpush2.msra.mxu0 %v1457_v24  ;;  %1797 = vmatpush2.msra.mxu1 %v1459_v57  ;;  %v1410_v24 = vld [vmem:[#allocation6 + $0x428] sm:$0xff]  ;;  %v1412_v57 = vld [vmem:[#allocation6 + $0x438] sm:$0xff] }
 0x204   :  { %1727 = vmatprep.subr.mxu0 %v1450_v47  ;;  %1798 = vmatprep.subr.mxu1 %v1452_v59  ;;  %v1409_v47 = vld [vmem:[#allocation6 + $0x420] sm:$0xff]  ;;  %v1411_v59 = vld [vmem:[#allocation6 + $0x430] sm:$0xff] }
 0x205   :  { %1728 = vmatpush2.msra.mxu0 %v1449_v38  ;;  %1799 = vmatpush2.msra.mxu1 %v1451_v34  ;;  %v2006_v38 = vld [vmem:[#allocation6 + $0x3c8] sm:$0xff]  ;;  %v2008_v34 = vld [vmem:[#allocation6 + $0x3d8] sm:$0xff] }
 0x206   :  { %1729 = vmatprep.subr.mxu0 %v1442_v62  ;;  %1800 = vmatprep.subr.mxu1 %v1444_v22  ;;  %v2005_v62 = vld [vmem:[#allocation6 + $0x3c0] sm:$0xff]  ;;  %v2007_v22 = vld [vmem:[#allocation6 + $0x3d0] sm:$0xff] }
 0x207   :  { %1730 = vmatpush2.msra.mxu0 %v1441_v6  ;;  %1801 = vmatpush2.msra.mxu1 %v1443_v2  ;;  %v1998_v6 = vld [vmem:[#allocation6 + $0x388] sm:$0xff]  ;;  %v2000_v2 = vld [vmem:[#allocation6 + $0x398] sm:$0xff] }
 0x208   :  { %1731 = vmatprep.subr.mxu0 %v1434_v50  ;;  %1802 = vmatprep.subr.mxu1 %v1436_v4  ;;  %v1997_v50 = vld [vmem:[#allocation6 + $0x380] sm:$0xff]  ;;  %v1999_v4 = vld [vmem:[#allocation6 + $0x390] sm:$0xff] }
 0x209   :  { %1732 = vmatpush2.msra.mxu0 %v1433_v5  ;;  %1803 = vmatpush2.msra.mxu1 %v1435_v42  ;;  %v1990_v5 = vld [vmem:[#allocation6 + $0x348] sm:$0xff]  ;;  %v1992_v42 = vld [vmem:[#allocation6 + $0x358] sm:$0xff] }
 0x20a   :  { %1733 = vmatprep.subr.mxu0 %v1426_v3  ;;  %1804 = vmatprep.subr.mxu1 %v1428_v13  ;;  %v1989_v3 = vld [vmem:[#allocation6 + $0x340] sm:$0xff]  ;;  %v1991_v13 = vld [vmem:[#allocation6 + $0x350] sm:$0xff] }
 0x20b   :  { %1734 = vmatpush2.msra.mxu0 %v1425_v18  ;;  %1805 = vmatpush2.msra.mxu1 %v1427_v12  ;;  %v1984_v18 = vld [vmem:[#allocation6 + $0x318] sm:$0xff]  ;;  %v1981_v12 = vld [vmem:[#allocation6 + $0x300] sm:$0xff] }
 0x20c   :  { %1735 = vmatprep.subr.mxu0 %v1418_v63  ;;  %1806 = vmatprep.subr.mxu1 %v1420_v26  ;;  %v1983_v63 = vld [vmem:[#allocation6 + $0x310] sm:$0xff]  ;;  %v1974_v26 = vld [vmem:[#allocation6 + $0x2c8] sm:$0xff] }
 0x20d   :  { %1736 = vmatpush2.msra.mxu0 %v1417_v46  ;;  %1807 = vmatpush2.msra.mxu1 %v1419_v49  ;;  %v1976_v46 = vld [vmem:[#allocation6 + $0x2d8] sm:$0xff]  ;;  %v1973_v49 = vld [vmem:[#allocation6 + $0x2c0] sm:$0xff] }
 0x20e   :  { %1737 = vmatprep.subr.mxu0 %v1410_v24  ;;  %1808 = vmatprep.subr.mxu1 %v1412_v57  ;;  %v1975_v24 = vld [vmem:[#allocation6 + $0x2d0] sm:$0xff]  ;;  %v1966_v57 = vld [vmem:[#allocation6 + $0x288] sm:$0xff] }
 0x20f   :  { %1738 = vmatpush2.msra.mxu0 %v1409_v47  ;;  %1809 = vmatpush2.msra.mxu1 %v1411_v59  ;;  %v1968_v47 = vld [vmem:[#allocation6 + $0x298] sm:$0xff]  ;;  %v1965_v59 = vld [vmem:[#allocation6 + $0x280] sm:$0xff] }
 0x210   :  { %1740 = vmatmul.mubr.f32.vlgmr.msra.gmra.mxu0 %v6503_v19  ;;  %1811 = vmatmul.mubr.f32.vlgmr.msra.gmra.mxu1 %v6503_v19  ;;  %v1982_v19 = vld [vmem:[#allocation6 + $0x308] sm:$0xff] }
 0x211   :  { %2141 = vmatprep.subr.mxu0 %v2006_v38  ;;  %2212 = vmatprep.subr.mxu1 %v2008_v34  ;;  %v1967_v38 = vld [vmem:[#allocation6 + $0x290] sm:$0xff]  ;;  %v1958_v34 = vld [vmem:[#allocation6 + $0x248] sm:$0xff] }
 0x212   :  { %2142 = vmatpush1.msra.mxu0 %v2005_v62  ;;  %2213 = vmatpush1.msra.mxu1 %v2007_v22  ;;  %v1960_v62 = vld [vmem:[#allocation6 + $0x258] sm:$0xff]  ;;  %v1957_v22 = vld [vmem:[#allocation6 + $0x240] sm:$0xff] }
 0x213   :  { %2143 = vmatprep.subr.mxu0 %v1998_v6  ;;  %2214 = vmatprep.subr.mxu1 %v2000_v2  ;;  %v1959_v6 = vld [vmem:[#allocation6 + $0x250] sm:$0xff]  ;;  %v1950_v2 = vld [vmem:[#allocation6 + $0x208] sm:$0xff] }
 0x214   :  { %2144 = vmatpush1.msra.mxu0 %v1997_v50  ;;  %2215 = vmatpush1.msra.mxu1 %v1999_v4  ;;  %v1952_v50 = vld [vmem:[#allocation6 + $0x218] sm:$0xff]  ;;  %v1949_v4 = vld [vmem:[#allocation6 + $0x200] sm:$0xff] }
 0x215   :  { %2145 = vmatprep.subr.mxu0 %v1990_v5  ;;  %2216 = vmatprep.subr.mxu1 %v1992_v42  ;;  %v1951_v5 = vld [vmem:[#allocation6 + $0x210] sm:$0xff]  ;;  %v1942_v42 = vld [vmem:[#allocation6 + $0x1c8] sm:$0xff] }
 0x216   :  { %2146 = vmatpush1.msra.mxu0 %v1989_v3  ;;  %2217 = vmatpush1.msra.mxu1 %v1991_v13  ;;  %v1944_v3 = vld [vmem:[#allocation6 + $0x1d8] sm:$0xff]  ;;  %v1941_v13 = vld [vmem:[#allocation6 + $0x1c0] sm:$0xff] }
 0x217   :  { %2147 = vmatprep.subr.mxu0 %v1982_v19  ;;  %2218 = vmatprep.subr.mxu1 %v1984_v18  ;;  %v1943_v19 = vld [vmem:[#allocation6 + $0x1d0] sm:$0xff]  ;;  %v1934_v18 = vld [vmem:[#allocation6 + $0x188] sm:$0xff] }
 0x218   :  { %2148 = vmatpush1.msra.mxu0 %v1981_v12  ;;  %2219 = vmatpush1.msra.mxu1 %v1983_v63  ;;  %v1936_v12 = vld [vmem:[#allocation6 + $0x198] sm:$0xff]  ;;  %v1933_v63 = vld [vmem:[#allocation6 + $0x180] sm:$0xff] }
 0x219   :  { %2149 = vmatprep.subr.mxu0 %v1974_v26  ;;  %2220 = vmatprep.subr.mxu1 %v1976_v46  ;;  %v1935_v26 = vld [vmem:[#allocation6 + $0x190] sm:$0xff]  ;;  %v1926_v46 = vld [vmem:[#allocation6 + $0x148] sm:$0xff] }
 0x21a   :  { %2150 = vmatpush1.msra.mxu0 %v1973_v49  ;;  %2221 = vmatpush1.msra.mxu1 %v1975_v24  ;;  %v1928_v49 = vld [vmem:[#allocation6 + $0x158] sm:$0xff]  ;;  %v1925_v24 = vld [vmem:[#allocation6 + $0x140] sm:$0xff] }
 0x21b   :  { %2151 = vmatprep.subr.mxu0 %v1966_v57  ;;  %2222 = vmatprep.subr.mxu1 %v1968_v47  ;;  %v1927_v57 = vld [vmem:[#allocation6 + $0x150] sm:$0xff]  ;;  %v1918_v47 = vld [vmem:[#allocation6 + $0x108] sm:$0xff] }
 0x21c   :  { %2152 = vmatpush1.msra.mxu0 %v1965_v59  ;;  %2223 = vmatpush1.msra.mxu1 %v1967_v38  ;;  %v1920_v59 = vld [vmem:[#allocation6 + $0x118] sm:$0xff]  ;;  %v1917_v38 = vld [vmem:[#allocation6 + $0x100] sm:$0xff] }
 0x21d   :  { %2153 = vmatprep.subr.mxu0 %v1958_v34  ;;  %2224 = vmatprep.subr.mxu1 %v1960_v62  ;;  %v1919_v34 = vld [vmem:[#allocation6 + $0x110] sm:$0xff]  ;;  %v1910_v62 = vld [vmem:[#allocation6 + $0xc8] sm:$0xff] }
 0x21e   :  { %2154 = vmatpush1.msra.mxu0 %v1957_v22  ;;  %2225 = vmatpush1.msra.mxu1 %v1959_v6  ;;  %v1912_v22 = vld [vmem:[#allocation6 + $0xd8] sm:$0xff]  ;;  %v1909_v6 = vld [vmem:[#allocation6 + $0xc0] sm:$0xff] }
 0x21f   :  { %2155 = vmatprep.subr.mxu0 %v1950_v2  ;;  %2226 = vmatprep.subr.mxu1 %v1952_v50  ;;  %v1911_v2 = vld [vmem:[#allocation6 + $0xd0] sm:$0xff]  ;;  %v1902_v50 = vld [vmem:[#allocation6 + $0x88] sm:$0xff] }
 0x220   :  { %2156 = vmatpush1.msra.mxu0 %v1949_v4  ;;  %2227 = vmatpush1.msra.mxu1 %v1951_v5  ;;  %v1904_v4 = vld [vmem:[#allocation6 + $0x98] sm:$0xff]  ;;  %v1901_v5 = vld [vmem:[#allocation6 + $0x80] sm:$0xff] }
 0x221   :  { %2157 = vmatprep.subr.mxu0 %v1942_v42  ;;  %2228 = vmatprep.subr.mxu1 %v1944_v3  ;;  %v1903_v42 = vld [vmem:[#allocation6 + $0x90] sm:$0xff]  ;;  %v1894_v3 = vld [vmem:[#allocation6 + $0x48] sm:$0xff] }
 0x222   :  { %2158 = vmatpush1.msra.mxu0 %v1941_v13  ;;  %2229 = vmatpush1.msra.mxu1 %v1943_v19  ;;  %v1896_v13 = vld [vmem:[#allocation6 + $0x58] sm:$0xff]  ;;  %v1893_v19 = vld [vmem:[#allocation6 + $0x40] sm:$0xff] }
 0x223   :  { %2159 = vmatprep.subr.mxu0 %v1934_v18  ;;  %2230 = vmatprep.subr.mxu1 %v1936_v12  ;;  %v1895_v18 = vld [vmem:[#allocation6 + $0x50] sm:$0xff]  ;;  %v1886_v12 = vld [vmem:[#allocation6 + $0x8] sm:$0xff] }
 0x224   :  { %2160 = vmatpush1.msra.mxu0 %v1933_v63  ;;  %2231 = vmatpush1.msra.mxu1 %v1935_v26  ;;  %v1888_v63 = vld [vmem:[#allocation6 + $0x18] sm:$0xff]  ;;  %v1885_v26 = vld [vmem:[#allocation6] sm:$0xff] }
 0x225   :  { %2161 = vmatprep.subr.mxu0 %v1926_v46  ;;  %2232 = vmatprep.subr.mxu1 %v1928_v49  ;;  %v1887_v46 = vld [vmem:[#allocation6 + $0x10] sm:$0xff]  ;;  %v2134_v49 = vld [vmem:[#allocation6 + $0x7c8] sm:$0xff] }
 0x226   :  { %2162 = vmatpush1.msra.mxu0 %v1925_v24  ;;  %2233 = vmatpush1.msra.mxu1 %v1927_v57  ;;  %v2136_v24 = vld [vmem:[#allocation6 + $0x7d8] sm:$0xff]  ;;  %v2133_v57 = vld [vmem:[#allocation6 + $0x7c0] sm:$0xff] }
 0x227   :  { %2163 = vmatprep.subr.mxu0 %v1918_v47  ;;  %2234 = vmatprep.subr.mxu1 %v1920_v59  ;;  %v2135_v47 = vld [vmem:[#allocation6 + $0x7d0] sm:$0xff]  ;;  %v2126_v59 = vld [vmem:[#allocation6 + $0x788] sm:$0xff] }
 0x228   :  { %2164 = vmatpush1.msra.mxu0 %v1917_v38  ;;  %2235 = vmatpush1.msra.mxu1 %v1919_v34  ;;  %v2128_v38 = vld [vmem:[#allocation6 + $0x798] sm:$0xff]  ;;  %v2125_v34 = vld [vmem:[#allocation6 + $0x780] sm:$0xff] }
 0x229   :  { %2165 = vmatprep.subr.mxu0 %v1910_v62  ;;  %2236 = vmatprep.subr.mxu1 %v1912_v22  ;;  %v2127_v62 = vld [vmem:[#allocation6 + $0x790] sm:$0xff]  ;;  %v2118_v22 = vld [vmem:[#allocation6 + $0x748] sm:$0xff] }
 0x22a   :  { %2166 = vmatpush1.msra.mxu0 %v1909_v6  ;;  %2237 = vmatpush1.msra.mxu1 %v1911_v2  ;;  %v2120_v6 = vld [vmem:[#allocation6 + $0x758] sm:$0xff]  ;;  %v2117_v2 = vld [vmem:[#allocation6 + $0x740] sm:$0xff] }
 0x22b   :  { %2167 = vmatprep.subr.mxu0 %v1902_v50  ;;  %2238 = vmatprep.subr.mxu1 %v1904_v4  ;;  %v2119_v50 = vld [vmem:[#allocation6 + $0x750] sm:$0xff]  ;;  %v2110_v4 = vld [vmem:[#allocation6 + $0x708] sm:$0xff] }
 0x22c   :  { %2168 = vmatpush1.msra.mxu0 %v1901_v5  ;;  %2239 = vmatpush1.msra.mxu1 %v1903_v42  ;;  %v2112_v5 = vld [vmem:[#allocation6 + $0x718] sm:$0xff]  ;;  %v2109_v42 = vld [vmem:[#allocation6 + $0x700] sm:$0xff] }
 0x22d   :  { %2169 = vmatprep.subr.mxu0 %v1894_v3  ;;  %2240 = vmatprep.subr.mxu1 %v1896_v13  ;;  %v2111_v3 = vld [vmem:[#allocation6 + $0x710] sm:$0xff]  ;;  %v2102_v13 = vld [vmem:[#allocation6 + $0x6c8] sm:$0xff] }
 0x22e   :  { %2170 = vmatpush1.msra.mxu0 %v1893_v19  ;;  %2241 = vmatpush1.msra.mxu1 %v1895_v18  ;;  %v2104_v19 = vld [vmem:[#allocation6 + $0x6d8] sm:$0xff]  ;;  %v2101_v18 = vld [vmem:[#allocation6 + $0x6c0] sm:$0xff] }
 0x22f   :  { %2171 = vmatprep.subr.mxu0 %v1886_v12  ;;  %2242 = vmatprep.subr.mxu1 %v1888_v63  ;;  %v2103_v12 = vld [vmem:[#allocation6 + $0x6d0] sm:$0xff]  ;;  %v2094_v63 = vld [vmem:[#allocation6 + $0x688] sm:$0xff] }
 0x230   :  { %2172 = vmatpush1.msra.mxu0 %v1885_v26  ;;  %2243 = vmatpush1.msra.mxu1 %v1887_v46  ;;  %v2096_v26 = vld [vmem:[#allocation6 + $0x698] sm:$0xff]  ;;  %v2093_v46 = vld [vmem:[#allocation6 + $0x680] sm:$0xff] }
 0x231   :  { %2173 = vmatprep.subr.mxu0 %v2134_v49  ;;  %2244 = vmatprep.subr.mxu1 %v2136_v24  ;;  %v2095_v49 = vld [vmem:[#allocation6 + $0x690] sm:$0xff]  ;;  %v2086_v24 = vld [vmem:[#allocation6 + $0x648] sm:$0xff] }
 0x232   :  { %2174 = vmatpush2.msra.mxu0 %v2133_v57  ;;  %2245 = vmatpush2.msra.mxu1 %v2135_v47  ;;  %v2088_v57 = vld [vmem:[#allocation6 + $0x658] sm:$0xff]  ;;  %v2085_v47 = vld [vmem:[#allocation6 + $0x640] sm:$0xff] }
 0x233   :  { %2175 = vmatprep.subr.mxu0 %v2126_v59  ;;  %2246 = vmatprep.subr.mxu1 %v2128_v38  ;;  %v2087_v59 = vld [vmem:[#allocation6 + $0x650] sm:$0xff]  ;;  %v2078_v38 = vld [vmem:[#allocation6 + $0x608] sm:$0xff] }
 0x234   :  { %2176 = vmatpush2.msra.mxu0 %v2125_v34  ;;  %2247 = vmatpush2.msra.mxu1 %v2127_v62  ;;  %v2080_v34 = vld [vmem:[#allocation6 + $0x618] sm:$0xff]  ;;  %v2077_v62 = vld [vmem:[#allocation6 + $0x600] sm:$0xff] }
 0x235   :  { %2177 = vmatprep.subr.mxu0 %v2118_v22  ;;  %2248 = vmatprep.subr.mxu1 %v2120_v6  ;;  %v2079_v22 = vld [vmem:[#allocation6 + $0x610] sm:$0xff]  ;;  %v2070_v6 = vld [vmem:[#allocation6 + $0x5c8] sm:$0xff] }
 0x236   :  { %2178 = vmatpush2.msra.mxu0 %v2117_v2  ;;  %2249 = vmatpush2.msra.mxu1 %v2119_v50  ;;  %v2072_v2 = vld [vmem:[#allocation6 + $0x5d8] sm:$0xff]  ;;  %v2069_v50 = vld [vmem:[#allocation6 + $0x5c0] sm:$0xff] }
 0x237   :  { %2179 = vmatprep.subr.mxu0 %v2110_v4  ;;  %2250 = vmatprep.subr.mxu1 %v2112_v5  ;;  %v2071_v4 = vld [vmem:[#allocation6 + $0x5d0] sm:$0xff]  ;;  %v2062_v5 = vld [vmem:[#allocation6 + $0x588] sm:$0xff] }
 0x238   :  { %2180 = vmatpush2.msra.mxu0 %v2109_v42  ;;  %2251 = vmatpush2.msra.mxu1 %v2111_v3  ;;  %v2064_v42 = vld [vmem:[#allocation6 + $0x598] sm:$0xff]  ;;  %v2061_v3 = vld [vmem:[#allocation6 + $0x580] sm:$0xff] }
 0x239   :  { %2181 = vmatprep.subr.mxu0 %v2102_v13  ;;  %2252 = vmatprep.subr.mxu1 %v2104_v19  ;;  %v2063_v13 = vld [vmem:[#allocation6 + $0x590] sm:$0xff]  ;;  %v2054_v19 = vld [vmem:[#allocation6 + $0x548] sm:$0xff] }
 0x23a   :  { %2182 = vmatpush2.msra.mxu0 %v2101_v18  ;;  %2253 = vmatpush2.msra.mxu1 %v2103_v12  ;;  %v2056_v18 = vld [vmem:[#allocation6 + $0x558] sm:$0xff]  ;;  %v2053_v12 = vld [vmem:[#allocation6 + $0x540] sm:$0xff] }
 0x23b   :  { %2183 = vmatprep.subr.mxu0 %v2094_v63  ;;  %2254 = vmatprep.subr.mxu1 %v2096_v26  ;;  %v2055_v63 = vld [vmem:[#allocation6 + $0x550] sm:$0xff]  ;;  %v2046_v26 = vld [vmem:[#allocation6 + $0x508] sm:$0xff] }
 0x23c   :  { %2184 = vmatpush2.msra.mxu0 %v2093_v46  ;;  %2255 = vmatpush2.msra.mxu1 %v2095_v49  ;;  %v2048_v46 = vld [vmem:[#allocation6 + $0x518] sm:$0xff]  ;;  %v2045_v49 = vld [vmem:[#allocation6 + $0x500] sm:$0xff] }
 0x23d   :  { %2185 = vmatprep.subr.mxu0 %v2086_v24  ;;  %2256 = vmatprep.subr.mxu1 %v2088_v57  ;;  %v2047_v24 = vld [vmem:[#allocation6 + $0x510] sm:$0xff]  ;;  %v2038_v57 = vld [vmem:[#allocation6 + $0x4c8] sm:$0xff] }
 0x23e   :  { %2186 = vmatpush2.msra.mxu0 %v2085_v47  ;;  %2257 = vmatpush2.msra.mxu1 %v2087_v59  ;;  %v2040_v47 = vld [vmem:[#allocation6 + $0x4d8] sm:$0xff]  ;;  %v2037_v59 = vld [vmem:[#allocation6 + $0x4c0] sm:$0xff] }
 0x23f   :  { %2187 = vmatprep.subr.mxu0 %v2078_v38  ;;  %2258 = vmatprep.subr.mxu1 %v2080_v34  ;;  %v2039_v38 = vld [vmem:[#allocation6 + $0x4d0] sm:$0xff]  ;;  %v2030_v34 = vld [vmem:[#allocation6 + $0x488] sm:$0xff] }
 0x240   :  { %2188 = vmatpush2.msra.mxu0 %v2077_v62  ;;  %2259 = vmatpush2.msra.mxu1 %v2079_v22  ;;  %v2032_v62 = vld [vmem:[#allocation6 + $0x498] sm:$0xff]  ;;  %v2029_v22 = vld [vmem:[#allocation6 + $0x480] sm:$0xff] }
 0x241   :  { %2189 = vmatprep.subr.mxu0 %v2070_v6  ;;  %2260 = vmatprep.subr.mxu1 %v2072_v2  ;;  %v2031_v6 = vld [vmem:[#allocation6 + $0x490] sm:$0xff]  ;;  %v2022_v2 = vld [vmem:[#allocation6 + $0x448] sm:$0xff] }
 0x242   :  { %2190 = vmatpush2.msra.mxu0 %v2069_v50  ;;  %2261 = vmatpush2.msra.mxu1 %v2071_v4  ;;  %v2024_v50 = vld [vmem:[#allocation6 + $0x458] sm:$0xff]  ;;  %v2021_v4 = vld [vmem:[#allocation6 + $0x440] sm:$0xff] }
 0x243   :  { %2191 = vmatprep.subr.mxu0 %v2062_v5  ;;  %2262 = vmatprep.subr.mxu1 %v2064_v42  ;;  %v2023_v5 = vld [vmem:[#allocation6 + $0x450] sm:$0xff]  ;;  %v2014_v42 = vld [vmem:[#allocation6 + $0x408] sm:$0xff] }
 0x244   :  { %2192 = vmatpush2.msra.mxu0 %v2061_v3  ;;  %2263 = vmatpush2.msra.mxu1 %v2063_v13  ;;  %v2016_v3 = vld [vmem:[#allocation6 + $0x418] sm:$0xff]  ;;  %v2013_v13 = vld [vmem:[#allocation6 + $0x400] sm:$0xff] }
 0x245   :  { %2193 = vmatprep.subr.mxu0 %v2054_v19  ;;  %2264 = vmatprep.subr.mxu1 %v2056_v18  ;;  %v2015_v19 = vld [vmem:[#allocation6 + $0x410] sm:$0xff]  ;;  %v2010_v18 = vld [vmem:[#allocation6 + $0x3e8] sm:$0xff] }
 0x246   :  { %2194 = vmatpush2.msra.mxu0 %v2053_v12  ;;  %2265 = vmatpush2.msra.mxu1 %v2055_v63  ;;  %v2012_v12 = vld [vmem:[#allocation6 + $0x3f8] sm:$0xff] }
 0x247   :  { %2195 = vmatprep.subr.mxu0 %v2046_v26  ;;  %2266 = vmatprep.subr.mxu1 %v2048_v46 }
 0x248   :  { %2196 = vmatpush2.msra.mxu0 %v2045_v49  ;;  %2267 = vmatpush2.msra.mxu1 %v2047_v24 }
 0x249   :  { %2197 = vmatprep.subr.mxu0 %v2038_v57  ;;  %2268 = vmatprep.subr.mxu1 %v2040_v47 }
 0x24a   :  { %2198 = vmatpush2.msra.mxu0 %v2037_v59  ;;  %2269 = vmatpush2.msra.mxu1 %v2039_v38 }
 0x24b   :  { %2199 = vmatprep.subr.mxu0 %v2030_v34  ;;  %2270 = vmatprep.subr.mxu1 %v2032_v62 }
 0x24c   :  { %2200 = vmatpush2.msra.mxu0 %v2029_v22  ;;  %2271 = vmatpush2.msra.mxu1 %v2031_v6 }
 0x24d   :  { %2201 = vmatprep.subr.mxu0 %v2022_v2  ;;  %2272 = vmatprep.subr.mxu1 %v2024_v50 }
 0x24e   :  { %2202 = vmatpush2.msra.mxu0 %v2021_v4  ;;  %2273 = vmatpush2.msra.mxu1 %v2023_v5 }
 0x24f   :  { %2203 = vmatprep.subr.mxu0 %v2014_v42  ;;  %2274 = vmatprep.subr.mxu1 %v2016_v3 }
 0x250   :  { %2204 = vmatpush2.msra.mxu0 %v2013_v13  ;;  %2275 = vmatpush2.msra.mxu1 %v2015_v19 }
 0x251   :  { %2283 = vmatprep.subr.mxu0 %v2010_v18  ;;  %2354 = vmatprep.subr.mxu1 %v2012_v12  ;;  %v478_v12 = vadd.f32 %v6481_v23, %v6283_v21  ;;  %v591_v23 = vadd.f32 %v6483_v58, %v6296_v37 }
 0x28f   :  { %v1599_v63 = vpop.f32.mrf.mxu0  ;;  %v1670_v57 = vpop.f32.mrf.mxu1 }
 0x290   :  { %v1821_v26 = vadd.f32 %v1599_v63, %v6347_v7  ;;  %v1823_v34 = vadd.f32 %v1670_v57, %v6353_v8 }
 0x291   :  { %v1601_v46 = vpop.f32.mrf.mxu0  ;;  %v1672_v59 = vpop.f32.mrf.mxu1 }
 0x292   :  { %v5642_v49 = vmul.f32 -1.442695, %v1821_v26  ;;  %v1822_v24 = vadd.f32 %v1601_v46, %v6356_v10  ;;  %v1824_v38 = vadd.f32 %v1672_v59, %v6359_v11  ;;  %v480_v26 = vadd.f32 %v6485_v39, %v6291_v32 }
 0x294   :  { %5727 = vpow2.f32 %v5642_v49  ;;  %v5643_v47 = vmul.f32 -1.442695, %v1822_v24  ;;  %v5644_v62 = vmul.f32 -1.442695, %v1824_v38  ;;  %v593_v38 = vadd.f32 %v6487_v51, %v6299_v25 }
 0x296   :  { %5729 = vpow2.f32 %v5643_v47 }
 0x297   :  { %5731 = vtanh.f32 %v1823_v34 }
 0x298   :  { %5733 = vpow2.f32 %v5644_v62 }
 0x2a1   :  { %v5728_v22 = vpop.eup %5727 }
 0x2a2   :  { %v1836_v6 = vadd.f32 1.0, %v5728_v22 }
 0x2a3   :  { %v5730_v2 = vpop.eup %5729 }
 0x2a4   :  { %5735 = vrcp.f32 %v1836_v6  ;;  %v1842_v7 = vadd.f32 1.0, %v5730_v2  ;;  %v5732_v50 = vpop.eup %5731 }
 0x2a5   :  { %v5734_v10 = vpop.eup %5733 }
 0x2a6   :  { %5737 = vrcp.f32 %v1842_v7  ;;  %v1849_v3 = vadd.f32 1.0, %v5734_v10 }
 0x2a8   :  { %5739 = vrcp.f32 %v1849_v3 }
 0x2b1   :  { %v5736_v4 = vpop.eup %5735 }
 0x2b2   :  { %v1853_v5 = vmul.f32 %v5736_v4, %v5732_v50 }
 0x2b3   :  { %v5738_v42 = vpop.eup %5737 }
 0x2b4   :  { %v1852_v13 = vmul.f32 %v5738_v42, %v6500_v43 }
 0x2b5   :  { %v5740_v8 = vpop.eup %5739 }
 0x2b6   :  { %v6525_v11 = vadd.f32 %v1853_v5, %v1852_v13 }
 0x2b8   :  { %5741 = vtanh.f32 %v6525_v11 }
 0x2c5   :  { %v5742_v19 = vpop.eup %5741 }
 0x2c6   :  { %v6528_v18 = vmul.f32 %v5742_v19, %v5740_v8 }
 0x2c8   :  { %1882 = vst [vmem:[#allocation8 + $0x8] sm:$0xff] %v6528_v18 }
 0x2d0   :  { %v1741_v63 = vpop.f32.mrf.mxu0  ;;  %v1812_v57 = vpop.f32.mrf.mxu1 }
 0x2d1   :  { %v1829_v46 = vadd.f32 %v1741_v63, %v478_v12  ;;  %v1831_v62 = vadd.f32 %v1812_v57, %v591_v23  ;;  %v2009_v12 = vld [vmem:[#allocation6 + $0x3e0] sm:$0xff]  ;;  %v2011_v63 = vld [vmem:[#allocation6 + $0x3f0] sm:$0xff] }
 0x2d2   :  { %v1743_v43 = vpop.f32.mrf.mxu0  ;;  %v1814_v59 = vpop.f32.mrf.mxu1  ;;  %v1993_v57 = vld [vmem:[#allocation6 + $0x360] sm:$0xff]  ;;  %v1987_v23 = vld [vmem:[#allocation6 + $0x330] sm:$0xff] }
 0x2d3   :  { %v5645_v49 = vmul.f32 -1.442695, %v1829_v46  ;;  %v1830_v24 = vadd.f32 %v1743_v43, %v480_v26  ;;  %v1832_v34 = vadd.f32 %v1814_v59, %v593_v38  ;;  %v2002_v26 = vld [vmem:[#allocation6 + $0x3a8] sm:$0xff]  ;;  %v2004_v46 = vld [vmem:[#allocation6 + $0x3b8] sm:$0xff]  ;;  %v2003_v43 = vld [vmem:[#allocation6 + $0x3b0] sm:$0xff] }
 0x2d4   :  { %v1986_v59 = vld [vmem:[#allocation6 + $0x328] sm:$0xff]  ;;  %v1988_v38 = vld [vmem:[#allocation6 + $0x338] sm:$0xff] }
 0x2d5   :  { %5743 = vpow2.f32 %v5645_v49  ;;  %v5646_v47 = vmul.f32 -1.442695, %v1830_v24  ;;  %v5647_v22 = vmul.f32 -1.442695, %v1832_v34  ;;  %v1994_v49 = vld [vmem:[#allocation6 + $0x368] sm:$0xff]  ;;  %v1996_v24 = vld [vmem:[#allocation6 + $0x378] sm:$0xff] }
 0x2d6   :  { %v1985_v34 = vld [vmem:[#allocation6 + $0x320] sm:$0xff] }
 0x2d7   :  { %5745 = vpow2.f32 %v5646_v47  ;;  %v1995_v47 = vld [vmem:[#allocation6 + $0x370] sm:$0xff] }
 0x2d8   :  { %5747 = vtanh.f32 %v1831_v62  ;;  %v1978_v62 = vld [vmem:[#allocation6 + $0x2e8] sm:$0xff] }
 0x2d9   :  { %5749 = vpow2.f32 %v5647_v22  ;;  %v1980_v22 = vld [vmem:[#allocation6 + $0x2f8] sm:$0xff] }
 0x2e2   :  { %v5744_v6 = vpop.eup %5743 }
 0x2e3   :  { %v1860_v39 = vadd.f32 1.0, %v5744_v6  ;;  %v1977_v6 = vld [vmem:[#allocation6 + $0x2e0] sm:$0xff] }
 0x2e4   :  { %v5746_v2 = vpop.eup %5745 }
 0x2e5   :  { %5751 = vrcp.f32 %v1860_v39  ;;  %v1866_v7 = vadd.f32 1.0, %v5746_v2  ;;  %v5748_v50 = vpop.eup %5747  ;;  %v1979_v39 = vld [vmem:[#allocation6 + $0x2f0] sm:$0xff]  ;;  %v1970_v2 = vld [vmem:[#allocation6 + $0x2a8] sm:$0xff] }
 0x2e6   :  { %v5750_v10 = vpop.eup %5749 }
 0x2e7   :  { %5753 = vrcp.f32 %v1866_v7  ;;  %v1873_v51 = vadd.f32 1.0, %v5750_v10  ;;  %v1972_v7 = vld [vmem:[#allocation6 + $0x2b8] sm:$0xff]  ;;  %v1971_v10 = vld [vmem:[#allocation6 + $0x2b0] sm:$0xff] }
 0x2e9   :  { %5755 = vrcp.f32 %v1873_v51  ;;  %v1963_v51 = vld [vmem:[#allocation6 + $0x270] sm:$0xff] }
 0x2f2   :  { %v5752_v4 = vpop.eup %5751 }
 0x2f3   :  { %v1877_v5 = vmul.f32 %v5752_v4, %v5748_v50  ;;  %v1969_v50 = vld [vmem:[#allocation6 + $0x2a0] sm:$0xff]  ;;  %v1962_v4 = vld [vmem:[#allocation6 + $0x268] sm:$0xff] }
 0x2f4   :  { %v5754_v42 = vpop.eup %5753 }
 0x2f5   :  { %v1876_v3 = vmul.f32 %v5754_v42, %v6513_v0  ;;  %v2001_v0 = vld [vmem:[#allocation6 + $0x3a0] sm:$0xff] }
 0x2f6   :  { %v5756_v58 = vpop.eup %5755  ;;  %v1961_v42 = vld [vmem:[#allocation6 + $0x260] sm:$0xff] }
 0x2f7   :  { %v6540_v13 = vadd.f32 %v1877_v5, %v1876_v3  ;;  %v1964_v5 = vld [vmem:[#allocation6 + $0x278] sm:$0xff]  ;;  %v1954_v3 = vld [vmem:[#allocation6 + $0x228] sm:$0xff] }
 0x2f9   :  { %5757 = vtanh.f32 %v6540_v13 }
 0x306   :  { %v5758_v8 = vpop.eup %5757 }
 0x307   :  { %v1880_v19 = vmul.f32 %v5758_v8, %v5756_v58  ;;  %v1956_v58 = vld [vmem:[#allocation6 + $0x238] sm:$0xff]  ;;  %v1953_v8 = vld [vmem:[#allocation6 + $0x220] sm:$0xff] }
 0x309   :  { %1884 = vst [vmem:[#allocation9 + $0x30] sm:$0xff] %v1880_v19  ;;  %2205 = vmatprep.mubr.f32.mxu0 %v1880_v19  ;;  %2276 = vmatprep.mubr.f32.mxu1 %v1880_v19 }
 0x30a   :  { %2206 = vmatmul.mubr.f32.vlgmr.msra.gmra.mxu0 %v6528_v18  ;;  %2277 = vmatmul.mubr.f32.vlgmr.msra.gmra.mxu1 %v6528_v18 }
 0x30b   :  { %2284 = vmatpush1.msra.mxu0 %v2009_v12  ;;  %2355 = vmatpush1.msra.mxu1 %v2011_v63  ;;  %v1946_v12 = vld [vmem:[#allocation6 + $0x1e8] sm:$0xff]  ;;  %v1948_v63 = vld [vmem:[#allocation6 + $0x1f8] sm:$0xff] }
 0x30c   :  { %2285 = vmatprep.subr.mxu0 %v2002_v26  ;;  %2347 = vmatprep.mubr.f32.mxu0 %v1880_v19  ;;  %v1945_v26 = vld [vmem:[#allocation6 + $0x1e0] sm:$0xff] }
 0x30d   :  { %2356 = vmatprep.subr.mxu1 %v2004_v46  ;;  %2418 = vmatprep.mubr.f32.mxu1 %v1880_v19  ;;  %v1955_v19 = vld [vmem:[#allocation6 + $0x230] sm:$0xff] }
 0x30e   :  { %2286 = vmatpush1.msra.mxu0 %v2001_v0  ;;  %2357 = vmatpush1.msra.mxu1 %v2003_v43  ;;  %v1947_v46 = vld [vmem:[#allocation6 + $0x1f0] sm:$0xff]  ;;  %v1938_v0 = vld [vmem:[#allocation6 + $0x1a8] sm:$0xff]  ;;  %v1940_v43 = vld [vmem:[#allocation6 + $0x1b8] sm:$0xff] }
 0x30f   :  { %2287 = vmatprep.subr.mxu0 %v1994_v49  ;;  %2358 = vmatprep.subr.mxu1 %v1996_v24  ;;  %v1937_v49 = vld [vmem:[#allocation6 + $0x1a0] sm:$0xff]  ;;  %v1939_v24 = vld [vmem:[#allocation6 + $0x1b0] sm:$0xff] }
 0x310   :  { %2288 = vmatpush1.msra.mxu0 %v1993_v57  ;;  %2359 = vmatpush1.msra.mxu1 %v1995_v47  ;;  %v1930_v57 = vld [vmem:[#allocation6 + $0x168] sm:$0xff]  ;;  %v1932_v47 = vld [vmem:[#allocation6 + $0x178] sm:$0xff] }
 0x311   :  { %2289 = vmatprep.subr.mxu0 %v1986_v59  ;;  %2360 = vmatprep.subr.mxu1 %v1988_v38  ;;  %v1929_v59 = vld [vmem:[#allocation6 + $0x160] sm:$0xff]  ;;  %v1931_v38 = vld [vmem:[#allocation6 + $0x170] sm:$0xff] }
 0x312   :  { %2290 = vmatpush1.msra.mxu0 %v1985_v34  ;;  %2361 = vmatpush1.msra.mxu1 %v1987_v23  ;;  %v1922_v34 = vld [vmem:[#allocation6 + $0x128] sm:$0xff]  ;;  %v1924_v23 = vld [vmem:[#allocation6 + $0x138] sm:$0xff] }
 0x313   :  { %2291 = vmatprep.subr.mxu0 %v1978_v62  ;;  %2362 = vmatprep.subr.mxu1 %v1980_v22  ;;  %v1921_v62 = vld [vmem:[#allocation6 + $0x120] sm:$0xff]  ;;  %v1923_v22 = vld [vmem:[#allocation6 + $0x130] sm:$0xff] }
 0x314   :  { %2292 = vmatpush1.msra.mxu0 %v1977_v6  ;;  %2363 = vmatpush1.msra.mxu1 %v1979_v39  ;;  %v1914_v6 = vld [vmem:[#allocation6 + $0xe8] sm:$0xff]  ;;  %v1916_v39 = vld [vmem:[#allocation6 + $0xf8] sm:$0xff] }
 0x315   :  { %2293 = vmatprep.subr.mxu0 %v1970_v2  ;;  %2364 = vmatprep.subr.mxu1 %v1972_v7  ;;  %v1913_v2 = vld [vmem:[#allocation6 + $0xe0] sm:$0xff]  ;;  %v1915_v7 = vld [vmem:[#allocation6 + $0xf0] sm:$0xff] }
 0x316   :  { %2294 = vmatpush1.msra.mxu0 %v1969_v50  ;;  %2365 = vmatpush1.msra.mxu1 %v1971_v10  ;;  %v1906_v50 = vld [vmem:[#allocation6 + $0xa8] sm:$0xff]  ;;  %v1908_v10 = vld [vmem:[#allocation6 + $0xb8] sm:$0xff] }
 0x317   :  { %2295 = vmatprep.subr.mxu0 %v1962_v4  ;;  %2366 = vmatprep.subr.mxu1 %v1964_v5  ;;  %v1905_v4 = vld [vmem:[#allocation6 + $0xa0] sm:$0xff]  ;;  %v1907_v5 = vld [vmem:[#allocation6 + $0xb0] sm:$0xff] }
 0x318   :  { %2296 = vmatpush1.msra.mxu0 %v1961_v42  ;;  %2367 = vmatpush1.msra.mxu1 %v1963_v51  ;;  %v1898_v42 = vld [vmem:[#allocation6 + $0x68] sm:$0xff]  ;;  %v1900_v51 = vld [vmem:[#allocation6 + $0x78] sm:$0xff] }
 0x319   :  { %2297 = vmatprep.subr.mxu0 %v1954_v3  ;;  %2368 = vmatprep.subr.mxu1 %v1956_v58  ;;  %v1897_v3 = vld [vmem:[#allocation6 + $0x60] sm:$0xff]  ;;  %v1899_v58 = vld [vmem:[#allocation6 + $0x70] sm:$0xff] }
 0x31a   :  { %2298 = vmatpush1.msra.mxu0 %v1953_v8  ;;  %2369 = vmatpush1.msra.mxu1 %v1955_v19  ;;  %v1890_v8 = vld [vmem:[#allocation6 + $0x28] sm:$0xff]  ;;  %v1892_v19 = vld [vmem:[#allocation6 + $0x38] sm:$0xff] }
 0x31b   :  { %2299 = vmatprep.subr.mxu0 %v1946_v12  ;;  %2370 = vmatprep.subr.mxu1 %v1948_v63  ;;  %v1889_v12 = vld [vmem:[#allocation6 + $0x20] sm:$0xff]  ;;  %v1891_v63 = vld [vmem:[#allocation6 + $0x30] sm:$0xff] }
 0x31c   :  { %2300 = vmatpush1.msra.mxu0 %v1945_v26  ;;  %2371 = vmatpush1.msra.mxu1 %v1947_v46  ;;  %v2138_v26 = vld [vmem:[#allocation6 + $0x7e8] sm:$0xff]  ;;  %v2140_v46 = vld [vmem:[#allocation6 + $0x7f8] sm:$0xff] }
 0x31d   :  { %2301 = vmatprep.subr.mxu0 %v1938_v0  ;;  %2372 = vmatprep.subr.mxu1 %v1940_v43  ;;  %v2137_v0 = vld [vmem:[#allocation6 + $0x7e0] sm:$0xff]  ;;  %v2139_v43 = vld [vmem:[#allocation6 + $0x7f0] sm:$0xff] }
 0x31e   :  { %2302 = vmatpush1.msra.mxu0 %v1937_v49  ;;  %2373 = vmatpush1.msra.mxu1 %v1939_v24  ;;  %v2130_v49 = vld [vmem:[#allocation6 + $0x7a8] sm:$0xff]  ;;  %v2132_v24 = vld [vmem:[#allocation6 + $0x7b8] sm:$0xff] }
 0x31f   :  { %2303 = vmatprep.subr.mxu0 %v1930_v57  ;;  %2374 = vmatprep.subr.mxu1 %v1932_v47  ;;  %v2129_v57 = vld [vmem:[#allocation6 + $0x7a0] sm:$0xff]  ;;  %v2131_v47 = vld [vmem:[#allocation6 + $0x7b0] sm:$0xff] }
 0x320   :  { %2304 = vmatpush1.msra.mxu0 %v1929_v59  ;;  %2375 = vmatpush1.msra.mxu1 %v1931_v38  ;;  %v2122_v59 = vld [vmem:[#allocation6 + $0x768] sm:$0xff]  ;;  %v2124_v38 = vld [vmem:[#allocation6 + $0x778] sm:$0xff] }
 0x321   :  { %2305 = vmatprep.subr.mxu0 %v1922_v34  ;;  %2376 = vmatprep.subr.mxu1 %v1924_v23  ;;  %v2121_v34 = vld [vmem:[#allocation6 + $0x760] sm:$0xff]  ;;  %v2123_v23 = vld [vmem:[#allocation6 + $0x770] sm:$0xff] }
 0x322   :  { %2306 = vmatpush1.msra.mxu0 %v1921_v62  ;;  %2377 = vmatpush1.msra.mxu1 %v1923_v22  ;;  %v2114_v62 = vld [vmem:[#allocation6 + $0x728] sm:$0xff]  ;;  %v2116_v22 = vld [vmem:[#allocation6 + $0x738] sm:$0xff] }
 0x323   :  { %2307 = vmatprep.subr.mxu0 %v1914_v6  ;;  %2378 = vmatprep.subr.mxu1 %v1916_v39  ;;  %v2113_v6 = vld [vmem:[#allocation6 + $0x720] sm:$0xff]  ;;  %v2115_v39 = vld [vmem:[#allocation6 + $0x730] sm:$0xff] }
 0x324   :  { %2308 = vmatpush1.msra.mxu0 %v1913_v2  ;;  %2379 = vmatpush1.msra.mxu1 %v1915_v7  ;;  %v2106_v2 = vld [vmem:[#allocation6 + $0x6e8] sm:$0xff]  ;;  %v2108_v7 = vld [vmem:[#allocation6 + $0x6f8] sm:$0xff] }
 0x325   :  { %2309 = vmatprep.subr.mxu0 %v1906_v50  ;;  %2380 = vmatprep.subr.mxu1 %v1908_v10  ;;  %v2105_v50 = vld [vmem:[#allocation6 + $0x6e0] sm:$0xff]  ;;  %v2107_v10 = vld [vmem:[#allocation6 + $0x6f0] sm:$0xff] }
 0x326   :  { %2310 = vmatpush1.msra.mxu0 %v1905_v4  ;;  %2381 = vmatpush1.msra.mxu1 %v1907_v5  ;;  %v2098_v4 = vld [vmem:[#allocation6 + $0x6a8] sm:$0xff]  ;;  %v2100_v5 = vld [vmem:[#allocation6 + $0x6b8] sm:$0xff] }
 0x327   :  { %2311 = vmatprep.subr.mxu0 %v1898_v42  ;;  %2382 = vmatprep.subr.mxu1 %v1900_v51  ;;  %v2097_v42 = vld [vmem:[#allocation6 + $0x6a0] sm:$0xff]  ;;  %v2099_v51 = vld [vmem:[#allocation6 + $0x6b0] sm:$0xff] }
 0x328   :  { %2312 = vmatpush1.msra.mxu0 %v1897_v3  ;;  %2383 = vmatpush1.msra.mxu1 %v1899_v58  ;;  %v2090_v3 = vld [vmem:[#allocation6 + $0x668] sm:$0xff]  ;;  %v2092_v58 = vld [vmem:[#allocation6 + $0x678] sm:$0xff] }
 0x329   :  { %2313 = vmatprep.subr.mxu0 %v1890_v8  ;;  %2384 = vmatprep.subr.mxu1 %v1892_v19  ;;  %v2089_v8 = vld [vmem:[#allocation6 + $0x660] sm:$0xff]  ;;  %v2091_v19 = vld [vmem:[#allocation6 + $0x670] sm:$0xff] }
 0x32a   :  { %2314 = vmatpush1.msra.mxu0 %v1889_v12  ;;  %2385 = vmatpush1.msra.mxu1 %v1891_v63  ;;  %v2082_v12 = vld [vmem:[#allocation6 + $0x628] sm:$0xff]  ;;  %v2084_v63 = vld [vmem:[#allocation6 + $0x638] sm:$0xff] }
 0x32b   :  { %2315 = vmatprep.subr.mxu0 %v2138_v26  ;;  %2386 = vmatprep.subr.mxu1 %v2140_v46  ;;  %v2081_v26 = vld [vmem:[#allocation6 + $0x620] sm:$0xff]  ;;  %v2083_v46 = vld [vmem:[#allocation6 + $0x630] sm:$0xff] }
 0x32c   :  { %2316 = vmatpush2.msra.mxu0 %v2137_v0  ;;  %2387 = vmatpush2.msra.mxu1 %v2139_v43  ;;  %v2074_v0 = vld [vmem:[#allocation6 + $0x5e8] sm:$0xff]  ;;  %v2076_v43 = vld [vmem:[#allocation6 + $0x5f8] sm:$0xff] }
 0x32d   :  { %2317 = vmatprep.subr.mxu0 %v2130_v49  ;;  %2388 = vmatprep.subr.mxu1 %v2132_v24  ;;  %v2073_v49 = vld [vmem:[#allocation6 + $0x5e0] sm:$0xff]  ;;  %v2075_v24 = vld [vmem:[#allocation6 + $0x5f0] sm:$0xff] }
 0x32e   :  { %2318 = vmatpush2.msra.mxu0 %v2129_v57  ;;  %2389 = vmatpush2.msra.mxu1 %v2131_v47  ;;  %v2066_v57 = vld [vmem:[#allocation6 + $0x5a8] sm:$0xff]  ;;  %v2068_v47 = vld [vmem:[#allocation6 + $0x5b8] sm:$0xff] }
 0x32f   :  { %2319 = vmatprep.subr.mxu0 %v2122_v59  ;;  %2390 = vmatprep.subr.mxu1 %v2124_v38  ;;  %v2065_v59 = vld [vmem:[#allocation6 + $0x5a0] sm:$0xff]  ;;  %v2067_v38 = vld [vmem:[#allocation6 + $0x5b0] sm:$0xff] }
 0x330   :  { %2320 = vmatpush2.msra.mxu0 %v2121_v34  ;;  %2391 = vmatpush2.msra.mxu1 %v2123_v23  ;;  %v2058_v34 = vld [vmem:[#allocation6 + $0x568] sm:$0xff]  ;;  %v2060_v23 = vld [vmem:[#allocation6 + $0x578] sm:$0xff] }
 0x331   :  { %2321 = vmatprep.subr.mxu0 %v2114_v62  ;;  %2392 = vmatprep.subr.mxu1 %v2116_v22  ;;  %v2057_v62 = vld [vmem:[#allocation6 + $0x560] sm:$0xff]  ;;  %v2059_v22 = vld [vmem:[#allocation6 + $0x570] sm:$0xff] }
 0x332   :  { %2322 = vmatpush2.msra.mxu0 %v2113_v6  ;;  %2393 = vmatpush2.msra.mxu1 %v2115_v39  ;;  %v2050_v6 = vld [vmem:[#allocation6 + $0x528] sm:$0xff]  ;;  %v2052_v39 = vld [vmem:[#allocation6 + $0x538] sm:$0xff] }
 0x333   :  { %2323 = vmatprep.subr.mxu0 %v2106_v2  ;;  %2394 = vmatprep.subr.mxu1 %v2108_v7  ;;  %v2049_v2 = vld [vmem:[#allocation6 + $0x520] sm:$0xff]  ;;  %v2051_v7 = vld [vmem:[#allocation6 + $0x530] sm:$0xff] }
 0x334   :  { %2324 = vmatpush2.msra.mxu0 %v2105_v50  ;;  %2395 = vmatpush2.msra.mxu1 %v2107_v10  ;;  %v2042_v50 = vld [vmem:[#allocation6 + $0x4e8] sm:$0xff]  ;;  %v2044_v10 = vld [vmem:[#allocation6 + $0x4f8] sm:$0xff] }
 0x335   :  { %2325 = vmatprep.subr.mxu0 %v2098_v4  ;;  %2396 = vmatprep.subr.mxu1 %v2100_v5  ;;  %v2041_v4 = vld [vmem:[#allocation6 + $0x4e0] sm:$0xff]  ;;  %v2043_v5 = vld [vmem:[#allocation6 + $0x4f0] sm:$0xff] }
 0x336   :  { %2326 = vmatpush2.msra.mxu0 %v2097_v42  ;;  %2397 = vmatpush2.msra.mxu1 %v2099_v51  ;;  %v2034_v42 = vld [vmem:[#allocation6 + $0x4a8] sm:$0xff]  ;;  %v2036_v51 = vld [vmem:[#allocation6 + $0x4b8] sm:$0xff] }
 0x337   :  { %2327 = vmatprep.subr.mxu0 %v2090_v3  ;;  %2398 = vmatprep.subr.mxu1 %v2092_v58  ;;  %v2033_v3 = vld [vmem:[#allocation6 + $0x4a0] sm:$0xff]  ;;  %v2035_v58 = vld [vmem:[#allocation6 + $0x4b0] sm:$0xff] }
 0x338   :  { %2328 = vmatpush2.msra.mxu0 %v2089_v8  ;;  %2399 = vmatpush2.msra.mxu1 %v2091_v19  ;;  %v2026_v8 = vld [vmem:[#allocation6 + $0x468] sm:$0xff]  ;;  %v2028_v19 = vld [vmem:[#allocation6 + $0x478] sm:$0xff] }
 0x339   :  { %2329 = vmatprep.subr.mxu0 %v2082_v12  ;;  %2400 = vmatprep.subr.mxu1 %v2084_v63  ;;  %v2025_v12 = vld [vmem:[#allocation6 + $0x460] sm:$0xff]  ;;  %v2027_v63 = vld [vmem:[#allocation6 + $0x470] sm:$0xff] }
 0x33a   :  { %2330 = vmatpush2.msra.mxu0 %v2081_v26  ;;  %2401 = vmatpush2.msra.mxu1 %v2083_v46  ;;  %v2018_v26 = vld [vmem:[#allocation6 + $0x428] sm:$0xff]  ;;  %v2020_v46 = vld [vmem:[#allocation6 + $0x438] sm:$0xff] }
 0x33b   :  { %2331 = vmatprep.subr.mxu0 %v2074_v0  ;;  %2402 = vmatprep.subr.mxu1 %v2076_v43  ;;  %v2017_v0 = vld [vmem:[#allocation6 + $0x420] sm:$0xff]  ;;  %v2019_v43 = vld [vmem:[#allocation6 + $0x430] sm:$0xff] }
 0x33c   :  { %2332 = vmatpush2.msra.mxu0 %v2073_v49  ;;  %2403 = vmatpush2.msra.mxu1 %v2075_v24  ;;  %v2614_v49 = vld [vmem:[#allocation6 + $0x3c8] sm:$0xff]  ;;  %v2616_v24 = vld [vmem:[#allocation6 + $0x3d8] sm:$0xff] }
 0x33d   :  { %2333 = vmatprep.subr.mxu0 %v2066_v57  ;;  %2404 = vmatprep.subr.mxu1 %v2068_v47  ;;  %v2613_v57 = vld [vmem:[#allocation6 + $0x3c0] sm:$0xff]  ;;  %v2615_v47 = vld [vmem:[#allocation6 + $0x3d0] sm:$0xff] }
 0x33e   :  { %2334 = vmatpush2.msra.mxu0 %v2065_v59  ;;  %2405 = vmatpush2.msra.mxu1 %v2067_v38  ;;  %v2606_v59 = vld [vmem:[#allocation6 + $0x388] sm:$0xff]  ;;  %v2608_v38 = vld [vmem:[#allocation6 + $0x398] sm:$0xff] }
 0x33f   :  { %2335 = vmatprep.subr.mxu0 %v2058_v34  ;;  %2406 = vmatprep.subr.mxu1 %v2060_v23  ;;  %v2605_v34 = vld [vmem:[#allocation6 + $0x380] sm:$0xff]  ;;  %v2607_v23 = vld [vmem:[#allocation6 + $0x390] sm:$0xff] }
 0x340   :  { %2336 = vmatpush2.msra.mxu0 %v2057_v62  ;;  %2407 = vmatpush2.msra.mxu1 %v2059_v22  ;;  %v2598_v62 = vld [vmem:[#allocation6 + $0x348] sm:$0xff]  ;;  %v2600_v22 = vld [vmem:[#allocation6 + $0x358] sm:$0xff] }
 0x341   :  { %2337 = vmatprep.subr.mxu0 %v2050_v6  ;;  %2408 = vmatprep.subr.mxu1 %v2052_v39  ;;  %v2597_v6 = vld [vmem:[#allocation6 + $0x340] sm:$0xff]  ;;  %v2599_v39 = vld [vmem:[#allocation6 + $0x350] sm:$0xff] }
 0x342   :  { %2338 = vmatpush2.msra.mxu0 %v2049_v2  ;;  %2409 = vmatpush2.msra.mxu1 %v2051_v7  ;;  %v2592_v2 = vld [vmem:[#allocation6 + $0x318] sm:$0xff]  ;;  %v2589_v7 = vld [vmem:[#allocation6 + $0x300] sm:$0xff] }
 0x343   :  { %2339 = vmatprep.subr.mxu0 %v2042_v50  ;;  %2410 = vmatprep.subr.mxu1 %v2044_v10  ;;  %v2591_v50 = vld [vmem:[#allocation6 + $0x310] sm:$0xff]  ;;  %v2582_v10 = vld [vmem:[#allocation6 + $0x2c8] sm:$0xff] }
 0x344   :  { %2340 = vmatpush2.msra.mxu0 %v2041_v4  ;;  %2411 = vmatpush2.msra.mxu1 %v2043_v5  ;;  %v2584_v4 = vld [vmem:[#allocation6 + $0x2d8] sm:$0xff]  ;;  %v2581_v5 = vld [vmem:[#allocation6 + $0x2c0] sm:$0xff] }
 0x345   :  { %2341 = vmatprep.subr.mxu0 %v2034_v42  ;;  %2412 = vmatprep.subr.mxu1 %v2036_v51  ;;  %v2583_v42 = vld [vmem:[#allocation6 + $0x2d0] sm:$0xff]  ;;  %v2574_v51 = vld [vmem:[#allocation6 + $0x288] sm:$0xff] }
 0x346   :  { %2342 = vmatpush2.msra.mxu0 %v2033_v3  ;;  %2413 = vmatpush2.msra.mxu1 %v2035_v58  ;;  %v2576_v3 = vld [vmem:[#allocation6 + $0x298] sm:$0xff]  ;;  %v2573_v58 = vld [vmem:[#allocation6 + $0x280] sm:$0xff] }
 0x347   :  { %2343 = vmatprep.subr.mxu0 %v2026_v8  ;;  %2414 = vmatprep.subr.mxu1 %v2028_v19  ;;  %v2575_v8 = vld [vmem:[#allocation6 + $0x290] sm:$0xff]  ;;  %v2566_v19 = vld [vmem:[#allocation6 + $0x248] sm:$0xff] }
 0x348   :  { %2344 = vmatpush2.msra.mxu0 %v2025_v12  ;;  %2415 = vmatpush2.msra.mxu1 %v2027_v63  ;;  %v2568_v12 = vld [vmem:[#allocation6 + $0x258] sm:$0xff]  ;;  %v2565_v63 = vld [vmem:[#allocation6 + $0x240] sm:$0xff] }
 0x349   :  { %2345 = vmatprep.subr.mxu0 %v2018_v26  ;;  %2416 = vmatprep.subr.mxu1 %v2020_v46  ;;  %v2567_v26 = vld [vmem:[#allocation6 + $0x250] sm:$0xff]  ;;  %v2558_v46 = vld [vmem:[#allocation6 + $0x208] sm:$0xff] }
 0x34a   :  { %2346 = vmatpush2.msra.mxu0 %v2017_v0  ;;  %2417 = vmatpush2.msra.mxu1 %v2019_v43  ;;  %v2560_v0 = vld [vmem:[#allocation6 + $0x218] sm:$0xff]  ;;  %v2557_v43 = vld [vmem:[#allocation6 + $0x200] sm:$0xff] }
 0x34b   :  { %2348 = vmatmul.mubr.f32.vlgmr.msra.gmra.mxu0 %v6528_v18  ;;  %2419 = vmatmul.mubr.f32.vlgmr.msra.gmra.mxu1 %v6528_v18  ;;  %v2590_v18 = vld [vmem:[#allocation6 + $0x308] sm:$0xff] }
 0x34c   :  { %2749 = vmatprep.subr.mxu0 %v2614_v49  ;;  %2820 = vmatprep.subr.mxu1 %v2616_v24  ;;  %v2559_v49 = vld [vmem:[#allocation6 + $0x210] sm:$0xff]  ;;  %v2550_v24 = vld [vmem:[#allocation6 + $0x1c8] sm:$0xff] }
 0x34d   :  { %2750 = vmatpush1.msra.mxu0 %v2613_v57  ;;  %2821 = vmatpush1.msra.mxu1 %v2615_v47  ;;  %v2552_v57 = vld [vmem:[#allocation6 + $0x1d8] sm:$0xff]  ;;  %v2549_v47 = vld [vmem:[#allocation6 + $0x1c0] sm:$0xff] }
 0x34e   :  { %2751 = vmatprep.subr.mxu0 %v2606_v59  ;;  %2822 = vmatprep.subr.mxu1 %v2608_v38  ;;  %v2551_v59 = vld [vmem:[#allocation6 + $0x1d0] sm:$0xff]  ;;  %v2542_v38 = vld [vmem:[#allocation6 + $0x188] sm:$0xff] }
 0x34f   :  { %2752 = vmatpush1.msra.mxu0 %v2605_v34  ;;  %2823 = vmatpush1.msra.mxu1 %v2607_v23  ;;  %v2544_v34 = vld [vmem:[#allocation6 + $0x198] sm:$0xff]  ;;  %v2541_v23 = vld [vmem:[#allocation6 + $0x180] sm:$0xff] }
 0x350   :  { %2753 = vmatprep.subr.mxu0 %v2598_v62  ;;  %2824 = vmatprep.subr.mxu1 %v2600_v22  ;;  %v2543_v62 = vld [vmem:[#allocation6 + $0x190] sm:$0xff]  ;;  %v2534_v22 = vld [vmem:[#allocation6 + $0x148] sm:$0xff] }
 0x351   :  { %2754 = vmatpush1.msra.mxu0 %v2597_v6  ;;  %2825 = vmatpush1.msra.mxu1 %v2599_v39  ;;  %v2536_v6 = vld [vmem:[#allocation6 + $0x158] sm:$0xff]  ;;  %v2533_v39 = vld [vmem:[#allocation6 + $0x140] sm:$0xff] }
 0x352   :  { %2755 = vmatprep.subr.mxu0 %v2590_v18  ;;  %2826 = vmatprep.subr.mxu1 %v2592_v2  ;;  %v2535_v18 = vld [vmem:[#allocation6 + $0x150] sm:$0xff]  ;;  %v2526_v2 = vld [vmem:[#allocation6 + $0x108] sm:$0xff] }
 0x353   :  { %2756 = vmatpush1.msra.mxu0 %v2589_v7  ;;  %2827 = vmatpush1.msra.mxu1 %v2591_v50  ;;  %v2528_v7 = vld [vmem:[#allocation6 + $0x118] sm:$0xff]  ;;  %v2525_v50 = vld [vmem:[#allocation6 + $0x100] sm:$0xff] }
 0x354   :  { %2757 = vmatprep.subr.mxu0 %v2582_v10  ;;  %2828 = vmatprep.subr.mxu1 %v2584_v4  ;;  %v2527_v10 = vld [vmem:[#allocation6 + $0x110] sm:$0xff]  ;;  %v2518_v4 = vld [vmem:[#allocation6 + $0xc8] sm:$0xff] }
 0x355   :  { %2758 = vmatpush1.msra.mxu0 %v2581_v5  ;;  %2829 = vmatpush1.msra.mxu1 %v2583_v42  ;;  %v2520_v5 = vld [vmem:[#allocation6 + $0xd8] sm:$0xff]  ;;  %v2517_v42 = vld [vmem:[#allocation6 + $0xc0] sm:$0xff] }
 0x356   :  { %2759 = vmatprep.subr.mxu0 %v2574_v51  ;;  %2830 = vmatprep.subr.mxu1 %v2576_v3  ;;  %v2519_v51 = vld [vmem:[#allocation6 + $0xd0] sm:$0xff]  ;;  %v2510_v3 = vld [vmem:[#allocation6 + $0x88] sm:$0xff] }
 0x357   :  { %2760 = vmatpush1.msra.mxu0 %v2573_v58  ;;  %2831 = vmatpush1.msra.mxu1 %v2575_v8  ;;  %v2512_v58 = vld [vmem:[#allocation6 + $0x98] sm:$0xff]  ;;  %v2509_v8 = vld [vmem:[#allocation6 + $0x80] sm:$0xff] }
 0x358   :  { %2761 = vmatprep.subr.mxu0 %v2566_v19  ;;  %2832 = vmatprep.subr.mxu1 %v2568_v12  ;;  %v2511_v19 = vld [vmem:[#allocation6 + $0x90] sm:$0xff]  ;;  %v2502_v12 = vld [vmem:[#allocation6 + $0x48] sm:$0xff] }
 0x359   :  { %2762 = vmatpush1.msra.mxu0 %v2565_v63  ;;  %2833 = vmatpush1.msra.mxu1 %v2567_v26  ;;  %v2504_v63 = vld [vmem:[#allocation6 + $0x58] sm:$0xff]  ;;  %v2501_v26 = vld [vmem:[#allocation6 + $0x40] sm:$0xff] }
 0x35a   :  { %2763 = vmatprep.subr.mxu0 %v2558_v46  ;;  %2834 = vmatprep.subr.mxu1 %v2560_v0  ;;  %v2503_v46 = vld [vmem:[#allocation6 + $0x50] sm:$0xff]  ;;  %v2494_v0 = vld [vmem:[#allocation6 + $0x8] sm:$0xff] }
 0x35b   :  { %2764 = vmatpush1.msra.mxu0 %v2557_v43  ;;  %2835 = vmatpush1.msra.mxu1 %v2559_v49  ;;  %v2496_v43 = vld [vmem:[#allocation6 + $0x18] sm:$0xff]  ;;  %v2493_v49 = vld [vmem:[#allocation6] sm:$0xff] }
 0x35c   :  { %2765 = vmatprep.subr.mxu0 %v2550_v24  ;;  %2836 = vmatprep.subr.mxu1 %v2552_v57  ;;  %v2495_v24 = vld [vmem:[#allocation6 + $0x10] sm:$0xff]  ;;  %v2742_v57 = vld [vmem:[#allocation6 + $0x7c8] sm:$0xff] }
 0x35d   :  { %2766 = vmatpush1.msra.mxu0 %v2549_v47  ;;  %2837 = vmatpush1.msra.mxu1 %v2551_v59  ;;  %v2744_v47 = vld [vmem:[#allocation6 + $0x7d8] sm:$0xff]  ;;  %v2741_v59 = vld [vmem:[#allocation6 + $0x7c0] sm:$0xff] }
 0x35e   :  { %2767 = vmatprep.subr.mxu0 %v2542_v38  ;;  %2838 = vmatprep.subr.mxu1 %v2544_v34  ;;  %v2743_v38 = vld [vmem:[#allocation6 + $0x7d0] sm:$0xff]  ;;  %v2734_v34 = vld [vmem:[#allocation6 + $0x788] sm:$0xff] }
 0x35f   :  { %2768 = vmatpush1.msra.mxu0 %v2541_v23  ;;  %2839 = vmatpush1.msra.mxu1 %v2543_v62  ;;  %v2736_v23 = vld [vmem:[#allocation6 + $0x798] sm:$0xff]  ;;  %v2733_v62 = vld [vmem:[#allocation6 + $0x780] sm:$0xff] }
 0x360   :  { %2769 = vmatprep.subr.mxu0 %v2534_v22  ;;  %2840 = vmatprep.subr.mxu1 %v2536_v6  ;;  %v2735_v22 = vld [vmem:[#allocation6 + $0x790] sm:$0xff]  ;;  %v2726_v6 = vld [vmem:[#allocation6 + $0x748] sm:$0xff] }
 0x361   :  { %2770 = vmatpush1.msra.mxu0 %v2533_v39  ;;  %2841 = vmatpush1.msra.mxu1 %v2535_v18  ;;  %v2728_v39 = vld [vmem:[#allocation6 + $0x758] sm:$0xff]  ;;  %v2725_v18 = vld [vmem:[#allocation6 + $0x740] sm:$0xff] }
 0x362   :  { %2771 = vmatprep.subr.mxu0 %v2526_v2  ;;  %2842 = vmatprep.subr.mxu1 %v2528_v7  ;;  %v2727_v2 = vld [vmem:[#allocation6 + $0x750] sm:$0xff]  ;;  %v2718_v7 = vld [vmem:[#allocation6 + $0x708] sm:$0xff] }
 0x363   :  { %2772 = vmatpush1.msra.mxu0 %v2525_v50  ;;  %2843 = vmatpush1.msra.mxu1 %v2527_v10  ;;  %v2720_v50 = vld [vmem:[#allocation6 + $0x718] sm:$0xff]  ;;  %v2717_v10 = vld [vmem:[#allocation6 + $0x700] sm:$0xff] }
 0x364   :  { %2773 = vmatprep.subr.mxu0 %v2518_v4  ;;  %2844 = vmatprep.subr.mxu1 %v2520_v5  ;;  %v2719_v4 = vld [vmem:[#allocation6 + $0x710] sm:$0xff]  ;;  %v2710_v5 = vld [vmem:[#allocation6 + $0x6c8] sm:$0xff] }
 0x365   :  { %2774 = vmatpush1.msra.mxu0 %v2517_v42  ;;  %2845 = vmatpush1.msra.mxu1 %v2519_v51  ;;  %v2712_v42 = vld [vmem:[#allocation6 + $0x6d8] sm:$0xff]  ;;  %v2709_v51 = vld [vmem:[#allocation6 + $0x6c0] sm:$0xff] }
 0x366   :  { %2775 = vmatprep.subr.mxu0 %v2510_v3  ;;  %2846 = vmatprep.subr.mxu1 %v2512_v58  ;;  %v2711_v3 = vld [vmem:[#allocation6 + $0x6d0] sm:$0xff]  ;;  %v2702_v58 = vld [vmem:[#allocation6 + $0x688] sm:$0xff] }
 0x367   :  { %2776 = vmatpush1.msra.mxu0 %v2509_v8  ;;  %2847 = vmatpush1.msra.mxu1 %v2511_v19  ;;  %v2704_v8 = vld [vmem:[#allocation6 + $0x698] sm:$0xff]  ;;  %v2701_v19 = vld [vmem:[#allocation6 + $0x680] sm:$0xff] }
 0x368   :  { %2777 = vmatprep.subr.mxu0 %v2502_v12  ;;  %2848 = vmatprep.subr.mxu1 %v2504_v63  ;;  %v2703_v12 = vld [vmem:[#allocation6 + $0x690] sm:$0xff]  ;;  %v2694_v63 = vld [vmem:[#allocation6 + $0x648] sm:$0xff] }
 0x369   :  { %2778 = vmatpush1.msra.mxu0 %v2501_v26  ;;  %2849 = vmatpush1.msra.mxu1 %v2503_v46  ;;  %v2696_v26 = vld [vmem:[#allocation6 + $0x658] sm:$0xff]  ;;  %v2693_v46 = vld [vmem:[#allocation6 + $0x640] sm:$0xff] }
 0x36a   :  { %2779 = vmatprep.subr.mxu0 %v2494_v0  ;;  %2850 = vmatprep.subr.mxu1 %v2496_v43  ;;  %v2695_v0 = vld [vmem:[#allocation6 + $0x650] sm:$0xff]  ;;  %v2686_v43 = vld [vmem:[#allocation6 + $0x608] sm:$0xff] }
 0x36b   :  { %2780 = vmatpush1.msra.mxu0 %v2493_v49  ;;  %2851 = vmatpush1.msra.mxu1 %v2495_v24  ;;  %v2688_v49 = vld [vmem:[#allocation6 + $0x618] sm:$0xff]  ;;  %v2685_v24 = vld [vmem:[#allocation6 + $0x600] sm:$0xff] }
 0x36c   :  { %2781 = vmatprep.subr.mxu0 %v2742_v57  ;;  %2852 = vmatprep.subr.mxu1 %v2744_v47  ;;  %v2687_v57 = vld [vmem:[#allocation6 + $0x610] sm:$0xff]  ;;  %v2678_v47 = vld [vmem:[#allocation6 + $0x5c8] sm:$0xff] }
 0x36d   :  { %2782 = vmatpush2.msra.mxu0 %v2741_v59  ;;  %2853 = vmatpush2.msra.mxu1 %v2743_v38  ;;  %v2680_v59 = vld [vmem:[#allocation6 + $0x5d8] sm:$0xff]  ;;  %v2677_v38 = vld [vmem:[#allocation6 + $0x5c0] sm:$0xff] }
 0x36e   :  { %2783 = vmatprep.subr.mxu0 %v2734_v34  ;;  %2854 = vmatprep.subr.mxu1 %v2736_v23  ;;  %v2679_v34 = vld [vmem:[#allocation6 + $0x5d0] sm:$0xff]  ;;  %v2670_v23 = vld [vmem:[#allocation6 + $0x588] sm:$0xff] }
 0x36f   :  { %2784 = vmatpush2.msra.mxu0 %v2733_v62  ;;  %2855 = vmatpush2.msra.mxu1 %v2735_v22  ;;  %v2672_v62 = vld [vmem:[#allocation6 + $0x598] sm:$0xff]  ;;  %v2669_v22 = vld [vmem:[#allocation6 + $0x580] sm:$0xff] }
 0x370   :  { %2785 = vmatprep.subr.mxu0 %v2726_v6  ;;  %2856 = vmatprep.subr.mxu1 %v2728_v39  ;;  %v2671_v6 = vld [vmem:[#allocation6 + $0x590] sm:$0xff]  ;;  %v2662_v39 = vld [vmem:[#allocation6 + $0x548] sm:$0xff] }
 0x371   :  { %2786 = vmatpush2.msra.mxu0 %v2725_v18  ;;  %2857 = vmatpush2.msra.mxu1 %v2727_v2  ;;  %v2664_v18 = vld [vmem:[#allocation6 + $0x558] sm:$0xff]  ;;  %v2661_v2 = vld [vmem:[#allocation6 + $0x540] sm:$0xff] }
 0x372   :  { %2787 = vmatprep.subr.mxu0 %v2718_v7  ;;  %2858 = vmatprep.subr.mxu1 %v2720_v50  ;;  %v2663_v7 = vld [vmem:[#allocation6 + $0x550] sm:$0xff]  ;;  %v2654_v50 = vld [vmem:[#allocation6 + $0x508] sm:$0xff] }
 0x373   :  { %2788 = vmatpush2.msra.mxu0 %v2717_v10  ;;  %2859 = vmatpush2.msra.mxu1 %v2719_v4  ;;  %v2656_v10 = vld [vmem:[#allocation6 + $0x518] sm:$0xff]  ;;  %v2653_v4 = vld [vmem:[#allocation6 + $0x500] sm:$0xff] }
 0x374   :  { %2789 = vmatprep.subr.mxu0 %v2710_v5  ;;  %2860 = vmatprep.subr.mxu1 %v2712_v42  ;;  %v2655_v5 = vld [vmem:[#allocation6 + $0x510] sm:$0xff]  ;;  %v2646_v42 = vld [vmem:[#allocation6 + $0x4c8] sm:$0xff] }
 0x375   :  { %2790 = vmatpush2.msra.mxu0 %v2709_v51  ;;  %2861 = vmatpush2.msra.mxu1 %v2711_v3  ;;  %v2648_v51 = vld [vmem:[#allocation6 + $0x4d8] sm:$0xff]  ;;  %v2645_v3 = vld [vmem:[#allocation6 + $0x4c0] sm:$0xff] }
 0x376   :  { %2791 = vmatprep.subr.mxu0 %v2702_v58  ;;  %2862 = vmatprep.subr.mxu1 %v2704_v8  ;;  %v2647_v58 = vld [vmem:[#allocation6 + $0x4d0] sm:$0xff]  ;;  %v2638_v8 = vld [vmem:[#allocation6 + $0x488] sm:$0xff] }
 0x377   :  { %2792 = vmatpush2.msra.mxu0 %v2701_v19  ;;  %2863 = vmatpush2.msra.mxu1 %v2703_v12  ;;  %v2640_v19 = vld [vmem:[#allocation6 + $0x498] sm:$0xff]  ;;  %v2637_v12 = vld [vmem:[#allocation6 + $0x480] sm:$0xff] }
 0x378   :  { %2793 = vmatprep.subr.mxu0 %v2694_v63  ;;  %2864 = vmatprep.subr.mxu1 %v2696_v26  ;;  %v2639_v63 = vld [vmem:[#allocation6 + $0x490] sm:$0xff]  ;;  %v2630_v26 = vld [vmem:[#allocation6 + $0x448] sm:$0xff] }
 0x379   :  { %2794 = vmatpush2.msra.mxu0 %v2693_v46  ;;  %2865 = vmatpush2.msra.mxu1 %v2695_v0  ;;  %v2632_v46 = vld [vmem:[#allocation6 + $0x458] sm:$0xff]  ;;  %v2629_v0 = vld [vmem:[#allocation6 + $0x440] sm:$0xff] }
 0x37a   :  { %2795 = vmatprep.subr.mxu0 %v2686_v43  ;;  %2866 = vmatprep.subr.mxu1 %v2688_v49  ;;  %v2631_v43 = vld [vmem:[#allocation6 + $0x450] sm:$0xff]  ;;  %v2622_v49 = vld [vmem:[#allocation6 + $0x408] sm:$0xff] }
 0x37b   :  { %2796 = vmatpush2.msra.mxu0 %v2685_v24  ;;  %2867 = vmatpush2.msra.mxu1 %v2687_v57  ;;  %v2624_v24 = vld [vmem:[#allocation6 + $0x418] sm:$0xff]  ;;  %v2621_v57 = vld [vmem:[#allocation6 + $0x400] sm:$0xff] }
 0x37c   :  { %2797 = vmatprep.subr.mxu0 %v2678_v47  ;;  %2868 = vmatprep.subr.mxu1 %v2680_v59  ;;  %v2623_v47 = vld [vmem:[#allocation6 + $0x410] sm:$0xff]  ;;  %v2618_v59 = vld [vmem:[#allocation6 + $0x3e8] sm:$0xff] }
 0x37d   :  { %2798 = vmatpush2.msra.mxu0 %v2677_v38  ;;  %2869 = vmatpush2.msra.mxu1 %v2679_v34  ;;  %v2620_v38 = vld [vmem:[#allocation6 + $0x3f8] sm:$0xff] }
 0x37e   :  { %2799 = vmatprep.subr.mxu0 %v2670_v23  ;;  %2870 = vmatprep.subr.mxu1 %v2672_v62 }
 0x37f   :  { %2800 = vmatpush2.msra.mxu0 %v2669_v22  ;;  %2871 = vmatpush2.msra.mxu1 %v2671_v6 }
 0x380   :  { %2801 = vmatprep.subr.mxu0 %v2662_v39  ;;  %2872 = vmatprep.subr.mxu1 %v2664_v18 }
 0x381   :  { %2802 = vmatpush2.msra.mxu0 %v2661_v2  ;;  %2873 = vmatpush2.msra.mxu1 %v2663_v7 }
 0x382   :  { %2803 = vmatprep.subr.mxu0 %v2654_v50  ;;  %2874 = vmatprep.subr.mxu1 %v2656_v10 }
 0x383   :  { %2804 = vmatpush2.msra.mxu0 %v2653_v4  ;;  %2875 = vmatpush2.msra.mxu1 %v2655_v5 }
 0x384   :  { %2805 = vmatprep.subr.mxu0 %v2646_v42  ;;  %2876 = vmatprep.subr.mxu1 %v2648_v51 }
 0x385   :  { %2806 = vmatpush2.msra.mxu0 %v2645_v3  ;;  %2877 = vmatpush2.msra.mxu1 %v2647_v58 }
 0x386   :  { %2807 = vmatprep.subr.mxu0 %v2638_v8  ;;  %2878 = vmatprep.subr.mxu1 %v2640_v19 }
 0x387   :  { %2808 = vmatpush2.msra.mxu0 %v2637_v12  ;;  %2879 = vmatpush2.msra.mxu1 %v2639_v63 }
 0x388   :  { %2809 = vmatprep.subr.mxu0 %v2630_v26  ;;  %2880 = vmatprep.subr.mxu1 %v2632_v46  ;;  %v472_v46 = vadd.f32 %v6473_v54, %v6283_v21  ;;  %v585_v54 = vadd.f32 %v6475_v1, %v6296_v37 }
 0x389   :  { %2810 = vmatpush2.msra.mxu0 %v2629_v0  ;;  %2881 = vmatpush2.msra.mxu1 %v2631_v43  ;;  %v474_v43 = vadd.f32 %v6477_v53, %v6291_v32 }
 0x38a   :  { %2811 = vmatprep.subr.mxu0 %v2622_v49  ;;  %2882 = vmatprep.subr.mxu1 %v2624_v24 }
 0x38b   :  { %2812 = vmatpush2.msra.mxu0 %v2621_v57  ;;  %2883 = vmatpush2.msra.mxu1 %v2623_v47 }
 0x38c   :  { %2891 = vmatprep.subr.mxu0 %v2618_v59  ;;  %2962 = vmatprep.subr.mxu1 %v2620_v38 }
 0x3ca   :  { %v2207_v34 = vpop.f32.mrf.mxu0  ;;  %v2278_v39 = vpop.f32.mrf.mxu1 }
 0x3cb   :  { %v2429_v23 = vadd.f32 %v2207_v34, %v6362_v16  ;;  %v2431_v50 = vadd.f32 %v2278_v39, %v6365_v17  ;;  %v587_v34 = vadd.f32 %v6479_v33, %v6299_v25 }
 0x3cc   :  { %v2209_v62 = vpop.f32.mrf.mxu0  ;;  %v2280_v2 = vpop.f32.mrf.mxu1 }
 0x3cd   :  { %v5648_v22 = vmul.f32 -1.442695, %v2429_v23  ;;  %v2430_v6 = vadd.f32 %v2209_v62, %v6368_v20  ;;  %v2432_v7 = vadd.f32 %v2280_v2, %v6371_v27 }
 0x3cf   :  { %5759 = vpow2.f32 %v5648_v22  ;;  %v5649_v18 = vmul.f32 -1.442695, %v2430_v6  ;;  %v5650_v10 = vmul.f32 -1.442695, %v2432_v7 }
 0x3d1   :  { %5761 = vpow2.f32 %v5649_v18 }
 0x3d2   :  { %5763 = vtanh.f32 %v2431_v50 }
 0x3d3   :  { %5765 = vpow2.f32 %v5650_v10 }
 0x3dc   :  { %v5760_v4 = vpop.eup %5759 }
 0x3dd   :  { %v2444_v5 = vadd.f32 1.0, %v5760_v4 }
 0x3de   :  { %v5762_v42 = vpop.eup %5761 }
 0x3df   :  { %5767 = vrcp.f32 %v2444_v5  ;;  %v2450_v16 = vadd.f32 1.0, %v5762_v42  ;;  %v5764_v51 = vpop.eup %5763 }
 0x3e0   :  { %v5766_v20 = vpop.eup %5765 }
 0x3e1   :  { %5769 = vrcp.f32 %v2450_v16  ;;  %v2457_v19 = vadd.f32 1.0, %v5766_v20  ;;  %v2617_v20 = vld [vmem:[#allocation6 + $0x3e0] sm:$0xff] }
 0x3e3   :  { %5771 = vrcp.f32 %v2457_v19  ;;  %v2611_v19 = vld [vmem:[#allocation6 + $0x3b0] sm:$0xff] }
 0x3ec   :  { %v5768_v3 = vpop.eup %5767 }
 0x3ed   :  { %v2461_v58 = vmul.f32 %v5768_v3, %v5764_v51  ;;  %v2619_v3 = vld [vmem:[#allocation6 + $0x3f0] sm:$0xff] }
 0x3ee   :  { %v5770_v8 = vpop.eup %5769 }
 0x3ef   :  { %v2460_v12 = vmul.f32 %v5770_v8, %v6525_v11  ;;  %v2612_v8 = vld [vmem:[#allocation6 + $0x3b8] sm:$0xff] }
 0x3f0   :  { %v5772_v17 = vpop.eup %5771 }
 0x3f1   :  { %v6552_v27 = vadd.f32 %v2461_v58, %v2460_v12  ;;  %v2610_v58 = vld [vmem:[#allocation6 + $0x3a8] sm:$0xff] }
 0x3f2   :  { %v2602_v12 = vld [vmem:[#allocation6 + $0x368] sm:$0xff] }
 0x3f3   :  { %5773 = vtanh.f32 %v6552_v27 }
 0x400   :  { %v5774_v63 = vpop.eup %5773 }
 0x401   :  { %v6555_v26 = vmul.f32 %v5774_v63, %v5772_v17  ;;  %v2604_v17 = vld [vmem:[#allocation6 + $0x378] sm:$0xff]  ;;  %v2601_v63 = vld [vmem:[#allocation6 + $0x360] sm:$0xff] }
 0x403   :  { %2490 = vst [vmem:[#allocation8 + $0x10] sm:$0xff] %v6555_v26 }
 0x40b   :  { %v2349_v0 = vpop.f32.mrf.mxu0  ;;  %v2420_v47 = vpop.f32.mrf.mxu1 }
 0x40c   :  { %v2437_v49 = vadd.f32 %v2349_v0, %v472_v46  ;;  %v2439_v62 = vadd.f32 %v2420_v47, %v585_v54  ;;  %v2603_v46 = vld [vmem:[#allocation6 + $0x370] sm:$0xff]  ;;  %v2594_v0 = vld [vmem:[#allocation6 + $0x328] sm:$0xff]  ;;  %v2585_v47 = vld [vmem:[#allocation6 + $0x2e0] sm:$0xff] }
 0x40d   :  { %v2351_v11 = vpop.f32.mrf.mxu0  ;;  %v2422_v38 = vpop.f32.mrf.mxu1  ;;  %v2579_v54 = vld [vmem:[#allocation6 + $0x2b0] sm:$0xff] }
 0x40e   :  { %v5651_v24 = vmul.f32 -1.442695, %v2437_v49  ;;  %v2438_v57 = vadd.f32 %v2351_v11, %v474_v43  ;;  %v2440_v23 = vadd.f32 %v2422_v38, %v587_v34  ;;  %v2596_v43 = vld [vmem:[#allocation6 + $0x338] sm:$0xff]  ;;  %v2593_v49 = vld [vmem:[#allocation6 + $0x320] sm:$0xff]  ;;  %v2595_v11 = vld [vmem:[#allocation6 + $0x330] sm:$0xff] }
 0x40f   :  { %v2578_v38 = vld [vmem:[#allocation6 + $0x2a8] sm:$0xff]  ;;  %v2580_v34 = vld [vmem:[#allocation6 + $0x2b8] sm:$0xff] }
 0x410   :  { %5775 = vpow2.f32 %v5651_v24  ;;  %v5652_v59 = vmul.f32 -1.442695, %v2438_v57  ;;  %v5653_v22 = vmul.f32 -1.442695, %v2440_v23  ;;  %v2586_v24 = vld [vmem:[#allocation6 + $0x2e8] sm:$0xff]  ;;  %v2588_v57 = vld [vmem:[#allocation6 + $0x2f8] sm:$0xff] }
 0x411   :  { %v2577_v23 = vld [vmem:[#allocation6 + $0x2a0] sm:$0xff] }
 0x412   :  { %5777 = vpow2.f32 %v5652_v59  ;;  %v2587_v59 = vld [vmem:[#allocation6 + $0x2f0] sm:$0xff] }
 0x413   :  { %5779 = vtanh.f32 %v2439_v62  ;;  %v2570_v62 = vld [vmem:[#allocation6 + $0x268] sm:$0xff] }
 0x414   :  { %5781 = vpow2.f32 %v5653_v22  ;;  %v2572_v22 = vld [vmem:[#allocation6 + $0x278] sm:$0xff] }
 0x41d   :  { %v5776_v6 = vpop.eup %5775 }
 0x41e   :  { %v2468_v53 = vadd.f32 1.0, %v5776_v6  ;;  %v2569_v6 = vld [vmem:[#allocation6 + $0x260] sm:$0xff] }
 0x41f   :  { %v5778_v39 = vpop.eup %5777 }
 0x420   :  { %5783 = vrcp.f32 %v2468_v53  ;;  %v2474_v18 = vadd.f32 1.0, %v5778_v39  ;;  %v5780_v2 = vpop.eup %5779  ;;  %v2571_v53 = vld [vmem:[#allocation6 + $0x270] sm:$0xff]  ;;  %v2562_v39 = vld [vmem:[#allocation6 + $0x228] sm:$0xff] }
 0x421   :  { %v5782_v7 = vpop.eup %5781 }
 0x422   :  { %5785 = vrcp.f32 %v2474_v18  ;;  %v2481_v33 = vadd.f32 1.0, %v5782_v7  ;;  %v2564_v18 = vld [vmem:[#allocation6 + $0x238] sm:$0xff]  ;;  %v2563_v7 = vld [vmem:[#allocation6 + $0x230] sm:$0xff] }
 0x424   :  { %5787 = vrcp.f32 %v2481_v33  ;;  %v2555_v33 = vld [vmem:[#allocation6 + $0x1f0] sm:$0xff] }
 0x42d   :  { %v5784_v50 = vpop.eup %5783 }
 0x42e   :  { %v2485_v10 = vmul.f32 %v5784_v50, %v5780_v2  ;;  %v2561_v2 = vld [vmem:[#allocation6 + $0x220] sm:$0xff]  ;;  %v2554_v50 = vld [vmem:[#allocation6 + $0x1e8] sm:$0xff] }
 0x42f   :  { %v5786_v4 = vpop.eup %5785 }
 0x430   :  { %v2484_v5 = vmul.f32 %v5786_v4, %v6540_v13  ;;  %v2609_v13 = vld [vmem:[#allocation6 + $0x3a0] sm:$0xff] }
 0x431   :  { %v5788_v1 = vpop.eup %5787  ;;  %v2553_v4 = vld [vmem:[#allocation6 + $0x1e0] sm:$0xff] }
 0x432   :  { %v6567_v42 = vadd.f32 %v2485_v10, %v2484_v5  ;;  %v2556_v10 = vld [vmem:[#allocation6 + $0x1f8] sm:$0xff]  ;;  %v2546_v5 = vld [vmem:[#allocation6 + $0x1a8] sm:$0xff] }
 0x434   :  { %5789 = vtanh.f32 %v6567_v42 }
 0x441   :  { %v5790_v16 = vpop.eup %5789 }
 0x442   :  { %v2488_v51 = vmul.f32 %v5790_v16, %v5788_v1  ;;  %v2548_v1 = vld [vmem:[#allocation6 + $0x1b8] sm:$0xff]  ;;  %v2545_v16 = vld [vmem:[#allocation6 + $0x1a0] sm:$0xff] }
 0x444   :  { %2492 = vst [vmem:[#allocation9 + $0x28] sm:$0xff] %v2488_v51  ;;  %2813 = vmatprep.mubr.f32.mxu0 %v2488_v51  ;;  %2884 = vmatprep.mubr.f32.mxu1 %v2488_v51 }
 0x445   :  { %2814 = vmatmul.mubr.f32.vlgmr.msra.gmra.mxu0 %v6555_v26  ;;  %2885 = vmatmul.mubr.f32.vlgmr.msra.gmra.mxu1 %v6555_v26 }
 0x446   :  { %2892 = vmatpush1.msra.mxu0 %v2617_v20  ;;  %2963 = vmatpush1.msra.mxu1 %v2619_v3  ;;  %v2538_v20 = vld [vmem:[#allocation6 + $0x168] sm:$0xff]  ;;  %v2540_v3 = vld [vmem:[#allocation6 + $0x178] sm:$0xff] }
 0x447   :  { %2893 = vmatprep.subr.mxu0 %v2610_v58  ;;  %2955 = vmatprep.mubr.f32.mxu0 %v2488_v51  ;;  %v2537_v58 = vld [vmem:[#allocation6 + $0x160] sm:$0xff] }
 0x448   :  { %2964 = vmatprep.subr.mxu1 %v2612_v8  ;;  %3026 = vmatprep.mubr.f32.mxu1 %v2488_v51  ;;  %v2547_v51 = vld [vmem:[#allocation6 + $0x1b0] sm:$0xff] }
 0x449   :  { %2894 = vmatpush1.msra.mxu0 %v2609_v13  ;;  %2965 = vmatpush1.msra.mxu1 %v2611_v19  ;;  %v2539_v8 = vld [vmem:[#allocation6 + $0x170] sm:$0xff]  ;;  %v2530_v13 = vld [vmem:[#allocation6 + $0x128] sm:$0xff]  ;;  %v2532_v19 = vld [vmem:[#allocation6 + $0x138] sm:$0xff] }
 0x44a   :  { %2895 = vmatprep.subr.mxu0 %v2602_v12  ;;  %2966 = vmatprep.subr.mxu1 %v2604_v17  ;;  %v2529_v12 = vld [vmem:[#allocation6 + $0x120] sm:$0xff]  ;;  %v2531_v17 = vld [vmem:[#allocation6 + $0x130] sm:$0xff] }
 0x44b   :  { %2896 = vmatpush1.msra.mxu0 %v2601_v63  ;;  %2967 = vmatpush1.msra.mxu1 %v2603_v46  ;;  %v2522_v63 = vld [vmem:[#allocation6 + $0xe8] sm:$0xff]  ;;  %v2524_v46 = vld [vmem:[#allocation6 + $0xf8] sm:$0xff] }
 0x44c   :  { %2897 = vmatprep.subr.mxu0 %v2594_v0  ;;  %2968 = vmatprep.subr.mxu1 %v2596_v43  ;;  %v2521_v0 = vld [vmem:[#allocation6 + $0xe0] sm:$0xff]  ;;  %v2523_v43 = vld [vmem:[#allocation6 + $0xf0] sm:$0xff] }
 0x44d   :  { %2898 = vmatpush1.msra.mxu0 %v2593_v49  ;;  %2969 = vmatpush1.msra.mxu1 %v2595_v11  ;;  %v2514_v49 = vld [vmem:[#allocation6 + $0xa8] sm:$0xff]  ;;  %v2516_v11 = vld [vmem:[#allocation6 + $0xb8] sm:$0xff] }
 0x44e   :  { %2899 = vmatprep.subr.mxu0 %v2586_v24  ;;  %2970 = vmatprep.subr.mxu1 %v2588_v57  ;;  %v2513_v24 = vld [vmem:[#allocation6 + $0xa0] sm:$0xff]  ;;  %v2515_v57 = vld [vmem:[#allocation6 + $0xb0] sm:$0xff] }
 0x44f   :  { %2900 = vmatpush1.msra.mxu0 %v2585_v47  ;;  %2971 = vmatpush1.msra.mxu1 %v2587_v59  ;;  %v2506_v47 = vld [vmem:[#allocation6 + $0x68] sm:$0xff]  ;;  %v2508_v59 = vld [vmem:[#allocation6 + $0x78] sm:$0xff] }
 0x450   :  { %2901 = vmatprep.subr.mxu0 %v2578_v38  ;;  %2972 = vmatprep.subr.mxu1 %v2580_v34  ;;  %v2505_v38 = vld [vmem:[#allocation6 + $0x60] sm:$0xff]  ;;  %v2507_v34 = vld [vmem:[#allocation6 + $0x70] sm:$0xff] }
 0x451   :  { %2902 = vmatpush1.msra.mxu0 %v2577_v23  ;;  %2973 = vmatpush1.msra.mxu1 %v2579_v54  ;;  %v2498_v23 = vld [vmem:[#allocation6 + $0x28] sm:$0xff]  ;;  %v2500_v54 = vld [vmem:[#allocation6 + $0x38] sm:$0xff] }
 0x452   :  { %2903 = vmatprep.subr.mxu0 %v2570_v62  ;;  %2974 = vmatprep.subr.mxu1 %v2572_v22  ;;  %v2497_v62 = vld [vmem:[#allocation6 + $0x20] sm:$0xff]  ;;  %v2499_v22 = vld [vmem:[#allocation6 + $0x30] sm:$0xff] }
 0x453   :  { %2904 = vmatpush1.msra.mxu0 %v2569_v6  ;;  %2975 = vmatpush1.msra.mxu1 %v2571_v53  ;;  %v2746_v6 = vld [vmem:[#allocation6 + $0x7e8] sm:$0xff]  ;;  %v2748_v53 = vld [vmem:[#allocation6 + $0x7f8] sm:$0xff] }
 0x454   :  { %2905 = vmatprep.subr.mxu0 %v2562_v39  ;;  %2976 = vmatprep.subr.mxu1 %v2564_v18  ;;  %v2745_v39 = vld [vmem:[#allocation6 + $0x7e0] sm:$0xff]  ;;  %v2747_v18 = vld [vmem:[#allocation6 + $0x7f0] sm:$0xff] }
 0x455   :  { %2906 = vmatpush1.msra.mxu0 %v2561_v2  ;;  %2977 = vmatpush1.msra.mxu1 %v2563_v7  ;;  %v2738_v2 = vld [vmem:[#allocation6 + $0x7a8] sm:$0xff]  ;;  %v2740_v7 = vld [vmem:[#allocation6 + $0x7b8] sm:$0xff] }
 0x456   :  { %2907 = vmatprep.subr.mxu0 %v2554_v50  ;;  %2978 = vmatprep.subr.mxu1 %v2556_v10  ;;  %v2737_v50 = vld [vmem:[#allocation6 + $0x7a0] sm:$0xff]  ;;  %v2739_v10 = vld [vmem:[#allocation6 + $0x7b0] sm:$0xff] }
 0x457   :  { %2908 = vmatpush1.msra.mxu0 %v2553_v4  ;;  %2979 = vmatpush1.msra.mxu1 %v2555_v33  ;;  %v2730_v4 = vld [vmem:[#allocation6 + $0x768] sm:$0xff]  ;;  %v2732_v33 = vld [vmem:[#allocation6 + $0x778] sm:$0xff] }
 0x458   :  { %2909 = vmatprep.subr.mxu0 %v2546_v5  ;;  %2980 = vmatprep.subr.mxu1 %v2548_v1  ;;  %v2729_v5 = vld [vmem:[#allocation6 + $0x760] sm:$0xff]  ;;  %v2731_v1 = vld [vmem:[#allocation6 + $0x770] sm:$0xff] }
 0x459   :  { %2910 = vmatpush1.msra.mxu0 %v2545_v16  ;;  %2981 = vmatpush1.msra.mxu1 %v2547_v51  ;;  %v2722_v16 = vld [vmem:[#allocation6 + $0x728] sm:$0xff]  ;;  %v2724_v51 = vld [vmem:[#allocation6 + $0x738] sm:$0xff] }
 0x45a   :  { %2911 = vmatprep.subr.mxu0 %v2538_v20  ;;  %2982 = vmatprep.subr.mxu1 %v2540_v3  ;;  %v2721_v20 = vld [vmem:[#allocation6 + $0x720] sm:$0xff]  ;;  %v2723_v3 = vld [vmem:[#allocation6 + $0x730] sm:$0xff] }
 0x45b   :  { %2912 = vmatpush1.msra.mxu0 %v2537_v58  ;;  %2983 = vmatpush1.msra.mxu1 %v2539_v8  ;;  %v2714_v58 = vld [vmem:[#allocation6 + $0x6e8] sm:$0xff]  ;;  %v2716_v8 = vld [vmem:[#allocation6 + $0x6f8] sm:$0xff] }
 0x45c   :  { %2913 = vmatprep.subr.mxu0 %v2530_v13  ;;  %2984 = vmatprep.subr.mxu1 %v2532_v19  ;;  %v2713_v13 = vld [vmem:[#allocation6 + $0x6e0] sm:$0xff]  ;;  %v2715_v19 = vld [vmem:[#allocation6 + $0x6f0] sm:$0xff] }
 0x45d   :  { %2914 = vmatpush1.msra.mxu0 %v2529_v12  ;;  %2985 = vmatpush1.msra.mxu1 %v2531_v17  ;;  %v2706_v12 = vld [vmem:[#allocation6 + $0x6a8] sm:$0xff]  ;;  %v2708_v17 = vld [vmem:[#allocation6 + $0x6b8] sm:$0xff] }
 0x45e   :  { %2915 = vmatprep.subr.mxu0 %v2522_v63  ;;  %2986 = vmatprep.subr.mxu1 %v2524_v46  ;;  %v2705_v63 = vld [vmem:[#allocation6 + $0x6a0] sm:$0xff]  ;;  %v2707_v46 = vld [vmem:[#allocation6 + $0x6b0] sm:$0xff] }
 0x45f   :  { %2916 = vmatpush1.msra.mxu0 %v2521_v0  ;;  %2987 = vmatpush1.msra.mxu1 %v2523_v43  ;;  %v2698_v0 = vld [vmem:[#allocation6 + $0x668] sm:$0xff]  ;;  %v2700_v43 = vld [vmem:[#allocation6 + $0x678] sm:$0xff] }
 0x460   :  { %2917 = vmatprep.subr.mxu0 %v2514_v49  ;;  %2988 = vmatprep.subr.mxu1 %v2516_v11  ;;  %v2697_v49 = vld [vmem:[#allocation6 + $0x660] sm:$0xff]  ;;  %v2699_v11 = vld [vmem:[#allocation6 + $0x670] sm:$0xff] }
 0x461   :  { %2918 = vmatpush1.msra.mxu0 %v2513_v24  ;;  %2989 = vmatpush1.msra.mxu1 %v2515_v57  ;;  %v2690_v24 = vld [vmem:[#allocation6 + $0x628] sm:$0xff]  ;;  %v2692_v57 = vld [vmem:[#allocation6 + $0x638] sm:$0xff] }
 0x462   :  { %2919 = vmatprep.subr.mxu0 %v2506_v47  ;;  %2990 = vmatprep.subr.mxu1 %v2508_v59  ;;  %v2689_v47 = vld [vmem:[#allocation6 + $0x620] sm:$0xff]  ;;  %v2691_v59 = vld [vmem:[#allocation6 + $0x630] sm:$0xff] }
 0x463   :  { %2920 = vmatpush1.msra.mxu0 %v2505_v38  ;;  %2991 = vmatpush1.msra.mxu1 %v2507_v34  ;;  %v2682_v38 = vld [vmem:[#allocation6 + $0x5e8] sm:$0xff]  ;;  %v2684_v34 = vld [vmem:[#allocation6 + $0x5f8] sm:$0xff] }
 0x464   :  { %2921 = vmatprep.subr.mxu0 %v2498_v23  ;;  %2992 = vmatprep.subr.mxu1 %v2500_v54  ;;  %v2681_v23 = vld [vmem:[#allocation6 + $0x5e0] sm:$0xff]  ;;  %v2683_v54 = vld [vmem:[#allocation6 + $0x5f0] sm:$0xff] }
 0x465   :  { %2922 = vmatpush1.msra.mxu0 %v2497_v62  ;;  %2993 = vmatpush1.msra.mxu1 %v2499_v22  ;;  %v2674_v62 = vld [vmem:[#allocation6 + $0x5a8] sm:$0xff]  ;;  %v2676_v22 = vld [vmem:[#allocation6 + $0x5b8] sm:$0xff] }
 0x466   :  { %2923 = vmatprep.subr.mxu0 %v2746_v6  ;;  %2994 = vmatprep.subr.mxu1 %v2748_v53  ;;  %v2673_v6 = vld [vmem:[#allocation6 + $0x5a0] sm:$0xff]  ;;  %v2675_v53 = vld [vmem:[#allocation6 + $0x5b0] sm:$0xff] }
 0x467   :  { %2924 = vmatpush2.msra.mxu0 %v2745_v39  ;;  %2995 = vmatpush2.msra.mxu1 %v2747_v18  ;;  %v2666_v39 = vld [vmem:[#allocation6 + $0x568] sm:$0xff]  ;;  %v2668_v18 = vld [vmem:[#allocation6 + $0x578] sm:$0xff] }
 0x468   :  { %2925 = vmatprep.subr.mxu0 %v2738_v2  ;;  %2996 = vmatprep.subr.mxu1 %v2740_v7  ;;  %v2665_v2 = vld [vmem:[#allocation6 + $0x560] sm:$0xff]  ;;  %v2667_v7 = vld [vmem:[#allocation6 + $0x570] sm:$0xff] }
 0x469   :  { %2926 = vmatpush2.msra.mxu0 %v2737_v50  ;;  %2997 = vmatpush2.msra.mxu1 %v2739_v10  ;;  %v2658_v50 = vld [vmem:[#allocation6 + $0x528] sm:$0xff]  ;;  %v2660_v10 = vld [vmem:[#allocation6 + $0x538] sm:$0xff] }
 0x46a   :  { %2927 = vmatprep.subr.mxu0 %v2730_v4  ;;  %2998 = vmatprep.subr.mxu1 %v2732_v33  ;;  %v2657_v4 = vld [vmem:[#allocation6 + $0x520] sm:$0xff]  ;;  %v2659_v33 = vld [vmem:[#allocation6 + $0x530] sm:$0xff] }
 0x46b   :  { %2928 = vmatpush2.msra.mxu0 %v2729_v5  ;;  %2999 = vmatpush2.msra.mxu1 %v2731_v1  ;;  %v2650_v5 = vld [vmem:[#allocation6 + $0x4e8] sm:$0xff]  ;;  %v2652_v1 = vld [vmem:[#allocation6 + $0x4f8] sm:$0xff] }
 0x46c   :  { %2929 = vmatprep.subr.mxu0 %v2722_v16  ;;  %3000 = vmatprep.subr.mxu1 %v2724_v51  ;;  %v2649_v16 = vld [vmem:[#allocation6 + $0x4e0] sm:$0xff]  ;;  %v2651_v51 = vld [vmem:[#allocation6 + $0x4f0] sm:$0xff] }
 0x46d   :  { %2930 = vmatpush2.msra.mxu0 %v2721_v20  ;;  %3001 = vmatpush2.msra.mxu1 %v2723_v3  ;;  %v2642_v20 = vld [vmem:[#allocation6 + $0x4a8] sm:$0xff]  ;;  %v2644_v3 = vld [vmem:[#allocation6 + $0x4b8] sm:$0xff] }
 0x46e   :  { %2931 = vmatprep.subr.mxu0 %v2714_v58  ;;  %3002 = vmatprep.subr.mxu1 %v2716_v8  ;;  %v2641_v58 = vld [vmem:[#allocation6 + $0x4a0] sm:$0xff]  ;;  %v2643_v8 = vld [vmem:[#allocation6 + $0x4b0] sm:$0xff] }
 0x46f   :  { %2932 = vmatpush2.msra.mxu0 %v2713_v13  ;;  %3003 = vmatpush2.msra.mxu1 %v2715_v19  ;;  %v2634_v13 = vld [vmem:[#allocation6 + $0x468] sm:$0xff]  ;;  %v2636_v19 = vld [vmem:[#allocation6 + $0x478] sm:$0xff] }
 0x470   :  { %2933 = vmatprep.subr.mxu0 %v2706_v12  ;;  %3004 = vmatprep.subr.mxu1 %v2708_v17  ;;  %v2633_v12 = vld [vmem:[#allocation6 + $0x460] sm:$0xff]  ;;  %v2635_v17 = vld [vmem:[#allocation6 + $0x470] sm:$0xff] }
 0x471   :  { %2934 = vmatpush2.msra.mxu0 %v2705_v63  ;;  %3005 = vmatpush2.msra.mxu1 %v2707_v46  ;;  %v2626_v63 = vld [vmem:[#allocation6 + $0x428] sm:$0xff]  ;;  %v2628_v46 = vld [vmem:[#allocation6 + $0x438] sm:$0xff] }
 0x472   :  { %2935 = vmatprep.subr.mxu0 %v2698_v0  ;;  %3006 = vmatprep.subr.mxu1 %v2700_v43  ;;  %v2625_v0 = vld [vmem:[#allocation6 + $0x420] sm:$0xff]  ;;  %v2627_v43 = vld [vmem:[#allocation6 + $0x430] sm:$0xff] }
 0x473   :  { %2936 = vmatpush2.msra.mxu0 %v2697_v49  ;;  %3007 = vmatpush2.msra.mxu1 %v2699_v11  ;;  %v3222_v49 = vld [vmem:[#allocation6 + $0x3c8] sm:$0xff]  ;;  %v3224_v11 = vld [vmem:[#allocation6 + $0x3d8] sm:$0xff] }
 0x474   :  { %2937 = vmatprep.subr.mxu0 %v2690_v24  ;;  %3008 = vmatprep.subr.mxu1 %v2692_v57  ;;  %v3221_v24 = vld [vmem:[#allocation6 + $0x3c0] sm:$0xff]  ;;  %v3223_v57 = vld [vmem:[#allocation6 + $0x3d0] sm:$0xff] }
 0x475   :  { %2938 = vmatpush2.msra.mxu0 %v2689_v47  ;;  %3009 = vmatpush2.msra.mxu1 %v2691_v59  ;;  %v3214_v47 = vld [vmem:[#allocation6 + $0x388] sm:$0xff]  ;;  %v3216_v59 = vld [vmem:[#allocation6 + $0x398] sm:$0xff] }
 0x476   :  { %2939 = vmatprep.subr.mxu0 %v2682_v38  ;;  %3010 = vmatprep.subr.mxu1 %v2684_v34  ;;  %v3213_v38 = vld [vmem:[#allocation6 + $0x380] sm:$0xff]  ;;  %v3215_v34 = vld [vmem:[#allocation6 + $0x390] sm:$0xff] }
 0x477   :  { %2940 = vmatpush2.msra.mxu0 %v2681_v23  ;;  %3011 = vmatpush2.msra.mxu1 %v2683_v54  ;;  %v3206_v23 = vld [vmem:[#allocation6 + $0x348] sm:$0xff]  ;;  %v3208_v54 = vld [vmem:[#allocation6 + $0x358] sm:$0xff] }
 0x478   :  { %2941 = vmatprep.subr.mxu0 %v2674_v62  ;;  %3012 = vmatprep.subr.mxu1 %v2676_v22  ;;  %v3205_v62 = vld [vmem:[#allocation6 + $0x340] sm:$0xff]  ;;  %v3207_v22 = vld [vmem:[#allocation6 + $0x350] sm:$0xff] }
 0x479   :  { %2942 = vmatpush2.msra.mxu0 %v2673_v6  ;;  %3013 = vmatpush2.msra.mxu1 %v2675_v53  ;;  %v3200_v6 = vld [vmem:[#allocation6 + $0x318] sm:$0xff]  ;;  %v3197_v53 = vld [vmem:[#allocation6 + $0x300] sm:$0xff] }
 0x47a   :  { %2943 = vmatprep.subr.mxu0 %v2666_v39  ;;  %3014 = vmatprep.subr.mxu1 %v2668_v18  ;;  %v3199_v39 = vld [vmem:[#allocation6 + $0x310] sm:$0xff]  ;;  %v3190_v18 = vld [vmem:[#allocation6 + $0x2c8] sm:$0xff] }
 0x47b   :  { %2944 = vmatpush2.msra.mxu0 %v2665_v2  ;;  %3015 = vmatpush2.msra.mxu1 %v2667_v7  ;;  %v3192_v2 = vld [vmem:[#allocation6 + $0x2d8] sm:$0xff]  ;;  %v3189_v7 = vld [vmem:[#allocation6 + $0x2c0] sm:$0xff] }
 0x47c   :  { %2945 = vmatprep.subr.mxu0 %v2658_v50  ;;  %3016 = vmatprep.subr.mxu1 %v2660_v10  ;;  %v3191_v50 = vld [vmem:[#allocation6 + $0x2d0] sm:$0xff]  ;;  %v3182_v10 = vld [vmem:[#allocation6 + $0x288] sm:$0xff] }
 0x47d   :  { %2946 = vmatpush2.msra.mxu0 %v2657_v4  ;;  %3017 = vmatpush2.msra.mxu1 %v2659_v33  ;;  %v3184_v4 = vld [vmem:[#allocation6 + $0x298] sm:$0xff]  ;;  %v3181_v33 = vld [vmem:[#allocation6 + $0x280] sm:$0xff] }
 0x47e   :  { %2947 = vmatprep.subr.mxu0 %v2650_v5  ;;  %3018 = vmatprep.subr.mxu1 %v2652_v1  ;;  %v3183_v5 = vld [vmem:[#allocation6 + $0x290] sm:$0xff]  ;;  %v3174_v1 = vld [vmem:[#allocation6 + $0x248] sm:$0xff] }
 0x47f   :  { %2948 = vmatpush2.msra.mxu0 %v2649_v16  ;;  %3019 = vmatpush2.msra.mxu1 %v2651_v51  ;;  %v3176_v16 = vld [vmem:[#allocation6 + $0x258] sm:$0xff]  ;;  %v3173_v51 = vld [vmem:[#allocation6 + $0x240] sm:$0xff] }
 0x480   :  { %2949 = vmatprep.subr.mxu0 %v2642_v20  ;;  %3020 = vmatprep.subr.mxu1 %v2644_v3  ;;  %v3175_v20 = vld [vmem:[#allocation6 + $0x250] sm:$0xff]  ;;  %v3166_v3 = vld [vmem:[#allocation6 + $0x208] sm:$0xff] }
 0x481   :  { %2950 = vmatpush2.msra.mxu0 %v2641_v58  ;;  %3021 = vmatpush2.msra.mxu1 %v2643_v8  ;;  %v3168_v58 = vld [vmem:[#allocation6 + $0x218] sm:$0xff]  ;;  %v3165_v8 = vld [vmem:[#allocation6 + $0x200] sm:$0xff] }
 0x482   :  { %2951 = vmatprep.subr.mxu0 %v2634_v13  ;;  %3022 = vmatprep.subr.mxu1 %v2636_v19  ;;  %v3167_v13 = vld [vmem:[#allocation6 + $0x210] sm:$0xff]  ;;  %v3158_v19 = vld [vmem:[#allocation6 + $0x1c8] sm:$0xff] }
 0x483   :  { %2952 = vmatpush2.msra.mxu0 %v2633_v12  ;;  %3023 = vmatpush2.msra.mxu1 %v2635_v17  ;;  %v3160_v12 = vld [vmem:[#allocation6 + $0x1d8] sm:$0xff]  ;;  %v3157_v17 = vld [vmem:[#allocation6 + $0x1c0] sm:$0xff] }
 0x484   :  { %2953 = vmatprep.subr.mxu0 %v2626_v63  ;;  %3024 = vmatprep.subr.mxu1 %v2628_v46  ;;  %v3159_v63 = vld [vmem:[#allocation6 + $0x1d0] sm:$0xff]  ;;  %v3150_v46 = vld [vmem:[#allocation6 + $0x188] sm:$0xff] }
 0x485   :  { %2954 = vmatpush2.msra.mxu0 %v2625_v0  ;;  %3025 = vmatpush2.msra.mxu1 %v2627_v43  ;;  %v3152_v0 = vld [vmem:[#allocation6 + $0x198] sm:$0xff]  ;;  %v3149_v43 = vld [vmem:[#allocation6 + $0x180] sm:$0xff] }
 0x486   :  { %2956 = vmatmul.mubr.f32.vlgmr.msra.gmra.mxu0 %v6555_v26  ;;  %3027 = vmatmul.mubr.f32.vlgmr.msra.gmra.mxu1 %v6555_v26  ;;  %v3198_v26 = vld [vmem:[#allocation6 + $0x308] sm:$0xff] }
 0x487   :  { %3357 = vmatprep.subr.mxu0 %v3222_v49  ;;  %3428 = vmatprep.subr.mxu1 %v3224_v11  ;;  %v3151_v49 = vld [vmem:[#allocation6 + $0x190] sm:$0xff]  ;;  %v3142_v11 = vld [vmem:[#allocation6 + $0x148] sm:$0xff] }
 0x488   :  { %3358 = vmatpush1.msra.mxu0 %v3221_v24  ;;  %3429 = vmatpush1.msra.mxu1 %v3223_v57  ;;  %v3144_v24 = vld [vmem:[#allocation6 + $0x158] sm:$0xff]  ;;  %v3141_v57 = vld [vmem:[#allocation6 + $0x140] sm:$0xff] }
 0x489   :  { %3359 = vmatprep.subr.mxu0 %v3214_v47  ;;  %3430 = vmatprep.subr.mxu1 %v3216_v59  ;;  %v3143_v47 = vld [vmem:[#allocation6 + $0x150] sm:$0xff]  ;;  %v3134_v59 = vld [vmem:[#allocation6 + $0x108] sm:$0xff] }
 0x48a   :  { %3360 = vmatpush1.msra.mxu0 %v3213_v38  ;;  %3431 = vmatpush1.msra.mxu1 %v3215_v34  ;;  %v3136_v38 = vld [vmem:[#allocation6 + $0x118] sm:$0xff]  ;;  %v3133_v34 = vld [vmem:[#allocation6 + $0x100] sm:$0xff] }
 0x48b   :  { %3361 = vmatprep.subr.mxu0 %v3206_v23  ;;  %3432 = vmatprep.subr.mxu1 %v3208_v54  ;;  %v3135_v23 = vld [vmem:[#allocation6 + $0x110] sm:$0xff]  ;;  %v3126_v54 = vld [vmem:[#allocation6 + $0xc8] sm:$0xff] }
 0x48c   :  { %3362 = vmatpush1.msra.mxu0 %v3205_v62  ;;  %3433 = vmatpush1.msra.mxu1 %v3207_v22  ;;  %v3128_v62 = vld [vmem:[#allocation6 + $0xd8] sm:$0xff]  ;;  %v3125_v22 = vld [vmem:[#allocation6 + $0xc0] sm:$0xff] }
 0x48d   :  { %3363 = vmatprep.subr.mxu0 %v3198_v26  ;;  %3434 = vmatprep.subr.mxu1 %v3200_v6  ;;  %v3127_v26 = vld [vmem:[#allocation6 + $0xd0] sm:$0xff]  ;;  %v3118_v6 = vld [vmem:[#allocation6 + $0x88] sm:$0xff] }
 0x48e   :  { %3364 = vmatpush1.msra.mxu0 %v3197_v53  ;;  %3435 = vmatpush1.msra.mxu1 %v3199_v39  ;;  %v3120_v53 = vld [vmem:[#allocation6 + $0x98] sm:$0xff]  ;;  %v3117_v39 = vld [vmem:[#allocation6 + $0x80] sm:$0xff] }
 0x48f   :  { %3365 = vmatprep.subr.mxu0 %v3190_v18  ;;  %3436 = vmatprep.subr.mxu1 %v3192_v2  ;;  %v3119_v18 = vld [vmem:[#allocation6 + $0x90] sm:$0xff]  ;;  %v3110_v2 = vld [vmem:[#allocation6 + $0x48] sm:$0xff] }
 0x490   :  { %3366 = vmatpush1.msra.mxu0 %v3189_v7  ;;  %3437 = vmatpush1.msra.mxu1 %v3191_v50  ;;  %v3112_v7 = vld [vmem:[#allocation6 + $0x58] sm:$0xff]  ;;  %v3109_v50 = vld [vmem:[#allocation6 + $0x40] sm:$0xff] }
 0x491   :  { %3367 = vmatprep.subr.mxu0 %v3182_v10  ;;  %3438 = vmatprep.subr.mxu1 %v3184_v4  ;;  %v3111_v10 = vld [vmem:[#allocation6 + $0x50] sm:$0xff]  ;;  %v3102_v4 = vld [vmem:[#allocation6 + $0x8] sm:$0xff] }
 0x492   :  { %3368 = vmatpush1.msra.mxu0 %v3181_v33  ;;  %3439 = vmatpush1.msra.mxu1 %v3183_v5  ;;  %v3104_v33 = vld [vmem:[#allocation6 + $0x18] sm:$0xff]  ;;  %v3101_v5 = vld [vmem:[#allocation6] sm:$0xff] }
 0x493   :  { %3369 = vmatprep.subr.mxu0 %v3174_v1  ;;  %3440 = vmatprep.subr.mxu1 %v3176_v16  ;;  %v3103_v1 = vld [vmem:[#allocation6 + $0x10] sm:$0xff]  ;;  %v3350_v16 = vld [vmem:[#allocation6 + $0x7c8] sm:$0xff] }
 0x494   :  { %3370 = vmatpush1.msra.mxu0 %v3173_v51  ;;  %3441 = vmatpush1.msra.mxu1 %v3175_v20  ;;  %v3352_v51 = vld [vmem:[#allocation6 + $0x7d8] sm:$0xff]  ;;  %v3349_v20 = vld [vmem:[#allocation6 + $0x7c0] sm:$0xff] }
 0x495   :  { %3371 = vmatprep.subr.mxu0 %v3166_v3  ;;  %3442 = vmatprep.subr.mxu1 %v3168_v58  ;;  %v3351_v3 = vld [vmem:[#allocation6 + $0x7d0] sm:$0xff]  ;;  %v3342_v58 = vld [vmem:[#allocation6 + $0x788] sm:$0xff] }
 0x496   :  { %3372 = vmatpush1.msra.mxu0 %v3165_v8  ;;  %3443 = vmatpush1.msra.mxu1 %v3167_v13  ;;  %v3344_v8 = vld [vmem:[#allocation6 + $0x798] sm:$0xff]  ;;  %v3341_v13 = vld [vmem:[#allocation6 + $0x780] sm:$0xff] }
 0x497   :  { %3373 = vmatprep.subr.mxu0 %v3158_v19  ;;  %3444 = vmatprep.subr.mxu1 %v3160_v12  ;;  %v3343_v19 = vld [vmem:[#allocation6 + $0x790] sm:$0xff]  ;;  %v3334_v12 = vld [vmem:[#allocation6 + $0x748] sm:$0xff] }
 0x498   :  { %3374 = vmatpush1.msra.mxu0 %v3157_v17  ;;  %3445 = vmatpush1.msra.mxu1 %v3159_v63  ;;  %v3336_v17 = vld [vmem:[#allocation6 + $0x758] sm:$0xff]  ;;  %v3333_v63 = vld [vmem:[#allocation6 + $0x740] sm:$0xff] }
 0x499   :  { %3375 = vmatprep.subr.mxu0 %v3150_v46  ;;  %3446 = vmatprep.subr.mxu1 %v3152_v0  ;;  %v3335_v46 = vld [vmem:[#allocation6 + $0x750] sm:$0xff]  ;;  %v3326_v0 = vld [vmem:[#allocation6 + $0x708] sm:$0xff] }
 0x49a   :  { %3376 = vmatpush1.msra.mxu0 %v3149_v43  ;;  %3447 = vmatpush1.msra.mxu1 %v3151_v49  ;;  %v3328_v43 = vld [vmem:[#allocation6 + $0x718] sm:$0xff]  ;;  %v3325_v49 = vld [vmem:[#allocation6 + $0x700] sm:$0xff] }
 0x49b   :  { %3377 = vmatprep.subr.mxu0 %v3142_v11  ;;  %3448 = vmatprep.subr.mxu1 %v3144_v24  ;;  %v3327_v11 = vld [vmem:[#allocation6 + $0x710] sm:$0xff]  ;;  %v3318_v24 = vld [vmem:[#allocation6 + $0x6c8] sm:$0xff] }
 0x49c   :  { %3378 = vmatpush1.msra.mxu0 %v3141_v57  ;;  %3449 = vmatpush1.msra.mxu1 %v3143_v47  ;;  %v3320_v57 = vld [vmem:[#allocation6 + $0x6d8] sm:$0xff]  ;;  %v3317_v47 = vld [vmem:[#allocation6 + $0x6c0] sm:$0xff] }
 0x49d   :  { %3379 = vmatprep.subr.mxu0 %v3134_v59  ;;  %3450 = vmatprep.subr.mxu1 %v3136_v38  ;;  %v3319_v59 = vld [vmem:[#allocation6 + $0x6d0] sm:$0xff]  ;;  %v3310_v38 = vld [vmem:[#allocation6 + $0x688] sm:$0xff] }
 0x49e   :  { %3380 = vmatpush1.msra.mxu0 %v3133_v34  ;;  %3451 = vmatpush1.msra.mxu1 %v3135_v23  ;;  %v3312_v34 = vld [vmem:[#allocation6 + $0x698] sm:$0xff]  ;;  %v3309_v23 = vld [vmem:[#allocation6 + $0x680] sm:$0xff] }
 0x49f   :  { %3381 = vmatprep.subr.mxu0 %v3126_v54  ;;  %3452 = vmatprep.subr.mxu1 %v3128_v62  ;;  %v3311_v54 = vld [vmem:[#allocation6 + $0x690] sm:$0xff]  ;;  %v3302_v62 = vld [vmem:[#allocation6 + $0x648] sm:$0xff] }
 0x4a0   :  { %3382 = vmatpush1.msra.mxu0 %v3125_v22  ;;  %3453 = vmatpush1.msra.mxu1 %v3127_v26  ;;  %v3304_v22 = vld [vmem:[#allocation6 + $0x658] sm:$0xff]  ;;  %v3301_v26 = vld [vmem:[#allocation6 + $0x640] sm:$0xff] }
 0x4a1   :  { %3383 = vmatprep.subr.mxu0 %v3118_v6  ;;  %3454 = vmatprep.subr.mxu1 %v3120_v53  ;;  %v3303_v6 = vld [vmem:[#allocation6 + $0x650] sm:$0xff]  ;;  %v3294_v53 = vld [vmem:[#allocation6 + $0x608] sm:$0xff] }
 0x4a2   :  { %3384 = vmatpush1.msra.mxu0 %v3117_v39  ;;  %3455 = vmatpush1.msra.mxu1 %v3119_v18  ;;  %v3296_v39 = vld [vmem:[#allocation6 + $0x618] sm:$0xff]  ;;  %v3293_v18 = vld [vmem:[#allocation6 + $0x600] sm:$0xff] }
 0x4a3   :  { %3385 = vmatprep.subr.mxu0 %v3110_v2  ;;  %3456 = vmatprep.subr.mxu1 %v3112_v7  ;;  %v3295_v2 = vld [vmem:[#allocation6 + $0x610] sm:$0xff]  ;;  %v3286_v7 = vld [vmem:[#allocation6 + $0x5c8] sm:$0xff] }
 0x4a4   :  { %3386 = vmatpush1.msra.mxu0 %v3109_v50  ;;  %3457 = vmatpush1.msra.mxu1 %v3111_v10  ;;  %v3288_v50 = vld [vmem:[#allocation6 + $0x5d8] sm:$0xff]  ;;  %v3285_v10 = vld [vmem:[#allocation6 + $0x5c0] sm:$0xff] }
 0x4a5   :  { %3387 = vmatprep.subr.mxu0 %v3102_v4  ;;  %3458 = vmatprep.subr.mxu1 %v3104_v33  ;;  %v3287_v4 = vld [vmem:[#allocation6 + $0x5d0] sm:$0xff]  ;;  %v3278_v33 = vld [vmem:[#allocation6 + $0x588] sm:$0xff] }
 0x4a6   :  { %3388 = vmatpush1.msra.mxu0 %v3101_v5  ;;  %3459 = vmatpush1.msra.mxu1 %v3103_v1  ;;  %v3280_v5 = vld [vmem:[#allocation6 + $0x598] sm:$0xff]  ;;  %v3277_v1 = vld [vmem:[#allocation6 + $0x580] sm:$0xff] }
 0x4a7   :  { %3389 = vmatprep.subr.mxu0 %v3350_v16  ;;  %3460 = vmatprep.subr.mxu1 %v3352_v51  ;;  %v3279_v16 = vld [vmem:[#allocation6 + $0x590] sm:$0xff]  ;;  %v3270_v51 = vld [vmem:[#allocation6 + $0x548] sm:$0xff] }
 0x4a8   :  { %3390 = vmatpush2.msra.mxu0 %v3349_v20  ;;  %3461 = vmatpush2.msra.mxu1 %v3351_v3  ;;  %v3272_v20 = vld [vmem:[#allocation6 + $0x558] sm:$0xff]  ;;  %v3269_v3 = vld [vmem:[#allocation6 + $0x540] sm:$0xff] }
 0x4a9   :  { %3391 = vmatprep.subr.mxu0 %v3342_v58  ;;  %3462 = vmatprep.subr.mxu1 %v3344_v8  ;;  %v3271_v58 = vld [vmem:[#allocation6 + $0x550] sm:$0xff]  ;;  %v3262_v8 = vld [vmem:[#allocation6 + $0x508] sm:$0xff] }
 0x4aa   :  { %3392 = vmatpush2.msra.mxu0 %v3341_v13  ;;  %3463 = vmatpush2.msra.mxu1 %v3343_v19  ;;  %v3264_v13 = vld [vmem:[#allocation6 + $0x518] sm:$0xff]  ;;  %v3261_v19 = vld [vmem:[#allocation6 + $0x500] sm:$0xff] }
 0x4ab   :  { %3393 = vmatprep.subr.mxu0 %v3334_v12  ;;  %3464 = vmatprep.subr.mxu1 %v3336_v17  ;;  %v3263_v12 = vld [vmem:[#allocation6 + $0x510] sm:$0xff]  ;;  %v3254_v17 = vld [vmem:[#allocation6 + $0x4c8] sm:$0xff] }
 0x4ac   :  { %3394 = vmatpush2.msra.mxu0 %v3333_v63  ;;  %3465 = vmatpush2.msra.mxu1 %v3335_v46  ;;  %v3256_v63 = vld [vmem:[#allocation6 + $0x4d8] sm:$0xff]  ;;  %v3253_v46 = vld [vmem:[#allocation6 + $0x4c0] sm:$0xff] }
 0x4ad   :  { %3395 = vmatprep.subr.mxu0 %v3326_v0  ;;  %3466 = vmatprep.subr.mxu1 %v3328_v43  ;;  %v3255_v0 = vld [vmem:[#allocation6 + $0x4d0] sm:$0xff]  ;;  %v3246_v43 = vld [vmem:[#allocation6 + $0x488] sm:$0xff] }
 0x4ae   :  { %3396 = vmatpush2.msra.mxu0 %v3325_v49  ;;  %3467 = vmatpush2.msra.mxu1 %v3327_v11  ;;  %v3248_v49 = vld [vmem:[#allocation6 + $0x498] sm:$0xff]  ;;  %v3245_v11 = vld [vmem:[#allocation6 + $0x480] sm:$0xff] }
 0x4af   :  { %3397 = vmatprep.subr.mxu0 %v3318_v24  ;;  %3468 = vmatprep.subr.mxu1 %v3320_v57  ;;  %v3247_v24 = vld [vmem:[#allocation6 + $0x490] sm:$0xff]  ;;  %v3238_v57 = vld [vmem:[#allocation6 + $0x448] sm:$0xff] }
 0x4b0   :  { %3398 = vmatpush2.msra.mxu0 %v3317_v47  ;;  %3469 = vmatpush2.msra.mxu1 %v3319_v59  ;;  %v3240_v47 = vld [vmem:[#allocation6 + $0x458] sm:$0xff]  ;;  %v3237_v59 = vld [vmem:[#allocation6 + $0x440] sm:$0xff] }
 0x4b1   :  { %3399 = vmatprep.subr.mxu0 %v3310_v38  ;;  %3470 = vmatprep.subr.mxu1 %v3312_v34  ;;  %v3239_v38 = vld [vmem:[#allocation6 + $0x450] sm:$0xff]  ;;  %v3230_v34 = vld [vmem:[#allocation6 + $0x408] sm:$0xff] }
 0x4b2   :  { %3400 = vmatpush2.msra.mxu0 %v3309_v23  ;;  %3471 = vmatpush2.msra.mxu1 %v3311_v54  ;;  %v3232_v23 = vld [vmem:[#allocation6 + $0x418] sm:$0xff]  ;;  %v3229_v54 = vld [vmem:[#allocation6 + $0x400] sm:$0xff] }
 0x4b3   :  { %3401 = vmatprep.subr.mxu0 %v3302_v62  ;;  %3472 = vmatprep.subr.mxu1 %v3304_v22  ;;  %v3231_v62 = vld [vmem:[#allocation6 + $0x410] sm:$0xff]  ;;  %v3226_v22 = vld [vmem:[#allocation6 + $0x3e8] sm:$0xff] }
 0x4b4   :  { %3402 = vmatpush2.msra.mxu0 %v3301_v26  ;;  %3473 = vmatpush2.msra.mxu1 %v3303_v6  ;;  %v3228_v26 = vld [vmem:[#allocation6 + $0x3f8] sm:$0xff] }
 0x4b5   :  { %3403 = vmatprep.subr.mxu0 %v3294_v53  ;;  %3474 = vmatprep.subr.mxu1 %v3296_v39 }
 0x4b6   :  { %3404 = vmatpush2.msra.mxu0 %v3293_v18  ;;  %3475 = vmatpush2.msra.mxu1 %v3295_v2 }
 0x4b7   :  { %3405 = vmatprep.subr.mxu0 %v3286_v7  ;;  %3476 = vmatprep.subr.mxu1 %v3288_v50 }
 0x4b8   :  { %3406 = vmatpush2.msra.mxu0 %v3285_v10  ;;  %3477 = vmatpush2.msra.mxu1 %v3287_v4 }
 0x4b9   :  { %3407 = vmatprep.subr.mxu0 %v3278_v33  ;;  %3478 = vmatprep.subr.mxu1 %v3280_v5 }
 0x4ba   :  { %3408 = vmatpush2.msra.mxu0 %v3277_v1  ;;  %3479 = vmatpush2.msra.mxu1 %v3279_v16 }
 0x4bb   :  { %3409 = vmatprep.subr.mxu0 %v3270_v51  ;;  %3480 = vmatprep.subr.mxu1 %v3272_v20 }
 0x4bc   :  { %3410 = vmatpush2.msra.mxu0 %v3269_v3  ;;  %3481 = vmatpush2.msra.mxu1 %v3271_v58 }
 0x4bd   :  { %3411 = vmatprep.subr.mxu0 %v3262_v8  ;;  %3482 = vmatprep.subr.mxu1 %v3264_v13 }
 0x4be   :  { %3412 = vmatpush2.msra.mxu0 %v3261_v19  ;;  %3483 = vmatpush2.msra.mxu1 %v3263_v12 }
 0x4bf   :  { %3413 = vmatprep.subr.mxu0 %v3254_v17  ;;  %3484 = vmatprep.subr.mxu1 %v3256_v63  ;;  %v466_v63 = vadd.f32 %v6465_v9, %v6283_v21  ;;  %v579_v9 = vadd.f32 %v6467_v55, %v6296_v37 }
 0x4c0   :  { %3414 = vmatpush2.msra.mxu0 %v3253_v46  ;;  %3485 = vmatpush2.msra.mxu1 %v3255_v0  ;;  %v468_v0 = vadd.f32 %v6469_v56, %v6291_v32 }
 0x4c1   :  { %3415 = vmatprep.subr.mxu0 %v3246_v43  ;;  %3486 = vmatprep.subr.mxu1 %v3248_v49 }
 0x4c2   :  { %3416 = vmatpush2.msra.mxu0 %v3245_v11  ;;  %3487 = vmatpush2.msra.mxu1 %v3247_v24 }
 0x4c3   :  { %3417 = vmatprep.subr.mxu0 %v3238_v57  ;;  %3488 = vmatprep.subr.mxu1 %v3240_v47 }
 0x4c4   :  { %3418 = vmatpush2.msra.mxu0 %v3237_v59  ;;  %3489 = vmatpush2.msra.mxu1 %v3239_v38  ;;  %v581_v59 = vadd.f32 %v6471_v15, %v6299_v25 }
 0x4c5   :  { %3419 = vmatprep.subr.mxu0 %v3230_v34  ;;  %3490 = vmatprep.subr.mxu1 %v3232_v23 }
 0x4c6   :  { %3420 = vmatpush2.msra.mxu0 %v3229_v54  ;;  %3491 = vmatpush2.msra.mxu1 %v3231_v62 }
 0x4c7   :  { %3499 = vmatprep.subr.mxu0 %v3226_v22  ;;  %3570 = vmatprep.subr.mxu1 %v3228_v26 }
 0x505   :  { %v2815_v6 = vpop.f32.mrf.mxu0  ;;  %v2886_v7 = vpop.f32.mrf.mxu1 }
 0x506   :  { %v3037_v53 = vadd.f32 %v2815_v6, %v6374_v30  ;;  %v3039_v33 = vadd.f32 %v2886_v7, %v6377_v31 }
 0x507   :  { %v2817_v39 = vpop.f32.mrf.mxu0  ;;  %v2888_v10 = vpop.f32.mrf.mxu1 }
 0x508   :  { %v5654_v18 = vmul.f32 -1.442695, %v3037_v53  ;;  %v3038_v2 = vadd.f32 %v2817_v39, %v6380_v35  ;;  %v3040_v4 = vadd.f32 %v2888_v10, %v6383_v36 }
 0x50a   :  { %5791 = vpow2.f32 %v5654_v18  ;;  %v5655_v50 = vmul.f32 -1.442695, %v3038_v2  ;;  %v5656_v5 = vmul.f32 -1.442695, %v3040_v4  ;;  %v3225_v4 = vld [vmem:[#allocation6 + $0x3e0] sm:$0xff] }
 0x50c   :  { %5793 = vpow2.f32 %v5655_v50 }
 0x50d   :  { %5795 = vtanh.f32 %v3039_v33  ;;  %v3227_v33 = vld [vmem:[#allocation6 + $0x3f0] sm:$0xff] }
 0x50e   :  { %5797 = vpow2.f32 %v5656_v5  ;;  %v3218_v5 = vld [vmem:[#allocation6 + $0x3a8] sm:$0xff] }
 0x517   :  { %v5792_v1 = vpop.eup %5791 }
 0x518   :  { %v3052_v16 = vadd.f32 1.0, %v5792_v1  ;;  %v3220_v1 = vld [vmem:[#allocation6 + $0x3b8] sm:$0xff] }
 0x519   :  { %v5794_v51 = vpop.eup %5793 }
 0x51a   :  { %5799 = vrcp.f32 %v3052_v16  ;;  %v3058_v30 = vadd.f32 1.0, %v5794_v51  ;;  %v5796_v20 = vpop.eup %5795  ;;  %v3219_v16 = vld [vmem:[#allocation6 + $0x3b0] sm:$0xff]  ;;  %v3210_v51 = vld [vmem:[#allocation6 + $0x368] sm:$0xff] }
 0x51b   :  { %v5798_v35 = vpop.eup %5797 }
 0x51c   :  { %5801 = vrcp.f32 %v3058_v30  ;;  %v3065_v13 = vadd.f32 1.0, %v5798_v35  ;;  %v3212_v30 = vld [vmem:[#allocation6 + $0x378] sm:$0xff]  ;;  %v3211_v35 = vld [vmem:[#allocation6 + $0x370] sm:$0xff] }
 0x51e   :  { %5803 = vrcp.f32 %v3065_v13  ;;  %v3203_v13 = vld [vmem:[#allocation6 + $0x330] sm:$0xff] }
 0x527   :  { %v5800_v3 = vpop.eup %5799 }
 0x528   :  { %v3069_v58 = vmul.f32 %v5800_v3, %v5796_v20  ;;  %v3209_v20 = vld [vmem:[#allocation6 + $0x360] sm:$0xff]  ;;  %v3202_v3 = vld [vmem:[#allocation6 + $0x328] sm:$0xff] }
 0x529   :  { %v5802_v8 = vpop.eup %5801 }
 0x52a   :  { %v3068_v19 = vmul.f32 %v5802_v8, %v6552_v27  ;;  %v3201_v8 = vld [vmem:[#allocation6 + $0x320] sm:$0xff] }
 0x52b   :  { %v5804_v31 = vpop.eup %5803 }
 0x52c   :  { %v6579_v36 = vadd.f32 %v3069_v58, %v3068_v19  ;;  %v3204_v58 = vld [vmem:[#allocation6 + $0x338] sm:$0xff]  ;;  %v3194_v19 = vld [vmem:[#allocation6 + $0x2e8] sm:$0xff] }
 0x52e   :  { %5805 = vtanh.f32 %v6579_v36 }
 0x53b   :  { %v5806_v12 = vpop.eup %5805 }
 0x53c   :  { %v6582_v17 = vmul.f32 %v5806_v12, %v5804_v31  ;;  %v3196_v31 = vld [vmem:[#allocation6 + $0x2f8] sm:$0xff]  ;;  %v3193_v12 = vld [vmem:[#allocation6 + $0x2e0] sm:$0xff] }
 0x53e   :  { %3098 = vst [vmem:[#allocation8 + $0x18] sm:$0xff] %v6582_v17 }
 0x546   :  { %v2957_v46 = vpop.f32.mrf.mxu0  ;;  %v3028_v24 = vpop.f32.mrf.mxu1 }
 0x547   :  { %v3045_v43 = vadd.f32 %v2957_v46, %v466_v63  ;;  %v3047_v34 = vadd.f32 %v3028_v24, %v579_v9  ;;  %v3195_v63 = vld [vmem:[#allocation6 + $0x2f0] sm:$0xff]  ;;  %v3186_v46 = vld [vmem:[#allocation6 + $0x2a8] sm:$0xff]  ;;  %v3177_v24 = vld [vmem:[#allocation6 + $0x260] sm:$0xff] }
 0x548   :  { %v2959_v27 = vpop.f32.mrf.mxu0  ;;  %v3030_v47 = vpop.f32.mrf.mxu1  ;;  %v3171_v9 = vld [vmem:[#allocation6 + $0x230] sm:$0xff] }
 0x549   :  { %v5657_v49 = vmul.f32 -1.442695, %v3045_v43  ;;  %v3046_v11 = vadd.f32 %v2959_v27, %v468_v0  ;;  %v3048_v38 = vadd.f32 %v3030_v47, %v581_v59  ;;  %v3188_v0 = vld [vmem:[#allocation6 + $0x2b8] sm:$0xff]  ;;  %v3185_v43 = vld [vmem:[#allocation6 + $0x2a0] sm:$0xff]  ;;  %v3187_v27 = vld [vmem:[#allocation6 + $0x2b0] sm:$0xff] }
 0x54a   :  { %v3170_v47 = vld [vmem:[#allocation6 + $0x228] sm:$0xff]  ;;  %v3172_v59 = vld [vmem:[#allocation6 + $0x238] sm:$0xff] }
 0x54b   :  { %5807 = vpow2.f32 %v5657_v49  ;;  %v5658_v57 = vmul.f32 -1.442695, %v3046_v11  ;;  %v5659_v23 = vmul.f32 -1.442695, %v3048_v38  ;;  %v3178_v49 = vld [vmem:[#allocation6 + $0x268] sm:$0xff]  ;;  %v3180_v11 = vld [vmem:[#allocation6 + $0x278] sm:$0xff] }
 0x54c   :  { %v3169_v38 = vld [vmem:[#allocation6 + $0x220] sm:$0xff] }
 0x54d   :  { %5809 = vpow2.f32 %v5658_v57  ;;  %v3179_v57 = vld [vmem:[#allocation6 + $0x270] sm:$0xff] }
 0x54e   :  { %5811 = vtanh.f32 %v3047_v34  ;;  %v3162_v34 = vld [vmem:[#allocation6 + $0x1e8] sm:$0xff] }
 0x54f   :  { %5813 = vpow2.f32 %v5659_v23  ;;  %v3164_v23 = vld [vmem:[#allocation6 + $0x1f8] sm:$0xff] }
 0x558   :  { %v5808_v54 = vpop.eup %5807 }
 0x559   :  { %v3076_v56 = vadd.f32 1.0, %v5808_v54  ;;  %v3161_v54 = vld [vmem:[#allocation6 + $0x1e0] sm:$0xff] }
 0x55a   :  { %v5810_v62 = vpop.eup %5809 }
 0x55b   :  { %5815 = vrcp.f32 %v3076_v56  ;;  %v3082_v22 = vadd.f32 1.0, %v5810_v62  ;;  %v5812_v26 = vpop.eup %5811  ;;  %v3163_v56 = vld [vmem:[#allocation6 + $0x1f0] sm:$0xff]  ;;  %v3154_v62 = vld [vmem:[#allocation6 + $0x1a8] sm:$0xff] }
 0x55c   :  { %v5814_v6 = vpop.eup %5813 }
 0x55d   :  { %5817 = vrcp.f32 %v3082_v22  ;;  %v3089_v15 = vadd.f32 1.0, %v5814_v6  ;;  %v3156_v22 = vld [vmem:[#allocation6 + $0x1b8] sm:$0xff]  ;;  %v3155_v6 = vld [vmem:[#allocation6 + $0x1b0] sm:$0xff] }
 0x55f   :  { %5819 = vrcp.f32 %v3089_v15  ;;  %v3147_v15 = vld [vmem:[#allocation6 + $0x170] sm:$0xff] }
 0x568   :  { %v5816_v53 = vpop.eup %5815 }
 0x569   :  { %v3093_v39 = vmul.f32 %v5816_v53, %v5812_v26  ;;  %v3153_v26 = vld [vmem:[#allocation6 + $0x1a0] sm:$0xff]  ;;  %v3146_v53 = vld [vmem:[#allocation6 + $0x168] sm:$0xff] }
 0x56a   :  { %v5818_v18 = vpop.eup %5817 }
 0x56b   :  { %v3092_v2 = vmul.f32 %v5818_v18, %v6567_v42  ;;  %v3217_v42 = vld [vmem:[#allocation6 + $0x3a0] sm:$0xff] }
 0x56c   :  { %v5820_v55 = vpop.eup %5819  ;;  %v3145_v18 = vld [vmem:[#allocation6 + $0x160] sm:$0xff] }
 0x56d   :  { %v6594_v7 = vadd.f32 %v3093_v39, %v3092_v2  ;;  %v3148_v39 = vld [vmem:[#allocation6 + $0x178] sm:$0xff]  ;;  %v3138_v2 = vld [vmem:[#allocation6 + $0x128] sm:$0xff] }
 0x56f   :  { %5821 = vtanh.f32 %v6594_v7 }
 0x57c   :  { %v5822_v50 = vpop.eup %5821 }
 0x57d   :  { %v3096_v10 = vmul.f32 %v5822_v50, %v5820_v55  ;;  %v3140_v55 = vld [vmem:[#allocation6 + $0x138] sm:$0xff]  ;;  %v3137_v50 = vld [vmem:[#allocation6 + $0x120] sm:$0xff] }
 0x57f   :  { %3100 = vst [vmem:[#allocation9 + $0x20] sm:$0xff] %v3096_v10  ;;  %3421 = vmatprep.mubr.f32.mxu0 %v3096_v10  ;;  %3492 = vmatprep.mubr.f32.mxu1 %v3096_v10 }
 0x580   :  { %3422 = vmatmul.mubr.f32.vlgmr.msra.gmra.mxu0 %v6582_v17  ;;  %3493 = vmatmul.mubr.f32.vlgmr.msra.gmra.mxu1 %v6582_v17 }
 0x581   :  { %3500 = vmatpush1.msra.mxu0 %v3225_v4  ;;  %3571 = vmatpush1.msra.mxu1 %v3227_v33  ;;  %v3130_v4 = vld [vmem:[#allocation6 + $0xe8] sm:$0xff]  ;;  %v3132_v33 = vld [vmem:[#allocation6 + $0xf8] sm:$0xff] }
 0x582   :  { %3501 = vmatprep.subr.mxu0 %v3218_v5  ;;  %3563 = vmatprep.mubr.f32.mxu0 %v3096_v10  ;;  %v3129_v5 = vld [vmem:[#allocation6 + $0xe0] sm:$0xff] }
 0x583   :  { %3572 = vmatprep.subr.mxu1 %v3220_v1  ;;  %3634 = vmatprep.mubr.f32.mxu1 %v3096_v10  ;;  %v3139_v10 = vld [vmem:[#allocation6 + $0x130] sm:$0xff] }
 0x584   :  { %3502 = vmatpush1.msra.mxu0 %v3217_v42  ;;  %3573 = vmatpush1.msra.mxu1 %v3219_v16  ;;  %v3131_v1 = vld [vmem:[#allocation6 + $0xf0] sm:$0xff]  ;;  %v3122_v42 = vld [vmem:[#allocation6 + $0xa8] sm:$0xff]  ;;  %v3124_v16 = vld [vmem:[#allocation6 + $0xb8] sm:$0xff] }
 0x585   :  { %3503 = vmatprep.subr.mxu0 %v3210_v51  ;;  %3574 = vmatprep.subr.mxu1 %v3212_v30  ;;  %v3121_v51 = vld [vmem:[#allocation6 + $0xa0] sm:$0xff]  ;;  %v3123_v30 = vld [vmem:[#allocation6 + $0xb0] sm:$0xff] }
 0x586   :  { %3504 = vmatpush1.msra.mxu0 %v3209_v20  ;;  %3575 = vmatpush1.msra.mxu1 %v3211_v35  ;;  %v3114_v20 = vld [vmem:[#allocation6 + $0x68] sm:$0xff]  ;;  %v3116_v35 = vld [vmem:[#allocation6 + $0x78] sm:$0xff] }
 0x587   :  { %3505 = vmatprep.subr.mxu0 %v3202_v3  ;;  %3576 = vmatprep.subr.mxu1 %v3204_v58  ;;  %v3113_v3 = vld [vmem:[#allocation6 + $0x60] sm:$0xff]  ;;  %v3115_v58 = vld [vmem:[#allocation6 + $0x70] sm:$0xff] }
 0x588   :  { %3506 = vmatpush1.msra.mxu0 %v3201_v8  ;;  %3577 = vmatpush1.msra.mxu1 %v3203_v13  ;;  %v3106_v8 = vld [vmem:[#allocation6 + $0x28] sm:$0xff]  ;;  %v3108_v13 = vld [vmem:[#allocation6 + $0x38] sm:$0xff] }
 0x589   :  { %3507 = vmatprep.subr.mxu0 %v3194_v19  ;;  %3578 = vmatprep.subr.mxu1 %v3196_v31  ;;  %v3105_v19 = vld [vmem:[#allocation6 + $0x20] sm:$0xff]  ;;  %v3107_v31 = vld [vmem:[#allocation6 + $0x30] sm:$0xff] }
 0x58a   :  { %3508 = vmatpush1.msra.mxu0 %v3193_v12  ;;  %3579 = vmatpush1.msra.mxu1 %v3195_v63  ;;  %v3354_v12 = vld [vmem:[#allocation6 + $0x7e8] sm:$0xff]  ;;  %v3356_v63 = vld [vmem:[#allocation6 + $0x7f8] sm:$0xff] }
 0x58b   :  { %3509 = vmatprep.subr.mxu0 %v3186_v46  ;;  %3580 = vmatprep.subr.mxu1 %v3188_v0  ;;  %v3353_v46 = vld [vmem:[#allocation6 + $0x7e0] sm:$0xff]  ;;  %v3355_v0 = vld [vmem:[#allocation6 + $0x7f0] sm:$0xff] }
 0x58c   :  { %3510 = vmatpush1.msra.mxu0 %v3185_v43  ;;  %3581 = vmatpush1.msra.mxu1 %v3187_v27  ;;  %v3346_v43 = vld [vmem:[#allocation6 + $0x7a8] sm:$0xff]  ;;  %v3348_v27 = vld [vmem:[#allocation6 + $0x7b8] sm:$0xff] }
 0x58d   :  { %3511 = vmatprep.subr.mxu0 %v3178_v49  ;;  %3582 = vmatprep.subr.mxu1 %v3180_v11  ;;  %v3345_v49 = vld [vmem:[#allocation6 + $0x7a0] sm:$0xff]  ;;  %v3347_v11 = vld [vmem:[#allocation6 + $0x7b0] sm:$0xff] }
 0x58e   :  { %3512 = vmatpush1.msra.mxu0 %v3177_v24  ;;  %3583 = vmatpush1.msra.mxu1 %v3179_v57  ;;  %v3338_v24 = vld [vmem:[#allocation6 + $0x768] sm:$0xff]  ;;  %v3340_v57 = vld [vmem:[#allocation6 + $0x778] sm:$0xff] }
 0x58f   :  { %3513 = vmatprep.subr.mxu0 %v3170_v47  ;;  %3584 = vmatprep.subr.mxu1 %v3172_v59  ;;  %v3337_v47 = vld [vmem:[#allocation6 + $0x760] sm:$0xff]  ;;  %v3339_v59 = vld [vmem:[#allocation6 + $0x770] sm:$0xff] }
 0x590   :  { %3514 = vmatpush1.msra.mxu0 %v3169_v38  ;;  %3585 = vmatpush1.msra.mxu1 %v3171_v9  ;;  %v3330_v38 = vld [vmem:[#allocation6 + $0x728] sm:$0xff]  ;;  %v3332_v9 = vld [vmem:[#allocation6 + $0x738] sm:$0xff] }
 0x591   :  { %3515 = vmatprep.subr.mxu0 %v3162_v34  ;;  %3586 = vmatprep.subr.mxu1 %v3164_v23  ;;  %v3329_v34 = vld [vmem:[#allocation6 + $0x720] sm:$0xff]  ;;  %v3331_v23 = vld [vmem:[#allocation6 + $0x730] sm:$0xff] }
 0x592   :  { %3516 = vmatpush1.msra.mxu0 %v3161_v54  ;;  %3587 = vmatpush1.msra.mxu1 %v3163_v56  ;;  %v3322_v54 = vld [vmem:[#allocation6 + $0x6e8] sm:$0xff]  ;;  %v3324_v56 = vld [vmem:[#allocation6 + $0x6f8] sm:$0xff] }
 0x593   :  { %3517 = vmatprep.subr.mxu0 %v3154_v62  ;;  %3588 = vmatprep.subr.mxu1 %v3156_v22  ;;  %v3321_v62 = vld [vmem:[#allocation6 + $0x6e0] sm:$0xff]  ;;  %v3323_v22 = vld [vmem:[#allocation6 + $0x6f0] sm:$0xff] }
 0x594   :  { %3518 = vmatpush1.msra.mxu0 %v3153_v26  ;;  %3589 = vmatpush1.msra.mxu1 %v3155_v6  ;;  %v3314_v26 = vld [vmem:[#allocation6 + $0x6a8] sm:$0xff]  ;;  %v3316_v6 = vld [vmem:[#allocation6 + $0x6b8] sm:$0xff] }
 0x595   :  { %3519 = vmatprep.subr.mxu0 %v3146_v53  ;;  %3590 = vmatprep.subr.mxu1 %v3148_v39  ;;  %v3313_v53 = vld [vmem:[#allocation6 + $0x6a0] sm:$0xff]  ;;  %v3315_v39 = vld [vmem:[#allocation6 + $0x6b0] sm:$0xff] }
 0x596   :  { %3520 = vmatpush1.msra.mxu0 %v3145_v18  ;;  %3591 = vmatpush1.msra.mxu1 %v3147_v15  ;;  %v3306_v18 = vld [vmem:[#allocation6 + $0x668] sm:$0xff]  ;;  %v3308_v15 = vld [vmem:[#allocation6 + $0x678] sm:$0xff] }
 0x597   :  { %3521 = vmatprep.subr.mxu0 %v3138_v2  ;;  %3592 = vmatprep.subr.mxu1 %v3140_v55  ;;  %v3305_v2 = vld [vmem:[#allocation6 + $0x660] sm:$0xff]  ;;  %v3307_v55 = vld [vmem:[#allocation6 + $0x670] sm:$0xff] }
 0x598   :  { %3522 = vmatpush1.msra.mxu0 %v3137_v50  ;;  %3593 = vmatpush1.msra.mxu1 %v3139_v10  ;;  %v3298_v50 = vld [vmem:[#allocation6 + $0x628] sm:$0xff]  ;;  %v3300_v10 = vld [vmem:[#allocation6 + $0x638] sm:$0xff] }
 0x599   :  { %3523 = vmatprep.subr.mxu0 %v3130_v4  ;;  %3594 = vmatprep.subr.mxu1 %v3132_v33  ;;  %v3297_v4 = vld [vmem:[#allocation6 + $0x620] sm:$0xff]  ;;  %v3299_v33 = vld [vmem:[#allocation6 + $0x630] sm:$0xff] }
 0x59a   :  { %3524 = vmatpush1.msra.mxu0 %v3129_v5  ;;  %3595 = vmatpush1.msra.mxu1 %v3131_v1  ;;  %v3290_v5 = vld [vmem:[#allocation6 + $0x5e8] sm:$0xff]  ;;  %v3292_v1 = vld [vmem:[#allocation6 + $0x5f8] sm:$0xff] }
 0x59b   :  { %3525 = vmatprep.subr.mxu0 %v3122_v42  ;;  %3596 = vmatprep.subr.mxu1 %v3124_v16  ;;  %v3289_v42 = vld [vmem:[#allocation6 + $0x5e0] sm:$0xff]  ;;  %v3291_v16 = vld [vmem:[#allocation6 + $0x5f0] sm:$0xff] }
 0x59c   :  { %3526 = vmatpush1.msra.mxu0 %v3121_v51  ;;  %3597 = vmatpush1.msra.mxu1 %v3123_v30  ;;  %v3282_v51 = vld [vmem:[#allocation6 + $0x5a8] sm:$0xff]  ;;  %v3284_v30 = vld [vmem:[#allocation6 + $0x5b8] sm:$0xff] }
 0x59d   :  { %3527 = vmatprep.subr.mxu0 %v3114_v20  ;;  %3598 = vmatprep.subr.mxu1 %v3116_v35  ;;  %v3281_v20 = vld [vmem:[#allocation6 + $0x5a0] sm:$0xff]  ;;  %v3283_v35 = vld [vmem:[#allocation6 + $0x5b0] sm:$0xff] }
 0x59e   :  { %3528 = vmatpush1.msra.mxu0 %v3113_v3  ;;  %3599 = vmatpush1.msra.mxu1 %v3115_v58  ;;  %v3274_v3 = vld [vmem:[#allocation6 + $0x568] sm:$0xff]  ;;  %v3276_v58 = vld [vmem:[#allocation6 + $0x578] sm:$0xff] }
 0x59f   :  { %3529 = vmatprep.subr.mxu0 %v3106_v8  ;;  %3600 = vmatprep.subr.mxu1 %v3108_v13  ;;  %v3273_v8 = vld [vmem:[#allocation6 + $0x560] sm:$0xff]  ;;  %v3275_v13 = vld [vmem:[#allocation6 + $0x570] sm:$0xff] }
 0x5a0   :  { %3530 = vmatpush1.msra.mxu0 %v3105_v19  ;;  %3601 = vmatpush1.msra.mxu1 %v3107_v31  ;;  %v3266_v19 = vld [vmem:[#allocation6 + $0x528] sm:$0xff]  ;;  %v3268_v31 = vld [vmem:[#allocation6 + $0x538] sm:$0xff] }
 0x5a1   :  { %3531 = vmatprep.subr.mxu0 %v3354_v12  ;;  %3602 = vmatprep.subr.mxu1 %v3356_v63  ;;  %v3265_v12 = vld [vmem:[#allocation6 + $0x520] sm:$0xff]  ;;  %v3267_v63 = vld [vmem:[#allocation6 + $0x530] sm:$0xff] }
 0x5a2   :  { %3532 = vmatpush2.msra.mxu0 %v3353_v46  ;;  %3603 = vmatpush2.msra.mxu1 %v3355_v0  ;;  %v3258_v46 = vld [vmem:[#allocation6 + $0x4e8] sm:$0xff]  ;;  %v3260_v0 = vld [vmem:[#allocation6 + $0x4f8] sm:$0xff] }
 0x5a3   :  { %3533 = vmatprep.subr.mxu0 %v3346_v43  ;;  %3604 = vmatprep.subr.mxu1 %v3348_v27  ;;  %v3257_v43 = vld [vmem:[#allocation6 + $0x4e0] sm:$0xff]  ;;  %v3259_v27 = vld [vmem:[#allocation6 + $0x4f0] sm:$0xff] }
 0x5a4   :  { %3534 = vmatpush2.msra.mxu0 %v3345_v49  ;;  %3605 = vmatpush2.msra.mxu1 %v3347_v11  ;;  %v3250_v49 = vld [vmem:[#allocation6 + $0x4a8] sm:$0xff]  ;;  %v3252_v11 = vld [vmem:[#allocation6 + $0x4b8] sm:$0xff] }
 0x5a5   :  { %3535 = vmatprep.subr.mxu0 %v3338_v24  ;;  %3606 = vmatprep.subr.mxu1 %v3340_v57  ;;  %v3249_v24 = vld [vmem:[#allocation6 + $0x4a0] sm:$0xff]  ;;  %v3251_v57 = vld [vmem:[#allocation6 + $0x4b0] sm:$0xff] }
 0x5a6   :  { %3536 = vmatpush2.msra.mxu0 %v3337_v47  ;;  %3607 = vmatpush2.msra.mxu1 %v3339_v59  ;;  %v3242_v47 = vld [vmem:[#allocation6 + $0x468] sm:$0xff]  ;;  %v3244_v59 = vld [vmem:[#allocation6 + $0x478] sm:$0xff] }
 0x5a7   :  { %3537 = vmatprep.subr.mxu0 %v3330_v38  ;;  %3608 = vmatprep.subr.mxu1 %v3332_v9  ;;  %v3241_v38 = vld [vmem:[#allocation6 + $0x460] sm:$0xff]  ;;  %v3243_v9 = vld [vmem:[#allocation6 + $0x470] sm:$0xff] }
 0x5a8   :  { %3538 = vmatpush2.msra.mxu0 %v3329_v34  ;;  %3609 = vmatpush2.msra.mxu1 %v3331_v23  ;;  %v3234_v34 = vld [vmem:[#allocation6 + $0x428] sm:$0xff]  ;;  %v3236_v23 = vld [vmem:[#allocation6 + $0x438] sm:$0xff] }
 0x5a9   :  { %3539 = vmatprep.subr.mxu0 %v3322_v54  ;;  %3610 = vmatprep.subr.mxu1 %v3324_v56  ;;  %v3233_v54 = vld [vmem:[#allocation6 + $0x420] sm:$0xff]  ;;  %v3235_v56 = vld [vmem:[#allocation6 + $0x430] sm:$0xff] }
 0x5aa   :  { %3540 = vmatpush2.msra.mxu0 %v3321_v62  ;;  %3611 = vmatpush2.msra.mxu1 %v3323_v22  ;;  %v3830_v62 = vld [vmem:[#allocation6 + $0x3c8] sm:$0xff]  ;;  %v3832_v22 = vld [vmem:[#allocation6 + $0x3d8] sm:$0xff] }
 0x5ab   :  { %3541 = vmatprep.subr.mxu0 %v3314_v26  ;;  %3612 = vmatprep.subr.mxu1 %v3316_v6  ;;  %v3829_v26 = vld [vmem:[#allocation6 + $0x3c0] sm:$0xff]  ;;  %v3831_v6 = vld [vmem:[#allocation6 + $0x3d0] sm:$0xff] }
 0x5ac   :  { %3542 = vmatpush2.msra.mxu0 %v3313_v53  ;;  %3613 = vmatpush2.msra.mxu1 %v3315_v39  ;;  %v3822_v53 = vld [vmem:[#allocation6 + $0x388] sm:$0xff]  ;;  %v3824_v39 = vld [vmem:[#allocation6 + $0x398] sm:$0xff] }
 0x5ad   :  { %3543 = vmatprep.subr.mxu0 %v3306_v18  ;;  %3614 = vmatprep.subr.mxu1 %v3308_v15  ;;  %v3821_v18 = vld [vmem:[#allocation6 + $0x380] sm:$0xff]  ;;  %v3823_v15 = vld [vmem:[#allocation6 + $0x390] sm:$0xff] }
 0x5ae   :  { %3544 = vmatpush2.msra.mxu0 %v3305_v2  ;;  %3615 = vmatpush2.msra.mxu1 %v3307_v55  ;;  %v3814_v2 = vld [vmem:[#allocation6 + $0x348] sm:$0xff]  ;;  %v3816_v55 = vld [vmem:[#allocation6 + $0x358] sm:$0xff] }
 0x5af   :  { %3545 = vmatprep.subr.mxu0 %v3298_v50  ;;  %3616 = vmatprep.subr.mxu1 %v3300_v10  ;;  %v3813_v50 = vld [vmem:[#allocation6 + $0x340] sm:$0xff]  ;;  %v3815_v10 = vld [vmem:[#allocation6 + $0x350] sm:$0xff] }
 0x5b0   :  { %3546 = vmatpush2.msra.mxu0 %v3297_v4  ;;  %3617 = vmatpush2.msra.mxu1 %v3299_v33  ;;  %v3808_v4 = vld [vmem:[#allocation6 + $0x318] sm:$0xff]  ;;  %v3805_v33 = vld [vmem:[#allocation6 + $0x300] sm:$0xff] }
 0x5b1   :  { %3547 = vmatprep.subr.mxu0 %v3290_v5  ;;  %3618 = vmatprep.subr.mxu1 %v3292_v1  ;;  %v3807_v5 = vld [vmem:[#allocation6 + $0x310] sm:$0xff]  ;;  %v3798_v1 = vld [vmem:[#allocation6 + $0x2c8] sm:$0xff] }
 0x5b2   :  { %3548 = vmatpush2.msra.mxu0 %v3289_v42  ;;  %3619 = vmatpush2.msra.mxu1 %v3291_v16  ;;  %v3800_v42 = vld [vmem:[#allocation6 + $0x2d8] sm:$0xff]  ;;  %v3797_v16 = vld [vmem:[#allocation6 + $0x2c0] sm:$0xff] }
 0x5b3   :  { %3549 = vmatprep.subr.mxu0 %v3282_v51  ;;  %3620 = vmatprep.subr.mxu1 %v3284_v30  ;;  %v3799_v51 = vld [vmem:[#allocation6 + $0x2d0] sm:$0xff]  ;;  %v3790_v30 = vld [vmem:[#allocation6 + $0x288] sm:$0xff] }
 0x5b4   :  { %3550 = vmatpush2.msra.mxu0 %v3281_v20  ;;  %3621 = vmatpush2.msra.mxu1 %v3283_v35  ;;  %v3792_v20 = vld [vmem:[#allocation6 + $0x298] sm:$0xff]  ;;  %v3789_v35 = vld [vmem:[#allocation6 + $0x280] sm:$0xff] }
 0x5b5   :  { %3551 = vmatprep.subr.mxu0 %v3274_v3  ;;  %3622 = vmatprep.subr.mxu1 %v3276_v58  ;;  %v3791_v3 = vld [vmem:[#allocation6 + $0x290] sm:$0xff]  ;;  %v3782_v58 = vld [vmem:[#allocation6 + $0x248] sm:$0xff] }
 0x5b6   :  { %3552 = vmatpush2.msra.mxu0 %v3273_v8  ;;  %3623 = vmatpush2.msra.mxu1 %v3275_v13  ;;  %v3784_v8 = vld [vmem:[#allocation6 + $0x258] sm:$0xff]  ;;  %v3781_v13 = vld [vmem:[#allocation6 + $0x240] sm:$0xff] }
 0x5b7   :  { %3553 = vmatprep.subr.mxu0 %v3266_v19  ;;  %3624 = vmatprep.subr.mxu1 %v3268_v31  ;;  %v3783_v19 = vld [vmem:[#allocation6 + $0x250] sm:$0xff]  ;;  %v3774_v31 = vld [vmem:[#allocation6 + $0x208] sm:$0xff] }
 0x5b8   :  { %3554 = vmatpush2.msra.mxu0 %v3265_v12  ;;  %3625 = vmatpush2.msra.mxu1 %v3267_v63  ;;  %v3776_v12 = vld [vmem:[#allocation6 + $0x218] sm:$0xff]  ;;  %v3773_v63 = vld [vmem:[#allocation6 + $0x200] sm:$0xff] }
 0x5b9   :  { %3555 = vmatprep.subr.mxu0 %v3258_v46  ;;  %3626 = vmatprep.subr.mxu1 %v3260_v0  ;;  %v3775_v46 = vld [vmem:[#allocation6 + $0x210] sm:$0xff]  ;;  %v3766_v0 = vld [vmem:[#allocation6 + $0x1c8] sm:$0xff] }
 0x5ba   :  { %3556 = vmatpush2.msra.mxu0 %v3257_v43  ;;  %3627 = vmatpush2.msra.mxu1 %v3259_v27  ;;  %v3768_v43 = vld [vmem:[#allocation6 + $0x1d8] sm:$0xff]  ;;  %v3765_v27 = vld [vmem:[#allocation6 + $0x1c0] sm:$0xff] }
 0x5bb   :  { %3557 = vmatprep.subr.mxu0 %v3250_v49  ;;  %3628 = vmatprep.subr.mxu1 %v3252_v11  ;;  %v3767_v49 = vld [vmem:[#allocation6 + $0x1d0] sm:$0xff]  ;;  %v3758_v11 = vld [vmem:[#allocation6 + $0x188] sm:$0xff] }
 0x5bc   :  { %3558 = vmatpush2.msra.mxu0 %v3249_v24  ;;  %3629 = vmatpush2.msra.mxu1 %v3251_v57  ;;  %v3760_v24 = vld [vmem:[#allocation6 + $0x198] sm:$0xff]  ;;  %v3757_v57 = vld [vmem:[#allocation6 + $0x180] sm:$0xff] }
 0x5bd   :  { %3559 = vmatprep.subr.mxu0 %v3242_v47  ;;  %3630 = vmatprep.subr.mxu1 %v3244_v59  ;;  %v3759_v47 = vld [vmem:[#allocation6 + $0x190] sm:$0xff]  ;;  %v3750_v59 = vld [vmem:[#allocation6 + $0x148] sm:$0xff] }
 0x5be   :  { %3560 = vmatpush2.msra.mxu0 %v3241_v38  ;;  %3631 = vmatpush2.msra.mxu1 %v3243_v9  ;;  %v3752_v38 = vld [vmem:[#allocation6 + $0x158] sm:$0xff]  ;;  %v3749_v9 = vld [vmem:[#allocation6 + $0x140] sm:$0xff] }
 0x5bf   :  { %3561 = vmatprep.subr.mxu0 %v3234_v34  ;;  %3632 = vmatprep.subr.mxu1 %v3236_v23  ;;  %v3751_v34 = vld [vmem:[#allocation6 + $0x150] sm:$0xff]  ;;  %v3742_v23 = vld [vmem:[#allocation6 + $0x108] sm:$0xff] }
 0x5c0   :  { %3562 = vmatpush2.msra.mxu0 %v3233_v54  ;;  %3633 = vmatpush2.msra.mxu1 %v3235_v56  ;;  %v3744_v54 = vld [vmem:[#allocation6 + $0x118] sm:$0xff]  ;;  %v3741_v56 = vld [vmem:[#allocation6 + $0x100] sm:$0xff] }
 0x5c1   :  { %3564 = vmatmul.mubr.f32.vlgmr.msra.gmra.mxu0 %v6582_v17  ;;  %3635 = vmatmul.mubr.f32.vlgmr.msra.gmra.mxu1 %v6582_v17  ;;  %v3806_v17 = vld [vmem:[#allocation6 + $0x308] sm:$0xff] }
 0x5c2   :  { %3965 = vmatprep.subr.mxu0 %v3830_v62  ;;  %4036 = vmatprep.subr.mxu1 %v3832_v22  ;;  %v3743_v62 = vld [vmem:[#allocation6 + $0x110] sm:$0xff]  ;;  %v3734_v22 = vld [vmem:[#allocation6 + $0xc8] sm:$0xff] }
 0x5c3   :  { %3966 = vmatpush1.msra.mxu0 %v3829_v26  ;;  %4037 = vmatpush1.msra.mxu1 %v3831_v6  ;;  %v3736_v26 = vld [vmem:[#allocation6 + $0xd8] sm:$0xff]  ;;  %v3733_v6 = vld [vmem:[#allocation6 + $0xc0] sm:$0xff] }
 0x5c4   :  { %3967 = vmatprep.subr.mxu0 %v3822_v53  ;;  %4038 = vmatprep.subr.mxu1 %v3824_v39  ;;  %v3735_v53 = vld [vmem:[#allocation6 + $0xd0] sm:$0xff]  ;;  %v3726_v39 = vld [vmem:[#allocation6 + $0x88] sm:$0xff] }
 0x5c5   :  { %3968 = vmatpush1.msra.mxu0 %v3821_v18  ;;  %4039 = vmatpush1.msra.mxu1 %v3823_v15  ;;  %v3728_v18 = vld [vmem:[#allocation6 + $0x98] sm:$0xff]  ;;  %v3725_v15 = vld [vmem:[#allocation6 + $0x80] sm:$0xff] }
 0x5c6   :  { %3969 = vmatprep.subr.mxu0 %v3814_v2  ;;  %4040 = vmatprep.subr.mxu1 %v3816_v55  ;;  %v3727_v2 = vld [vmem:[#allocation6 + $0x90] sm:$0xff]  ;;  %v3718_v55 = vld [vmem:[#allocation6 + $0x48] sm:$0xff] }
 0x5c7   :  { %3970 = vmatpush1.msra.mxu0 %v3813_v50  ;;  %4041 = vmatpush1.msra.mxu1 %v3815_v10  ;;  %v3720_v50 = vld [vmem:[#allocation6 + $0x58] sm:$0xff]  ;;  %v3717_v10 = vld [vmem:[#allocation6 + $0x40] sm:$0xff] }
 0x5c8   :  { %3971 = vmatprep.subr.mxu0 %v3806_v17  ;;  %4042 = vmatprep.subr.mxu1 %v3808_v4  ;;  %v3719_v17 = vld [vmem:[#allocation6 + $0x50] sm:$0xff]  ;;  %v3710_v4 = vld [vmem:[#allocation6 + $0x8] sm:$0xff] }
 0x5c9   :  { %3972 = vmatpush1.msra.mxu0 %v3805_v33  ;;  %4043 = vmatpush1.msra.mxu1 %v3807_v5  ;;  %v3712_v33 = vld [vmem:[#allocation6 + $0x18] sm:$0xff]  ;;  %v3709_v5 = vld [vmem:[#allocation6] sm:$0xff] }
 0x5ca   :  { %3973 = vmatprep.subr.mxu0 %v3798_v1  ;;  %4044 = vmatprep.subr.mxu1 %v3800_v42  ;;  %v3711_v1 = vld [vmem:[#allocation6 + $0x10] sm:$0xff]  ;;  %v3958_v42 = vld [vmem:[#allocation6 + $0x7c8] sm:$0xff] }
 0x5cb   :  { %3974 = vmatpush1.msra.mxu0 %v3797_v16  ;;  %4045 = vmatpush1.msra.mxu1 %v3799_v51  ;;  %v3960_v16 = vld [vmem:[#allocation6 + $0x7d8] sm:$0xff]  ;;  %v3957_v51 = vld [vmem:[#allocation6 + $0x7c0] sm:$0xff] }
 0x5cc   :  { %3975 = vmatprep.subr.mxu0 %v3790_v30  ;;  %4046 = vmatprep.subr.mxu1 %v3792_v20  ;;  %v3959_v30 = vld [vmem:[#allocation6 + $0x7d0] sm:$0xff]  ;;  %v3950_v20 = vld [vmem:[#allocation6 + $0x788] sm:$0xff] }
 0x5cd   :  { %3976 = vmatpush1.msra.mxu0 %v3789_v35  ;;  %4047 = vmatpush1.msra.mxu1 %v3791_v3  ;;  %v3952_v35 = vld [vmem:[#allocation6 + $0x798] sm:$0xff]  ;;  %v3949_v3 = vld [vmem:[#allocation6 + $0x780] sm:$0xff] }
 0x5ce   :  { %3977 = vmatprep.subr.mxu0 %v3782_v58  ;;  %4048 = vmatprep.subr.mxu1 %v3784_v8  ;;  %v3951_v58 = vld [vmem:[#allocation6 + $0x790] sm:$0xff]  ;;  %v3942_v8 = vld [vmem:[#allocation6 + $0x748] sm:$0xff] }
 0x5cf   :  { %3978 = vmatpush1.msra.mxu0 %v3781_v13  ;;  %4049 = vmatpush1.msra.mxu1 %v3783_v19  ;;  %v3944_v13 = vld [vmem:[#allocation6 + $0x758] sm:$0xff]  ;;  %v3941_v19 = vld [vmem:[#allocation6 + $0x740] sm:$0xff] }
 0x5d0   :  { %3979 = vmatprep.subr.mxu0 %v3774_v31  ;;  %4050 = vmatprep.subr.mxu1 %v3776_v12  ;;  %v3943_v31 = vld [vmem:[#allocation6 + $0x750] sm:$0xff]  ;;  %v3934_v12 = vld [vmem:[#allocation6 + $0x708] sm:$0xff] }
 0x5d1   :  { %3980 = vmatpush1.msra.mxu0 %v3773_v63  ;;  %4051 = vmatpush1.msra.mxu1 %v3775_v46  ;;  %v3936_v63 = vld [vmem:[#allocation6 + $0x718] sm:$0xff]  ;;  %v3933_v46 = vld [vmem:[#allocation6 + $0x700] sm:$0xff] }
 0x5d2   :  { %3981 = vmatprep.subr.mxu0 %v3766_v0  ;;  %4052 = vmatprep.subr.mxu1 %v3768_v43  ;;  %v3935_v0 = vld [vmem:[#allocation6 + $0x710] sm:$0xff]  ;;  %v3926_v43 = vld [vmem:[#allocation6 + $0x6c8] sm:$0xff] }
 0x5d3   :  { %3982 = vmatpush1.msra.mxu0 %v3765_v27  ;;  %4053 = vmatpush1.msra.mxu1 %v3767_v49  ;;  %v3928_v27 = vld [vmem:[#allocation6 + $0x6d8] sm:$0xff]  ;;  %v3925_v49 = vld [vmem:[#allocation6 + $0x6c0] sm:$0xff] }
 0x5d4   :  { %3983 = vmatprep.subr.mxu0 %v3758_v11  ;;  %4054 = vmatprep.subr.mxu1 %v3760_v24  ;;  %v3927_v11 = vld [vmem:[#allocation6 + $0x6d0] sm:$0xff]  ;;  %v3918_v24 = vld [vmem:[#allocation6 + $0x688] sm:$0xff] }
 0x5d5   :  { %3984 = vmatpush1.msra.mxu0 %v3757_v57  ;;  %4055 = vmatpush1.msra.mxu1 %v3759_v47  ;;  %v3920_v57 = vld [vmem:[#allocation6 + $0x698] sm:$0xff]  ;;  %v3917_v47 = vld [vmem:[#allocation6 + $0x680] sm:$0xff] }
 0x5d6   :  { %3985 = vmatprep.subr.mxu0 %v3750_v59  ;;  %4056 = vmatprep.subr.mxu1 %v3752_v38  ;;  %v3919_v59 = vld [vmem:[#allocation6 + $0x690] sm:$0xff]  ;;  %v3910_v38 = vld [vmem:[#allocation6 + $0x648] sm:$0xff] }
 0x5d7   :  { %3986 = vmatpush1.msra.mxu0 %v3749_v9  ;;  %4057 = vmatpush1.msra.mxu1 %v3751_v34  ;;  %v3912_v9 = vld [vmem:[#allocation6 + $0x658] sm:$0xff]  ;;  %v3909_v34 = vld [vmem:[#allocation6 + $0x640] sm:$0xff] }
 0x5d8   :  { %3987 = vmatprep.subr.mxu0 %v3742_v23  ;;  %4058 = vmatprep.subr.mxu1 %v3744_v54  ;;  %v3911_v23 = vld [vmem:[#allocation6 + $0x650] sm:$0xff]  ;;  %v3902_v54 = vld [vmem:[#allocation6 + $0x608] sm:$0xff] }
 0x5d9   :  { %3988 = vmatpush1.msra.mxu0 %v3741_v56  ;;  %4059 = vmatpush1.msra.mxu1 %v3743_v62  ;;  %v3904_v56 = vld [vmem:[#allocation6 + $0x618] sm:$0xff]  ;;  %v3901_v62 = vld [vmem:[#allocation6 + $0x600] sm:$0xff] }
 0x5da   :  { %3989 = vmatprep.subr.mxu0 %v3734_v22  ;;  %4060 = vmatprep.subr.mxu1 %v3736_v26  ;;  %v3903_v22 = vld [vmem:[#allocation6 + $0x610] sm:$0xff]  ;;  %v3894_v26 = vld [vmem:[#allocation6 + $0x5c8] sm:$0xff] }
 0x5db   :  { %3990 = vmatpush1.msra.mxu0 %v3733_v6  ;;  %4061 = vmatpush1.msra.mxu1 %v3735_v53  ;;  %v3896_v6 = vld [vmem:[#allocation6 + $0x5d8] sm:$0xff]  ;;  %v3893_v53 = vld [vmem:[#allocation6 + $0x5c0] sm:$0xff] }
 0x5dc   :  { %3991 = vmatprep.subr.mxu0 %v3726_v39  ;;  %4062 = vmatprep.subr.mxu1 %v3728_v18  ;;  %v3895_v39 = vld [vmem:[#allocation6 + $0x5d0] sm:$0xff]  ;;  %v3886_v18 = vld [vmem:[#allocation6 + $0x588] sm:$0xff] }
 0x5dd   :  { %3992 = vmatpush1.msra.mxu0 %v3725_v15  ;;  %4063 = vmatpush1.msra.mxu1 %v3727_v2  ;;  %v3888_v15 = vld [vmem:[#allocation6 + $0x598] sm:$0xff]  ;;  %v3885_v2 = vld [vmem:[#allocation6 + $0x580] sm:$0xff] }
 0x5de   :  { %3993 = vmatprep.subr.mxu0 %v3718_v55  ;;  %4064 = vmatprep.subr.mxu1 %v3720_v50  ;;  %v3887_v55 = vld [vmem:[#allocation6 + $0x590] sm:$0xff]  ;;  %v3878_v50 = vld [vmem:[#allocation6 + $0x548] sm:$0xff] }
 0x5df   :  { %3994 = vmatpush1.msra.mxu0 %v3717_v10  ;;  %4065 = vmatpush1.msra.mxu1 %v3719_v17  ;;  %v3880_v10 = vld [vmem:[#allocation6 + $0x558] sm:$0xff]  ;;  %v3877_v17 = vld [vmem:[#allocation6 + $0x540] sm:$0xff] }
 0x5e0   :  { %3995 = vmatprep.subr.mxu0 %v3710_v4  ;;  %4066 = vmatprep.subr.mxu1 %v3712_v33  ;;  %v3879_v4 = vld [vmem:[#allocation6 + $0x550] sm:$0xff]  ;;  %v3870_v33 = vld [vmem:[#allocation6 + $0x508] sm:$0xff] }
 0x5e1   :  { %3996 = vmatpush1.msra.mxu0 %v3709_v5  ;;  %4067 = vmatpush1.msra.mxu1 %v3711_v1  ;;  %v3872_v5 = vld [vmem:[#allocation6 + $0x518] sm:$0xff]  ;;  %v3869_v1 = vld [vmem:[#allocation6 + $0x500] sm:$0xff] }
 0x5e2   :  { %3997 = vmatprep.subr.mxu0 %v3958_v42  ;;  %4068 = vmatprep.subr.mxu1 %v3960_v16  ;;  %v3871_v42 = vld [vmem:[#allocation6 + $0x510] sm:$0xff]  ;;  %v3862_v16 = vld [vmem:[#allocation6 + $0x4c8] sm:$0xff] }
 0x5e3   :  { %3998 = vmatpush2.msra.mxu0 %v3957_v51  ;;  %4069 = vmatpush2.msra.mxu1 %v3959_v30  ;;  %v3864_v51 = vld [vmem:[#allocation6 + $0x4d8] sm:$0xff]  ;;  %v3861_v30 = vld [vmem:[#allocation6 + $0x4c0] sm:$0xff] }
 0x5e4   :  { %3999 = vmatprep.subr.mxu0 %v3950_v20  ;;  %4070 = vmatprep.subr.mxu1 %v3952_v35  ;;  %v3863_v20 = vld [vmem:[#allocation6 + $0x4d0] sm:$0xff]  ;;  %v3854_v35 = vld [vmem:[#allocation6 + $0x488] sm:$0xff] }
 0x5e5   :  { %4000 = vmatpush2.msra.mxu0 %v3949_v3  ;;  %4071 = vmatpush2.msra.mxu1 %v3951_v58  ;;  %v3856_v3 = vld [vmem:[#allocation6 + $0x498] sm:$0xff]  ;;  %v3853_v58 = vld [vmem:[#allocation6 + $0x480] sm:$0xff] }
 0x5e6   :  { %4001 = vmatprep.subr.mxu0 %v3942_v8  ;;  %4072 = vmatprep.subr.mxu1 %v3944_v13  ;;  %v3855_v8 = vld [vmem:[#allocation6 + $0x490] sm:$0xff]  ;;  %v3846_v13 = vld [vmem:[#allocation6 + $0x448] sm:$0xff] }
 0x5e7   :  { %4002 = vmatpush2.msra.mxu0 %v3941_v19  ;;  %4073 = vmatpush2.msra.mxu1 %v3943_v31  ;;  %v3848_v19 = vld [vmem:[#allocation6 + $0x458] sm:$0xff]  ;;  %v3845_v31 = vld [vmem:[#allocation6 + $0x440] sm:$0xff] }
 0x5e8   :  { %4003 = vmatprep.subr.mxu0 %v3934_v12  ;;  %4074 = vmatprep.subr.mxu1 %v3936_v63  ;;  %v3847_v12 = vld [vmem:[#allocation6 + $0x450] sm:$0xff]  ;;  %v3838_v63 = vld [vmem:[#allocation6 + $0x408] sm:$0xff] }
 0x5e9   :  { %4004 = vmatpush2.msra.mxu0 %v3933_v46  ;;  %4075 = vmatpush2.msra.mxu1 %v3935_v0  ;;  %v3840_v46 = vld [vmem:[#allocation6 + $0x418] sm:$0xff]  ;;  %v3837_v0 = vld [vmem:[#allocation6 + $0x400] sm:$0xff] }
 0x5ea   :  { %4005 = vmatprep.subr.mxu0 %v3926_v43  ;;  %4076 = vmatprep.subr.mxu1 %v3928_v27  ;;  %v3839_v43 = vld [vmem:[#allocation6 + $0x410] sm:$0xff]  ;;  %v3834_v27 = vld [vmem:[#allocation6 + $0x3e8] sm:$0xff] }
 0x5eb   :  { %4006 = vmatpush2.msra.mxu0 %v3925_v49  ;;  %4077 = vmatpush2.msra.mxu1 %v3927_v11  ;;  %v3836_v49 = vld [vmem:[#allocation6 + $0x3f8] sm:$0xff] }
 0x5ec   :  { %4007 = vmatprep.subr.mxu0 %v3918_v24  ;;  %4078 = vmatprep.subr.mxu1 %v3920_v57 }
 0x5ed   :  { %4008 = vmatpush2.msra.mxu0 %v3917_v47  ;;  %4079 = vmatpush2.msra.mxu1 %v3919_v59 }
 0x5ee   :  { %4009 = vmatprep.subr.mxu0 %v3910_v38  ;;  %4080 = vmatprep.subr.mxu1 %v3912_v9 }
 0x5ef   :  { %4010 = vmatpush2.msra.mxu0 %v3909_v34  ;;  %4081 = vmatpush2.msra.mxu1 %v3911_v23 }
 0x5f0   :  { %4011 = vmatprep.subr.mxu0 %v3902_v54  ;;  %4082 = vmatprep.subr.mxu1 %v3904_v56 }
 0x5f1   :  { %4012 = vmatpush2.msra.mxu0 %v3901_v62  ;;  %4083 = vmatpush2.msra.mxu1 %v3903_v22 }
 0x5f2   :  { %4013 = vmatprep.subr.mxu0 %v3894_v26  ;;  %4084 = vmatprep.subr.mxu1 %v3896_v6 }
 0x5f3   :  { %4014 = vmatpush2.msra.mxu0 %v3893_v53  ;;  %4085 = vmatpush2.msra.mxu1 %v3895_v39 }
 0x5f4   :  { %4015 = vmatprep.subr.mxu0 %v3886_v18  ;;  %4086 = vmatprep.subr.mxu1 %v3888_v15 }
 0x5f5   :  { %4016 = vmatpush2.msra.mxu0 %v3885_v2  ;;  %4087 = vmatpush2.msra.mxu1 %v3887_v55 }
 0x5f6   :  { %4017 = vmatprep.subr.mxu0 %v3878_v50  ;;  %4088 = vmatprep.subr.mxu1 %v3880_v10  ;;  %v460_v10 = vadd.f32 %v6457_v28, %v6283_v21  ;;  %v573_v28 = vadd.f32 %v6459_v29, %v6296_v37 }
 0x5f7   :  { %4018 = vmatpush2.msra.mxu0 %v3877_v17  ;;  %4089 = vmatpush2.msra.mxu1 %v3879_v4  ;;  %v462_v4 = vadd.f32 %v6461_v60, %v6291_v32 }
 0x5f8   :  { %4019 = vmatprep.subr.mxu0 %v3870_v33  ;;  %4090 = vmatprep.subr.mxu1 %v3872_v5 }
 0x5f9   :  { %4020 = vmatpush2.msra.mxu0 %v3869_v1  ;;  %4091 = vmatpush2.msra.mxu1 %v3871_v42 }
 0x5fa   :  { %4021 = vmatprep.subr.mxu0 %v3862_v16  ;;  %4092 = vmatprep.subr.mxu1 %v3864_v51 }
 0x5fb   :  { %4022 = vmatpush2.msra.mxu0 %v3861_v30  ;;  %4093 = vmatpush2.msra.mxu1 %v3863_v20  ;;  %v575_v30 = vadd.f32 %v6463_v61, %v6299_v25 }
 0x5fc   :  { %4023 = vmatprep.subr.mxu0 %v3854_v35  ;;  %4094 = vmatprep.subr.mxu1 %v3856_v3 }
 0x5fd   :  { %4024 = vmatpush2.msra.mxu0 %v3853_v58  ;;  %4095 = vmatpush2.msra.mxu1 %v3855_v8 }
 0x5fe   :  { %4025 = vmatprep.subr.mxu0 %v3846_v13  ;;  %4096 = vmatprep.subr.mxu1 %v3848_v19 }
 0x5ff   :  { %4026 = vmatpush2.msra.mxu0 %v3845_v31  ;;  %4097 = vmatpush2.msra.mxu1 %v3847_v12 }
 0x600   :  { %4027 = vmatprep.subr.mxu0 %v3838_v63  ;;  %4098 = vmatprep.subr.mxu1 %v3840_v46 }
 0x601   :  { %4028 = vmatpush2.msra.mxu0 %v3837_v0  ;;  %4099 = vmatpush2.msra.mxu1 %v3839_v43 }
 0x602   :  { %4107 = vmatprep.subr.mxu0 %v3834_v27  ;;  %4178 = vmatprep.subr.mxu1 %v3836_v49 }
 0x640   :  { %v3423_v11 = vpop.f32.mrf.mxu0  ;;  %v3494_v38 = vpop.f32.mrf.mxu1 }
 0x641   :  { %v3645_v24 = vadd.f32 %v3423_v11, %v6386_v40  ;;  %v3647_v54 = vadd.f32 %v3494_v38, %v6389_v41  ;;  %v3833_v11 = vld [vmem:[#allocation6 + $0x3e0] sm:$0xff]  ;;  %v3818_v38 = vld [vmem:[#allocation6 + $0x368] sm:$0xff] }
 0x642   :  { %v3425_v57 = vpop.f32.mrf.mxu0  ;;  %v3496_v34 = vpop.f32.mrf.mxu1 }
 0x643   :  { %v5660_v47 = vmul.f32 -1.442695, %v3645_v24  ;;  %v3646_v59 = vadd.f32 %v3425_v57, %v6392_v44  ;;  %v3648_v23 = vadd.f32 %v3496_v34, %v6395_v45  ;;  %v3835_v24 = vld [vmem:[#allocation6 + $0x3f0] sm:$0xff]  ;;  %v3826_v57 = vld [vmem:[#allocation6 + $0x3a8] sm:$0xff]  ;;  %v3817_v34 = vld [vmem:[#allocation6 + $0x360] sm:$0xff] }
 0x645   :  { %5823 = vpow2.f32 %v5660_v47  ;;  %v5661_v9 = vmul.f32 -1.442695, %v3646_v59  ;;  %v5662_v56 = vmul.f32 -1.442695, %v3648_v23  ;;  %v3828_v47 = vld [vmem:[#allocation6 + $0x3b8] sm:$0xff]  ;;  %v3827_v59 = vld [vmem:[#allocation6 + $0x3b0] sm:$0xff] }
 0x646   :  { %v3819_v23 = vld [vmem:[#allocation6 + $0x370] sm:$0xff] }
 0x647   :  { %5825 = vpow2.f32 %v5661_v9  ;;  %v3820_v9 = vld [vmem:[#allocation6 + $0x378] sm:$0xff] }
 0x648   :  { %5827 = vtanh.f32 %v3647_v54  ;;  %v3810_v54 = vld [vmem:[#allocation6 + $0x328] sm:$0xff] }
 0x649   :  { %5829 = vpow2.f32 %v5662_v56  ;;  %v3812_v56 = vld [vmem:[#allocation6 + $0x338] sm:$0xff] }
 0x652   :  { %v5824_v62 = vpop.eup %5823 }
 0x653   :  { %v3660_v22 = vadd.f32 1.0, %v5824_v62  ;;  %v3809_v62 = vld [vmem:[#allocation6 + $0x320] sm:$0xff] }
 0x654   :  { %v5826_v26 = vpop.eup %5825 }
 0x655   :  { %5831 = vrcp.f32 %v3660_v22  ;;  %v3666_v40 = vadd.f32 1.0, %v5826_v26  ;;  %v5828_v6 = vpop.eup %5827  ;;  %v3811_v22 = vld [vmem:[#allocation6 + $0x330] sm:$0xff]  ;;  %v3802_v26 = vld [vmem:[#allocation6 + $0x2e8] sm:$0xff] }
 0x656   :  { %v5830_v44 = vpop.eup %5829 }
 0x657   :  { %5833 = vrcp.f32 %v3666_v40  ;;  %v3673_v15 = vadd.f32 1.0, %v5830_v44  ;;  %v3804_v40 = vld [vmem:[#allocation6 + $0x2f8] sm:$0xff]  ;;  %v3803_v44 = vld [vmem:[#allocation6 + $0x2f0] sm:$0xff] }
 0x659   :  { %5835 = vrcp.f32 %v3673_v15  ;;  %v3795_v15 = vld [vmem:[#allocation6 + $0x2b0] sm:$0xff] }
 0x662   :  { %v5832_v53 = vpop.eup %5831 }
 0x663   :  { %v3677_v39 = vmul.f32 %v5832_v53, %v5828_v6  ;;  %v3801_v6 = vld [vmem:[#allocation6 + $0x2e0] sm:$0xff]  ;;  %v3794_v53 = vld [vmem:[#allocation6 + $0x2a8] sm:$0xff] }
 0x664   :  { %v5834_v18 = vpop.eup %5833 }
 0x665   :  { %v3676_v2 = vmul.f32 %v5834_v18, %v6579_v36  ;;  %v3793_v18 = vld [vmem:[#allocation6 + $0x2a0] sm:$0xff] }
 0x666   :  { %v5836_v41 = vpop.eup %5835 }
 0x667   :  { %v6606_v45 = vadd.f32 %v3677_v39, %v3676_v2  ;;  %v3796_v39 = vld [vmem:[#allocation6 + $0x2b8] sm:$0xff]  ;;  %v3786_v2 = vld [vmem:[#allocation6 + $0x268] sm:$0xff] }
 0x669   :  { %5837 = vtanh.f32 %v6606_v45 }
 0x676   :  { %v5838_v55 = vpop.eup %5837 }
 0x677   :  { %v6609_v50 = vmul.f32 %v5838_v55, %v5836_v41  ;;  %v3788_v41 = vld [vmem:[#allocation6 + $0x278] sm:$0xff]  ;;  %v3785_v55 = vld [vmem:[#allocation6 + $0x260] sm:$0xff] }
 0x679   :  { %3706 = vst [vmem:[#allocation8 + $0x20] sm:$0xff] %v6609_v50 }
 0x681   :  { %v3565_v17 = vpop.f32.mrf.mxu0  ;;  %v3636_v42 = vpop.f32.mrf.mxu1 }
 0x682   :  { %v3653_v33 = vadd.f32 %v3565_v17, %v460_v10  ;;  %v3655_v35 = vadd.f32 %v3636_v42, %v573_v28  ;;  %v3787_v10 = vld [vmem:[#allocation6 + $0x270] sm:$0xff]  ;;  %v3778_v17 = vld [vmem:[#allocation6 + $0x228] sm:$0xff]  ;;  %v3769_v42 = vld [vmem:[#allocation6 + $0x1e0] sm:$0xff] }
 0x683   :  { %v3567_v36 = vpop.f32.mrf.mxu0  ;;  %v3638_v51 = vpop.f32.mrf.mxu1  ;;  %v3763_v28 = vld [vmem:[#allocation6 + $0x1b0] sm:$0xff] }
 0x684   :  { %v5663_v5 = vmul.f32 -1.442695, %v3653_v33  ;;  %v3654_v1 = vadd.f32 %v3567_v36, %v462_v4  ;;  %v3656_v20 = vadd.f32 %v3638_v51, %v575_v30  ;;  %v3780_v4 = vld [vmem:[#allocation6 + $0x238] sm:$0xff]  ;;  %v3777_v33 = vld [vmem:[#allocation6 + $0x220] sm:$0xff]  ;;  %v3779_v36 = vld [vmem:[#allocation6 + $0x230] sm:$0xff] }
 0x685   :  { %v3762_v51 = vld [vmem:[#allocation6 + $0x1a8] sm:$0xff]  ;;  %v3764_v30 = vld [vmem:[#allocation6 + $0x1b8] sm:$0xff] }
 0x686   :  { %5839 = vpow2.f32 %v5663_v5  ;;  %v5664_v16 = vmul.f32 -1.442695, %v3654_v1  ;;  %v5665_v3 = vmul.f32 -1.442695, %v3656_v20  ;;  %v3770_v5 = vld [vmem:[#allocation6 + $0x1e8] sm:$0xff]  ;;  %v3772_v1 = vld [vmem:[#allocation6 + $0x1f8] sm:$0xff] }
 0x687   :  { %v3761_v20 = vld [vmem:[#allocation6 + $0x1a0] sm:$0xff] }
 0x688   :  { %5841 = vpow2.f32 %v5664_v16  ;;  %v3771_v16 = vld [vmem:[#allocation6 + $0x1f0] sm:$0xff] }
 0x689   :  { %5843 = vtanh.f32 %v3655_v35  ;;  %v3754_v35 = vld [vmem:[#allocation6 + $0x168] sm:$0xff] }
 0x68a   :  { %5845 = vpow2.f32 %v5665_v3  ;;  %v3756_v3 = vld [vmem:[#allocation6 + $0x178] sm:$0xff] }
 0x693   :  { %v5840_v58 = vpop.eup %5839 }
 0x694   :  { %v3684_v60 = vadd.f32 1.0, %v5840_v58  ;;  %v3753_v58 = vld [vmem:[#allocation6 + $0x160] sm:$0xff] }
 0x695   :  { %v5842_v8 = vpop.eup %5841 }
 0x696   :  { %5847 = vrcp.f32 %v3684_v60  ;;  %v3690_v13 = vadd.f32 1.0, %v5842_v8  ;;  %v5844_v19 = vpop.eup %5843  ;;  %v3755_v60 = vld [vmem:[#allocation6 + $0x170] sm:$0xff]  ;;  %v3746_v8 = vld [vmem:[#allocation6 + $0x128] sm:$0xff] }
 0x697   :  { %v5846_v31 = vpop.eup %5845 }
 0x698   :  { %5849 = vrcp.f32 %v3690_v13  ;;  %v3697_v61 = vadd.f32 1.0, %v5846_v31  ;;  %v3748_v13 = vld [vmem:[#allocation6 + $0x138] sm:$0xff]  ;;  %v3747_v31 = vld [vmem:[#allocation6 + $0x130] sm:$0xff] }
 0x69a   :  { %5851 = vrcp.f32 %v3697_v61  ;;  %v3739_v61 = vld [vmem:[#allocation6 + $0xf0] sm:$0xff] }
 0x6a3   :  { %v5848_v12 = vpop.eup %5847 }
 0x6a4   :  { %v3701_v63 = vmul.f32 %v5848_v12, %v5844_v19  ;;  %v3745_v19 = vld [vmem:[#allocation6 + $0x120] sm:$0xff]  ;;  %v3738_v12 = vld [vmem:[#allocation6 + $0xe8] sm:$0xff] }
 0x6a5   :  { %v5850_v46 = vpop.eup %5849 }
 0x6a6   :  { %v3700_v0 = vmul.f32 %v5850_v46, %v6594_v7  ;;  %v3825_v7 = vld [vmem:[#allocation6 + $0x3a0] sm:$0xff] }
 0x6a7   :  { %v5852_v29 = vpop.eup %5851  ;;  %v3737_v46 = vld [vmem:[#allocation6 + $0xe0] sm:$0xff] }
 0x6a8   :  { %v6621_v43 = vadd.f32 %v3701_v63, %v3700_v0  ;;  %v3740_v63 = vld [vmem:[#allocation6 + $0xf8] sm:$0xff]  ;;  %v3730_v0 = vld [vmem:[#allocation6 + $0xa8] sm:$0xff] }
 0x6aa   :  { %5853 = vtanh.f32 %v6621_v43 }
 0x6b7   :  { %v5854_v27 = vpop.eup %5853 }
 0x6b8   :  { %v3704_v49 = vmul.f32 %v5854_v27, %v5852_v29  ;;  %v3732_v29 = vld [vmem:[#allocation6 + $0xb8] sm:$0xff]  ;;  %v3729_v27 = vld [vmem:[#allocation6 + $0xa0] sm:$0xff] }
 0x6ba   :  { %3708 = vst [vmem:[#allocation9 + $0x18] sm:$0xff] %v3704_v49  ;;  %4029 = vmatprep.mubr.f32.mxu0 %v3704_v49  ;;  %4100 = vmatprep.mubr.f32.mxu1 %v3704_v49 }
 0x6bb   :  { %4030 = vmatmul.mubr.f32.vlgmr.msra.gmra.mxu0 %v6609_v50  ;;  %4101 = vmatmul.mubr.f32.vlgmr.msra.gmra.mxu1 %v6609_v50 }
 0x6bc   :  { %4108 = vmatpush1.msra.mxu0 %v3833_v11  ;;  %4179 = vmatpush1.msra.mxu1 %v3835_v24  ;;  %v3722_v11 = vld [vmem:[#allocation6 + $0x68] sm:$0xff]  ;;  %v3724_v24 = vld [vmem:[#allocation6 + $0x78] sm:$0xff] }
 0x6bd   :  { %4109 = vmatprep.subr.mxu0 %v3826_v57  ;;  %4171 = vmatprep.mubr.f32.mxu0 %v3704_v49  ;;  %v3721_v57 = vld [vmem:[#allocation6 + $0x60] sm:$0xff] }
 0x6be   :  { %4180 = vmatprep.subr.mxu1 %v3828_v47  ;;  %4242 = vmatprep.mubr.f32.mxu1 %v3704_v49  ;;  %v3731_v49 = vld [vmem:[#allocation6 + $0xb0] sm:$0xff] }
 0x6bf   :  { %4110 = vmatpush1.msra.mxu0 %v3825_v7  ;;  %4181 = vmatpush1.msra.mxu1 %v3827_v59  ;;  %v3723_v47 = vld [vmem:[#allocation6 + $0x70] sm:$0xff]  ;;  %v3714_v7 = vld [vmem:[#allocation6 + $0x28] sm:$0xff]  ;;  %v3716_v59 = vld [vmem:[#allocation6 + $0x38] sm:$0xff] }
 0x6c0   :  { %4111 = vmatprep.subr.mxu0 %v3818_v38  ;;  %4182 = vmatprep.subr.mxu1 %v3820_v9  ;;  %v3713_v38 = vld [vmem:[#allocation6 + $0x20] sm:$0xff]  ;;  %v3715_v9 = vld [vmem:[#allocation6 + $0x30] sm:$0xff] }
 0x6c1   :  { %4112 = vmatpush1.msra.mxu0 %v3817_v34  ;;  %4183 = vmatpush1.msra.mxu1 %v3819_v23  ;;  %v3962_v34 = vld [vmem:[#allocation6 + $0x7e8] sm:$0xff]  ;;  %v3964_v23 = vld [vmem:[#allocation6 + $0x7f8] sm:$0xff] }
 0x6c2   :  { %4113 = vmatprep.subr.mxu0 %v3810_v54  ;;  %4184 = vmatprep.subr.mxu1 %v3812_v56  ;;  %v3961_v54 = vld [vmem:[#allocation6 + $0x7e0] sm:$0xff]  ;;  %v3963_v56 = vld [vmem:[#allocation6 + $0x7f0] sm:$0xff] }
 0x6c3   :  { %4114 = vmatpush1.msra.mxu0 %v3809_v62  ;;  %4185 = vmatpush1.msra.mxu1 %v3811_v22  ;;  %v3954_v62 = vld [vmem:[#allocation6 + $0x7a8] sm:$0xff]  ;;  %v3956_v22 = vld [vmem:[#allocation6 + $0x7b8] sm:$0xff] }
 0x6c4   :  { %4115 = vmatprep.subr.mxu0 %v3802_v26  ;;  %4186 = vmatprep.subr.mxu1 %v3804_v40  ;;  %v3953_v26 = vld [vmem:[#allocation6 + $0x7a0] sm:$0xff]  ;;  %v3955_v40 = vld [vmem:[#allocation6 + $0x7b0] sm:$0xff] }
 0x6c5   :  { %4116 = vmatpush1.msra.mxu0 %v3801_v6  ;;  %4187 = vmatpush1.msra.mxu1 %v3803_v44  ;;  %v3946_v6 = vld [vmem:[#allocation6 + $0x768] sm:$0xff]  ;;  %v3948_v44 = vld [vmem:[#allocation6 + $0x778] sm:$0xff] }
 0x6c6   :  { %4117 = vmatprep.subr.mxu0 %v3794_v53  ;;  %4188 = vmatprep.subr.mxu1 %v3796_v39  ;;  %v3945_v53 = vld [vmem:[#allocation6 + $0x760] sm:$0xff]  ;;  %v3947_v39 = vld [vmem:[#allocation6 + $0x770] sm:$0xff] }
 0x6c7   :  { %4118 = vmatpush1.msra.mxu0 %v3793_v18  ;;  %4189 = vmatpush1.msra.mxu1 %v3795_v15  ;;  %v3938_v18 = vld [vmem:[#allocation6 + $0x728] sm:$0xff]  ;;  %v3940_v15 = vld [vmem:[#allocation6 + $0x738] sm:$0xff] }
 0x6c8   :  { %4119 = vmatprep.subr.mxu0 %v3786_v2  ;;  %4190 = vmatprep.subr.mxu1 %v3788_v41  ;;  %v3937_v2 = vld [vmem:[#allocation6 + $0x720] sm:$0xff]  ;;  %v3939_v41 = vld [vmem:[#allocation6 + $0x730] sm:$0xff] }
 0x6c9   :  { %4120 = vmatpush1.msra.mxu0 %v3785_v55  ;;  %4191 = vmatpush1.msra.mxu1 %v3787_v10  ;;  %v3930_v55 = vld [vmem:[#allocation6 + $0x6e8] sm:$0xff]  ;;  %v3932_v10 = vld [vmem:[#allocation6 + $0x6f8] sm:$0xff] }
 0x6ca   :  { %4121 = vmatprep.subr.mxu0 %v3778_v17  ;;  %4192 = vmatprep.subr.mxu1 %v3780_v4  ;;  %v3929_v17 = vld [vmem:[#allocation6 + $0x6e0] sm:$0xff]  ;;  %v3931_v4 = vld [vmem:[#allocation6 + $0x6f0] sm:$0xff] }
 0x6cb   :  { %4122 = vmatpush1.msra.mxu0 %v3777_v33  ;;  %4193 = vmatpush1.msra.mxu1 %v3779_v36  ;;  %v3922_v33 = vld [vmem:[#allocation6 + $0x6a8] sm:$0xff]  ;;  %v3924_v36 = vld [vmem:[#allocation6 + $0x6b8] sm:$0xff] }
 0x6cc   :  { %4123 = vmatprep.subr.mxu0 %v3770_v5  ;;  %4194 = vmatprep.subr.mxu1 %v3772_v1  ;;  %v3921_v5 = vld [vmem:[#allocation6 + $0x6a0] sm:$0xff]  ;;  %v3923_v1 = vld [vmem:[#allocation6 + $0x6b0] sm:$0xff] }
 0x6cd   :  { %4124 = vmatpush1.msra.mxu0 %v3769_v42  ;;  %4195 = vmatpush1.msra.mxu1 %v3771_v16  ;;  %v3914_v42 = vld [vmem:[#allocation6 + $0x668] sm:$0xff]  ;;  %v3916_v16 = vld [vmem:[#allocation6 + $0x678] sm:$0xff] }
 0x6ce   :  { %4125 = vmatprep.subr.mxu0 %v3762_v51  ;;  %4196 = vmatprep.subr.mxu1 %v3764_v30  ;;  %v3913_v51 = vld [vmem:[#allocation6 + $0x660] sm:$0xff]  ;;  %v3915_v30 = vld [vmem:[#allocation6 + $0x670] sm:$0xff] }
 0x6cf   :  { %4126 = vmatpush1.msra.mxu0 %v3761_v20  ;;  %4197 = vmatpush1.msra.mxu1 %v3763_v28  ;;  %v3906_v20 = vld [vmem:[#allocation6 + $0x628] sm:$0xff]  ;;  %v3908_v28 = vld [vmem:[#allocation6 + $0x638] sm:$0xff] }
 0x6d0   :  { %4127 = vmatprep.subr.mxu0 %v3754_v35  ;;  %4198 = vmatprep.subr.mxu1 %v3756_v3  ;;  %v3905_v35 = vld [vmem:[#allocation6 + $0x620] sm:$0xff]  ;;  %v3907_v3 = vld [vmem:[#allocation6 + $0x630] sm:$0xff] }
 0x6d1   :  { %4128 = vmatpush1.msra.mxu0 %v3753_v58  ;;  %4199 = vmatpush1.msra.mxu1 %v3755_v60  ;;  %v3898_v58 = vld [vmem:[#allocation6 + $0x5e8] sm:$0xff]  ;;  %v3900_v60 = vld [vmem:[#allocation6 + $0x5f8] sm:$0xff] }
 0x6d2   :  { %4129 = vmatprep.subr.mxu0 %v3746_v8  ;;  %4200 = vmatprep.subr.mxu1 %v3748_v13  ;;  %v3897_v8 = vld [vmem:[#allocation6 + $0x5e0] sm:$0xff]  ;;  %v3899_v13 = vld [vmem:[#allocation6 + $0x5f0] sm:$0xff] }
 0x6d3   :  { %4130 = vmatpush1.msra.mxu0 %v3745_v19  ;;  %4201 = vmatpush1.msra.mxu1 %v3747_v31  ;;  %v3890_v19 = vld [vmem:[#allocation6 + $0x5a8] sm:$0xff]  ;;  %v3892_v31 = vld [vmem:[#allocation6 + $0x5b8] sm:$0xff] }
 0x6d4   :  { %4131 = vmatprep.subr.mxu0 %v3738_v12  ;;  %4202 = vmatprep.subr.mxu1 %v3740_v63  ;;  %v3889_v12 = vld [vmem:[#allocation6 + $0x5a0] sm:$0xff]  ;;  %v3891_v63 = vld [vmem:[#allocation6 + $0x5b0] sm:$0xff] }
 0x6d5   :  { %4132 = vmatpush1.msra.mxu0 %v3737_v46  ;;  %4203 = vmatpush1.msra.mxu1 %v3739_v61  ;;  %v3882_v46 = vld [vmem:[#allocation6 + $0x568] sm:$0xff]  ;;  %v3884_v61 = vld [vmem:[#allocation6 + $0x578] sm:$0xff] }
 0x6d6   :  { %4133 = vmatprep.subr.mxu0 %v3730_v0  ;;  %4204 = vmatprep.subr.mxu1 %v3732_v29  ;;  %v3881_v0 = vld [vmem:[#allocation6 + $0x560] sm:$0xff]  ;;  %v3883_v29 = vld [vmem:[#allocation6 + $0x570] sm:$0xff] }
 0x6d7   :  { %4134 = vmatpush1.msra.mxu0 %v3729_v27  ;;  %4205 = vmatpush1.msra.mxu1 %v3731_v49  ;;  %v3874_v27 = vld [vmem:[#allocation6 + $0x528] sm:$0xff]  ;;  %v3876_v49 = vld [vmem:[#allocation6 + $0x538] sm:$0xff] }
 0x6d8   :  { %4135 = vmatprep.subr.mxu0 %v3722_v11  ;;  %4206 = vmatprep.subr.mxu1 %v3724_v24  ;;  %v3873_v11 = vld [vmem:[#allocation6 + $0x520] sm:$0xff]  ;;  %v3875_v24 = vld [vmem:[#allocation6 + $0x530] sm:$0xff] }
 0x6d9   :  { %4136 = vmatpush1.msra.mxu0 %v3721_v57  ;;  %4207 = vmatpush1.msra.mxu1 %v3723_v47  ;;  %v3866_v57 = vld [vmem:[#allocation6 + $0x4e8] sm:$0xff]  ;;  %v3868_v47 = vld [vmem:[#allocation6 + $0x4f8] sm:$0xff] }
 0x6da   :  { %4137 = vmatprep.subr.mxu0 %v3714_v7  ;;  %4208 = vmatprep.subr.mxu1 %v3716_v59  ;;  %v3865_v7 = vld [vmem:[#allocation6 + $0x4e0] sm:$0xff]  ;;  %v3867_v59 = vld [vmem:[#allocation6 + $0x4f0] sm:$0xff] }
 0x6db   :  { %4138 = vmatpush1.msra.mxu0 %v3713_v38  ;;  %4209 = vmatpush1.msra.mxu1 %v3715_v9  ;;  %v3858_v38 = vld [vmem:[#allocation6 + $0x4a8] sm:$0xff]  ;;  %v3860_v9 = vld [vmem:[#allocation6 + $0x4b8] sm:$0xff] }
 0x6dc   :  { %4139 = vmatprep.subr.mxu0 %v3962_v34  ;;  %4210 = vmatprep.subr.mxu1 %v3964_v23  ;;  %v3857_v34 = vld [vmem:[#allocation6 + $0x4a0] sm:$0xff]  ;;  %v3859_v23 = vld [vmem:[#allocation6 + $0x4b0] sm:$0xff] }
 0x6dd   :  { %4140 = vmatpush2.msra.mxu0 %v3961_v54  ;;  %4211 = vmatpush2.msra.mxu1 %v3963_v56  ;;  %v3850_v54 = vld [vmem:[#allocation6 + $0x468] sm:$0xff]  ;;  %v3852_v56 = vld [vmem:[#allocation6 + $0x478] sm:$0xff] }
 0x6de   :  { %4141 = vmatprep.subr.mxu0 %v3954_v62  ;;  %4212 = vmatprep.subr.mxu1 %v3956_v22  ;;  %v3849_v62 = vld [vmem:[#allocation6 + $0x460] sm:$0xff]  ;;  %v3851_v22 = vld [vmem:[#allocation6 + $0x470] sm:$0xff] }
 0x6df   :  { %4142 = vmatpush2.msra.mxu0 %v3953_v26  ;;  %4213 = vmatpush2.msra.mxu1 %v3955_v40  ;;  %v3842_v26 = vld [vmem:[#allocation6 + $0x428] sm:$0xff]  ;;  %v3844_v40 = vld [vmem:[#allocation6 + $0x438] sm:$0xff] }
 0x6e0   :  { %4143 = vmatprep.subr.mxu0 %v3946_v6  ;;  %4214 = vmatprep.subr.mxu1 %v3948_v44  ;;  %v3841_v6 = vld [vmem:[#allocation6 + $0x420] sm:$0xff]  ;;  %v3843_v44 = vld [vmem:[#allocation6 + $0x430] sm:$0xff] }
 0x6e1   :  { %4144 = vmatpush2.msra.mxu0 %v3945_v53  ;;  %4215 = vmatpush2.msra.mxu1 %v3947_v39  ;;  %v4438_v53 = vld [vmem:[#allocation6 + $0x3c8] sm:$0xff]  ;;  %v4440_v39 = vld [vmem:[#allocation6 + $0x3d8] sm:$0xff] }
 0x6e2   :  { %4145 = vmatprep.subr.mxu0 %v3938_v18  ;;  %4216 = vmatprep.subr.mxu1 %v3940_v15  ;;  %v4437_v18 = vld [vmem:[#allocation6 + $0x3c0] sm:$0xff]  ;;  %v4439_v15 = vld [vmem:[#allocation6 + $0x3d0] sm:$0xff] }
 0x6e3   :  { %4146 = vmatpush2.msra.mxu0 %v3937_v2  ;;  %4217 = vmatpush2.msra.mxu1 %v3939_v41  ;;  %v4430_v2 = vld [vmem:[#allocation6 + $0x388] sm:$0xff]  ;;  %v4432_v41 = vld [vmem:[#allocation6 + $0x398] sm:$0xff] }
 0x6e4   :  { %4147 = vmatprep.subr.mxu0 %v3930_v55  ;;  %4218 = vmatprep.subr.mxu1 %v3932_v10  ;;  %v4429_v55 = vld [vmem:[#allocation6 + $0x380] sm:$0xff]  ;;  %v4431_v10 = vld [vmem:[#allocation6 + $0x390] sm:$0xff] }
 0x6e5   :  { %4148 = vmatpush2.msra.mxu0 %v3929_v17  ;;  %4219 = vmatpush2.msra.mxu1 %v3931_v4  ;;  %v4422_v17 = vld [vmem:[#allocation6 + $0x348] sm:$0xff]  ;;  %v4424_v4 = vld [vmem:[#allocation6 + $0x358] sm:$0xff] }
 0x6e6   :  { %4149 = vmatprep.subr.mxu0 %v3922_v33  ;;  %4220 = vmatprep.subr.mxu1 %v3924_v36  ;;  %v4421_v33 = vld [vmem:[#allocation6 + $0x340] sm:$0xff]  ;;  %v4423_v36 = vld [vmem:[#allocation6 + $0x350] sm:$0xff] }
 0x6e7   :  { %4150 = vmatpush2.msra.mxu0 %v3921_v5  ;;  %4221 = vmatpush2.msra.mxu1 %v3923_v1  ;;  %v4416_v5 = vld [vmem:[#allocation6 + $0x318] sm:$0xff]  ;;  %v4413_v1 = vld [vmem:[#allocation6 + $0x300] sm:$0xff] }
 0x6e8   :  { %4151 = vmatprep.subr.mxu0 %v3914_v42  ;;  %4222 = vmatprep.subr.mxu1 %v3916_v16  ;;  %v4415_v42 = vld [vmem:[#allocation6 + $0x310] sm:$0xff]  ;;  %v4406_v16 = vld [vmem:[#allocation6 + $0x2c8] sm:$0xff] }
 0x6e9   :  { %4152 = vmatpush2.msra.mxu0 %v3913_v51  ;;  %4223 = vmatpush2.msra.mxu1 %v3915_v30  ;;  %v4408_v51 = vld [vmem:[#allocation6 + $0x2d8] sm:$0xff]  ;;  %v4405_v30 = vld [vmem:[#allocation6 + $0x2c0] sm:$0xff] }
 0x6ea   :  { %4153 = vmatprep.subr.mxu0 %v3906_v20  ;;  %4224 = vmatprep.subr.mxu1 %v3908_v28  ;;  %v4407_v20 = vld [vmem:[#allocation6 + $0x2d0] sm:$0xff]  ;;  %v4398_v28 = vld [vmem:[#allocation6 + $0x288] sm:$0xff] }
 0x6eb   :  { %4154 = vmatpush2.msra.mxu0 %v3905_v35  ;;  %4225 = vmatpush2.msra.mxu1 %v3907_v3  ;;  %v4400_v35 = vld [vmem:[#allocation6 + $0x298] sm:$0xff]  ;;  %v4397_v3 = vld [vmem:[#allocation6 + $0x280] sm:$0xff] }
 0x6ec   :  { %4155 = vmatprep.subr.mxu0 %v3898_v58  ;;  %4226 = vmatprep.subr.mxu1 %v3900_v60  ;;  %v4399_v58 = vld [vmem:[#allocation6 + $0x290] sm:$0xff]  ;;  %v4390_v60 = vld [vmem:[#allocation6 + $0x248] sm:$0xff] }
 0x6ed   :  { %4156 = vmatpush2.msra.mxu0 %v3897_v8  ;;  %4227 = vmatpush2.msra.mxu1 %v3899_v13  ;;  %v4392_v8 = vld [vmem:[#allocation6 + $0x258] sm:$0xff]  ;;  %v4389_v13 = vld [vmem:[#allocation6 + $0x240] sm:$0xff] }
 0x6ee   :  { %4157 = vmatprep.subr.mxu0 %v3890_v19  ;;  %4228 = vmatprep.subr.mxu1 %v3892_v31  ;;  %v4391_v19 = vld [vmem:[#allocation6 + $0x250] sm:$0xff]  ;;  %v4382_v31 = vld [vmem:[#allocation6 + $0x208] sm:$0xff] }
 0x6ef   :  { %4158 = vmatpush2.msra.mxu0 %v3889_v12  ;;  %4229 = vmatpush2.msra.mxu1 %v3891_v63  ;;  %v4384_v12 = vld [vmem:[#allocation6 + $0x218] sm:$0xff]  ;;  %v4381_v63 = vld [vmem:[#allocation6 + $0x200] sm:$0xff] }
 0x6f0   :  { %4159 = vmatprep.subr.mxu0 %v3882_v46  ;;  %4230 = vmatprep.subr.mxu1 %v3884_v61  ;;  %v4383_v46 = vld [vmem:[#allocation6 + $0x210] sm:$0xff]  ;;  %v4374_v61 = vld [vmem:[#allocation6 + $0x1c8] sm:$0xff] }
 0x6f1   :  { %4160 = vmatpush2.msra.mxu0 %v3881_v0  ;;  %4231 = vmatpush2.msra.mxu1 %v3883_v29  ;;  %v4376_v0 = vld [vmem:[#allocation6 + $0x1d8] sm:$0xff]  ;;  %v4373_v29 = vld [vmem:[#allocation6 + $0x1c0] sm:$0xff] }
 0x6f2   :  { %4161 = vmatprep.subr.mxu0 %v3874_v27  ;;  %4232 = vmatprep.subr.mxu1 %v3876_v49  ;;  %v4375_v27 = vld [vmem:[#allocation6 + $0x1d0] sm:$0xff]  ;;  %v4366_v49 = vld [vmem:[#allocation6 + $0x188] sm:$0xff] }
 0x6f3   :  { %4162 = vmatpush2.msra.mxu0 %v3873_v11  ;;  %4233 = vmatpush2.msra.mxu1 %v3875_v24  ;;  %v4368_v11 = vld [vmem:[#allocation6 + $0x198] sm:$0xff]  ;;  %v4365_v24 = vld [vmem:[#allocation6 + $0x180] sm:$0xff] }
 0x6f4   :  { %4163 = vmatprep.subr.mxu0 %v3866_v57  ;;  %4234 = vmatprep.subr.mxu1 %v3868_v47  ;;  %v4367_v57 = vld [vmem:[#allocation6 + $0x190] sm:$0xff]  ;;  %v4358_v47 = vld [vmem:[#allocation6 + $0x148] sm:$0xff] }
 0x6f5   :  { %4164 = vmatpush2.msra.mxu0 %v3865_v7  ;;  %4235 = vmatpush2.msra.mxu1 %v3867_v59  ;;  %v4360_v7 = vld [vmem:[#allocation6 + $0x158] sm:$0xff]  ;;  %v4357_v59 = vld [vmem:[#allocation6 + $0x140] sm:$0xff] }
 0x6f6   :  { %4165 = vmatprep.subr.mxu0 %v3858_v38  ;;  %4236 = vmatprep.subr.mxu1 %v3860_v9  ;;  %v4359_v38 = vld [vmem:[#allocation6 + $0x150] sm:$0xff]  ;;  %v4350_v9 = vld [vmem:[#allocation6 + $0x108] sm:$0xff] }
 0x6f7   :  { %4166 = vmatpush2.msra.mxu0 %v3857_v34  ;;  %4237 = vmatpush2.msra.mxu1 %v3859_v23  ;;  %v4352_v34 = vld [vmem:[#allocation6 + $0x118] sm:$0xff]  ;;  %v4349_v23 = vld [vmem:[#allocation6 + $0x100] sm:$0xff] }
 0x6f8   :  { %4167 = vmatprep.subr.mxu0 %v3850_v54  ;;  %4238 = vmatprep.subr.mxu1 %v3852_v56  ;;  %v4351_v54 = vld [vmem:[#allocation6 + $0x110] sm:$0xff]  ;;  %v4342_v56 = vld [vmem:[#allocation6 + $0xc8] sm:$0xff] }
 0x6f9   :  { %4168 = vmatpush2.msra.mxu0 %v3849_v62  ;;  %4239 = vmatpush2.msra.mxu1 %v3851_v22  ;;  %v4344_v62 = vld [vmem:[#allocation6 + $0xd8] sm:$0xff]  ;;  %v4341_v22 = vld [vmem:[#allocation6 + $0xc0] sm:$0xff] }
 0x6fa   :  { %4169 = vmatprep.subr.mxu0 %v3842_v26  ;;  %4240 = vmatprep.subr.mxu1 %v3844_v40  ;;  %v4343_v26 = vld [vmem:[#allocation6 + $0xd0] sm:$0xff]  ;;  %v4334_v40 = vld [vmem:[#allocation6 + $0x88] sm:$0xff] }
 0x6fb   :  { %4170 = vmatpush2.msra.mxu0 %v3841_v6  ;;  %4241 = vmatpush2.msra.mxu1 %v3843_v44  ;;  %v4336_v6 = vld [vmem:[#allocation6 + $0x98] sm:$0xff]  ;;  %v4333_v44 = vld [vmem:[#allocation6 + $0x80] sm:$0xff] }
 0x6fc   :  { %4172 = vmatmul.mubr.f32.vlgmr.msra.gmra.mxu0 %v6609_v50  ;;  %4243 = vmatmul.mubr.f32.vlgmr.msra.gmra.mxu1 %v6609_v50  ;;  %v4414_v50 = vld [vmem:[#allocation6 + $0x308] sm:$0xff] }
 0x6fd   :  { %4573 = vmatprep.subr.mxu0 %v4438_v53  ;;  %4644 = vmatprep.subr.mxu1 %v4440_v39  ;;  %v4335_v53 = vld [vmem:[#allocation6 + $0x90] sm:$0xff]  ;;  %v4326_v39 = vld [vmem:[#allocation6 + $0x48] sm:$0xff] }
 0x6fe   :  { %4574 = vmatpush1.msra.mxu0 %v4437_v18  ;;  %4645 = vmatpush1.msra.mxu1 %v4439_v15  ;;  %v4328_v18 = vld [vmem:[#allocation6 + $0x58] sm:$0xff]  ;;  %v4325_v15 = vld [vmem:[#allocation6 + $0x40] sm:$0xff] }
 0x6ff   :  { %4575 = vmatprep.subr.mxu0 %v4430_v2  ;;  %4646 = vmatprep.subr.mxu1 %v4432_v41  ;;  %v4327_v2 = vld [vmem:[#allocation6 + $0x50] sm:$0xff]  ;;  %v4318_v41 = vld [vmem:[#allocation6 + $0x8] sm:$0xff] }
 0x700   :  { %4576 = vmatpush1.msra.mxu0 %v4429_v55  ;;  %4647 = vmatpush1.msra.mxu1 %v4431_v10  ;;  %v4320_v55 = vld [vmem:[#allocation6 + $0x18] sm:$0xff]  ;;  %v4317_v10 = vld [vmem:[#allocation6] sm:$0xff] }
 0x701   :  { %4577 = vmatprep.subr.mxu0 %v4422_v17  ;;  %4648 = vmatprep.subr.mxu1 %v4424_v4  ;;  %v4319_v17 = vld [vmem:[#allocation6 + $0x10] sm:$0xff]  ;;  %v4566_v4 = vld [vmem:[#allocation6 + $0x7c8] sm:$0xff] }
 0x702   :  { %4578 = vmatpush1.msra.mxu0 %v4421_v33  ;;  %4649 = vmatpush1.msra.mxu1 %v4423_v36  ;;  %v4568_v33 = vld [vmem:[#allocation6 + $0x7d8] sm:$0xff]  ;;  %v4565_v36 = vld [vmem:[#allocation6 + $0x7c0] sm:$0xff] }
 0x703   :  { %4579 = vmatprep.subr.mxu0 %v4414_v50  ;;  %4650 = vmatprep.subr.mxu1 %v4416_v5  ;;  %v4567_v50 = vld [vmem:[#allocation6 + $0x7d0] sm:$0xff]  ;;  %v4558_v5 = vld [vmem:[#allocation6 + $0x788] sm:$0xff] }
 0x704   :  { %4580 = vmatpush1.msra.mxu0 %v4413_v1  ;;  %4651 = vmatpush1.msra.mxu1 %v4415_v42  ;;  %v4560_v1 = vld [vmem:[#allocation6 + $0x798] sm:$0xff]  ;;  %v4557_v42 = vld [vmem:[#allocation6 + $0x780] sm:$0xff] }
 0x705   :  { %4581 = vmatprep.subr.mxu0 %v4406_v16  ;;  %4652 = vmatprep.subr.mxu1 %v4408_v51  ;;  %v4559_v16 = vld [vmem:[#allocation6 + $0x790] sm:$0xff]  ;;  %v4550_v51 = vld [vmem:[#allocation6 + $0x748] sm:$0xff] }
 0x706   :  { %4582 = vmatpush1.msra.mxu0 %v4405_v30  ;;  %4653 = vmatpush1.msra.mxu1 %v4407_v20  ;;  %v4552_v30 = vld [vmem:[#allocation6 + $0x758] sm:$0xff]  ;;  %v4549_v20 = vld [vmem:[#allocation6 + $0x740] sm:$0xff] }
 0x707   :  { %4583 = vmatprep.subr.mxu0 %v4398_v28  ;;  %4654 = vmatprep.subr.mxu1 %v4400_v35  ;;  %v4551_v28 = vld [vmem:[#allocation6 + $0x750] sm:$0xff]  ;;  %v4542_v35 = vld [vmem:[#allocation6 + $0x708] sm:$0xff] }
 0x708   :  { %4584 = vmatpush1.msra.mxu0 %v4397_v3  ;;  %4655 = vmatpush1.msra.mxu1 %v4399_v58  ;;  %v4544_v3 = vld [vmem:[#allocation6 + $0x718] sm:$0xff]  ;;  %v4541_v58 = vld [vmem:[#allocation6 + $0x700] sm:$0xff] }
 0x709   :  { %4585 = vmatprep.subr.mxu0 %v4390_v60  ;;  %4656 = vmatprep.subr.mxu1 %v4392_v8  ;;  %v4543_v60 = vld [vmem:[#allocation6 + $0x710] sm:$0xff]  ;;  %v4534_v8 = vld [vmem:[#allocation6 + $0x6c8] sm:$0xff] }
 0x70a   :  { %4586 = vmatpush1.msra.mxu0 %v4389_v13  ;;  %4657 = vmatpush1.msra.mxu1 %v4391_v19  ;;  %v4536_v13 = vld [vmem:[#allocation6 + $0x6d8] sm:$0xff]  ;;  %v4533_v19 = vld [vmem:[#allocation6 + $0x6c0] sm:$0xff] }
 0x70b   :  { %4587 = vmatprep.subr.mxu0 %v4382_v31  ;;  %4658 = vmatprep.subr.mxu1 %v4384_v12  ;;  %v4535_v31 = vld [vmem:[#allocation6 + $0x6d0] sm:$0xff]  ;;  %v4526_v12 = vld [vmem:[#allocation6 + $0x688] sm:$0xff] }
 0x70c   :  { %4588 = vmatpush1.msra.mxu0 %v4381_v63  ;;  %4659 = vmatpush1.msra.mxu1 %v4383_v46  ;;  %v4528_v63 = vld [vmem:[#allocation6 + $0x698] sm:$0xff]  ;;  %v4525_v46 = vld [vmem:[#allocation6 + $0x680] sm:$0xff] }
 0x70d   :  { %4589 = vmatprep.subr.mxu0 %v4374_v61  ;;  %4660 = vmatprep.subr.mxu1 %v4376_v0  ;;  %v4527_v61 = vld [vmem:[#allocation6 + $0x690] sm:$0xff]  ;;  %v4518_v0 = vld [vmem:[#allocation6 + $0x648] sm:$0xff] }
 0x70e   :  { %4590 = vmatpush1.msra.mxu0 %v4373_v29  ;;  %4661 = vmatpush1.msra.mxu1 %v4375_v27  ;;  %v4520_v29 = vld [vmem:[#allocation6 + $0x658] sm:$0xff]  ;;  %v4517_v27 = vld [vmem:[#allocation6 + $0x640] sm:$0xff] }
 0x70f   :  { %4591 = vmatprep.subr.mxu0 %v4366_v49  ;;  %4662 = vmatprep.subr.mxu1 %v4368_v11  ;;  %v4519_v49 = vld [vmem:[#allocation6 + $0x650] sm:$0xff]  ;;  %v4510_v11 = vld [vmem:[#allocation6 + $0x608] sm:$0xff] }
 0x710   :  { %4592 = vmatpush1.msra.mxu0 %v4365_v24  ;;  %4663 = vmatpush1.msra.mxu1 %v4367_v57  ;;  %v4512_v24 = vld [vmem:[#allocation6 + $0x618] sm:$0xff]  ;;  %v4509_v57 = vld [vmem:[#allocation6 + $0x600] sm:$0xff] }
 0x711   :  { %4593 = vmatprep.subr.mxu0 %v4358_v47  ;;  %4664 = vmatprep.subr.mxu1 %v4360_v7  ;;  %v4511_v47 = vld [vmem:[#allocation6 + $0x610] sm:$0xff]  ;;  %v4502_v7 = vld [vmem:[#allocation6 + $0x5c8] sm:$0xff] }
 0x712   :  { %4594 = vmatpush1.msra.mxu0 %v4357_v59  ;;  %4665 = vmatpush1.msra.mxu1 %v4359_v38  ;;  %v4504_v59 = vld [vmem:[#allocation6 + $0x5d8] sm:$0xff]  ;;  %v4501_v38 = vld [vmem:[#allocation6 + $0x5c0] sm:$0xff] }
 0x713   :  { %4595 = vmatprep.subr.mxu0 %v4350_v9  ;;  %4666 = vmatprep.subr.mxu1 %v4352_v34  ;;  %v4503_v9 = vld [vmem:[#allocation6 + $0x5d0] sm:$0xff]  ;;  %v4494_v34 = vld [vmem:[#allocation6 + $0x588] sm:$0xff] }
 0x714   :  { %4596 = vmatpush1.msra.mxu0 %v4349_v23  ;;  %4667 = vmatpush1.msra.mxu1 %v4351_v54  ;;  %v4496_v23 = vld [vmem:[#allocation6 + $0x598] sm:$0xff]  ;;  %v4493_v54 = vld [vmem:[#allocation6 + $0x580] sm:$0xff] }
 0x715   :  { %4597 = vmatprep.subr.mxu0 %v4342_v56  ;;  %4668 = vmatprep.subr.mxu1 %v4344_v62  ;;  %v4495_v56 = vld [vmem:[#allocation6 + $0x590] sm:$0xff]  ;;  %v4486_v62 = vld [vmem:[#allocation6 + $0x548] sm:$0xff] }
 0x716   :  { %4598 = vmatpush1.msra.mxu0 %v4341_v22  ;;  %4669 = vmatpush1.msra.mxu1 %v4343_v26  ;;  %v4488_v22 = vld [vmem:[#allocation6 + $0x558] sm:$0xff]  ;;  %v4485_v26 = vld [vmem:[#allocation6 + $0x540] sm:$0xff] }
 0x717   :  { %4599 = vmatprep.subr.mxu0 %v4334_v40  ;;  %4670 = vmatprep.subr.mxu1 %v4336_v6  ;;  %v4487_v40 = vld [vmem:[#allocation6 + $0x550] sm:$0xff]  ;;  %v4478_v6 = vld [vmem:[#allocation6 + $0x508] sm:$0xff] }
 0x718   :  { %4600 = vmatpush1.msra.mxu0 %v4333_v44  ;;  %4671 = vmatpush1.msra.mxu1 %v4335_v53  ;;  %v4480_v44 = vld [vmem:[#allocation6 + $0x518] sm:$0xff]  ;;  %v4477_v53 = vld [vmem:[#allocation6 + $0x500] sm:$0xff] }
 0x719   :  { %4601 = vmatprep.subr.mxu0 %v4326_v39  ;;  %4672 = vmatprep.subr.mxu1 %v4328_v18  ;;  %v4479_v39 = vld [vmem:[#allocation6 + $0x510] sm:$0xff]  ;;  %v4470_v18 = vld [vmem:[#allocation6 + $0x4c8] sm:$0xff] }
 0x71a   :  { %4602 = vmatpush1.msra.mxu0 %v4325_v15  ;;  %4673 = vmatpush1.msra.mxu1 %v4327_v2  ;;  %v4472_v15 = vld [vmem:[#allocation6 + $0x4d8] sm:$0xff]  ;;  %v4469_v2 = vld [vmem:[#allocation6 + $0x4c0] sm:$0xff] }
 0x71b   :  { %4603 = vmatprep.subr.mxu0 %v4318_v41  ;;  %4674 = vmatprep.subr.mxu1 %v4320_v55  ;;  %v4471_v41 = vld [vmem:[#allocation6 + $0x4d0] sm:$0xff]  ;;  %v4462_v55 = vld [vmem:[#allocation6 + $0x488] sm:$0xff] }
 0x71c   :  { %4604 = vmatpush1.msra.mxu0 %v4317_v10  ;;  %4675 = vmatpush1.msra.mxu1 %v4319_v17  ;;  %v4464_v10 = vld [vmem:[#allocation6 + $0x498] sm:$0xff]  ;;  %v4461_v17 = vld [vmem:[#allocation6 + $0x480] sm:$0xff] }
 0x71d   :  { %4605 = vmatprep.subr.mxu0 %v4566_v4  ;;  %4676 = vmatprep.subr.mxu1 %v4568_v33  ;;  %v4463_v4 = vld [vmem:[#allocation6 + $0x490] sm:$0xff]  ;;  %v4454_v33 = vld [vmem:[#allocation6 + $0x448] sm:$0xff] }
 0x71e   :  { %4606 = vmatpush2.msra.mxu0 %v4565_v36  ;;  %4677 = vmatpush2.msra.mxu1 %v4567_v50  ;;  %v4456_v36 = vld [vmem:[#allocation6 + $0x458] sm:$0xff]  ;;  %v4453_v50 = vld [vmem:[#allocation6 + $0x440] sm:$0xff] }
 0x71f   :  { %4607 = vmatprep.subr.mxu0 %v4558_v5  ;;  %4678 = vmatprep.subr.mxu1 %v4560_v1  ;;  %v4455_v5 = vld [vmem:[#allocation6 + $0x450] sm:$0xff]  ;;  %v4446_v1 = vld [vmem:[#allocation6 + $0x408] sm:$0xff] }
 0x720   :  { %4608 = vmatpush2.msra.mxu0 %v4557_v42  ;;  %4679 = vmatpush2.msra.mxu1 %v4559_v16  ;;  %v4448_v42 = vld [vmem:[#allocation6 + $0x418] sm:$0xff]  ;;  %v4445_v16 = vld [vmem:[#allocation6 + $0x400] sm:$0xff] }
 0x721   :  { %4609 = vmatprep.subr.mxu0 %v4550_v51  ;;  %4680 = vmatprep.subr.mxu1 %v4552_v30  ;;  %v4447_v51 = vld [vmem:[#allocation6 + $0x410] sm:$0xff]  ;;  %v4442_v30 = vld [vmem:[#allocation6 + $0x3e8] sm:$0xff] }
 0x722   :  { %4610 = vmatpush2.msra.mxu0 %v4549_v20  ;;  %4681 = vmatpush2.msra.mxu1 %v4551_v28  ;;  %v4444_v20 = vld [vmem:[#allocation6 + $0x3f8] sm:$0xff] }
 0x723   :  { %4611 = vmatprep.subr.mxu0 %v4542_v35  ;;  %4682 = vmatprep.subr.mxu1 %v4544_v3 }
 0x724   :  { %4612 = vmatpush2.msra.mxu0 %v4541_v58  ;;  %4683 = vmatpush2.msra.mxu1 %v4543_v60 }
 0x725   :  { %4613 = vmatprep.subr.mxu0 %v4534_v8  ;;  %4684 = vmatprep.subr.mxu1 %v4536_v13 }
 0x726   :  { %4614 = vmatpush2.msra.mxu0 %v4533_v19  ;;  %4685 = vmatpush2.msra.mxu1 %v4535_v31 }
 0x727   :  { %4615 = vmatprep.subr.mxu0 %v4526_v12  ;;  %4686 = vmatprep.subr.mxu1 %v4528_v63  ;;  %v6751_v12 = vld [vmem:[#allocation19_spill] sm:$0xff] }
 0x728   :  { %4616 = vmatpush2.msra.mxu0 %v4525_v46  ;;  %4687 = vmatpush2.msra.mxu1 %v4527_v61 }
 0x729   :  { %4617 = vmatprep.subr.mxu0 %v4518_v0  ;;  %4688 = vmatprep.subr.mxu1 %v4520_v29 }
 0x72a   :  { %4618 = vmatpush2.msra.mxu0 %v4517_v27  ;;  %4689 = vmatpush2.msra.mxu1 %v4519_v49 }
 0x72b   :  { %4619 = vmatprep.subr.mxu0 %v4510_v11  ;;  %4690 = vmatprep.subr.mxu1 %v4512_v24 }
 0x72c   :  { %4620 = vmatpush2.msra.mxu0 %v4509_v57  ;;  %4691 = vmatpush2.msra.mxu1 %v4511_v47 }
 0x72d   :  { %4621 = vmatprep.subr.mxu0 %v4502_v7  ;;  %4692 = vmatprep.subr.mxu1 %v4504_v59 }
 0x72e   :  { %4622 = vmatpush2.msra.mxu0 %v4501_v38  ;;  %4693 = vmatpush2.msra.mxu1 %v4503_v9  ;;  %v6752_v9 = vld [vmem:[#allocation36_spill] sm:$0xff] }
 0x72f   :  { %4623 = vmatprep.subr.mxu0 %v4494_v34  ;;  %4694 = vmatprep.subr.mxu1 %v4496_v23  ;;  %v454_v34 = vadd.f32 %v6752_v9, %v6283_v21  ;;  %v4393_v9 = vld [vmem:[#allocation6 + $0x260] sm:$0xff] }
 0x730   :  { %4624 = vmatpush2.msra.mxu0 %v4493_v54  ;;  %4695 = vmatpush2.msra.mxu1 %v4495_v56  ;;  %v6753_v54 = vld [vmem:[#allocation38_spill] sm:$0xff] }
 0x731   :  { %4625 = vmatprep.subr.mxu0 %v4486_v62  ;;  %4696 = vmatprep.subr.mxu1 %v4488_v22  ;;  %v456_v56 = vadd.f32 %v6753_v54, %v6291_v32  ;;  %v4388_v54 = vld [vmem:[#allocation6 + $0x238] sm:$0xff] }
 0x732   :  { %4626 = vmatpush2.msra.mxu0 %v4485_v26  ;;  %4697 = vmatpush2.msra.mxu1 %v4487_v40 }
 0x733   :  { %4627 = vmatprep.subr.mxu0 %v4478_v6  ;;  %4698 = vmatprep.subr.mxu1 %v4480_v44 }
 0x734   :  { %4628 = vmatpush2.msra.mxu0 %v4477_v53  ;;  %4699 = vmatpush2.msra.mxu1 %v4479_v39  ;;  %v6754_v53 = vld [vmem:[#allocation39_spill] sm:$0xff] }
 0x735   :  { %4629 = vmatprep.subr.mxu0 %v4470_v18  ;;  %4700 = vmatprep.subr.mxu1 %v4472_v15  ;;  %v569_v39 = vadd.f32 %v6754_v53, %v6299_v25  ;;  %v6755_v15 = vld [vmem:[#allocation37_spill] sm:$0xff]  ;;  %v4369_v53 = vld [vmem:[#allocation6 + $0x1a0] sm:$0xff] }
 0x736   :  { %4630 = vmatpush2.msra.mxu0 %v4469_v2  ;;  %4701 = vmatpush2.msra.mxu1 %v4471_v41  ;;  %v567_v2 = vadd.f32 %v6755_v15, %v6296_v37  ;;  %v4364_v15 = vld [vmem:[#allocation6 + $0x178] sm:$0xff] }
 0x737   :  { %4631 = vmatprep.subr.mxu0 %v4462_v55  ;;  %4702 = vmatprep.subr.mxu1 %v4464_v10 }
 0x738   :  { %4632 = vmatpush2.msra.mxu0 %v4461_v17  ;;  %4703 = vmatpush2.msra.mxu1 %v4463_v4 }
 0x739   :  { %4633 = vmatprep.subr.mxu0 %v4454_v33  ;;  %4704 = vmatprep.subr.mxu1 %v4456_v36 }
 0x73a   :  { %4634 = vmatpush2.msra.mxu0 %v4453_v50  ;;  %4705 = vmatpush2.msra.mxu1 %v4455_v5 }
 0x73b   :  { %4635 = vmatprep.subr.mxu0 %v4446_v1  ;;  %4706 = vmatprep.subr.mxu1 %v4448_v42 }
 0x73c   :  { %4636 = vmatpush2.msra.mxu0 %v4445_v16  ;;  %4707 = vmatpush2.msra.mxu1 %v4447_v51 }
 0x73d   :  { %4715 = vmatprep.subr.mxu0 %v4442_v30  ;;  %4786 = vmatprep.subr.mxu1 %v4444_v20 }
 0x77b   :  { %v4031_v28 = vpop.f32.mrf.mxu0  ;;  %v4102_v8 = vpop.f32.mrf.mxu1 }
 0x77c   :  { %v4253_v35 = vadd.f32 %v4031_v28, %v6398_v48  ;;  %v4255_v63 = vadd.f32 %v4102_v8, %v6751_v12  ;;  %v4436_v8 = vld [vmem:[#allocation6 + $0x3b8] sm:$0xff]  ;;  %v4425_v12 = vld [vmem:[#allocation6 + $0x360] sm:$0xff] }
 0x77d   :  { %v4033_v3 = vpop.f32.mrf.mxu0  ;;  %v4104_v19 = vpop.f32.mrf.mxu1 }
 0x77e   :  { %v5666_v58 = vmul.f32 -1.442695, %v4253_v35  ;;  %v4254_v60 = vadd.f32 %v4033_v3, %v6404_v14  ;;  %v4256_v31 = vadd.f32 %v4104_v19, %v6407_v52  ;;  %v4441_v3 = vld [vmem:[#allocation6 + $0x3e0] sm:$0xff]  ;;  %v4426_v19 = vld [vmem:[#allocation6 + $0x368] sm:$0xff] }
 0x780   :  { %5855 = vpow2.f32 %v5666_v58  ;;  %v5667_v13 = vmul.f32 -1.442695, %v4254_v60  ;;  %v5668_v46 = vmul.f32 -1.442695, %v4256_v31  ;;  %v4443_v58 = vld [vmem:[#allocation6 + $0x3f0] sm:$0xff]  ;;  %v4434_v60 = vld [vmem:[#allocation6 + $0x3a8] sm:$0xff] }
 0x781   :  { %v4428_v31 = vld [vmem:[#allocation6 + $0x378] sm:$0xff] }
 0x782   :  { %5857 = vpow2.f32 %v5667_v13  ;;  %v4435_v13 = vld [vmem:[#allocation6 + $0x3b0] sm:$0xff] }
 0x783   :  { %5859 = vtanh.f32 %v4255_v63  ;;  %v4427_v63 = vld [vmem:[#allocation6 + $0x370] sm:$0xff] }
 0x784   :  { %5861 = vpow2.f32 %v5668_v46  ;;  %v4418_v46 = vld [vmem:[#allocation6 + $0x328] sm:$0xff] }
 0x78d   :  { %v5856_v61 = vpop.eup %5855 }
 0x78e   :  { %v4268_v0 = vadd.f32 1.0, %v5856_v61  ;;  %v4420_v61 = vld [vmem:[#allocation6 + $0x338] sm:$0xff] }
 0x78f   :  { %v5858_v29 = vpop.eup %5857 }
 0x790   :  { %5863 = vrcp.f32 %v4268_v0  ;;  %v4274_v48 = vadd.f32 1.0, %v5858_v29  ;;  %v5860_v27 = vpop.eup %5859  ;;  %v4417_v0 = vld [vmem:[#allocation6 + $0x320] sm:$0xff]  ;;  %v4419_v29 = vld [vmem:[#allocation6 + $0x330] sm:$0xff] }
 0x791   :  { %v5862_v14 = vpop.eup %5861 }
 0x792   :  { %5865 = vrcp.f32 %v4274_v48  ;;  %v4281_v57 = vadd.f32 1.0, %v5862_v14  ;;  %v4410_v48 = vld [vmem:[#allocation6 + $0x2e8] sm:$0xff]  ;;  %v4409_v14 = vld [vmem:[#allocation6 + $0x2e0] sm:$0xff] }
 0x794   :  { %5867 = vrcp.f32 %v4281_v57  ;;  %v4401_v57 = vld [vmem:[#allocation6 + $0x2a0] sm:$0xff] }
 0x79d   :  { %v5864_v49 = vpop.eup %5863 }
 0x79e   :  { %v4285_v11 = vmul.f32 %v5864_v49, %v5860_v27  ;;  %v4412_v27 = vld [vmem:[#allocation6 + $0x2f8] sm:$0xff]  ;;  %v4411_v49 = vld [vmem:[#allocation6 + $0x2f0] sm:$0xff] }
 0x79f   :  { %v5866_v24 = vpop.eup %5865 }
 0x7a0   :  { %v4284_v47 = vmul.f32 %v5866_v24, %v6606_v45  ;;  %v4404_v24 = vld [vmem:[#allocation6 + $0x2b8] sm:$0xff] }
 0x7a1   :  { %v5868_v7 = vpop.eup %5867 }
 0x7a2   :  { %v6633_v52 = vadd.f32 %v4285_v11, %v4284_v47  ;;  %v4402_v11 = vld [vmem:[#allocation6 + $0x2a8] sm:$0xff]  ;;  %v4403_v47 = vld [vmem:[#allocation6 + $0x2b0] sm:$0xff] }
 0x7a4   :  { %5869 = vtanh.f32 %v6633_v52 }
 0x7b1   :  { %v5870_v59 = vpop.eup %5869 }
 0x7b2   :  { %v6636_v38 = vmul.f32 %v5870_v59, %v5868_v7  ;;  %v4394_v7 = vld [vmem:[#allocation6 + $0x268] sm:$0xff]  ;;  %v4396_v59 = vld [vmem:[#allocation6 + $0x278] sm:$0xff] }
 0x7b4   :  { %4314 = vst [vmem:[#allocation8 + $0x28] sm:$0xff] %v6636_v38 }
 0x7bc   :  { %v4173_v23 = vpop.f32.mrf.mxu0  ;;  %v4244_v40 = vpop.f32.mrf.mxu1 }
 0x7bd   :  { %v4261_v62 = vadd.f32 %v4173_v23, %v454_v34  ;;  %v4263_v41 = vadd.f32 %v4244_v40, %v567_v2  ;;  %v4395_v34 = vld [vmem:[#allocation6 + $0x270] sm:$0xff]  ;;  %v4386_v23 = vld [vmem:[#allocation6 + $0x228] sm:$0xff]  ;;  %v4361_v2 = vld [vmem:[#allocation6 + $0x160] sm:$0xff] }
 0x7be   :  { %v4175_v45 = vpop.f32.mrf.mxu0  ;;  %v4246_v44 = vpop.f32.mrf.mxu1  ;;  %v4379_v40 = vld [vmem:[#allocation6 + $0x1f0] sm:$0xff] }
 0x7bf   :  { %v5669_v22 = vmul.f32 -1.442695, %v4261_v62  ;;  %v4262_v26 = vadd.f32 %v4175_v45, %v456_v56  ;;  %v4264_v18 = vadd.f32 %v4246_v44, %v569_v39  ;;  %v4385_v56 = vld [vmem:[#allocation6 + $0x220] sm:$0xff]  ;;  %v4387_v62 = vld [vmem:[#allocation6 + $0x230] sm:$0xff]  ;;  %v4378_v45 = vld [vmem:[#allocation6 + $0x1e8] sm:$0xff] }
 0x7c0   :  { %v4372_v44 = vld [vmem:[#allocation6 + $0x1b8] sm:$0xff]  ;;  %v4371_v39 = vld [vmem:[#allocation6 + $0x1b0] sm:$0xff] }
 0x7c1   :  { %5871 = vpow2.f32 %v5669_v22  ;;  %v5670_v6 = vmul.f32 -1.442695, %v4262_v26  ;;  %v5671_v55 = vmul.f32 -1.442695, %v4264_v18  ;;  %v4380_v22 = vld [vmem:[#allocation6 + $0x1f8] sm:$0xff]  ;;  %v4377_v26 = vld [vmem:[#allocation6 + $0x1e0] sm:$0xff] }
 0x7c2   :  { %v4362_v18 = vld [vmem:[#allocation6 + $0x168] sm:$0xff] }
 0x7c3   :  { %5873 = vpow2.f32 %v5670_v6  ;;  %v4370_v6 = vld [vmem:[#allocation6 + $0x1a8] sm:$0xff] }
 0x7c4   :  { %5875 = vtanh.f32 %v4263_v41  ;;  %v4363_v41 = vld [vmem:[#allocation6 + $0x170] sm:$0xff] }
 0x7c5   :  { %5877 = vpow2.f32 %v5671_v55  ;;  %v4354_v55 = vld [vmem:[#allocation6 + $0x128] sm:$0xff] }
 0x7ce   :  { %v5872_v10 = vpop.eup %5871 }
 0x7cf   :  { %v4292_v17 = vadd.f32 1.0, %v5872_v10  ;;  %v4356_v10 = vld [vmem:[#allocation6 + $0x138] sm:$0xff] }
 0x7d0   :  { %v5874_v4 = vpop.eup %5873 }
 0x7d1   :  { %5879 = vrcp.f32 %v4292_v17  ;;  %v4298_v33 = vadd.f32 1.0, %v5874_v4  ;;  %v5876_v36 = vpop.eup %5875  ;;  %v4353_v17 = vld [vmem:[#allocation6 + $0x120] sm:$0xff]  ;;  %v4355_v4 = vld [vmem:[#allocation6 + $0x130] sm:$0xff] }
 0x7d2   :  { %v5878_v50 = vpop.eup %5877 }
 0x7d3   :  { %5881 = vrcp.f32 %v4298_v33  ;;  %v4305_v16 = vadd.f32 1.0, %v5878_v50  ;;  %v4346_v33 = vld [vmem:[#allocation6 + $0xe8] sm:$0xff]  ;;  %v4345_v50 = vld [vmem:[#allocation6 + $0xe0] sm:$0xff] }
 0x7d5   :  { %5883 = vrcp.f32 %v4305_v16  ;;  %v4337_v16 = vld [vmem:[#allocation6 + $0xa0] sm:$0xff] }
 0x7de   :  { %v5880_v5 = vpop.eup %5879 }
 0x7df   :  { %v4309_v1 = vmul.f32 %v5880_v5, %v5876_v36  ;;  %v4348_v36 = vld [vmem:[#allocation6 + $0xf8] sm:$0xff]  ;;  %v4347_v5 = vld [vmem:[#allocation6 + $0xf0] sm:$0xff] }
 0x7e0   :  { %v5882_v42 = vpop.eup %5881 }
 0x7e1   :  { %v4308_v51 = vmul.f32 %v5882_v42, %v6621_v43  ;;  %v4433_v43 = vld [vmem:[#allocation6 + $0x3a0] sm:$0xff]  ;;  %v4340_v42 = vld [vmem:[#allocation6 + $0xb8] sm:$0xff] }
 0x7e2   :  { %v5884_v20 = vpop.eup %5883 }
 0x7e3   :  { %v6648_v30 = vadd.f32 %v4309_v1, %v4308_v51  ;;  %v4338_v1 = vld [vmem:[#allocation6 + $0xa8] sm:$0xff]  ;;  %v4339_v51 = vld [vmem:[#allocation6 + $0xb0] sm:$0xff] }
 0x7e5   :  { %5885 = vtanh.f32 %v6648_v30 }
 0x7f2   :  { %v5886_v28 = vpop.eup %5885 }
 0x7f3   :  { %v4312_v35 = vmul.f32 %v5886_v28, %v5884_v20  ;;  %v4330_v20 = vld [vmem:[#allocation6 + $0x68] sm:$0xff]  ;;  %v4332_v28 = vld [vmem:[#allocation6 + $0x78] sm:$0xff] }
 0x7f5   :  { %4316 = vst [vmem:[#allocation9 + $0x10] sm:$0xff] %v4312_v35  ;;  %4637 = vmatprep.mubr.f32.mxu0 %v4312_v35  ;;  %4708 = vmatprep.mubr.f32.mxu1 %v4312_v35 }
 0x7f6   :  { %4638 = vmatmul.mubr.f32.vlgmr.msra.gmra.mxu0 %v6636_v38  ;;  %4709 = vmatmul.mubr.f32.vlgmr.msra.gmra.mxu1 %v6636_v38 }
 0x7f7   :  { %4716 = vmatpush1.msra.mxu0 %v4441_v3  ;;  %4787 = vmatpush1.msra.mxu1 %v4443_v58  ;;  %v4331_v3 = vld [vmem:[#allocation6 + $0x70] sm:$0xff]  ;;  %v4322_v58 = vld [vmem:[#allocation6 + $0x28] sm:$0xff] }
 0x7f8   :  { %4717 = vmatprep.subr.mxu0 %v4434_v60  ;;  %4779 = vmatprep.mubr.f32.mxu0 %v4312_v35  ;;  %v4324_v60 = vld [vmem:[#allocation6 + $0x38] sm:$0xff] }
 0x7f9   :  { %4788 = vmatprep.subr.mxu1 %v4436_v8  ;;  %4850 = vmatprep.mubr.f32.mxu1 %v4312_v35  ;;  %v4329_v35 = vld [vmem:[#allocation6 + $0x60] sm:$0xff] }
 0x7fa   :  { %4718 = vmatpush1.msra.mxu0 %v4433_v43  ;;  %4789 = vmatpush1.msra.mxu1 %v4435_v13  ;;  %v4321_v8 = vld [vmem:[#allocation6 + $0x20] sm:$0xff]  ;;  %v4323_v43 = vld [vmem:[#allocation6 + $0x30] sm:$0xff]  ;;  %v4570_v13 = vld [vmem:[#allocation6 + $0x7e8] sm:$0xff] }
 0x7fb   :  { %4719 = vmatprep.subr.mxu0 %v4426_v19  ;;  %4790 = vmatprep.subr.mxu1 %v4428_v31  ;;  %v4572_v19 = vld [vmem:[#allocation6 + $0x7f8] sm:$0xff]  ;;  %v4569_v31 = vld [vmem:[#allocation6 + $0x7e0] sm:$0xff] }
 0x7fc   :  { %4720 = vmatpush1.msra.mxu0 %v4425_v12  ;;  %4791 = vmatpush1.msra.mxu1 %v4427_v63  ;;  %v4571_v12 = vld [vmem:[#allocation6 + $0x7f0] sm:$0xff]  ;;  %v4562_v63 = vld [vmem:[#allocation6 + $0x7a8] sm:$0xff] }
 0x7fd   :  { %4721 = vmatprep.subr.mxu0 %v4418_v46  ;;  %4792 = vmatprep.subr.mxu1 %v4420_v61  ;;  %v4564_v46 = vld [vmem:[#allocation6 + $0x7b8] sm:$0xff]  ;;  %v4561_v61 = vld [vmem:[#allocation6 + $0x7a0] sm:$0xff] }
 0x7fe   :  { %4722 = vmatpush1.msra.mxu0 %v4417_v0  ;;  %4793 = vmatpush1.msra.mxu1 %v4419_v29  ;;  %v4563_v0 = vld [vmem:[#allocation6 + $0x7b0] sm:$0xff]  ;;  %v4554_v29 = vld [vmem:[#allocation6 + $0x768] sm:$0xff] }
 0x7ff   :  { %4723 = vmatprep.subr.mxu0 %v4410_v48  ;;  %4794 = vmatprep.subr.mxu1 %v4412_v27  ;;  %v4556_v48 = vld [vmem:[#allocation6 + $0x778] sm:$0xff]  ;;  %v4553_v27 = vld [vmem:[#allocation6 + $0x760] sm:$0xff] }
 0x800   :  { %4724 = vmatpush1.msra.mxu0 %v4409_v14  ;;  %4795 = vmatpush1.msra.mxu1 %v4411_v49  ;;  %v4555_v14 = vld [vmem:[#allocation6 + $0x770] sm:$0xff]  ;;  %v4546_v49 = vld [vmem:[#allocation6 + $0x728] sm:$0xff] }
 0x801   :  { %4725 = vmatprep.subr.mxu0 %v4402_v11  ;;  %4796 = vmatprep.subr.mxu1 %v4404_v24  ;;  %v4548_v11 = vld [vmem:[#allocation6 + $0x738] sm:$0xff]  ;;  %v4545_v24 = vld [vmem:[#allocation6 + $0x720] sm:$0xff] }
 0x802   :  { %4726 = vmatpush1.msra.mxu0 %v4401_v57  ;;  %4797 = vmatpush1.msra.mxu1 %v4403_v47  ;;  %v4547_v57 = vld [vmem:[#allocation6 + $0x730] sm:$0xff]  ;;  %v4538_v47 = vld [vmem:[#allocation6 + $0x6e8] sm:$0xff] }
 0x803   :  { %4727 = vmatprep.subr.mxu0 %v4394_v7  ;;  %4798 = vmatprep.subr.mxu1 %v4396_v59  ;;  %v4540_v7 = vld [vmem:[#allocation6 + $0x6f8] sm:$0xff]  ;;  %v4537_v59 = vld [vmem:[#allocation6 + $0x6e0] sm:$0xff] }
 0x804   :  { %4728 = vmatpush1.msra.mxu0 %v4393_v9  ;;  %4799 = vmatpush1.msra.mxu1 %v4395_v34  ;;  %v4539_v9 = vld [vmem:[#allocation6 + $0x6f0] sm:$0xff]  ;;  %v4530_v34 = vld [vmem:[#allocation6 + $0x6a8] sm:$0xff] }
 0x805   :  { %4729 = vmatprep.subr.mxu0 %v4386_v23  ;;  %4800 = vmatprep.subr.mxu1 %v4388_v54  ;;  %v4532_v23 = vld [vmem:[#allocation6 + $0x6b8] sm:$0xff]  ;;  %v4529_v54 = vld [vmem:[#allocation6 + $0x6a0] sm:$0xff] }
 0x806   :  { %4730 = vmatpush1.msra.mxu0 %v4385_v56  ;;  %4801 = vmatpush1.msra.mxu1 %v4387_v62  ;;  %v4531_v56 = vld [vmem:[#allocation6 + $0x6b0] sm:$0xff]  ;;  %v4522_v62 = vld [vmem:[#allocation6 + $0x668] sm:$0xff] }
 0x807   :  { %4731 = vmatprep.subr.mxu0 %v4378_v45  ;;  %4802 = vmatprep.subr.mxu1 %v4380_v22  ;;  %v4524_v45 = vld [vmem:[#allocation6 + $0x678] sm:$0xff]  ;;  %v4521_v22 = vld [vmem:[#allocation6 + $0x660] sm:$0xff] }
 0x808   :  { %4732 = vmatpush1.msra.mxu0 %v4377_v26  ;;  %4803 = vmatpush1.msra.mxu1 %v4379_v40  ;;  %v4523_v26 = vld [vmem:[#allocation6 + $0x670] sm:$0xff]  ;;  %v4514_v40 = vld [vmem:[#allocation6 + $0x628] sm:$0xff] }
 0x809   :  { %4733 = vmatprep.subr.mxu0 %v4370_v6  ;;  %4804 = vmatprep.subr.mxu1 %v4372_v44  ;;  %v4516_v6 = vld [vmem:[#allocation6 + $0x638] sm:$0xff]  ;;  %v4513_v44 = vld [vmem:[#allocation6 + $0x620] sm:$0xff] }
 0x80a   :  { %4734 = vmatpush1.msra.mxu0 %v4369_v53  ;;  %4805 = vmatpush1.msra.mxu1 %v4371_v39  ;;  %v4515_v53 = vld [vmem:[#allocation6 + $0x630] sm:$0xff]  ;;  %v4506_v39 = vld [vmem:[#allocation6 + $0x5e8] sm:$0xff] }
 0x80b   :  { %4735 = vmatprep.subr.mxu0 %v4362_v18  ;;  %4806 = vmatprep.subr.mxu1 %v4364_v15  ;;  %v4508_v18 = vld [vmem:[#allocation6 + $0x5f8] sm:$0xff]  ;;  %v4505_v15 = vld [vmem:[#allocation6 + $0x5e0] sm:$0xff] }
 0x80c   :  { %4736 = vmatpush1.msra.mxu0 %v4361_v2  ;;  %4807 = vmatpush1.msra.mxu1 %v4363_v41  ;;  %v4507_v2 = vld [vmem:[#allocation6 + $0x5f0] sm:$0xff]  ;;  %v4498_v41 = vld [vmem:[#allocation6 + $0x5a8] sm:$0xff] }
 0x80d   :  { %4737 = vmatprep.subr.mxu0 %v4354_v55  ;;  %4808 = vmatprep.subr.mxu1 %v4356_v10  ;;  %v4500_v55 = vld [vmem:[#allocation6 + $0x5b8] sm:$0xff]  ;;  %v4497_v10 = vld [vmem:[#allocation6 + $0x5a0] sm:$0xff] }
 0x80e   :  { %4738 = vmatpush1.msra.mxu0 %v4353_v17  ;;  %4809 = vmatpush1.msra.mxu1 %v4355_v4  ;;  %v4499_v17 = vld [vmem:[#allocation6 + $0x5b0] sm:$0xff]  ;;  %v4490_v4 = vld [vmem:[#allocation6 + $0x568] sm:$0xff] }
 0x80f   :  { %4739 = vmatprep.subr.mxu0 %v4346_v33  ;;  %4810 = vmatprep.subr.mxu1 %v4348_v36  ;;  %v4492_v33 = vld [vmem:[#allocation6 + $0x578] sm:$0xff]  ;;  %v4489_v36 = vld [vmem:[#allocation6 + $0x560] sm:$0xff] }
 0x810   :  { %4740 = vmatpush1.msra.mxu0 %v4345_v50  ;;  %4811 = vmatpush1.msra.mxu1 %v4347_v5  ;;  %v4491_v50 = vld [vmem:[#allocation6 + $0x570] sm:$0xff]  ;;  %v4482_v5 = vld [vmem:[#allocation6 + $0x528] sm:$0xff] }
 0x811   :  { %4741 = vmatprep.subr.mxu0 %v4338_v1  ;;  %4812 = vmatprep.subr.mxu1 %v4340_v42  ;;  %v4484_v1 = vld [vmem:[#allocation6 + $0x538] sm:$0xff]  ;;  %v4481_v42 = vld [vmem:[#allocation6 + $0x520] sm:$0xff] }
 0x812   :  { %4742 = vmatpush1.msra.mxu0 %v4337_v16  ;;  %4813 = vmatpush1.msra.mxu1 %v4339_v51  ;;  %v4483_v16 = vld [vmem:[#allocation6 + $0x530] sm:$0xff]  ;;  %v4474_v51 = vld [vmem:[#allocation6 + $0x4e8] sm:$0xff] }
 0x813   :  { %4743 = vmatprep.subr.mxu0 %v4330_v20  ;;  %4814 = vmatprep.subr.mxu1 %v4332_v28  ;;  %v4476_v20 = vld [vmem:[#allocation6 + $0x4f8] sm:$0xff]  ;;  %v4473_v28 = vld [vmem:[#allocation6 + $0x4e0] sm:$0xff] }
 0x814   :  { %4744 = vmatpush1.msra.mxu0 %v4329_v35  ;;  %4815 = vmatpush1.msra.mxu1 %v4331_v3  ;;  %v4475_v35 = vld [vmem:[#allocation6 + $0x4f0] sm:$0xff]  ;;  %v4466_v3 = vld [vmem:[#allocation6 + $0x4a8] sm:$0xff] }
 0x815   :  { %4745 = vmatprep.subr.mxu0 %v4322_v58  ;;  %4816 = vmatprep.subr.mxu1 %v4324_v60  ;;  %v4468_v58 = vld [vmem:[#allocation6 + $0x4b8] sm:$0xff]  ;;  %v4465_v60 = vld [vmem:[#allocation6 + $0x4a0] sm:$0xff] }
 0x816   :  { %4746 = vmatpush1.msra.mxu0 %v4321_v8  ;;  %4817 = vmatpush1.msra.mxu1 %v4323_v43  ;;  %v4467_v8 = vld [vmem:[#allocation6 + $0x4b0] sm:$0xff]  ;;  %v4458_v43 = vld [vmem:[#allocation6 + $0x468] sm:$0xff] }
 0x817   :  { %4747 = vmatprep.subr.mxu0 %v4570_v13  ;;  %4818 = vmatprep.subr.mxu1 %v4572_v19  ;;  %v4460_v13 = vld [vmem:[#allocation6 + $0x478] sm:$0xff]  ;;  %v4457_v19 = vld [vmem:[#allocation6 + $0x460] sm:$0xff] }
 0x818   :  { %4748 = vmatpush2.msra.mxu0 %v4569_v31  ;;  %4819 = vmatpush2.msra.mxu1 %v4571_v12  ;;  %v4459_v31 = vld [vmem:[#allocation6 + $0x470] sm:$0xff]  ;;  %v4450_v12 = vld [vmem:[#allocation6 + $0x428] sm:$0xff] }
 0x819   :  { %4749 = vmatprep.subr.mxu0 %v4562_v63  ;;  %4820 = vmatprep.subr.mxu1 %v4564_v46  ;;  %v4452_v63 = vld [vmem:[#allocation6 + $0x438] sm:$0xff]  ;;  %v4449_v46 = vld [vmem:[#allocation6 + $0x420] sm:$0xff] }
 0x81a   :  { %4750 = vmatpush2.msra.mxu0 %v4561_v61  ;;  %4821 = vmatpush2.msra.mxu1 %v4563_v0  ;;  %v4451_v61 = vld [vmem:[#allocation6 + $0x430] sm:$0xff]  ;;  %v5046_v0 = vld [vmem:[#allocation6 + $0x3c8] sm:$0xff] }
 0x81b   :  { %4751 = vmatprep.subr.mxu0 %v4554_v29  ;;  %4822 = vmatprep.subr.mxu1 %v4556_v48  ;;  %v5048_v29 = vld [vmem:[#allocation6 + $0x3d8] sm:$0xff]  ;;  %v5045_v48 = vld [vmem:[#allocation6 + $0x3c0] sm:$0xff] }
 0x81c   :  { %4752 = vmatpush2.msra.mxu0 %v4553_v27  ;;  %4823 = vmatpush2.msra.mxu1 %v4555_v14  ;;  %v5047_v27 = vld [vmem:[#allocation6 + $0x3d0] sm:$0xff]  ;;  %v5038_v14 = vld [vmem:[#allocation6 + $0x388] sm:$0xff] }
 0x81d   :  { %4753 = vmatprep.subr.mxu0 %v4546_v49  ;;  %4824 = vmatprep.subr.mxu1 %v4548_v11  ;;  %v5040_v49 = vld [vmem:[#allocation6 + $0x398] sm:$0xff]  ;;  %v5037_v11 = vld [vmem:[#allocation6 + $0x380] sm:$0xff] }
 0x81e   :  { %4754 = vmatpush2.msra.mxu0 %v4545_v24  ;;  %4825 = vmatpush2.msra.mxu1 %v4547_v57  ;;  %v5039_v24 = vld [vmem:[#allocation6 + $0x390] sm:$0xff]  ;;  %v5030_v57 = vld [vmem:[#allocation6 + $0x348] sm:$0xff] }
 0x81f   :  { %4755 = vmatprep.subr.mxu0 %v4538_v47  ;;  %4826 = vmatprep.subr.mxu1 %v4540_v7  ;;  %v5032_v47 = vld [vmem:[#allocation6 + $0x358] sm:$0xff]  ;;  %v5029_v7 = vld [vmem:[#allocation6 + $0x340] sm:$0xff] }
 0x820   :  { %4756 = vmatpush2.msra.mxu0 %v4537_v59  ;;  %4827 = vmatpush2.msra.mxu1 %v4539_v9  ;;  %v5031_v59 = vld [vmem:[#allocation6 + $0x350] sm:$0xff]  ;;  %v5024_v9 = vld [vmem:[#allocation6 + $0x318] sm:$0xff] }
 0x821   :  { %4757 = vmatprep.subr.mxu0 %v4530_v34  ;;  %4828 = vmatprep.subr.mxu1 %v4532_v23  ;;  %v5021_v34 = vld [vmem:[#allocation6 + $0x300] sm:$0xff]  ;;  %v5023_v23 = vld [vmem:[#allocation6 + $0x310] sm:$0xff] }
 0x822   :  { %4758 = vmatpush2.msra.mxu0 %v4529_v54  ;;  %4829 = vmatpush2.msra.mxu1 %v4531_v56  ;;  %v5014_v54 = vld [vmem:[#allocation6 + $0x2c8] sm:$0xff]  ;;  %v5016_v56 = vld [vmem:[#allocation6 + $0x2d8] sm:$0xff] }
 0x823   :  { %4759 = vmatprep.subr.mxu0 %v4522_v62  ;;  %4830 = vmatprep.subr.mxu1 %v4524_v45  ;;  %v5013_v62 = vld [vmem:[#allocation6 + $0x2c0] sm:$0xff]  ;;  %v5015_v45 = vld [vmem:[#allocation6 + $0x2d0] sm:$0xff] }
 0x824   :  { %4760 = vmatpush2.msra.mxu0 %v4521_v22  ;;  %4831 = vmatpush2.msra.mxu1 %v4523_v26  ;;  %v5006_v22 = vld [vmem:[#allocation6 + $0x288] sm:$0xff]  ;;  %v5008_v26 = vld [vmem:[#allocation6 + $0x298] sm:$0xff] }
 0x825   :  { %4761 = vmatprep.subr.mxu0 %v4514_v40  ;;  %4832 = vmatprep.subr.mxu1 %v4516_v6  ;;  %v5005_v40 = vld [vmem:[#allocation6 + $0x280] sm:$0xff]  ;;  %v5007_v6 = vld [vmem:[#allocation6 + $0x290] sm:$0xff] }
 0x826   :  { %4762 = vmatpush2.msra.mxu0 %v4513_v44  ;;  %4833 = vmatpush2.msra.mxu1 %v4515_v53  ;;  %v4998_v44 = vld [vmem:[#allocation6 + $0x248] sm:$0xff]  ;;  %v5000_v53 = vld [vmem:[#allocation6 + $0x258] sm:$0xff] }
 0x827   :  { %4763 = vmatprep.subr.mxu0 %v4506_v39  ;;  %4834 = vmatprep.subr.mxu1 %v4508_v18  ;;  %v4997_v39 = vld [vmem:[#allocation6 + $0x240] sm:$0xff]  ;;  %v4999_v18 = vld [vmem:[#allocation6 + $0x250] sm:$0xff] }
 0x828   :  { %4764 = vmatpush2.msra.mxu0 %v4505_v15  ;;  %4835 = vmatpush2.msra.mxu1 %v4507_v2  ;;  %v4990_v15 = vld [vmem:[#allocation6 + $0x208] sm:$0xff]  ;;  %v4992_v2 = vld [vmem:[#allocation6 + $0x218] sm:$0xff] }
 0x829   :  { %4765 = vmatprep.subr.mxu0 %v4498_v41  ;;  %4836 = vmatprep.subr.mxu1 %v4500_v55  ;;  %v4989_v41 = vld [vmem:[#allocation6 + $0x200] sm:$0xff]  ;;  %v4991_v55 = vld [vmem:[#allocation6 + $0x210] sm:$0xff] }
 0x82a   :  { %4766 = vmatpush2.msra.mxu0 %v4497_v10  ;;  %4837 = vmatpush2.msra.mxu1 %v4499_v17  ;;  %v4982_v10 = vld [vmem:[#allocation6 + $0x1c8] sm:$0xff]  ;;  %v4984_v17 = vld [vmem:[#allocation6 + $0x1d8] sm:$0xff] }
 0x82b   :  { %4767 = vmatprep.subr.mxu0 %v4490_v4  ;;  %4838 = vmatprep.subr.mxu1 %v4492_v33  ;;  %v4981_v4 = vld [vmem:[#allocation6 + $0x1c0] sm:$0xff]  ;;  %v4983_v33 = vld [vmem:[#allocation6 + $0x1d0] sm:$0xff] }
 0x82c   :  { %4768 = vmatpush2.msra.mxu0 %v4489_v36  ;;  %4839 = vmatpush2.msra.mxu1 %v4491_v50  ;;  %v4974_v36 = vld [vmem:[#allocation6 + $0x188] sm:$0xff]  ;;  %v4976_v50 = vld [vmem:[#allocation6 + $0x198] sm:$0xff] }
 0x82d   :  { %4769 = vmatprep.subr.mxu0 %v4482_v5  ;;  %4840 = vmatprep.subr.mxu1 %v4484_v1  ;;  %v4973_v5 = vld [vmem:[#allocation6 + $0x180] sm:$0xff]  ;;  %v4975_v1 = vld [vmem:[#allocation6 + $0x190] sm:$0xff] }
 0x82e   :  { %4770 = vmatpush2.msra.mxu0 %v4481_v42  ;;  %4841 = vmatpush2.msra.mxu1 %v4483_v16  ;;  %v4966_v42 = vld [vmem:[#allocation6 + $0x148] sm:$0xff]  ;;  %v4968_v16 = vld [vmem:[#allocation6 + $0x158] sm:$0xff] }
 0x82f   :  { %4771 = vmatprep.subr.mxu0 %v4474_v51  ;;  %4842 = vmatprep.subr.mxu1 %v4476_v20  ;;  %v4965_v51 = vld [vmem:[#allocation6 + $0x140] sm:$0xff]  ;;  %v4967_v20 = vld [vmem:[#allocation6 + $0x150] sm:$0xff] }
 0x830   :  { %4772 = vmatpush2.msra.mxu0 %v4473_v28  ;;  %4843 = vmatpush2.msra.mxu1 %v4475_v35  ;;  %v4958_v28 = vld [vmem:[#allocation6 + $0x108] sm:$0xff]  ;;  %v4960_v35 = vld [vmem:[#allocation6 + $0x118] sm:$0xff] }
 0x831   :  { %4773 = vmatprep.subr.mxu0 %v4466_v3  ;;  %4844 = vmatprep.subr.mxu1 %v4468_v58  ;;  %v4957_v3 = vld [vmem:[#allocation6 + $0x100] sm:$0xff]  ;;  %v4959_v58 = vld [vmem:[#allocation6 + $0x110] sm:$0xff] }
 0x832   :  { %4774 = vmatpush2.msra.mxu0 %v4465_v60  ;;  %4845 = vmatpush2.msra.mxu1 %v4467_v8  ;;  %v4950_v60 = vld [vmem:[#allocation6 + $0xc8] sm:$0xff]  ;;  %v4952_v8 = vld [vmem:[#allocation6 + $0xd8] sm:$0xff] }
 0x833   :  { %4775 = vmatprep.subr.mxu0 %v4458_v43  ;;  %4846 = vmatprep.subr.mxu1 %v4460_v13  ;;  %v4949_v43 = vld [vmem:[#allocation6 + $0xc0] sm:$0xff]  ;;  %v4951_v13 = vld [vmem:[#allocation6 + $0xd0] sm:$0xff] }
 0x834   :  { %4776 = vmatpush2.msra.mxu0 %v4457_v19  ;;  %4847 = vmatpush2.msra.mxu1 %v4459_v31  ;;  %v4942_v19 = vld [vmem:[#allocation6 + $0x88] sm:$0xff]  ;;  %v4944_v31 = vld [vmem:[#allocation6 + $0x98] sm:$0xff] }
 0x835   :  { %4777 = vmatprep.subr.mxu0 %v4450_v12  ;;  %4848 = vmatprep.subr.mxu1 %v4452_v63  ;;  %v4941_v12 = vld [vmem:[#allocation6 + $0x80] sm:$0xff]  ;;  %v4943_v63 = vld [vmem:[#allocation6 + $0x90] sm:$0xff] }
 0x836   :  { %4778 = vmatpush2.msra.mxu0 %v4449_v46  ;;  %4849 = vmatpush2.msra.mxu1 %v4451_v61  ;;  %v4934_v46 = vld [vmem:[#allocation6 + $0x48] sm:$0xff]  ;;  %v4936_v61 = vld [vmem:[#allocation6 + $0x58] sm:$0xff] }
 0x837   :  { %4780 = vmatmul.mubr.f32.vlgmr.msra.gmra.mxu0 %v6636_v38  ;;  %4851 = vmatmul.mubr.f32.vlgmr.msra.gmra.mxu1 %v6636_v38  ;;  %v5022_v38 = vld [vmem:[#allocation6 + $0x308] sm:$0xff] }
 0x838   :  { %5181 = vmatprep.subr.mxu0 %v5046_v0  ;;  %5252 = vmatprep.subr.mxu1 %v5048_v29  ;;  %v4933_v0 = vld [vmem:[#allocation6 + $0x40] sm:$0xff]  ;;  %v4935_v29 = vld [vmem:[#allocation6 + $0x50] sm:$0xff] }
 0x839   :  { %5182 = vmatpush1.msra.mxu0 %v5045_v48  ;;  %5253 = vmatpush1.msra.mxu1 %v5047_v27  ;;  %v4926_v48 = vld [vmem:[#allocation6 + $0x8] sm:$0xff]  ;;  %v4928_v27 = vld [vmem:[#allocation6 + $0x18] sm:$0xff] }
 0x83a   :  { %5183 = vmatprep.subr.mxu0 %v5038_v14  ;;  %5254 = vmatprep.subr.mxu1 %v5040_v49  ;;  %v4925_v14 = vld [vmem:[#allocation6] sm:$0xff]  ;;  %v4927_v49 = vld [vmem:[#allocation6 + $0x10] sm:$0xff] }
 0x83b   :  { %5184 = vmatpush1.msra.mxu0 %v5037_v11  ;;  %5255 = vmatpush1.msra.mxu1 %v5039_v24  ;;  %v5174_v11 = vld [vmem:[#allocation6 + $0x7c8] sm:$0xff]  ;;  %v5176_v24 = vld [vmem:[#allocation6 + $0x7d8] sm:$0xff] }
 0x83c   :  { %5185 = vmatprep.subr.mxu0 %v5030_v57  ;;  %5256 = vmatprep.subr.mxu1 %v5032_v47  ;;  %v5173_v57 = vld [vmem:[#allocation6 + $0x7c0] sm:$0xff]  ;;  %v5175_v47 = vld [vmem:[#allocation6 + $0x7d0] sm:$0xff] }
 0x83d   :  { %5186 = vmatpush1.msra.mxu0 %v5029_v7  ;;  %5257 = vmatpush1.msra.mxu1 %v5031_v59  ;;  %v5166_v7 = vld [vmem:[#allocation6 + $0x788] sm:$0xff]  ;;  %v5168_v59 = vld [vmem:[#allocation6 + $0x798] sm:$0xff] }
 0x83e   :  { %5187 = vmatprep.subr.mxu0 %v5022_v38  ;;  %5258 = vmatprep.subr.mxu1 %v5024_v9  ;;  %v5165_v38 = vld [vmem:[#allocation6 + $0x780] sm:$0xff]  ;;  %v5167_v9 = vld [vmem:[#allocation6 + $0x790] sm:$0xff] }
 0x83f   :  { %5188 = vmatpush1.msra.mxu0 %v5021_v34  ;;  %5259 = vmatpush1.msra.mxu1 %v5023_v23  ;;  %v5158_v34 = vld [vmem:[#allocation6 + $0x748] sm:$0xff]  ;;  %v5160_v23 = vld [vmem:[#allocation6 + $0x758] sm:$0xff] }
 0x840   :  { %5189 = vmatprep.subr.mxu0 %v5014_v54  ;;  %5260 = vmatprep.subr.mxu1 %v5016_v56  ;;  %v5157_v54 = vld [vmem:[#allocation6 + $0x740] sm:$0xff]  ;;  %v5159_v56 = vld [vmem:[#allocation6 + $0x750] sm:$0xff] }
 0x841   :  { %5190 = vmatpush1.msra.mxu0 %v5013_v62  ;;  %5261 = vmatpush1.msra.mxu1 %v5015_v45  ;;  %v5150_v62 = vld [vmem:[#allocation6 + $0x708] sm:$0xff]  ;;  %v5152_v45 = vld [vmem:[#allocation6 + $0x718] sm:$0xff] }
 0x842   :  { %5191 = vmatprep.subr.mxu0 %v5006_v22  ;;  %5262 = vmatprep.subr.mxu1 %v5008_v26  ;;  %v5149_v22 = vld [vmem:[#allocation6 + $0x700] sm:$0xff]  ;;  %v5151_v26 = vld [vmem:[#allocation6 + $0x710] sm:$0xff] }
 0x843   :  { %5192 = vmatpush1.msra.mxu0 %v5005_v40  ;;  %5263 = vmatpush1.msra.mxu1 %v5007_v6  ;;  %v5142_v40 = vld [vmem:[#allocation6 + $0x6c8] sm:$0xff]  ;;  %v5144_v6 = vld [vmem:[#allocation6 + $0x6d8] sm:$0xff] }
 0x844   :  { %5193 = vmatprep.subr.mxu0 %v4998_v44  ;;  %5264 = vmatprep.subr.mxu1 %v5000_v53  ;;  %v5141_v44 = vld [vmem:[#allocation6 + $0x6c0] sm:$0xff]  ;;  %v5143_v53 = vld [vmem:[#allocation6 + $0x6d0] sm:$0xff] }
 0x845   :  { %5194 = vmatpush1.msra.mxu0 %v4997_v39  ;;  %5265 = vmatpush1.msra.mxu1 %v4999_v18  ;;  %v5134_v39 = vld [vmem:[#allocation6 + $0x688] sm:$0xff]  ;;  %v5136_v18 = vld [vmem:[#allocation6 + $0x698] sm:$0xff] }
 0x846   :  { %5195 = vmatprep.subr.mxu0 %v4990_v15  ;;  %5266 = vmatprep.subr.mxu1 %v4992_v2  ;;  %v5133_v15 = vld [vmem:[#allocation6 + $0x680] sm:$0xff]  ;;  %v5135_v2 = vld [vmem:[#allocation6 + $0x690] sm:$0xff] }
 0x847   :  { %5196 = vmatpush1.msra.mxu0 %v4989_v41  ;;  %5267 = vmatpush1.msra.mxu1 %v4991_v55  ;;  %v5126_v41 = vld [vmem:[#allocation6 + $0x648] sm:$0xff]  ;;  %v5128_v55 = vld [vmem:[#allocation6 + $0x658] sm:$0xff] }
 0x848   :  { %5197 = vmatprep.subr.mxu0 %v4982_v10  ;;  %5268 = vmatprep.subr.mxu1 %v4984_v17  ;;  %v5125_v10 = vld [vmem:[#allocation6 + $0x640] sm:$0xff]  ;;  %v5127_v17 = vld [vmem:[#allocation6 + $0x650] sm:$0xff] }
 0x849   :  { %5198 = vmatpush1.msra.mxu0 %v4981_v4  ;;  %5269 = vmatpush1.msra.mxu1 %v4983_v33  ;;  %v5118_v4 = vld [vmem:[#allocation6 + $0x608] sm:$0xff]  ;;  %v5120_v33 = vld [vmem:[#allocation6 + $0x618] sm:$0xff] }
 0x84a   :  { %5199 = vmatprep.subr.mxu0 %v4974_v36  ;;  %5270 = vmatprep.subr.mxu1 %v4976_v50  ;;  %v5117_v36 = vld [vmem:[#allocation6 + $0x600] sm:$0xff]  ;;  %v5119_v50 = vld [vmem:[#allocation6 + $0x610] sm:$0xff] }
 0x84b   :  { %5200 = vmatpush1.msra.mxu0 %v4973_v5  ;;  %5271 = vmatpush1.msra.mxu1 %v4975_v1  ;;  %v5110_v5 = vld [vmem:[#allocation6 + $0x5c8] sm:$0xff]  ;;  %v5112_v1 = vld [vmem:[#allocation6 + $0x5d8] sm:$0xff] }
 0x84c   :  { %5201 = vmatprep.subr.mxu0 %v4966_v42  ;;  %5272 = vmatprep.subr.mxu1 %v4968_v16  ;;  %v5109_v42 = vld [vmem:[#allocation6 + $0x5c0] sm:$0xff]  ;;  %v5111_v16 = vld [vmem:[#allocation6 + $0x5d0] sm:$0xff] }
 0x84d   :  { %5202 = vmatpush1.msra.mxu0 %v4965_v51  ;;  %5273 = vmatpush1.msra.mxu1 %v4967_v20  ;;  %v5102_v51 = vld [vmem:[#allocation6 + $0x588] sm:$0xff]  ;;  %v5104_v20 = vld [vmem:[#allocation6 + $0x598] sm:$0xff] }
 0x84e   :  { %5203 = vmatprep.subr.mxu0 %v4958_v28  ;;  %5274 = vmatprep.subr.mxu1 %v4960_v35  ;;  %v5101_v28 = vld [vmem:[#allocation6 + $0x580] sm:$0xff]  ;;  %v5103_v35 = vld [vmem:[#allocation6 + $0x590] sm:$0xff] }
 0x84f   :  { %5204 = vmatpush1.msra.mxu0 %v4957_v3  ;;  %5275 = vmatpush1.msra.mxu1 %v4959_v58  ;;  %v5094_v3 = vld [vmem:[#allocation6 + $0x548] sm:$0xff]  ;;  %v5096_v58 = vld [vmem:[#allocation6 + $0x558] sm:$0xff] }
 0x850   :  { %5205 = vmatprep.subr.mxu0 %v4950_v60  ;;  %5276 = vmatprep.subr.mxu1 %v4952_v8  ;;  %v5093_v60 = vld [vmem:[#allocation6 + $0x540] sm:$0xff]  ;;  %v5095_v8 = vld [vmem:[#allocation6 + $0x550] sm:$0xff] }
 0x851   :  { %5206 = vmatpush1.msra.mxu0 %v4949_v43  ;;  %5277 = vmatpush1.msra.mxu1 %v4951_v13  ;;  %v5086_v43 = vld [vmem:[#allocation6 + $0x508] sm:$0xff]  ;;  %v5088_v13 = vld [vmem:[#allocation6 + $0x518] sm:$0xff] }
 0x852   :  { %5207 = vmatprep.subr.mxu0 %v4942_v19  ;;  %5278 = vmatprep.subr.mxu1 %v4944_v31  ;;  %v5085_v19 = vld [vmem:[#allocation6 + $0x500] sm:$0xff]  ;;  %v5087_v31 = vld [vmem:[#allocation6 + $0x510] sm:$0xff] }
 0x853   :  { %5208 = vmatpush1.msra.mxu0 %v4941_v12  ;;  %5279 = vmatpush1.msra.mxu1 %v4943_v63  ;;  %v5078_v12 = vld [vmem:[#allocation6 + $0x4c8] sm:$0xff]  ;;  %v5080_v63 = vld [vmem:[#allocation6 + $0x4d8] sm:$0xff] }
 0x854   :  { %5209 = vmatprep.subr.mxu0 %v4934_v46  ;;  %5280 = vmatprep.subr.mxu1 %v4936_v61  ;;  %v5077_v46 = vld [vmem:[#allocation6 + $0x4c0] sm:$0xff]  ;;  %v5079_v61 = vld [vmem:[#allocation6 + $0x4d0] sm:$0xff] }
 0x855   :  { %5210 = vmatpush1.msra.mxu0 %v4933_v0  ;;  %5281 = vmatpush1.msra.mxu1 %v4935_v29  ;;  %v5070_v0 = vld [vmem:[#allocation6 + $0x488] sm:$0xff]  ;;  %v5072_v29 = vld [vmem:[#allocation6 + $0x498] sm:$0xff] }
 0x856   :  { %5211 = vmatprep.subr.mxu0 %v4926_v48  ;;  %5282 = vmatprep.subr.mxu1 %v4928_v27  ;;  %v5069_v48 = vld [vmem:[#allocation6 + $0x480] sm:$0xff]  ;;  %v5071_v27 = vld [vmem:[#allocation6 + $0x490] sm:$0xff] }
 0x857   :  { %5212 = vmatpush1.msra.mxu0 %v4925_v14  ;;  %5283 = vmatpush1.msra.mxu1 %v4927_v49  ;;  %v5062_v14 = vld [vmem:[#allocation6 + $0x448] sm:$0xff]  ;;  %v5064_v49 = vld [vmem:[#allocation6 + $0x458] sm:$0xff] }
 0x858   :  { %5213 = vmatprep.subr.mxu0 %v5174_v11  ;;  %5284 = vmatprep.subr.mxu1 %v5176_v24  ;;  %v5061_v11 = vld [vmem:[#allocation6 + $0x440] sm:$0xff]  ;;  %v5063_v24 = vld [vmem:[#allocation6 + $0x450] sm:$0xff] }
 0x859   :  { %5214 = vmatpush2.msra.mxu0 %v5173_v57  ;;  %5285 = vmatpush2.msra.mxu1 %v5175_v47  ;;  %v5054_v57 = vld [vmem:[#allocation6 + $0x408] sm:$0xff]  ;;  %v5056_v47 = vld [vmem:[#allocation6 + $0x418] sm:$0xff] }
 0x85a   :  { %5215 = vmatprep.subr.mxu0 %v5166_v7  ;;  %5286 = vmatprep.subr.mxu1 %v5168_v59  ;;  %v5053_v7 = vld [vmem:[#allocation6 + $0x400] sm:$0xff]  ;;  %v5055_v59 = vld [vmem:[#allocation6 + $0x410] sm:$0xff] }
 0x85b   :  { %5216 = vmatpush2.msra.mxu0 %v5165_v38  ;;  %5287 = vmatpush2.msra.mxu1 %v5167_v9  ;;  %v5050_v38 = vld [vmem:[#allocation6 + $0x3e8] sm:$0xff]  ;;  %v5052_v9 = vld [vmem:[#allocation6 + $0x3f8] sm:$0xff] }
 0x85c   :  { %5217 = vmatprep.subr.mxu0 %v5158_v34  ;;  %5288 = vmatprep.subr.mxu1 %v5160_v23  ;;  %v6756_v23 = vld [vmem:[#allocation20_spill] sm:$0xff] }
 0x85d   :  { %5218 = vmatpush2.msra.mxu0 %v5157_v54  ;;  %5289 = vmatpush2.msra.mxu1 %v5159_v56 }
 0x85e   :  { %5219 = vmatprep.subr.mxu0 %v5150_v62  ;;  %5290 = vmatprep.subr.mxu1 %v5152_v45  ;;  %v6757_v45 = vld [vmem:[#allocation22_spill] sm:$0xff] }
 0x85f   :  { %5220 = vmatpush2.msra.mxu0 %v5149_v22  ;;  %5291 = vmatpush2.msra.mxu1 %v5151_v26 }
 0x860   :  { %5221 = vmatprep.subr.mxu0 %v5142_v40  ;;  %5292 = vmatprep.subr.mxu1 %v5144_v6 }
 0x861   :  { %5222 = vmatpush2.msra.mxu0 %v5141_v44  ;;  %5293 = vmatpush2.msra.mxu1 %v5143_v53  ;;  %v6758_v44 = vld [vmem:[#allocation23_spill] sm:$0xff] }
 0x862   :  { %5223 = vmatprep.subr.mxu0 %v5134_v39  ;;  %5294 = vmatprep.subr.mxu1 %v5136_v18  ;;  %v6759_v39 = vld [vmem:[#allocation21_spill] sm:$0xff] }
 0x863   :  { %5224 = vmatpush2.msra.mxu0 %v5133_v15  ;;  %5295 = vmatpush2.msra.mxu1 %v5135_v2 }
 0x864   :  { %5225 = vmatprep.subr.mxu0 %v5126_v41  ;;  %5296 = vmatprep.subr.mxu1 %v5128_v55 }
 0x865   :  { %5226 = vmatpush2.msra.mxu0 %v5125_v10  ;;  %5297 = vmatpush2.msra.mxu1 %v5127_v17 }
 0x866   :  { %5227 = vmatprep.subr.mxu0 %v5118_v4  ;;  %5298 = vmatprep.subr.mxu1 %v5120_v33 }
 0x867   :  { %5228 = vmatpush2.msra.mxu0 %v5117_v36  ;;  %5299 = vmatpush2.msra.mxu1 %v5119_v50 }
 0x868   :  { %5229 = vmatprep.subr.mxu0 %v5110_v5  ;;  %5300 = vmatprep.subr.mxu1 %v5112_v1 }
 0x869   :  { %5230 = vmatpush2.msra.mxu0 %v5109_v42  ;;  %5301 = vmatpush2.msra.mxu1 %v5111_v16 }
 0x86a   :  { %5231 = vmatprep.subr.mxu0 %v5102_v51  ;;  %5302 = vmatprep.subr.mxu1 %v5104_v20 }
 0x86b   :  { %5232 = vmatpush2.msra.mxu0 %v5101_v28  ;;  %5303 = vmatpush2.msra.mxu1 %v5103_v35  ;;  %v6760_v28 = vld [vmem:[#allocation32_spill] sm:$0xff] }
 0x86c   :  { %5233 = vmatprep.subr.mxu0 %v5094_v3  ;;  %5304 = vmatprep.subr.mxu1 %v5096_v58  ;;  %v448_v35 = vadd.f32 %v6760_v28, %v6283_v21  ;;  %v6761_v58 = vld [vmem:[#allocation34_spill] sm:$0xff]  ;;  %v5001_v28 = vld [vmem:[#allocation6 + $0x260] sm:$0xff] }
 0x86d   :  { %5234 = vmatpush2.msra.mxu0 %v5093_v60  ;;  %5305 = vmatpush2.msra.mxu1 %v5095_v8  ;;  %v450_v60 = vadd.f32 %v6761_v58, %v6291_v32  ;;  %v4996_v58 = vld [vmem:[#allocation6 + $0x238] sm:$0xff] }
 0x86e   :  { %5235 = vmatprep.subr.mxu0 %v5086_v43  ;;  %5306 = vmatprep.subr.mxu1 %v5088_v13 }
 0x86f   :  { %5236 = vmatpush2.msra.mxu0 %v5085_v19  ;;  %5307 = vmatpush2.msra.mxu1 %v5087_v31 }
 0x870   :  { %5237 = vmatprep.subr.mxu0 %v5078_v12  ;;  %5308 = vmatprep.subr.mxu1 %v5080_v63  ;;  %v6762_v63 = vld [vmem:[#allocation35_spill] sm:$0xff] }
 0x871   :  { %5238 = vmatpush2.msra.mxu0 %v5077_v46  ;;  %5309 = vmatpush2.msra.mxu1 %v5079_v61  ;;  %v563_v46 = vadd.f32 %v6762_v63, %v6299_v25  ;;  %v4977_v63 = vld [vmem:[#allocation6 + $0x1a0] sm:$0xff] }
 0x872   :  { %5239 = vmatprep.subr.mxu0 %v5070_v0  ;;  %5310 = vmatprep.subr.mxu1 %v5072_v29  ;;  %v6763_v0 = vld [vmem:[#allocation33_spill] sm:$0xff] }
 0x873   :  { %5240 = vmatpush2.msra.mxu0 %v5069_v48  ;;  %5311 = vmatpush2.msra.mxu1 %v5071_v27  ;;  %v561_v29 = vadd.f32 %v6763_v0, %v6296_v37  ;;  %v4972_v0 = vld [vmem:[#allocation6 + $0x178] sm:$0xff] }
 0x874   :  { %5241 = vmatprep.subr.mxu0 %v5062_v14  ;;  %5312 = vmatprep.subr.mxu1 %v5064_v49 }
 0x875   :  { %5242 = vmatpush2.msra.mxu0 %v5061_v11  ;;  %5313 = vmatpush2.msra.mxu1 %v5063_v24 }
 0x876   :  { %5243 = vmatprep.subr.mxu0 %v5054_v57  ;;  %5314 = vmatprep.subr.mxu1 %v5056_v47 }
 0x877   :  { %5244 = vmatpush2.msra.mxu0 %v5053_v7  ;;  %5315 = vmatpush2.msra.mxu1 %v5055_v59 }
 0x878   :  { %5323 = vmatprep.subr.mxu0 %v5050_v38  ;;  %5394 = vmatprep.subr.mxu1 %v5052_v9 }
 0x8b6   :  { %v4639_v34 = vpop.f32.mrf.mxu0  ;;  %v4710_v26 = vpop.f32.mrf.mxu1 }
 0x8b7   :  { %v4861_v54 = vadd.f32 %v4639_v34, %v6756_v23  ;;  %v4863_v18 = vadd.f32 %v4710_v26, %v6759_v39  ;;  %v5042_v26 = vld [vmem:[#allocation6 + $0x3a8] sm:$0xff]  ;;  %v5033_v39 = vld [vmem:[#allocation6 + $0x360] sm:$0xff] }
 0x8b8   :  { %v4641_v56 = vpop.f32.mrf.mxu0  ;;  %v4712_v6 = vpop.f32.mrf.mxu1 }
 0x8b9   :  { %v5672_v62 = vmul.f32 -1.442695, %v4861_v54  ;;  %v4862_v22 = vadd.f32 %v4641_v56, %v6757_v45  ;;  %v4864_v53 = vadd.f32 %v4712_v6, %v6758_v44  ;;  %v5049_v45 = vld [vmem:[#allocation6 + $0x3e0] sm:$0xff]  ;;  %v5043_v6 = vld [vmem:[#allocation6 + $0x3b0] sm:$0xff]  ;;  %v5034_v44 = vld [vmem:[#allocation6 + $0x368] sm:$0xff] }
 0x8bb   :  { %5887 = vpow2.f32 %v5672_v62  ;;  %v5673_v40 = vmul.f32 -1.442695, %v4862_v22  ;;  %v5674_v15 = vmul.f32 -1.442695, %v4864_v53  ;;  %v5051_v22 = vld [vmem:[#allocation6 + $0x3f0] sm:$0xff]  ;;  %v5036_v53 = vld [vmem:[#allocation6 + $0x378] sm:$0xff] }
 0x8bd   :  { %5889 = vpow2.f32 %v5673_v40  ;;  %v5044_v40 = vld [vmem:[#allocation6 + $0x3b8] sm:$0xff] }
 0x8be   :  { %5891 = vtanh.f32 %v4863_v18  ;;  %v5035_v18 = vld [vmem:[#allocation6 + $0x370] sm:$0xff] }
 0x8bf   :  { %5893 = vpow2.f32 %v5674_v15  ;;  %v5026_v15 = vld [vmem:[#allocation6 + $0x328] sm:$0xff] }
 0x8c8   :  { %v5888_v2 = vpop.eup %5887 }
 0x8c9   :  { %v4876_v41 = vadd.f32 1.0, %v5888_v2  ;;  %v5028_v2 = vld [vmem:[#allocation6 + $0x338] sm:$0xff] }
 0x8ca   :  { %v5890_v55 = vpop.eup %5889 }
 0x8cb   :  { %5895 = vrcp.f32 %v4876_v41  ;;  %v4882_v10 = vadd.f32 1.0, %v5890_v55  ;;  %v5892_v17 = vpop.eup %5891  ;;  %v5025_v41 = vld [vmem:[#allocation6 + $0x320] sm:$0xff]  ;;  %v5027_v55 = vld [vmem:[#allocation6 + $0x330] sm:$0xff] }
 0x8cc   :  { %v5894_v4 = vpop.eup %5893 }
 0x8cd   :  { %5897 = vrcp.f32 %v4882_v10  ;;  %v4889_v5 = vadd.f32 1.0, %v5894_v4  ;;  %v5018_v10 = vld [vmem:[#allocation6 + $0x2e8] sm:$0xff]  ;;  %v5017_v4 = vld [vmem:[#allocation6 + $0x2e0] sm:$0xff] }
 0x8cf   :  { %5899 = vrcp.f32 %v4889_v5  ;;  %v5009_v5 = vld [vmem:[#allocation6 + $0x2a0] sm:$0xff] }
 0x8d8   :  { %v5896_v33 = vpop.eup %5895 }
 0x8d9   :  { %v4893_v36 = vmul.f32 %v5896_v33, %v5892_v17  ;;  %v5020_v17 = vld [vmem:[#allocation6 + $0x2f8] sm:$0xff]  ;;  %v5019_v33 = vld [vmem:[#allocation6 + $0x2f0] sm:$0xff] }
 0x8da   :  { %v5898_v50 = vpop.eup %5897 }
 0x8db   :  { %v4892_v1 = vmul.f32 %v5898_v50, %v6633_v52  ;;  %v5012_v50 = vld [vmem:[#allocation6 + $0x2b8] sm:$0xff] }
 0x8dc   :  { %v5900_v16 = vpop.eup %5899 }
 0x8dd   :  { %v6660_v42 = vadd.f32 %v4893_v36, %v4892_v1  ;;  %v5010_v36 = vld [vmem:[#allocation6 + $0x2a8] sm:$0xff]  ;;  %v5011_v1 = vld [vmem:[#allocation6 + $0x2b0] sm:$0xff] }
 0x8df   :  { %5901 = vtanh.f32 %v6660_v42 }
 0x8ec   :  { %v5902_v51 = vpop.eup %5901 }
 0x8ed   :  { %v6663_v20 = vmul.f32 %v5902_v51, %v5900_v16  ;;  %v5002_v16 = vld [vmem:[#allocation6 + $0x268] sm:$0xff]  ;;  %v5004_v51 = vld [vmem:[#allocation6 + $0x278] sm:$0xff] }
 0x8ef   :  { %4922 = vst [vmem:[#allocation8 + $0x30] sm:$0xff] %v6663_v20 }
 0x8f7   :  { %v4781_v3 = vpop.f32.mrf.mxu0  ;;  %v4852_v19 = vpop.f32.mrf.mxu1 }
 0x8f8   :  { %v4869_v8 = vadd.f32 %v4781_v3, %v448_v35  ;;  %v4871_v48 = vadd.f32 %v4852_v19, %v561_v29  ;;  %v5003_v35 = vld [vmem:[#allocation6 + $0x270] sm:$0xff]  ;;  %v4994_v3 = vld [vmem:[#allocation6 + $0x228] sm:$0xff]  ;;  %v4969_v29 = vld [vmem:[#allocation6 + $0x160] sm:$0xff] }
 0x8f9   :  { %v4783_v52 = vpop.f32.mrf.mxu0  ;;  %v4854_v12 = vpop.f32.mrf.mxu1  ;;  %v4987_v19 = vld [vmem:[#allocation6 + $0x1f0] sm:$0xff] }
 0x8fa   :  { %v5675_v43 = vmul.f32 -1.442695, %v4869_v8  ;;  %v4870_v13 = vadd.f32 %v4783_v52, %v450_v60  ;;  %v4872_v61 = vadd.f32 %v4854_v12, %v563_v46  ;;  %v4993_v60 = vld [vmem:[#allocation6 + $0x220] sm:$0xff]  ;;  %v4995_v8 = vld [vmem:[#allocation6 + $0x230] sm:$0xff]  ;;  %v4986_v52 = vld [vmem:[#allocation6 + $0x1e8] sm:$0xff] }
 0x8fb   :  { %v4980_v12 = vld [vmem:[#allocation6 + $0x1b8] sm:$0xff]  ;;  %v4979_v46 = vld [vmem:[#allocation6 + $0x1b0] sm:$0xff] }
 0x8fc   :  { %5903 = vpow2.f32 %v5675_v43  ;;  %v5676_v31 = vmul.f32 -1.442695, %v4870_v13  ;;  %v5677_v27 = vmul.f32 -1.442695, %v4872_v61  ;;  %v4988_v43 = vld [vmem:[#allocation6 + $0x1f8] sm:$0xff]  ;;  %v4985_v13 = vld [vmem:[#allocation6 + $0x1e0] sm:$0xff] }
 0x8fd   :  { %v4970_v61 = vld [vmem:[#allocation6 + $0x168] sm:$0xff] }
 0x8fe   :  { %5905 = vpow2.f32 %v5676_v31  ;;  %v4978_v31 = vld [vmem:[#allocation6 + $0x1a8] sm:$0xff] }
 0x8ff   :  { %5907 = vtanh.f32 %v4871_v48  ;;  %v4971_v48 = vld [vmem:[#allocation6 + $0x170] sm:$0xff] }
 0x900   :  { %5909 = vpow2.f32 %v5677_v27  ;;  %v4962_v27 = vld [vmem:[#allocation6 + $0x128] sm:$0xff] }
 0x909   :  { %v5904_v14 = vpop.eup %5903 }
 0x90a   :  { %v4900_v49 = vadd.f32 1.0, %v5904_v14  ;;  %v4964_v14 = vld [vmem:[#allocation6 + $0x138] sm:$0xff] }
 0x90b   :  { %v5906_v11 = vpop.eup %5905 }
 0x90c   :  { %5911 = vrcp.f32 %v4900_v49  ;;  %v4906_v24 = vadd.f32 1.0, %v5906_v11  ;;  %v5908_v57 = vpop.eup %5907  ;;  %v4961_v49 = vld [vmem:[#allocation6 + $0x120] sm:$0xff]  ;;  %v4963_v11 = vld [vmem:[#allocation6 + $0x130] sm:$0xff] }
 0x90d   :  { %v5910_v47 = vpop.eup %5909 }
 0x90e   :  { %5913 = vrcp.f32 %v4906_v24  ;;  %v4913_v9 = vadd.f32 1.0, %v5910_v47  ;;  %v4954_v24 = vld [vmem:[#allocation6 + $0xe8] sm:$0xff]  ;;  %v4953_v47 = vld [vmem:[#allocation6 + $0xe0] sm:$0xff] }
 0x910   :  { %5915 = vrcp.f32 %v4913_v9  ;;  %v4945_v9 = vld [vmem:[#allocation6 + $0xa0] sm:$0xff] }
 0x919   :  { %v5912_v7 = vpop.eup %5911 }
 0x91a   :  { %v4917_v59 = vmul.f32 %v5912_v7, %v5908_v57  ;;  %v4956_v57 = vld [vmem:[#allocation6 + $0xf8] sm:$0xff]  ;;  %v4955_v7 = vld [vmem:[#allocation6 + $0xf0] sm:$0xff] }
 0x91b   :  { %v5914_v38 = vpop.eup %5913 }
 0x91c   :  { %v4916_v34 = vmul.f32 %v5914_v38, %v6648_v30  ;;  %v5041_v30 = vld [vmem:[#allocation6 + $0x3a0] sm:$0xff]  ;;  %v4948_v38 = vld [vmem:[#allocation6 + $0xb8] sm:$0xff] }
 0x91d   :  { %v5916_v54 = vpop.eup %5915 }
 0x91e   :  { %v6675_v23 = vadd.f32 %v4917_v59, %v4916_v34  ;;  %v4946_v59 = vld [vmem:[#allocation6 + $0xa8] sm:$0xff]  ;;  %v4947_v34 = vld [vmem:[#allocation6 + $0xb0] sm:$0xff] }
 0x920   :  { %5917 = vtanh.f32 %v6675_v23 }
 0x92d   :  { %v5918_v56 = vpop.eup %5917 }
 0x92e   :  { %v4920_v62 = vmul.f32 %v5918_v56, %v5916_v54  ;;  %v4938_v54 = vld [vmem:[#allocation6 + $0x68] sm:$0xff]  ;;  %v4940_v56 = vld [vmem:[#allocation6 + $0x78] sm:$0xff] }
 0x930   :  { %4924 = vst [vmem:[#allocation9 + $0x8] sm:$0xff] %v4920_v62  ;;  %5245 = vmatprep.mubr.f32.mxu0 %v4920_v62  ;;  %5316 = vmatprep.mubr.f32.mxu1 %v4920_v62 }
 0x931   :  { %5246 = vmatmul.mubr.f32.vlgmr.msra.gmra.mxu0 %v6663_v20  ;;  %5317 = vmatmul.mubr.f32.vlgmr.msra.gmra.mxu1 %v6663_v20 }
 0x932   :  { %5324 = vmatpush1.msra.mxu0 %v5049_v45  ;;  %5395 = vmatpush1.msra.mxu1 %v5051_v22  ;;  %v4939_v45 = vld [vmem:[#allocation6 + $0x70] sm:$0xff]  ;;  %v4930_v22 = vld [vmem:[#allocation6 + $0x28] sm:$0xff] }
 0x933   :  { %5325 = vmatprep.subr.mxu0 %v5042_v26  ;;  %5387 = vmatprep.mubr.f32.mxu0 %v4920_v62  ;;  %v4932_v26 = vld [vmem:[#allocation6 + $0x38] sm:$0xff] }
 0x934   :  { %5396 = vmatprep.subr.mxu1 %v5044_v40  ;;  %5458 = vmatprep.mubr.f32.mxu1 %v4920_v62  ;;  %v4937_v62 = vld [vmem:[#allocation6 + $0x60] sm:$0xff] }
 0x935   :  { %5326 = vmatpush1.msra.mxu0 %v5041_v30  ;;  %5397 = vmatpush1.msra.mxu1 %v5043_v6  ;;  %v4929_v40 = vld [vmem:[#allocation6 + $0x20] sm:$0xff]  ;;  %v4931_v30 = vld [vmem:[#allocation6 + $0x30] sm:$0xff]  ;;  %v5178_v6 = vld [vmem:[#allocation6 + $0x7e8] sm:$0xff] }
 0x936   :  { %5327 = vmatprep.subr.mxu0 %v5034_v44  ;;  %5398 = vmatprep.subr.mxu1 %v5036_v53  ;;  %v5180_v44 = vld [vmem:[#allocation6 + $0x7f8] sm:$0xff]  ;;  %v5177_v53 = vld [vmem:[#allocation6 + $0x7e0] sm:$0xff] }
 0x937   :  { %5328 = vmatpush1.msra.mxu0 %v5033_v39  ;;  %5399 = vmatpush1.msra.mxu1 %v5035_v18  ;;  %v5179_v39 = vld [vmem:[#allocation6 + $0x7f0] sm:$0xff]  ;;  %v5170_v18 = vld [vmem:[#allocation6 + $0x7a8] sm:$0xff] }
 0x938   :  { %5329 = vmatprep.subr.mxu0 %v5026_v15  ;;  %5400 = vmatprep.subr.mxu1 %v5028_v2  ;;  %v5172_v15 = vld [vmem:[#allocation6 + $0x7b8] sm:$0xff]  ;;  %v5169_v2 = vld [vmem:[#allocation6 + $0x7a0] sm:$0xff] }
 0x939   :  { %5330 = vmatpush1.msra.mxu0 %v5025_v41  ;;  %5401 = vmatpush1.msra.mxu1 %v5027_v55  ;;  %v5171_v41 = vld [vmem:[#allocation6 + $0x7b0] sm:$0xff]  ;;  %v5162_v55 = vld [vmem:[#allocation6 + $0x768] sm:$0xff] }
 0x93a   :  { %5331 = vmatprep.subr.mxu0 %v5018_v10  ;;  %5402 = vmatprep.subr.mxu1 %v5020_v17  ;;  %v5164_v10 = vld [vmem:[#allocation6 + $0x778] sm:$0xff]  ;;  %v5161_v17 = vld [vmem:[#allocation6 + $0x760] sm:$0xff] }
 0x93b   :  { %5332 = vmatpush1.msra.mxu0 %v5017_v4  ;;  %5403 = vmatpush1.msra.mxu1 %v5019_v33  ;;  %v5163_v4 = vld [vmem:[#allocation6 + $0x770] sm:$0xff]  ;;  %v5154_v33 = vld [vmem:[#allocation6 + $0x728] sm:$0xff] }
 0x93c   :  { %5333 = vmatprep.subr.mxu0 %v5010_v36  ;;  %5404 = vmatprep.subr.mxu1 %v5012_v50  ;;  %v5156_v36 = vld [vmem:[#allocation6 + $0x738] sm:$0xff]  ;;  %v5153_v50 = vld [vmem:[#allocation6 + $0x720] sm:$0xff] }
 0x93d   :  { %5334 = vmatpush1.msra.mxu0 %v5009_v5  ;;  %5405 = vmatpush1.msra.mxu1 %v5011_v1  ;;  %v5155_v5 = vld [vmem:[#allocation6 + $0x730] sm:$0xff]  ;;  %v5146_v1 = vld [vmem:[#allocation6 + $0x6e8] sm:$0xff] }
 0x93e   :  { %5335 = vmatprep.subr.mxu0 %v5002_v16  ;;  %5406 = vmatprep.subr.mxu1 %v5004_v51  ;;  %v5148_v16 = vld [vmem:[#allocation6 + $0x6f8] sm:$0xff]  ;;  %v5145_v51 = vld [vmem:[#allocation6 + $0x6e0] sm:$0xff] }
 0x93f   :  { %5336 = vmatpush1.msra.mxu0 %v5001_v28  ;;  %5407 = vmatpush1.msra.mxu1 %v5003_v35  ;;  %v5147_v28 = vld [vmem:[#allocation6 + $0x6f0] sm:$0xff]  ;;  %v5138_v35 = vld [vmem:[#allocation6 + $0x6a8] sm:$0xff] }
 0x940   :  { %5337 = vmatprep.subr.mxu0 %v4994_v3  ;;  %5408 = vmatprep.subr.mxu1 %v4996_v58  ;;  %v5140_v3 = vld [vmem:[#allocation6 + $0x6b8] sm:$0xff]  ;;  %v5137_v58 = vld [vmem:[#allocation6 + $0x6a0] sm:$0xff] }
 0x941   :  { %5338 = vmatpush1.msra.mxu0 %v4993_v60  ;;  %5409 = vmatpush1.msra.mxu1 %v4995_v8  ;;  %v5139_v60 = vld [vmem:[#allocation6 + $0x6b0] sm:$0xff]  ;;  %v5130_v8 = vld [vmem:[#allocation6 + $0x668] sm:$0xff] }
 0x942   :  { %5339 = vmatprep.subr.mxu0 %v4986_v52  ;;  %5410 = vmatprep.subr.mxu1 %v4988_v43  ;;  %v5132_v52 = vld [vmem:[#allocation6 + $0x678] sm:$0xff]  ;;  %v5129_v43 = vld [vmem:[#allocation6 + $0x660] sm:$0xff] }
 0x943   :  { %5340 = vmatpush1.msra.mxu0 %v4985_v13  ;;  %5411 = vmatpush1.msra.mxu1 %v4987_v19  ;;  %v5131_v13 = vld [vmem:[#allocation6 + $0x670] sm:$0xff]  ;;  %v5122_v19 = vld [vmem:[#allocation6 + $0x628] sm:$0xff] }
 0x944   :  { %5341 = vmatprep.subr.mxu0 %v4978_v31  ;;  %5412 = vmatprep.subr.mxu1 %v4980_v12  ;;  %v5124_v31 = vld [vmem:[#allocation6 + $0x638] sm:$0xff]  ;;  %v5121_v12 = vld [vmem:[#allocation6 + $0x620] sm:$0xff] }
 0x945   :  { %5342 = vmatpush1.msra.mxu0 %v4977_v63  ;;  %5413 = vmatpush1.msra.mxu1 %v4979_v46  ;;  %v5123_v63 = vld [vmem:[#allocation6 + $0x630] sm:$0xff]  ;;  %v5114_v46 = vld [vmem:[#allocation6 + $0x5e8] sm:$0xff] }
 0x946   :  { %5343 = vmatprep.subr.mxu0 %v4970_v61  ;;  %5414 = vmatprep.subr.mxu1 %v4972_v0  ;;  %v5116_v61 = vld [vmem:[#allocation6 + $0x5f8] sm:$0xff]  ;;  %v5113_v0 = vld [vmem:[#allocation6 + $0x5e0] sm:$0xff] }
 0x947   :  { %5344 = vmatpush1.msra.mxu0 %v4969_v29  ;;  %5415 = vmatpush1.msra.mxu1 %v4971_v48  ;;  %v5115_v29 = vld [vmem:[#allocation6 + $0x5f0] sm:$0xff]  ;;  %v5106_v48 = vld [vmem:[#allocation6 + $0x5a8] sm:$0xff] }
 0x948   :  { %5345 = vmatprep.subr.mxu0 %v4962_v27  ;;  %5416 = vmatprep.subr.mxu1 %v4964_v14  ;;  %v5108_v27 = vld [vmem:[#allocation6 + $0x5b8] sm:$0xff]  ;;  %v5105_v14 = vld [vmem:[#allocation6 + $0x5a0] sm:$0xff] }
 0x949   :  { %5346 = vmatpush1.msra.mxu0 %v4961_v49  ;;  %5417 = vmatpush1.msra.mxu1 %v4963_v11  ;;  %v5107_v49 = vld [vmem:[#allocation6 + $0x5b0] sm:$0xff]  ;;  %v5098_v11 = vld [vmem:[#allocation6 + $0x568] sm:$0xff] }
 0x94a   :  { %5347 = vmatprep.subr.mxu0 %v4954_v24  ;;  %5418 = vmatprep.subr.mxu1 %v4956_v57  ;;  %v5100_v24 = vld [vmem:[#allocation6 + $0x578] sm:$0xff]  ;;  %v5097_v57 = vld [vmem:[#allocation6 + $0x560] sm:$0xff] }
 0x94b   :  { %5348 = vmatpush1.msra.mxu0 %v4953_v47  ;;  %5419 = vmatpush1.msra.mxu1 %v4955_v7  ;;  %v5099_v47 = vld [vmem:[#allocation6 + $0x570] sm:$0xff]  ;;  %v5090_v7 = vld [vmem:[#allocation6 + $0x528] sm:$0xff] }
 0x94c   :  { %5349 = vmatprep.subr.mxu0 %v4946_v59  ;;  %5420 = vmatprep.subr.mxu1 %v4948_v38  ;;  %v5092_v59 = vld [vmem:[#allocation6 + $0x538] sm:$0xff]  ;;  %v5089_v38 = vld [vmem:[#allocation6 + $0x520] sm:$0xff] }
 0x94d   :  { %5350 = vmatpush1.msra.mxu0 %v4945_v9  ;;  %5421 = vmatpush1.msra.mxu1 %v4947_v34  ;;  %v5091_v9 = vld [vmem:[#allocation6 + $0x530] sm:$0xff]  ;;  %v5082_v34 = vld [vmem:[#allocation6 + $0x4e8] sm:$0xff] }
 0x94e   :  { %5351 = vmatprep.subr.mxu0 %v4938_v54  ;;  %5422 = vmatprep.subr.mxu1 %v4940_v56  ;;  %v5084_v54 = vld [vmem:[#allocation6 + $0x4f8] sm:$0xff]  ;;  %v5081_v56 = vld [vmem:[#allocation6 + $0x4e0] sm:$0xff] }
 0x94f   :  { %5352 = vmatpush1.msra.mxu0 %v4937_v62  ;;  %5423 = vmatpush1.msra.mxu1 %v4939_v45  ;;  %v5083_v62 = vld [vmem:[#allocation6 + $0x4f0] sm:$0xff]  ;;  %v5074_v45 = vld [vmem:[#allocation6 + $0x4a8] sm:$0xff] }
 0x950   :  { %5353 = vmatprep.subr.mxu0 %v4930_v22  ;;  %5424 = vmatprep.subr.mxu1 %v4932_v26  ;;  %v5076_v22 = vld [vmem:[#allocation6 + $0x4b8] sm:$0xff]  ;;  %v5073_v26 = vld [vmem:[#allocation6 + $0x4a0] sm:$0xff] }
 0x951   :  { %5354 = vmatpush1.msra.mxu0 %v4929_v40  ;;  %5425 = vmatpush1.msra.mxu1 %v4931_v30  ;;  %v5075_v40 = vld [vmem:[#allocation6 + $0x4b0] sm:$0xff]  ;;  %v5066_v30 = vld [vmem:[#allocation6 + $0x468] sm:$0xff] }
 0x952   :  { %5355 = vmatprep.subr.mxu0 %v5178_v6  ;;  %5426 = vmatprep.subr.mxu1 %v5180_v44  ;;  %v5068_v6 = vld [vmem:[#allocation6 + $0x478] sm:$0xff]  ;;  %v5065_v44 = vld [vmem:[#allocation6 + $0x460] sm:$0xff] }
 0x953   :  { %5356 = vmatpush2.msra.mxu0 %v5177_v53  ;;  %5427 = vmatpush2.msra.mxu1 %v5179_v39  ;;  %v5067_v53 = vld [vmem:[#allocation6 + $0x470] sm:$0xff]  ;;  %v5058_v39 = vld [vmem:[#allocation6 + $0x428] sm:$0xff] }
 0x954   :  { %5357 = vmatprep.subr.mxu0 %v5170_v18  ;;  %5428 = vmatprep.subr.mxu1 %v5172_v15  ;;  %v5060_v18 = vld [vmem:[#allocation6 + $0x438] sm:$0xff]  ;;  %v5057_v15 = vld [vmem:[#allocation6 + $0x420] sm:$0xff] }
 0x955   :  { %5358 = vmatpush2.msra.mxu0 %v5169_v2  ;;  %5429 = vmatpush2.msra.mxu1 %v5171_v41  ;;  %v5059_v2 = vld [vmem:[#allocation6 + $0x430] sm:$0xff] }
 0x956   :  { %5359 = vmatprep.subr.mxu0 %v5162_v55  ;;  %5430 = vmatprep.subr.mxu1 %v5164_v10  ;;  %v6764_v55 = vld [vmem:[#allocation24_spill] sm:$0xff] }
 0x957   :  { %5360 = vmatpush2.msra.mxu0 %v5161_v17  ;;  %5431 = vmatpush2.msra.mxu1 %v5163_v4 }
 0x958   :  { %5361 = vmatprep.subr.mxu0 %v5154_v33  ;;  %5432 = vmatprep.subr.mxu1 %v5156_v36  ;;  %v6765_v33 = vld [vmem:[#allocation26_spill] sm:$0xff] }
 0x959   :  { %5362 = vmatpush2.msra.mxu0 %v5153_v50  ;;  %5433 = vmatpush2.msra.mxu1 %v5155_v5 }
 0x95a   :  { %5363 = vmatprep.subr.mxu0 %v5146_v1  ;;  %5434 = vmatprep.subr.mxu1 %v5148_v16  ;;  %v6766_v16 = vld [vmem:[#allocation27_spill] sm:$0xff] }
 0x95b   :  { %5364 = vmatpush2.msra.mxu0 %v5145_v51  ;;  %5435 = vmatpush2.msra.mxu1 %v5147_v28  ;;  %v6767_v28 = vld [vmem:[#allocation25_spill] sm:$0xff] }
 0x95c   :  { %5365 = vmatprep.subr.mxu0 %v5138_v35  ;;  %5436 = vmatprep.subr.mxu1 %v5140_v3 }
 0x95d   :  { %5366 = vmatpush2.msra.mxu0 %v5137_v58  ;;  %5437 = vmatpush2.msra.mxu1 %v5139_v60 }
 0x95e   :  { %5367 = vmatprep.subr.mxu0 %v5130_v8  ;;  %5438 = vmatprep.subr.mxu1 %v5132_v52 }
 0x95f   :  { %5368 = vmatpush2.msra.mxu0 %v5129_v43  ;;  %5439 = vmatpush2.msra.mxu1 %v5131_v13 }
 0x960   :  { %5369 = vmatprep.subr.mxu0 %v5122_v19  ;;  %5440 = vmatprep.subr.mxu1 %v5124_v31 }
 0x961   :  { %5370 = vmatpush2.msra.mxu0 %v5121_v12  ;;  %5441 = vmatpush2.msra.mxu1 %v5123_v63 }
 0x962   :  { %5371 = vmatprep.subr.mxu0 %v5114_v46  ;;  %5442 = vmatprep.subr.mxu1 %v5116_v61 }
 0x963   :  { %5372 = vmatpush2.msra.mxu0 %v5113_v0  ;;  %5443 = vmatpush2.msra.mxu1 %v5115_v29 }
 0x964   :  { %5373 = vmatprep.subr.mxu0 %v5106_v48  ;;  %5444 = vmatprep.subr.mxu1 %v5108_v27 }
 0x965   :  { %5374 = vmatpush2.msra.mxu0 %v5105_v14  ;;  %5445 = vmatpush2.msra.mxu1 %v5107_v49 }
 0x966   :  { %5375 = vmatprep.subr.mxu0 %v5098_v11  ;;  %5446 = vmatprep.subr.mxu1 %v5100_v24 }
 0x967   :  { %5376 = vmatpush2.msra.mxu0 %v5097_v57  ;;  %5447 = vmatpush2.msra.mxu1 %v5099_v47 }
 0x968   :  { %5377 = vmatprep.subr.mxu0 %v5090_v7  ;;  %5448 = vmatprep.subr.mxu1 %v5092_v59 }
 0x969   :  { %5378 = vmatpush2.msra.mxu0 %v5089_v38  ;;  %5449 = vmatpush2.msra.mxu1 %v5091_v9 }
 0x96a   :  { %5379 = vmatprep.subr.mxu0 %v5082_v34  ;;  %5450 = vmatprep.subr.mxu1 %v5084_v54 }
 0x96b   :  { %5380 = vmatpush2.msra.mxu0 %v5081_v56  ;;  %5451 = vmatpush2.msra.mxu1 %v5083_v62 }
 0x96c   :  { %5381 = vmatprep.subr.mxu0 %v5074_v45  ;;  %5452 = vmatprep.subr.mxu1 %v5076_v22 }
 0x96d   :  { %5382 = vmatpush2.msra.mxu0 %v5073_v26  ;;  %5453 = vmatpush2.msra.mxu1 %v5075_v40 }
 0x96e   :  { %5383 = vmatprep.subr.mxu0 %v5066_v30  ;;  %5454 = vmatprep.subr.mxu1 %v5068_v6 }
 0x96f   :  { %5384 = vmatpush2.msra.mxu0 %v5065_v44  ;;  %5455 = vmatpush2.msra.mxu1 %v5067_v53 }
 0x970   :  { %5385 = vmatprep.subr.mxu0 %v5058_v39  ;;  %5456 = vmatprep.subr.mxu1 %v5060_v18 }
 0x971   :  { %5386 = vmatpush2.msra.mxu0 %v5057_v15  ;;  %5457 = vmatpush2.msra.mxu1 %v5059_v2 }
 0x972   :  { %5388 = vmatmul.mubr.f32.vlgmr.msra.gmra.mxu0 %v6663_v20  ;;  %5459 = vmatmul.mubr.f32.vlgmr.msra.gmra.mxu1 %v6663_v20 }
 0x9f1   :  { %v5247_v41 = vpop.f32.mrf.mxu0  ;;  %v5318_v50 = vpop.f32.mrf.mxu1 }
 0x9f2   :  { %v5469_v10 = vadd.f32 %v5247_v41, %v6764_v55  ;;  %v5471_v35 = vadd.f32 %v5318_v50, %v6767_v28 }
 0x9f3   :  { %v5249_v17 = vpop.f32.mrf.mxu0  ;;  %v5320_v1 = vpop.f32.mrf.mxu1 }
 0x9f4   :  { %v5678_v4 = vmul.f32 -1.442695, %v5469_v10  ;;  %v5470_v36 = vadd.f32 %v5249_v17, %v6765_v33  ;;  %v5472_v51 = vadd.f32 %v5320_v1, %v6766_v16 }
 0x9f6   :  { %5919 = vpow2.f32 %v5678_v4  ;;  %v5679_v5 = vmul.f32 -1.442695, %v5470_v36  ;;  %v5680_v3 = vmul.f32 -1.442695, %v5472_v51 }
 0x9f8   :  { %5921 = vpow2.f32 %v5679_v5 }
 0x9f9   :  { %5923 = vtanh.f32 %v5471_v35 }
 0x9fa   :  { %5925 = vpow2.f32 %v5680_v3 }
 0xa03   :  { %v5920_v58 = vpop.eup %5919 }
 0xa04   :  { %v5484_v60 = vadd.f32 1.0, %v5920_v58 }
 0xa05   :  { %v5922_v20 = vpop.eup %5921 }
 0xa06   :  { %5927 = vrcp.f32 %v5484_v60  ;;  %v5490_v8 = vadd.f32 1.0, %v5922_v20  ;;  %v5924_v52 = vpop.eup %5923 }
 0xa07   :  { %v5926_v43 = vpop.eup %5925 }
 0xa08   :  { %5929 = vrcp.f32 %v5490_v8  ;;  %v5497_v12 = vadd.f32 1.0, %v5926_v43 }
 0xa0a   :  { %5931 = vrcp.f32 %v5497_v12 }
 0xa13   :  { %v5928_v13 = vpop.eup %5927 }
 0xa14   :  { %v5501_v19 = vmul.f32 %v5928_v13, %v5924_v52 }
 0xa15   :  { %v5930_v31 = vpop.eup %5929 }
 0xa16   :  { %v5500_v63 = vmul.f32 %v5930_v31, %v6660_v42 }
 0xa17   :  { %v5932_v61 = vpop.eup %5931 }
 0xa18   :  { %v5502_v46 = vadd.f32 %v5501_v19, %v5500_v63 }
 0xa1a   :  { %5933 = vtanh.f32 %v5502_v46  ;;  %5535 = vst [vmem:[#allocation12] sm:$0xff] %v5502_v46 }
 0xa27   :  { %v5934_v0 = vpop.eup %5933 }
 0xa28   :  { %v5504_v29 = vmul.f32 %v5934_v0, %v5932_v61 }
 0xa2a   :  { %5530 = vst [vmem:[#allocation8 + $0x38] sm:$0xff] %v5504_v29  ;;  %5532 = vst [vmem:[#allocation11] sm:$0xff] %v5504_v29 }
 0xa2b   :  { %6002 = shalt.err (!%p5999_p0)
}
 0xa2c   :  { %s6087_s21 = smov 128   ;;  %s6088_s22 = smov 8   ;;  %v6768_v42 = vld [vmem:[#allocation28_spill] sm:$0xff]  ;;  %v6769_v14 = vld [vmem:[#allocation30_spill] sm:$0xff]  ;;  %v6770_v9 = vld [vmem:[#allocation31_spill] sm:$0xff] }
 0xa2d   :  { %5549 = dma.vmem_to_hbm [thread:$0]  %s5544_s3, 1024, %s6726_s6, [#allocation5], %s6087_s21, %s6087_s21, %s6088_s22   ;;  %v442_v48 = vadd.f32 %v6768_v42, %v6283_v21  ;;  %v444_v49 = vadd.f32 %v6769_v14, %v6291_v32  ;;  %v557_v34 = vadd.f32 %v6770_v9, %v6299_v25  ;;  %v6771_v56 = vld [vmem:[#allocation29_spill] sm:$0xff] }
 0xa2e   :  { %v555_v21 = vadd.f32 %v6771_v56, %v6296_v37  ;;  %s6089_s6 = smov [#allocation12]  }
 0xa2f   :  { %s5579_s25 = sshll.u32 %s6089_s6, 4  ;;  %s5580_s25 = int_to_ptr.vmem [resolvable:$true] %s5579_s25 }
 0xa30   :  { %s6011_s26 = scalar_lea.vmem %s5580_s25, 256  ;;  %p6016_p2 = scmp.lt.s32.totalorder %s5580_s25, %s5580_s25 }
 0xa31   :  { %p6012_p1 = scmp.ne.s32.totalorder %s5580_s25, %s6011_s26  ;;  %p6017_p3 = scmp.lt.s32.totalorder %s6011_s26, %s6011_s26 }
 0xa32   :  { %v5389_v27 = vpop.f32.mrf.mxu0  ;;  %v5460_v7 = vpop.f32.mrf.mxu1 }
 0xa33   :  { %v5477_v11 = vadd.f32 %v5389_v27, %v442_v48  ;;  %v5479_v62 = vadd.f32 %v5460_v7, %v555_v21  ;;  %p6018_p4 = por %p6017_p3, %p6016_p2 }
 0xa34   :  { %v5391_v24 = vpop.f32.mrf.mxu0  ;;  %v5462_v38 = vpop.f32.mrf.mxu1 }
 0xa35   :  { %v5681_v57 = vmul.f32 -1.442695, %v5477_v11  ;;  %v5478_v47 = vadd.f32 %v5391_v24, %v444_v49  ;;  %v5480_v54 = vadd.f32 %v5462_v38, %v557_v34  ;;  %p6019_p5 = pnand %p6018_p4, %p6012_p1 }
 0xa37   :  { %5935 = vpow2.f32 %v5681_v57  ;;  %v5682_v59 = vmul.f32 -1.442695, %v5478_v47  ;;  %v5683_v45 = vmul.f32 -1.442695, %v5480_v54 }
 0xa39   :  { %5937 = vpow2.f32 %v5682_v59 }
 0xa3a   :  { %5939 = vtanh.f32 %v5479_v62 }
 0xa3b   :  { %5941 = vpow2.f32 %v5683_v45 }
 0xa44   :  { %v5936_v22 = vpop.eup %5935 }
 0xa45   :  { %v5508_v32 = vadd.f32 1.0, %v5936_v22 }
 0xa46   :  { %v5938_v26 = vpop.eup %5937 }
 0xa47   :  { %5943 = vrcp.f32 %v5508_v32  ;;  %v5514_v40 = vadd.f32 1.0, %v5938_v26  ;;  %v5940_v30 = vpop.eup %5939 }
 0xa48   :  { %v5942_v6 = vpop.eup %5941 }
 0xa49   :  { %5945 = vrcp.f32 %v5514_v40  ;;  %v5521_v25 = vadd.f32 1.0, %v5942_v6 }
 0xa4b   :  { %5947 = vrcp.f32 %v5521_v25 }
 0xa54   :  { %v5944_v44 = vpop.eup %5943 }
 0xa55   :  { %v5525_v53 = vmul.f32 %v5944_v44, %v5940_v30 }
 0xa56   :  { %v5946_v39 = vpop.eup %5945 }
 0xa57   :  { %v5524_v37 = vmul.f32 %v5946_v39, %v6675_v23 }
 0xa59   :  { %v5526_v18 = vadd.f32 %v5525_v53, %v5524_v37 }
 0xa5b   :  { %5949 = vtanh.f32 %v5526_v18  ;;  %5537 = vst [vmem:[#allocation12 + $0x8] sm:$0xff] %v5526_v18 }
 0xa5c   :  { %6022 = shalt.err (!%p6019_p5)
}
 0xa5d   :  { %5585 = dma.vmem_to_hbm [thread:$0]  %s5580_s25, 256, %s6729_s9, [#allocation13], %s6087_s21, %s6087_s21, %s6088_s22   ;;  %v5948_v23 = vpop.eup %5947 }
 0xa5e   :  { %s6090_s29 = smov [#allocation9]   ;;  %s6091_s10 = smov [#allocation11]  }
 0xa5f   :  { %s5555_s30 = sshll.u32 %s6090_s29, 4  ;;  %s5567_s11 = sshll.u32 %s6091_s10, 4  ;;  %s5556_s30 = int_to_ptr.vmem [resolvable:$true] %s5555_s30  ;;  %s5568_s11 = int_to_ptr.vmem [resolvable:$true] %s5567_s11 }
 0xa60   :  { %s6031_s12 = scalar_lea.vmem %s5556_s30, 1024  ;;  %p6036_p7 = scmp.lt.s32.totalorder %s5556_s30, %s5556_s30 }
 0xa61   :  { %p6032_p6 = scmp.ne.s32.totalorder %s5556_s30, %s6031_s12  ;;  %p6037_p8 = scmp.lt.s32.totalorder %s6031_s12, %s6031_s12 }
 0xa63   :  { %p6038_p9 = por %p6037_p8, %p6036_p7 }
 0xa65   :  { %p6039_p10 = pnand %p6038_p9, %p6032_p6 }
 0xa68   :  { %v5950_v15 = vpop.eup %5949 }
 0xa69   :  { %v5528_v2 = vmul.f32 %v5950_v15, %v5948_v23 }
 0xa6b   :  { %5531 = vst [vmem:[#allocation9] sm:$0xff] %v5528_v2  ;;  %5534 = vst [vmem:[#allocation11 + $0x8] sm:$0xff] %v5528_v2 }
 0xa6c   :  { %6042 = shalt.err (!%p6039_p10)
}
 0xa6d   :  { %5561 = dma.vmem_to_hbm [thread:$0]  %s5556_s30, 1024, %s6727_s7, [#allocation10], %s6087_s21, %s6087_s21, %s6088_s22  }
 0xa6e   :  { %s6051_s0 = scalar_lea.vmem %s5568_s11, 256  ;;  %p6056_p12 = scmp.lt.s32.totalorder %s5568_s11, %s5568_s11 }
 0xa6f   :  { %p6052_p11 = scmp.ne.s32.totalorder %s5568_s11, %s6051_s0  ;;  %p6057_p13 = scmp.lt.s32.totalorder %s6051_s0, %s6051_s0 }
 0xa71   :  { %p6058_p0 = por %p6057_p13, %p6056_p12 }
 0xa73   :  { %p6059_p1 = pnand %p6058_p0, %p6052_p11 }
 0xa75   :  { %6062 = shalt.err (!%p6059_p1)
}
 0xa76   :  { %5573 = dma.vmem_to_hbm [thread:$0]  %s5568_s11, 256, %s6728_s8, [#allocation10], %s6087_s21, %s6087_s21, %s6088_s22  }
 0xa77   :  { %6075 = dma.done.wait [#allocation5], 1024  }
 0xa78   :  { %6076 = vsyncadd [#allocation5], 4294966272 }
 0xa79   :  { %6077 = dma.done.wait [#allocation10], 1280  }
 0xa7a   :  { %6078 = vsyncadd [#allocation10], 4294966016 }
 0xa7b   :  { %6079 = dma.done.wait [#allocation13], 256  }
 0xa7c   :  { %6080 = vsyncadd [#allocation13], 4294967040 }
 0xa7d   :  { %5598 = vsyncpa [#allocation4], 1 }
 0xa7e   :  { %5599 = vsyncpa [#allocation7], 1 }
 0xa7f   :  { %5600 = vsyncpa [#allocation5], 1 }
 0xa80   :  { %5601 = vsyncpa [#allocation10], 1 }
 0xa81   :  { %5602 = vsyncpa [#allocation13], 1 }

</bundles_post_ra>
